<compile_context>
chip_gen: v7x
topology: tpu7x:2x2x1
jax: 0.10.0
libtpu: 0.0.40
codegen_flags: <defaults>
</compile_context>

<pallas_src>
import jax
import jax.numpy as jnp
import numpy as np
from jax.experimental import pallas as pl
from jax.experimental.pallas import tpu as pltpu

TN_EMBED = 32              # tn_embed_dim
MPS_SITES = 3              # mps_input_dim
BOND = 16                  # mps_bond_dim
OUT_DIM = 64               # mps_output_dim
HID = 128                  # adapter hidden width
FEAT = TN_EMBED            # MPS feature dim per site
K_TOTAL = TN_EMBED ** 3    # 32768 = flattened TN tensor
TK = 16384                 # K tile: int8 w1 tile = 2 MiB (4 MiB double-buffered)
LN_EPS = 1e-5
BB = BOND * BOND           # 256


def _tn_mps_kernel(flat_ref, w1q_ref, w1s_ref, b1_ref, gamma_ref, beta_ref,
                   w2_ref, b2_ref, bd_ref, fcw_ref, fcb_ref,
                   out_ref, acc_ref):
    k = pl.program_id(0)

    @pl.when(k == 0)
    def _():
        acc_ref[...] = jnp.zeros_like(acc_ref)

    # ---- hot path: (B, TK)bf16 @ (TK, 128)int8->bf16 with f32 accumulation.
    # The int8 per-column scale is constant across K, so it is applied once in
    # the epilogue instead of per tile (exact).
    acc_ref[...] += jnp.dot(flat_ref[...], w1q_ref[...].astype(jnp.bfloat16),
                            preferred_element_type=jnp.float32)

    @pl.when(k == pl.num_programs(0) - 1)
    def _():
        # adapter tail: dequant scale + bias + ReLU + LayerNorm(128)
        a1 = jnp.maximum(acc_ref[...] * w1s_ref[...] + b1_ref[...], 0.0)   # (B,128)
        mu = jnp.mean(a1, axis=-1, keepdims=True)
        var = jnp.mean((a1 - mu) ** 2, axis=-1, keepdims=True)
        ln = (a1 - mu) * jax.lax.rsqrt(var + LN_EPS) * gamma_ref[...] + beta_ref[...]

        # second Linear: one (B,128)@(128,128) dot covering all three sites
        # (columns 0..95 = real w2, 96..127 zero-padded).
        a2 = jnp.maximum(
            jnp.dot(ln, w2_ref[...], preferred_element_type=jnp.float32)
            + b2_ref[...], 0.0)                                            # (B,128)

        # MPS contraction: one (B,128)@(128,768) dot against the block-diag
        # matrix holding [c0@rep | c1 | c2@grp.T] -> [res_rep | mcol | t2rep].
        z = jnp.dot(a2, bd_ref[...], preferred_element_type=jnp.float32)  # (B,768)
        prod = z[:, 0:BB] * z[:, BB:2 * BB] * z[:, 2 * BB:3 * BB]          # (B,256)
        scalar = jnp.sum(prod, axis=-1, keepdims=True)                     # (B,1)

        # fc: Linear(1, 64)
        out_ref[...] = scalar * fcw_ref[...] + fcb_ref[...]                # (B,64)


def integrated_tn_mps(flat_bf16, params):
    """flat_bf16: (B, 32768) bf16 flattened TN tensors. Returns (B, 64) f32."""
    (w1q, w1s, b1, gamma, beta, w2cat, b2cat, bd, fcw, fcb) = params
    B = flat_bf16.shape[0]
    assert flat_bf16.shape[1] == K_TOTAL and K_TOTAL % TK == 0
    n_k = K_TOTAL // TK

    grid_spec = pltpu.PrefetchScalarGridSpec(
        num_scalar_prefetch=0,
        grid=(n_k,),
        in_specs=[
            pl.BlockSpec((B, TK), lambda k: (0, k)),                  # flat (bf16)
            pl.BlockSpec((TK, HID), lambda k: (k, 0)),                # w1 (int8)
            pl.BlockSpec((1, HID), lambda k: (0, 0)),                 # w1 per-col scales
            pl.BlockSpec((1, HID), lambda k: (0, 0)),                 # b1
            pl.BlockSpec((1, HID), lambda k: (0, 0)),                 # gamma
            pl.BlockSpec((1, HID), lambda k: (0, 0)),                 # beta
            pl.BlockSpec((HID, HID), lambda k: (0, 0)),               # w2 (lane-padded)
            pl.BlockSpec((1, HID), lambda k: (0, 0)),                 # b2 (lane-padded)
            pl.BlockSpec((HID, 3 * BB), lambda k: (0, 0)),            # block-diag cores
            pl.BlockSpec((1, OUT_DIM), lambda k: (0, 0)),             # fc weight row
            pl.BlockSpec((1, OUT_DIM), lambda k: (0, 0)),             # fc bias
        ],
        out_specs=pl.BlockSpec((B, OUT_DIM), lambda k: (0, 0)),
        scratch_shapes=[pltpu.VMEM((B, HID), jnp.float32)],
    )

    return pl.pallas_call(
        _tn_mps_kernel,
        out_shape=jax.ShapeDtypeStruct((B, OUT_DIM), jnp.float32),
        grid_spec=grid_spec,
        compiler_params=pltpu.CompilerParams(
            dimension_semantics=("arbitrary",),
            vmem_limit_bytes=32 * 1024 * 1024),
    )(flat_bf16, w1q, w1s, b1, gamma, beta, w2cat, b2cat, bd, fcw, fcb)


def init_params(key):
    """Deterministic synthetic parameters (PyTorch-default-style scales)."""
    ks = jax.random.split(key, 9)
    lim1 = 1.0 / np.sqrt(K_TOTAL)
    w1 = jax.random.uniform(ks[0], (K_TOTAL, HID), jnp.float32, -lim1, lim1)
    b1 = jax.random.uniform(ks[1], (1, HID), jnp.float32, -lim1, lim1)
    gamma = jnp.ones((1, HID), jnp.float32)         # LayerNorm init
    beta = jnp.zeros((1, HID), jnp.float32)
    lim2 = 1.0 / np.sqrt(HID)
    w2 = jax.random.uniform(ks[2], (HID, MPS_SITES * FEAT), jnp.float32, -lim2, lim2)
    b2 = jax.random.uniform(ks[3], (1, MPS_SITES * FEAT), jnp.float32, -lim2, lim2)
    cores = jax.random.normal(ks[4], (MPS_SITES, BOND, FEAT, BOND), jnp.float32)
    start = jax.random.normal(ks[5], (1, BOND), jnp.float32)
    end = jax.random.normal(ks[6], (BOND, 1), jnp.float32)
    fcw = jax.random.uniform(ks[7], (1, OUT_DIM), jnp.float32, -1.0, 1.0)  # Linear(1,64)
    fcb = jax.random.uniform(ks[8], (1, OUT_DIM), jnp.float32, -1.0, 1.0)

    # ---- kernel-friendly forms ----
    # int8 symmetric quantization of w1 with per-output-column scales.
    w1s = jnp.max(jnp.abs(w1), axis=0, keepdims=True) / 127.0              # (1,128)
    w1q = jnp.clip(jnp.round(w1 / w1s), -127, 127).astype(jnp.int8)        # (32768,128)

    # second Linear lane-padded to 128 columns (one MXU dot for all 3 sites).
    pad = HID - MPS_SITES * FEAT
    w2cat = jnp.concatenate([w2, jnp.zeros((HID, pad), jnp.float32)], axis=1)   # (128,128)
    b2cat = jnp.concatenate([b2, jnp.zeros((1, pad), jnp.float32)], axis=1)     # (1,128)

    # start folded into core0: c0[f,r] = sum_d start[d] * core0[d,f,r]
    c0 = jnp.einsum('d,dfr->fr', start[0], cores[0])                       # (32,16)
    # core1 with column index r*BOND + d
    c1 = jnp.transpose(cores[1], (1, 2, 0)).reshape(FEAT, BB)              # (32,256)
    # end folded into core2: c2[f,d] = sum_r core2[d,f,r] * end[r]
    c2 = jnp.einsum('dfr,r->fd', cores[2], end[:, 0])                      # (32,16)
    # fold the lane-replicate / group-sum constants into the cores (exact):
    rep = np.tile(np.eye(BOND, dtype=np.float32), (1, BOND))               # (16,256)
    grp = (np.arange(BB)[:, None] // BOND
           == np.arange(BOND)[None, :]).astype(np.float32)                 # (256,16)
    c0rep = c0 @ jnp.asarray(rep)                                          # (32,256)
    c2g = c2 @ jnp.asarray(grp.T)                                          # (32,256)

    # block-diagonal [c0rep | c1 | c2g] aligned with the 3 site-feature blocks
    bd = jnp.zeros((HID, 3 * BB), jnp.float32)
    bd = bd.at[0:FEAT, 0:BB].set(c0rep)
    bd = bd.at[FEAT:2 * FEAT, BB:2 * BB].set(c1)
    bd = bd.at[2 * FEAT:3 * FEAT, 2 * BB:3 * BB].set(c2g)

    kern = (w1q, w1s, b1, gamma, beta, w2cat, b2cat, bd, fcw, fcb)
    ref = (w1, b1, gamma, beta, w2, b2, cores, start, end, fcw, fcb)
    return kern, ref


def reference(flat, params):
    """Pure-JAX replica of IntegratedTN_MPS.forward semantics (f32 throughout)."""
    (w1, b1, gamma, beta, w2, b2, cores, start, end, fcw, fcb) = params
    B = flat.shape[0]
    a1 = jnp.maximum(flat @ w1 + b1, 0.0)
    mu = a1.mean(-1, keepdims=True)
    var = ((a1 - mu) ** 2).mean(-1, keepdims=True)
    ln = (a1 - mu) / jnp.sqrt(var + LN_EPS) * gamma + beta
    a2 = jnp.maximum(ln @ w2 + b2, 0.0)
    x = a2.reshape(B, MPS_SITES, FEAT)
    res = jnp.broadcast_to(start[None], (B, 1, BOND))
    for i in range(MPS_SITES):
        M = jnp.einsum('bf,dfr->bdr', x[:, i, :], cores[i])
        res = jnp.einsum('bij,bjk->bik', res, M)
    scalar = jnp.einsum('bij,jk->bik', res, end).reshape(B, 1)
    return scalar @ fcw + fcb


if __name__ == "__main__":
    B = 8   # multiple of 8 -> full sublanes in the (B, .) tiles
    key = jax.random.PRNGKey(0)
    k_in, k_par = jax.random.split(key)

    # Stand-in for TripleCompressor.text_to_tensor: 3 "text byte" vectors of
    # length 32 per sample, values in the printable-ASCII range.
    bytes_spo = jax.random.randint(
        k_in, (B, MPS_SITES, TN_EMBED), 32, 127).astype(jnp.float32)

    # TripleCompressor.compress_triplet: s (x) p (x) o outer product, flattened.
    flat_f32 = jnp.einsum('bi,bj,bk->bijk',
                          bytes_spo[:, 0], bytes_spo[:, 1],
                          bytes_spo[:, 2]).reshape(B, K_TOTAL)
    flat_bf16 = flat_f32.astype(jnp.bfloat16)   # cast once on the host

    kern_params, ref_params = init_params(k_par)

    out = integrated_tn_mps(flat_bf16, kern_params)
    out = jax.block_until_ready(out)
    assert out.shape == (B, OUT_DIM)

    ref = reference(flat_f32, ref_params)
    scale = float(np.max(np.abs(np.asarray(ref)))) + 1e-6
    np.testing.assert_allclose(np.asarray(out), np.asarray(ref),
                               rtol=5e-2, atol=5e-2 * scale)
    print("KERNEL_OK")
</pallas_src>

<mosaic_0001>
module attributes {stable_mosaic.version = 11 : i64} {
  func.func @_tn_mps_kernel(%arg0: i32, %arg1: memref<8x16384xbf16, #tpu.memory_space<vmem>>, %arg2: memref<16384x128xi8, #tpu.memory_space<vmem>>, %arg3: memref<1x128xf32, #tpu.memory_space<vmem>>, %arg4: memref<1x128xf32, #tpu.memory_space<vmem>>, %arg5: memref<1x128xf32, #tpu.memory_space<vmem>>, %arg6: memref<1x128xf32, #tpu.memory_space<vmem>>, %arg7: memref<128x128xf32, #tpu.memory_space<vmem>>, %arg8: memref<1x128xf32, #tpu.memory_space<vmem>>, %arg9: memref<128x768xf32, #tpu.memory_space<vmem>>, %arg10: memref<1x64xf32, #tpu.memory_space<vmem>>, %arg11: memref<1x64xf32, #tpu.memory_space<vmem>>, %arg12: memref<8x64xf32, #tpu.memory_space<vmem>>, %arg13: memref<8x128xf32, #tpu.memory_space<vmem>>) attributes {dimension_semantics = [#tpu.dimension_semantics<arbitrary>], iteration_bounds = array<i64: 2>, scalar_prefetch = 0 : i64, scratch_operands = 1 : i64, tpu.core_type = #tpu.core_type<tc>, window_params = [{transform_indices = @transform_0, window_bounds = array<i64: 8, 16384>}, {transform_indices = @transform_1, window_bounds = array<i64: 16384, 128>}, {pipeline_mode = #tpu.pipeline_mode<synchronous>, transform_indices = @transform_2, window_bounds = array<i64: 1, 128>}, {pipeline_mode = #tpu.pipeline_mode<synchronous>, transform_indices = @transform_3, window_bounds = array<i64: 1, 128>}, {pipeline_mode = #tpu.pipeline_mode<synchronous>, transform_indices = @transform_4, window_bounds = array<i64: 1, 128>}, {pipeline_mode = #tpu.pipeline_mode<synchronous>, transform_indices = @transform_5, window_bounds = array<i64: 1, 128>}, {pipeline_mode = #tpu.pipeline_mode<synchronous>, transform_indices = @transform_6, window_bounds = array<i64: 128, 128>}, {pipeline_mode = #tpu.pipeline_mode<synchronous>, transform_indices = @transform_7, window_bounds = array<i64: 1, 128>}, {pipeline_mode = #tpu.pipeline_mode<synchronous>, transform_indices = @transform_8, window_bounds = array<i64: 128, 768>}, {pipeline_mode = #tpu.pipeline_mode<synchronous>, transform_indices = @transform_9, window_bounds = array<i64: 1, 64>}, {pipeline_mode = #tpu.pipeline_mode<synchronous>, transform_indices = @transform_10, window_bounds = array<i64: 1, 64>}, {pipeline_mode = #tpu.pipeline_mode<synchronous>, transform_indices = @transform_11, window_bounds = array<i64: 8, 64>}]} {
    %c0_i32 = arith.constant 0 : i32
    %0 = arith.cmpi eq, %arg0, %c0_i32 : i32
    %1 = arith.extui %0 : i1 to i32
    %c0_i32_0 = arith.constant 0 : i32
    %2 = arith.cmpi ne, %1, %c0_i32_0 : i32
    scf.if %2 {
      %cst_9 = arith.constant 0.000000e+00 : f32
      %13 = vector.broadcast %cst_9 : f32 to vector<8x128xf32>
      %c0_10 = arith.constant 0 : index
      %c0_11 = arith.constant 0 : index
      %14 = vector.load %arg13[%c0_10, %c0_11] : memref<8x128xf32, #tpu.memory_space<vmem>>, vector<8x128xf32>
      tpu.vector_store %arg13[%c0_10, %c0_11], %13 {strides = array<i32>} : memref<8x128xf32, #tpu.memory_space<vmem>>, vector<8x128xf32>,
    } else {
    }
    %c0 = arith.constant 0 : index
    %c0_1 = arith.constant 0 : index
    %3 = vector.load %arg13[%c0, %c0_1] : memref<8x128xf32, #tpu.memory_space<vmem>>, vector<8x128xf32>
    %c0_2 = arith.constant 0 : index
    %c0_3 = arith.constant 0 : index
    %4 = vector.load %arg1[%c0_2, %c0_3] : memref<8x16384xbf16, #tpu.memory_space<vmem>>, vector<8x16384xbf16>
    %c0_4 = arith.constant 0 : index
    %c0_5 = arith.constant 0 : index
    %5 = vector.load %arg2[%c0_4, %c0_5] : memref<16384x128xi8, #tpu.memory_space<vmem>>, vector<16384x128xi8>
    %6 = arith.sitofp %5 : vector<16384x128xi8> to vector<16384x128xbf16>
    %cst = arith.constant dense<0.000000e+00> : vector<8x128xf32>
    %7 = tpu.matmul %4, %6, %cst {dimension_numbers = #tpu.dot_dimension_numbers<[1], [0], [0], [1], [0, 0, 1, 1], [], []>} : vector<8x16384xbf16>, vector<16384x128xbf16>, vector<8x128xf32> -> vector<8x128xf32>
    %8 = arith.addf %3, %7 : vector<8x128xf32>
    %c0_6 = arith.constant 0 : index
    %c0_7 = arith.constant 0 : index
    %9 = vector.load %arg13[%c0_6, %c0_7] : memref<8x128xf32, #tpu.memory_space<vmem>>, vector<8x128xf32>
    tpu.vector_store %arg13[%c0_6, %c0_7], %8 {strides = array<i32>} : memref<8x128xf32, #tpu.memory_space<vmem>>, vector<8x128xf32>,
    %c1_i32 = arith.constant 1 : i32
    %10 = arith.cmpi eq, %arg0, %c1_i32 : i32
    %11 = arith.extui %10 : i1 to i32
    %c0_i32_8 = arith.constant 0 : i32
    %12 = arith.cmpi ne, %11, %c0_i32_8 : i32
    scf.if %12 {
      %c0_9 = arith.constant 0 : index
      %c0_10 = arith.constant 0 : index
      %13 = vector.load %arg13[%c0_9, %c0_10] : memref<8x128xf32, #tpu.memory_space<vmem>>, vector<8x128xf32>
      %c0_11 = arith.constant 0 : index
      %c0_12 = arith.constant 0 : index
      %14 = vector.load %arg3[%c0_11, %c0_12] : memref<1x128xf32, #tpu.memory_space<vmem>>, vector<1x128xf32>
      %15 = vector.broadcast %14 : vector<1x128xf32> to vector<8x128xf32>
      %16 = arith.mulf %13, %15 : vector<8x128xf32>
      %c0_13 = arith.constant 0 : index
      %c0_14 = arith.constant 0 : index
      %17 = vector.load %arg4[%c0_13, %c0_14] : memref<1x128xf32, #tpu.memory_space<vmem>>, vector<1x128xf32>
      %18 = vector.broadcast %17 : vector<1x128xf32> to vector<8x128xf32>
      %19 = arith.addf %16, %18 : vector<8x128xf32>
      %cst_15 = arith.constant 0.000000e+00 : f32
      %20 = vector.broadcast %cst_15 : f32 to vector<8x128xf32>
      %21 = arith.maximumf %19, %20 : vector<8x128xf32>
      %cst_16 = arith.constant dense<0.000000e+00> : vector<8xf32>
      %22 = vector.multi_reduction <add>, %21, %cst_16 [1] : vector<8x128xf32> to vector<8xf32>
      %23 = vector.shape_cast %22 : vector<8xf32> to vector<8x1xf32>
      %cst_17 = arith.constant 1.280000e+02 : f32
      %24 = vector.broadcast %cst_17 : f32 to vector<8x1xf32>
      %25 = arith.divf %23, %24 : vector<8x1xf32>
      %26 = vector.broadcast %25 : vector<8x1xf32> to vector<8x128xf32>
      %27 = arith.subf %21, %26 : vector<8x128xf32>
      %28 = arith.mulf %27, %27 : vector<8x128xf32>
      %cst_18 = arith.constant dense<0.000000e+00> : vector<8xf32>
      %29 = vector.multi_reduction <add>, %28, %cst_18 [1] : vector<8x128xf32> to vector<8xf32>
      %30 = vector.shape_cast %29 : vector<8xf32> to vector<8x1xf32>
      %cst_19 = arith.constant 1.280000e+02 : f32
      %31 = vector.broadcast %cst_19 : f32 to vector<8x1xf32>
      %32 = arith.divf %30, %31 : vector<8x1xf32>
      %33 = vector.broadcast %25 : vector<8x1xf32> to vector<8x128xf32>
      %34 = arith.subf %21, %33 : vector<8x128xf32>
      %cst_20 = arith.constant 9.99999974E-6 : f32
      %35 = vector.broadcast %cst_20 : f32 to vector<8x1xf32>
      %36 = arith.addf %32, %35 : vector<8x1xf32>
      %37 = math.rsqrt %36 : vector<8x1xf32>
      %38 = vector.broadcast %37 : vector<8x1xf32> to vector<8x128xf32>
      %39 = arith.mulf %34, %38 : vector<8x128xf32>
      %c0_21 = arith.constant 0 : index
      %c0_22 = arith.constant 0 : index
      %40 = vector.load %arg5[%c0_21, %c0_22] : memref<1x128xf32, #tpu.memory_space<vmem>>, vector<1x128xf32>
      %41 = vector.broadcast %40 : vector<1x128xf32> to vector<8x128xf32>
      %42 = arith.mulf %39, %41 : vector<8x128xf32>
      %c0_23 = arith.constant 0 : index
      %c0_24 = arith.constant 0 : index
      %43 = vector.load %arg6[%c0_23, %c0_24] : memref<1x128xf32, #tpu.memory_space<vmem>>, vector<1x128xf32>
      %44 = vector.broadcast %43 : vector<1x128xf32> to vector<8x128xf32>
      %45 = arith.addf %42, %44 : vector<8x128xf32>
      %c0_25 = arith.constant 0 : index
      %c0_26 = arith.constant 0 : index
      %46 = vector.load %arg7[%c0_25, %c0_26] : memref<128x128xf32, #tpu.memory_space<vmem>>, vector<128x128xf32>
      %cst_27 = arith.constant dense<0.000000e+00> : vector<8x128xf32>
      %47 = tpu.matmul %45, %46, %cst_27 {dimension_numbers = #tpu.dot_dimension_numbers<[1], [0], [0], [1], [0, 0, 1, 1], [], []>} : vector<8x128xf32>, vector<128x128xf32>, vector<8x128xf32> -> vector<8x128xf32>
      %c0_28 = arith.constant 0 : index
      %c0_29 = arith.constant 0 : index
      %48 = vector.load %arg8[%c0_28, %c0_29] : memref<1x128xf32, #tpu.memory_space<vmem>>, vector<1x128xf32>
      %49 = vector.broadcast %48 : vector<1x128xf32> to vector<8x128xf32>
      %50 = arith.addf %47, %49 : vector<8x128xf32>
      %cst_30 = arith.constant 0.000000e+00 : f32
      %51 = vector.broadcast %cst_30 : f32 to vector<8x128xf32>
      %52 = arith.maximumf %50, %51 : vector<8x128xf32>
      %c0_31 = arith.constant 0 : index
      %c0_32 = arith.constant 0 : index
      %53 = vector.load %arg9[%c0_31, %c0_32] : memref<128x768xf32, #tpu.memory_space<vmem>>, vector<128x768xf32>
      %cst_33 = arith.constant dense<0.000000e+00> : vector<8x768xf32>
      %54 = tpu.matmul %52, %53, %cst_33 {dimension_numbers = #tpu.dot_dimension_numbers<[1], [0], [0], [1], [0, 0, 1, 1], [], []>} : vector<8x128xf32>, vector<128x768xf32>, vector<8x768xf32> -> vector<8x768xf32>
      %55 = vector.extract_strided_slice %54 {offsets = [0, 0], sizes = [8, 256], strides = [1, 1]} : vector<8x768xf32> to vector<8x256xf32>
      %56 = vector.extract_strided_slice %54 {offsets = [0, 256], sizes = [8, 256], strides = [1, 1]} : vector<8x768xf32> to vector<8x256xf32>
      %57 = arith.mulf %55, %56 : vector<8x256xf32>
      %58 = vector.extract_strided_slice %54 {offsets = [0, 512], sizes = [8, 256], strides = [1, 1]} : vector<8x768xf32> to vector<8x256xf32>
      %59 = arith.mulf %57, %58 : vector<8x256xf32>
      %cst_34 = arith.constant dense<0.000000e+00> : vector<8xf32>
      %60 = vector.multi_reduction <add>, %59, %cst_34 [1] : vector<8x256xf32> to vector<8xf32>
      %61 = vector.shape_cast %60 : vector<8xf32> to vector<8x1xf32>
      %c0_35 = arith.constant 0 : index
      %c0_36 = arith.constant 0 : index
      %62 = vector.load %arg10[%c0_35, %c0_36] : memref<1x64xf32, #tpu.memory_space<vmem>>, vector<1x64xf32>
      %63 = vector.broadcast %61 : vector<8x1xf32> to vector<8x64xf32>
      %64 = vector.broadcast %62 : vector<1x64xf32> to vector<8x64xf32>
      %65 = arith.mulf %63, %64 : vector<8x64xf32>
      %c0_37 = arith.constant 0 : index
      %c0_38 = arith.constant 0 : index
      %66 = vector.load %arg11[%c0_37, %c0_38] : memref<1x64xf32, #tpu.memory_space<vmem>>, vector<1x64xf32>
      %67 = vector.broadcast %66 : vector<1x64xf32> to vector<8x64xf32>
      %68 = arith.addf %65, %67 : vector<8x64xf32>
      %c0_39 = arith.constant 0 : index
      %c0_40 = arith.constant 0 : index
      %69 = vector.load %arg12[%c0_39, %c0_40] : memref<8x64xf32, #tpu.memory_space<vmem>>, vector<8x64xf32>
      tpu.vector_store %arg12[%c0_39, %c0_40], %68 {strides = array<i32>} : memref<8x64xf32, #tpu.memory_space<vmem>>, vector<8x64xf32>,
    } else {
    }
    return
  }
  func.func @transform_0(%arg0: i32) -> (i32, i32) {
    %c0_i32 = arith.constant 0 : i32
    %c0_i32_0 = arith.constant 0 : i32
    return %c0_i32, %arg0 : i32, i32
  }
  func.func @transform_1(%arg0: i32) -> (i32, i32) {
    %c0_i32 = arith.constant 0 : i32
    %c0_i32_0 = arith.constant 0 : i32
    return %arg0, %c0_i32 : i32, i32
  }
  func.func @transform_2(%arg0: i32) -> (i32, i32) {
    %c0_i32 = arith.constant 0 : i32
    %c0_i32_0 = arith.constant 0 : i32
    %c0_i32_1 = arith.constant 0 : i32
    return %c0_i32, %c0_i32_0 : i32, i32
  }
  func.func @transform_3(%arg0: i32) -> (i32, i32) {
    %c0_i32 = arith.constant 0 : i32
    %c0_i32_0 = arith.constant 0 : i32
    %c0_i32_1 = arith.constant 0 : i32
    return %c0_i32, %c0_i32_0 : i32, i32
  }
  func.func @transform_4(%arg0: i32) -> (i32, i32) {
    %c0_i32 = arith.constant 0 : i32
    %c0_i32_0 = arith.constant 0 : i32
    %c0_i32_1 = arith.constant 0 : i32
    return %c0_i32, %c0_i32_0 : i32, i32
  }
  func.func @transform_5(%arg0: i32) -> (i32, i32) {
    %c0_i32 = arith.constant 0 : i32
    %c0_i32_0 = arith.constant 0 : i32
    %c0_i32_1 = arith.constant 0 : i32
    return %c0_i32, %c0_i32_0 : i32, i32
  }
  func.func @transform_6(%arg0: i32) -> (i32, i32) {
    %c0_i32 = arith.constant 0 : i32
    %c0_i32_0 = arith.constant 0 : i32
    %c0_i32_1 = arith.constant 0 : i32
    return %c0_i32, %c0_i32_0 : i32, i32
  }
  func.func @transform_7(%arg0: i32) -> (i32, i32) {
    %c0_i32 = arith.constant 0 : i32
    %c0_i32_0 = arith.constant 0 : i32
    %c0_i32_1 = arith.constant 0 : i32
    return %c0_i32, %c0_i32_0 : i32, i32
  }
  func.func @transform_8(%arg0: i32) -> (i32, i32) {
    %c0_i32 = arith.constant 0 : i32
    %c0_i32_0 = arith.constant 0 : i32
    %c0_i32_1 = arith.constant 0 : i32
    return %c0_i32, %c0_i32_0 : i32, i32
  }
  func.func @transform_9(%arg0: i32) -> (i32, i32) {
    %c0_i32 = arith.constant 0 : i32
    %c0_i32_0 = arith.constant 0 : i32
    %c0_i32_1 = arith.constant 0 : i32
    return %c0_i32, %c0_i32_0 : i32, i32
  }
  func.func @transform_10(%arg0: i32) -> (i32, i32) {
    %c0_i32 = arith.constant 0 : i32
    %c0_i32_0 = arith.constant 0 : i32
    %c0_i32_1 = arith.constant 0 : i32
    return %c0_i32, %c0_i32_0 : i32, i32
  }
  func.func @transform_11(%arg0: i32) -> (i32, i32) {
    %c0_i32 = arith.constant 0 : i32
    %c0_i32_0 = arith.constant 0 : i32
    %c0_i32_1 = arith.constant 0 : i32
    return %c0_i32, %c0_i32_0 : i32, i32
  }
}

</mosaic_0001>

<bundles_post_ra>
// kernel: tpu_custom_call.1
= control target key start
LH: loop header
LB: loop body
LE: loop exit
PB: predicated region body
PF: predicated region fallthrough
CT: control target
= control target key end

     0   :  { %s9783_s0 = inlined_call_operand.hbm [shape: bf16[8,32768], index: 0, kind: input, shape index: {}]   ;;  %s9784_s1 = inlined_call_operand.hbm [shape: s8[32768,128], index: 1, kind: input, shape index: {}]   ;;  %s9785_s2 = inlined_call_operand.hbm [shape: f32[1,128], index: 2, kind: input, shape index: {}]   ;;  %s9786_s3 = inlined_call_operand.hbm [shape: f32[1,128], index: 3, kind: input, shape index: {}]   ;;  %s9787_s4 = inlined_call_operand.hbm [shape: f32[1,128], index: 4, kind: input, shape index: {}]   ;;  %s9788_s5 = inlined_call_operand.hbm [shape: f32[1,128], index: 5, kind: input, shape index: {}]   ;;  %s9789_s6 = inlined_call_operand.hbm [shape: f32[128,128], index: 6, kind: input, shape index: {}]   ;;  %s9790_s7 = inlined_call_operand.hbm [shape: f32[1,128], index: 7, kind: input, shape index: {}]   ;;  %s9791_s8 = inlined_call_operand.hbm [shape: f32[128,768], index: 8, kind: input, shape index: {}]   ;;  %s9792_s9 = inlined_call_operand.hbm [shape: f32[1,64], index: 9, kind: input, shape index: {}]   ;;  %s9793_s10 = inlined_call_operand.hbm [shape: f32[1,64], index: 10, kind: input, shape index: {}]   ;;  %s9794_s11 = inlined_call_operand.hbm [shape: f32[8,64], index: 11, kind: output, shape index: {}]  }
   0x1   :  { %9801 = sst [smem:[#allocation31_spill]] %s9783_s0 }
   0x2   :  { %9802 = sst [smem:[#allocation32_spill]] %s9785_s2 }
   0x3   :  { %9803 = sst [smem:[#allocation33_spill]] %s9794_s11 }
   0x4   :  { %16 = vsyncpa [#allocation4], 0 }
   0x5   :  { %18 = vsyncpa [#allocation4 + $0x1], 0 }
   0x6   :  { %19 = vsyncpa [#allocation7], 0 }
   0x7   :  { %21 = vsyncpa [#allocation7 + $0x1], 0 }
   0x8   :  { %22 = vsyncpa [#allocation10], 0 }
   0x9   :  { %23 = vsyncpa [#allocation13], 0 }
   0xa   :  { %24 = vsyncpa [#allocation16], 0 }
   0xb   :  { %25 = vsyncpa [#allocation19], 0 }
   0xc   :  { %26 = vsyncpa [#allocation5], 0  ;;  %s8324_s17 = smov 0   ;;  %s8326_s18 = smov 0  }
   0xd   :  { %s8328_s19 = smov 0   ;;  %s8330_s20 = smov 0  }
   0xe LB: > { %s8244_s21 = smov [#allocation8]   ;;  %s8345_s23 = sadd.s32 4294967295, %s8242_s20   ;;  %s8242_s20 = sphi %s8330_s20, %s9832_s20   ;;  %s8238_s19 = sphi %s8328_s19, %s9831_s19   ;;  %s8234_s18 = sphi %s8326_s18, %s9830_s18   ;;  %s8230_s17 = sphi %s8324_s17, %s9829_s17  }
   0xf   : > { %s312_s22 = sshll.u32 %s8244_s21, 4  ;;  %p5810_p0 = scmp.ge.s32.totalorder %s8242_s20, 1  ;;  %s8351_s22 = int_to_ptr.vmem [resolvable:$true] %s312_s22 }
  0x10   : > { %p9797_p1 = scmp.eq.s32.totalorder %s8345_s23, 0  ;;  %p299_p2 = scmp.lt.s32.totalorder %s8242_s20, 3 }
  0x11   : > { %s8245_s25 = smov [#allocation9]   ;;  %s8246_s27 = smov [#allocation12]  }
  0x12   : > { %p8353_p4 = pnand %p5810_p0, %p299_p2  ;;  %s323_s26 = sshll.u32 %s8245_s25, 4  ;;  %s8359_s26 = int_to_ptr.vmem [resolvable:$true] %s323_s26 }
  0x13   : > { %s345_s28 = sshll.u32 %s8246_s27, 4  ;;  %s8247_s30 = smov [#allocation15]   ;;  %s8367_s28 = int_to_ptr.vmem [resolvable:$true] %s345_s28 }
  0x14   : > { %s9804_s24 = scalar_select %p8353_p4, 1, 0 }
  0x15   : > { %p7606_p5 = pneg %p8353_p4  ;;  %s8369_s12 = sshll.u32 %s8247_s30, 4  ;;  %s370_s12 = int_to_ptr.vmem [resolvable:$true] %s8369_s12 }
  0x16   : > { %9805 = sst [smem:[#allocation30_spill]] %s9804_s24  ;;  %s9807_s2 = sld [smem:[#allocation32_spill]] }
  0x17   : > { %p8363_p6 = pnand %p7606_p5, %p9797_p1 }
  0x19   : > { %p8379_p8 = pneg %p8363_p6 }
  0x1c   : > { %s7842_s15 = scalar_lea.hbm %s9807_s2, 16 }
  0x1d   : > { %p7843_p7 = scmp.ne.s32.totalorder %s9807_s2, %s7842_s15  ;;  %p7849_p11 = scmp.lt.u32.totalorder %s7842_s15, %s9807_s2 }
  0x1f   : > { %p7845_p9 = pnand %p8379_p8, %p7843_p7 }
  0x21   : > { %p7846_p10 = pneg %p7845_p9 }
  0x23   : > { %p7851_p12 = pnand %p7849_p11, %p7846_p10 }
  0x25   : > { %7854 = shalt.err (!%p7851_p12)
}
  0x26   : > { %s7855_s13 = scalar_lea.vmem %s8351_s22, 16  ;;  %s7862_s14 = scalar_lea.vmem %s8351_s22, 32 }
  0x27   : > { %p7856_p13 = scmp.ne.s32.totalorder %s8351_s22, %s7855_s13  ;;  %p7863_p5 = scmp.lt.s32.totalorder %s8351_s22, %s8351_s22 }
  0x28   : > { %p7864_p7 = scmp.lt.s32.totalorder %s7862_s14, %s7855_s13 }
  0x29   : > { %p7858_p0 = pnand %p7856_p13, %p8379_p8 }
  0x2a   : > { %p7865_p9 = por %p7864_p7, %p7863_p5 }
  0x2b   : > { %p7859_p2 = pneg %p7858_p0 }
  0x2d   : > { %p7866_p3 = pnand %p7865_p9, %p7859_p2 }
  0x2f   : > { %7869 = shalt.err (!%p7866_p3)
}
  0x30   : > { %7609 = dma.hbm_to_vmem [thread:$0]  (!%p8363_p6), %s9807_s2, 16, %s8351_s22, [#allocation7]  }
  0x31   : > { %s7870_s30 = scalar_lea.hbm %s9786_s3, 16 }
  0x32   : > { %p7871_p10 = scmp.ne.s32.totalorder %s9786_s3, %s7870_s30  ;;  %p7877_p3 = scmp.lt.u32.totalorder %s7870_s30, %s9786_s3 }
  0x34   : > { %p7873_p11 = pnand %p7871_p10, %p8379_p8 }
  0x36   : > { %p7874_p12 = pneg %p7873_p11 }
  0x38   : > { %p7879_p13 = pnand %p7877_p3, %p7874_p12 }
  0x3a   : > { %7882 = shalt.err (!%p7879_p13)
}
  0x3b   : > { %s7883_s22 = scalar_lea.vmem %s8359_s26, 16  ;;  %s7890_s11 = scalar_lea.vmem %s8359_s26, 32 }
  0x3c   : > { %p7884_p0 = scmp.ne.s32.totalorder %s8359_s26, %s7883_s22  ;;  %p7891_p7 = scmp.lt.s32.totalorder %s8359_s26, %s8359_s26 }
  0x3d   : > { %p7892_p9 = scmp.lt.s32.totalorder %s7890_s11, %s7883_s22 }
  0x3e   : > { %p7886_p2 = pnand %p7884_p0, %p8379_p8 }
  0x3f   : > { %p7893_p10 = por %p7892_p9, %p7891_p7 }
  0x40   : > { %p7887_p5 = pneg %p7886_p2 }
  0x42   : > { %p7894_p11 = pnand %p7893_p10, %p7887_p5 }
  0x44   : > { %7897 = shalt.err (!%p7894_p11)
}
  0x45   : > { %7612 = dma.hbm_to_vmem [thread:$0]  (!%p8363_p6), %s9786_s3, 16, %s8359_s26, [#allocation10]  }
  0x46   : > { %s7898_s27 = scalar_lea.hbm %s9788_s5, 16 }
  0x47   : > { %p7899_p12 = scmp.ne.s32.totalorder %s9788_s5, %s7898_s27  ;;  %p7905_p0 = scmp.lt.u32.totalorder %s7898_s27, %s9788_s5 }
  0x49   : > { %p7901_p3 = pnand %p7899_p12, %p8379_p8 }
  0x4b   : > { %p7902_p13 = pneg %p7901_p3 }
  0x4d   : > { %p7907_p2 = pnand %p7905_p0, %p7902_p13 }
  0x4f   : > { %7910 = shalt.err (!%p7907_p2)
}
  0x50   : > { %s7911_s26 = scalar_lea.vmem %s8367_s28, 16  ;;  %s7918_s11 = scalar_lea.vmem %s8367_s28, 32 }
  0x51   : > { %p7912_p5 = scmp.ne.s32.totalorder %s8367_s28, %s7911_s26  ;;  %p7919_p10 = scmp.lt.s32.totalorder %s8367_s28, %s8367_s28 }
  0x52   : > { %p7920_p11 = scmp.lt.s32.totalorder %s7918_s11, %s7911_s26 }
  0x53   : > { %p7914_p7 = pnand %p7912_p5, %p8379_p8 }
  0x54   : > { %p7921_p12 = por %p7920_p11, %p7919_p10 }
  0x55   : > { %p7915_p9 = pneg %p7914_p7 }
  0x57   : > { %p7922_p3 = pnand %p7921_p12, %p7915_p9 }
  0x59   : > { %7925 = shalt.err (!%p7922_p3)
}
  0x5a   : > { %7618 = dma.hbm_to_vmem [thread:$0]  (!%p8363_p6), %s9788_s5, 16, %s8367_s28, [#allocation13]  }
  0x5b   : > { %s8248_s16 = smov [#allocation18]   ;;  %s7926_s13 = scalar_lea.hbm %s9790_s7, 16 }
  0x5c   : > { %s393_s21 = sshll.u32 %s8248_s16, 4  ;;  %p7927_p13 = scmp.ne.s32.totalorder %s9790_s7, %s7926_s13  ;;  %s394_s21 = int_to_ptr.vmem [resolvable:$true] %s393_s21 }
  0x5d   : > { %p7933_p5 = scmp.lt.u32.totalorder %s7926_s13, %s9790_s7 }
  0x5e   : > { %p7929_p0 = pnand %p7927_p13, %p8379_p8 }
  0x60   : > { %p7930_p2 = pneg %p7929_p0 }
  0x62   : > { %p7935_p7 = pnand %p7933_p5, %p7930_p2 }
  0x64   : > { %7938 = shalt.err (!%p7935_p7)
}
  0x65   : > { %s7939_s28 = scalar_lea.vmem %s370_s12, 16  ;;  %s7946_s24 = scalar_lea.vmem %s370_s12, 32 }
  0x66   : > { %p7940_p9 = scmp.ne.s32.totalorder %s370_s12, %s7939_s28  ;;  %p7947_p12 = scmp.lt.s32.totalorder %s370_s12, %s370_s12 }
  0x67   : > { %p7948_p3 = scmp.lt.s32.totalorder %s7946_s24, %s7939_s28 }
  0x68   : > { %p7942_p10 = pnand %p7940_p9, %p8379_p8 }
  0x69   : > { %p7949_p1 = por %p7948_p3, %p7947_p12 }
  0x6a   : > { %p7943_p11 = pneg %p7942_p10 }
  0x6c   : > { %p7950_p4 = pnand %p7949_p1, %p7943_p11 }
  0x6e   : > { %7953 = shalt.err (!%p7950_p4)
}
  0x6f   : > { %7624 = dma.hbm_to_vmem [thread:$0]  (!%p8363_p6), %s9790_s7, 16, %s370_s12, [#allocation16]  }
  0x70   : > { %s7954_s13 = scalar_lea.hbm %s9792_s9, 16 }
  0x71   : > { %p7955_p13 = scmp.ne.s32.totalorder %s9792_s9, %s7954_s13  ;;  %p7961_p4 = scmp.lt.u32.totalorder %s7954_s13, %s9792_s9 }
  0x73   : > { %p7957_p0 = pnand %p7955_p13, %p8379_p8 }
  0x75   : > { %p7958_p1 = pneg %p7957_p0 }
  0x77   : > { %p7963_p2 = pnand %p7961_p4, %p7958_p1 }
  0x79   : > { %7966 = shalt.err (!%p7963_p2)
}
  0x7a   : > { %s7967_s28 = scalar_lea.vmem %s394_s21, 16  ;;  %s7974_s12 = scalar_lea.vmem %s394_s21, 32 }
  0x7b   : > { %p7968_p5 = scmp.ne.s32.totalorder %s394_s21, %s7967_s28  ;;  %p7975_p10 = scmp.lt.s32.totalorder %s394_s21, %s394_s21 }
  0x7c   : > { %p7976_p11 = scmp.lt.s32.totalorder %s7974_s12, %s7967_s28 }
  0x7d   : > { %p7970_p7 = pnand %p7968_p5, %p8379_p8 }
  0x7e   : > { %p7977_p12 = por %p7976_p11, %p7975_p10 }
  0x7f   : > { %p7971_p9 = pneg %p7970_p7 }
  0x81   : > { %p7978_p3 = pnand %p7977_p12, %p7971_p9 }
  0x83   : > { %7981 = shalt.err (!%p7978_p3)
}
  0x84   : > { %7630 = dma.hbm_to_vmem [thread:$0]  (!%p8363_p6), %s9792_s9, 16, %s394_s21, [#allocation19]  }
  0x85   : > { %s8249_s16 = smov [#allocation11]   ;;  %s8250_s30 = smov [#allocation14]  }
  0x86   : > { %s334_s27 = sshll.u32 %s8249_s16, 4  ;;  %s355_s13 = sshll.u32 %s8250_s30, 4  ;;  %s335_s27 = int_to_ptr.vmem [resolvable:$true] %s334_s27  ;;  %s356_s13 = int_to_ptr.vmem [resolvable:$true] %s355_s13 }
  0x87   : > { %s7982_s26 = scalar_lea.hbm %s9787_s4, 16 }
  0x88   : > { %p7983_p13 = scmp.ne.s32.totalorder %s9787_s4, %s7982_s26  ;;  %p7989_p4 = scmp.lt.u32.totalorder %s7982_s26, %s9787_s4 }
  0x8a   : > { %p7985_p0 = pnand %p7983_p13, %p8379_p8 }
  0x8c   : > { %p7986_p1 = pneg %p7985_p0 }
  0x8e   : > { %p7991_p2 = pnand %p7989_p4, %p7986_p1 }
  0x90   : > { %7994 = shalt.err (!%p7991_p2)
}
  0x91   : > { %s7995_s21 = scalar_lea.vmem %s335_s27, 16  ;;  %s8002_s15 = scalar_lea.vmem %s335_s27, 32 }
  0x92   : > { %p7996_p5 = scmp.ne.s32.totalorder %s335_s27, %s7995_s21  ;;  %p8003_p10 = scmp.lt.s32.totalorder %s335_s27, %s335_s27 }
  0x93   : > { %p8004_p11 = scmp.lt.s32.totalorder %s8002_s15, %s7995_s21 }
  0x94   : > { %p7998_p7 = pnand %p7996_p5, %p8379_p8 }
  0x95   : > { %p8005_p12 = por %p8004_p11, %p8003_p10 }
  0x96   : > { %p7999_p9 = pneg %p7998_p7 }
  0x98   : > { %p8006_p3 = pnand %p8005_p12, %p7999_p9 }
  0x9a   : > { %8009 = shalt.err (!%p8006_p3)
}
  0x9b   : > { %7615 = dma.hbm_to_vmem [thread:$0]  (!%p8363_p6), %s9787_s4, 16, %s335_s27, [#allocation10]  }
  0x9c   : > { %s8010_s26 = scalar_lea.hbm %s9789_s6, 2048 }
  0x9d   : > { %p8011_p13 = scmp.ne.s32.totalorder %s9789_s6, %s8010_s26  ;;  %p8017_p4 = scmp.lt.u32.totalorder %s8010_s26, %s9789_s6 }
  0x9f   : > { %p8013_p0 = pnand %p8011_p13, %p8379_p8 }
  0xa1   : > { %p8014_p1 = pneg %p8013_p0 }
  0xa3   : > { %p8019_p2 = pnand %p8017_p4, %p8014_p1 }
  0xa5   : > { %8022 = shalt.err (!%p8019_p2)
}
  0xa6   : > { %s8023_s21 = scalar_lea.vmem %s356_s13, 2048  ;;  %p8031_p10 = scmp.lt.s32.totalorder %s356_s13, %s356_s13 }
  0xa7   : > { %p8024_p5 = scmp.ne.s32.totalorder %s356_s13, %s8023_s21  ;;  %p8032_p11 = scmp.lt.s32.totalorder %s8023_s21, %s8023_s21 }
  0xa9   : > { %p8026_p7 = pnand %p8024_p5, %p8379_p8  ;;  %p8033_p12 = por %p8032_p11, %p8031_p10 }
  0xab   : > { %p8027_p9 = pneg %p8026_p7 }
  0xad   : > { %p8034_p3 = pnand %p8033_p12, %p8027_p9 }
  0xaf   : > { %8037 = shalt.err (!%p8034_p3)
}
  0xb0   : > { %s9799_s27 = smov 128   ;;  %s9800_s15 = smov 8  }
  0xb1   : > { %7621 = dma.hbm_to_vmem [thread:$0]  (!%p8363_p6), %s9789_s6, 2048, %s356_s13, [#allocation13], %s9799_s27, %s9799_s27, %s9800_s15  }
  0xb2   : > { %s8253_s14 = smov [#allocation17]   ;;  %s8038_s28 = scalar_lea.hbm %s9791_s8, 12288 }
  0xb3   : > { %s379_s22 = sshll.u32 %s8253_s14, 4  ;;  %p8039_p13 = scmp.ne.s32.totalorder %s9791_s8, %s8038_s28  ;;  %s380_s22 = int_to_ptr.vmem [resolvable:$true] %s379_s22 }
  0xb4   : > { %p8045_p4 = scmp.lt.u32.totalorder %s8038_s28, %s9791_s8 }
  0xb5   : > { %p8041_p0 = pnand %p8039_p13, %p8379_p8 }
  0xb7   : > { %p8042_p1 = pneg %p8041_p0 }
  0xb9   : > { %p8047_p2 = pnand %p8045_p4, %p8042_p1 }
  0xbb   : > { %8050 = shalt.err (!%p8047_p2)
}
  0xbc   : > { %s8051_s13 = scalar_lea.vmem %s380_s22, 12288  ;;  %p8059_p10 = scmp.lt.s32.totalorder %s380_s22, %s380_s22 }
  0xbd   : > { %p8052_p5 = scmp.ne.s32.totalorder %s380_s22, %s8051_s13  ;;  %p8060_p11 = scmp.lt.s32.totalorder %s8051_s13, %s8051_s13 }
  0xbf   : > { %p8054_p7 = pnand %p8052_p5, %p8379_p8  ;;  %p8061_p12 = por %p8060_p11, %p8059_p10 }
  0xc1   : > { %p8055_p9 = pneg %p8054_p7 }
  0xc3   : > { %p8062_p3 = pnand %p8061_p12, %p8055_p9 }
  0xc5   : > { %8065 = shalt.err (!%p8062_p3)
}
  0xc6   : > { %s8254_s16 = smov 768   ;;  %s8255_s30 = smov 48  }
  0xc7   : > { %7627 = dma.hbm_to_vmem [thread:$0]  (!%p8363_p6), %s9791_s8, 12288, %s380_s22, [#allocation16], %s8254_s16, %s8254_s16, %s8255_s30  }
  0xc8   : > { %s8256_s26 = smov [#allocation20]   ;;  %s8066_s24 = scalar_lea.hbm %s9793_s10, 16 }
  0xc9   : > { %s404_s11 = sshll.u32 %s8256_s26, 4  ;;  %p8067_p13 = scmp.ne.s32.totalorder %s9793_s10, %s8066_s24  ;;  %s405_s11 = int_to_ptr.vmem [resolvable:$true] %s404_s11 }
  0xca   : > { %p8073_p4 = scmp.lt.u32.totalorder %s8066_s24, %s9793_s10 }
  0xcb   : > { %p8069_p0 = pnand %p8067_p13, %p8379_p8 }
  0xcd   : > { %p8070_p1 = pneg %p8069_p0 }
  0xcf   : > { %p8075_p2 = pnand %p8073_p4, %p8070_p1 }
  0xd1   : > { %8078 = shalt.err (!%p8075_p2)
}
  0xd2   : > { %s8079_s22 = scalar_lea.vmem %s405_s11, 16  ;;  %s8086_s16 = scalar_lea.vmem %s405_s11, 32 }
  0xd3   : > { %p8080_p5 = scmp.ne.s32.totalorder %s405_s11, %s8079_s22  ;;  %p8087_p10 = scmp.lt.s32.totalorder %s405_s11, %s405_s11 }
  0xd4   : > { %p8088_p11 = scmp.lt.s32.totalorder %s8086_s16, %s8079_s22 }
  0xd5   : > { %p8082_p7 = pnand %p8080_p5, %p8379_p8 }
  0xd6   : > { %p8089_p12 = por %p8088_p11, %p8087_p10 }
  0xd7   : > { %p8083_p9 = pneg %p8082_p7 }
  0xd9   : > { %p8090_p3 = pnand %p8089_p12, %p8083_p9 }
  0xdb   : > { %8093 = shalt.err (!%p8090_p3)
}
  0xdc   : > { %7633 = dma.hbm_to_vmem [thread:$0]  (!%p8363_p6), %s9793_s10, 16, %s405_s11, [#allocation19]  }
  0xdd   : > { %s8562_s25 = sadd.s32 1, %s8242_s20   ;;  %s39_s27 = sadd.s32 1, %s8238_s19 }
  0xde   : > { %s36_s29 = ssub.s32 %s8242_s20, %s8562_s25  ;;  %p46_p13 = scmp.ne.s32.totalorder %s8238_s19, %s8234_s18 }
  0xdf   : > { %p37_p8 = scmp.eq.s32.totalorder %s36_s29, 0  ;;  %p47_p0 = scmp.eq.s32.totalorder %s8242_s20, 0 }
  0xe0   : > { %p52_p1 = scmp.ne.s32.totalorder %s8234_s18, %s8230_s17  ;;  %p9809_p2 = scmp.eq.s32.totalorder %s8345_s23, 0 }
  0xe1   : > { %s8573_s15 = scalar_select %p37_p8, %s8238_s19, %s39_s27  }
  0xe2   : > { %p48_p4 = por %p47_p0, %p46_p13  ;;  %p8577_p5 = por %p9809_p2, %p52_p1 }
  0xe3   : > { %p7650_p7 = scmp.lt.s32.totalorder %s8242_s20, 2  ;;  %s8583_s26 = sand.u32 1, %s8238_s19  }
  0xe4   : > { %s5821_s11 = sshll.u32 %s8583_s26, 9  ;;  %s5980_s28 = sshll.u32 %s8242_s20, 13 }
  0xe5   : > { %s9811_s0 = sld [smem:[#allocation31_spill]]  ;;  %s419_s21 = scalar_lea.vmem [#allocation3], %s5821_s11 }
  0xe6   : > { %s427_s13 = sshll.u32 %s419_s21, 4  ;;  %p8594_p6 = pnand %p7650_p7, %p48_p4  ;;  %s8592_s13 = int_to_ptr.vmem [resolvable:$true] %s427_s13 }
  0xe7   : > { %s5824_s16 = sshll.u32 %s8583_s26, 12  ;;  %s434_s30 = sand.u32 1, %s8242_s20  }
  0xe8   : > { %s416_s2 = scalar_lea.sflag [#allocation4], %s8583_s26  ;;  %p8096_p10 = pneg %p8594_p6 }
  0xeb   : > { %s8590_s17 = scalar_lea.hbm %s9811_s0, %s5980_s28  ;;  %s8099_s28 = scalar_lea.hbm %s9811_s0, 16384 }
  0xec   : > { %s8094_s29 = scalar_lea.hbm %s8590_s17, 8192  ;;  %p8100_p3 = scmp.lt.u32.totalorder %s8590_s17, %s9811_s0 }
  0xed   : > { %p8095_p9 = scmp.ne.s32.totalorder %s8590_s17, %s8094_s29  ;;  %p8101_p8 = scmp.lt.u32.totalorder %s8099_s28, %s8094_s29 }
  0xee   : > { %p8103_p0 = scmp.lt.u32.totalorder %s8094_s29, %s8590_s17 }
  0xef   : > { %p8097_p11 = pnand %p8096_p10, %p8095_p9  ;;  %p8102_p13 = por %p8101_p8, %p8100_p3 }
  0xf1   : > { %p8098_p12 = pneg %p8097_p11  ;;  %p8104_p1 = por %p8103_p0, %p8102_p13 }
  0xf3   : > { %p8105_p4 = pnand %p8104_p1, %p8098_p12 }
  0xf5   : > { %8108 = shalt.err (!%p8105_p4)
}
  0xf6   : > { %s8109_s21 = scalar_lea.vmem %s8592_s13, 8192  ;;  %s8257_s27 = smov [#allocation3]  }
  0xf7   : > { %p8110_p2 = scmp.ne.s32.totalorder %s8592_s13, %s8109_s21  ;;  %s8114_s11 = sshll.u32 %s8257_s27, 4  ;;  %s8115_s11 = int_to_ptr.vmem [resolvable:$false] %s8114_s11 }
  0xf8   : > { %s8116_s12 = scalar_lea.vmem %s8115_s11, 16384  ;;  %p8117_p11 = scmp.lt.s32.totalorder %s8592_s13, %s8115_s11 }
  0xf9   : > { %p8112_p7 = pnand %p8110_p2, %p8096_p10  ;;  %p8118_p3 = scmp.lt.s32.totalorder %s8116_s12, %s8109_s21 }
  0xfb   : > { %p8113_p9 = pneg %p8112_p7  ;;  %p8119_p8 = por %p8118_p3, %p8117_p11 }
  0xfd   : > { %p8120_p13 = pnand %p8119_p8, %p8113_p9 }
  0xff   : > { %8123 = shalt.err (!%p8120_p13)
}
 0x100   : > { %7637 = dma.hbm_to_vmem [thread:$0]  (!%p8594_p6), %s8590_s17, 8192, %s8592_s13, %s416_s2  }
 0x101   : > { %s438_s29 = scalar_lea.vmem [#allocation6], %s5824_s16  ;;  %s5981_s24 = sshll.u32 %s8242_s20, 16 }
 0x102   : > { %s445_s28 = sshll.u32 %s438_s29, 4  ;;  %s8634_s11 = scalar_lea.hbm %s9784_s1, %s5981_s24  ;;  %s8628_s28 = int_to_ptr.vmem [resolvable:$true] %s445_s28 }
 0x103   : > { %s8638_s12 = scalar_lea.sflag [#allocation7], %s434_s30  ;;  %s8124_s0 = scalar_lea.hbm %s8634_s11, 65536 }
 0x104   : > { %p8125_p12 = scmp.ne.s32.totalorder %s8634_s11, %s8124_s0  ;;  %s8129_s13 = scalar_lea.hbm %s9784_s1, 131072 }
 0x105   : > { %p8130_p4 = scmp.lt.u32.totalorder %s8634_s11, %s9784_s1  ;;  %p8131_p2 = scmp.lt.u32.totalorder %s8129_s13, %s8124_s0 }
 0x106   : > { %p8127_p0 = pnand %p8125_p12, %p8096_p10  ;;  %p8133_p9 = scmp.lt.u32.totalorder %s8124_s0, %s8634_s11 }
 0x107   : > { %p8132_p7 = por %p8131_p2, %p8130_p4 }
 0x108   : > { %p8128_p1 = pneg %p8127_p0 }
 0x109   : > { %p8134_p11 = por %p8133_p9, %p8132_p7 }
 0x10b   : > { %p8135_p3 = pnand %p8134_p11, %p8128_p1 }
 0x10d   : > { %8138 = shalt.err (!%p8135_p3)
}
 0x10e   : > { %s8139_s20 = scalar_lea.vmem %s8628_s28, 65536  ;;  %s8258_s30 = smov [#allocation6]  }
 0x10f   : > { %p8140_p8 = scmp.ne.s32.totalorder %s8628_s28, %s8139_s20  ;;  %s8144_s29 = sshll.u32 %s8258_s30, 4  ;;  %s8145_s29 = int_to_ptr.vmem [resolvable:$false] %s8144_s29 }
 0x110   : > { %s8146_s24 = scalar_lea.vmem %s8145_s29, 131072  ;;  %p8147_p0 = scmp.lt.s32.totalorder %s8628_s28, %s8145_s29 }
 0x111   : > { %p8142_p13 = pnand %p8140_p8, %p8096_p10  ;;  %p8148_p4 = scmp.lt.s32.totalorder %s8146_s24, %s8139_s20 }
 0x113   : > { %p8143_p12 = pneg %p8142_p13  ;;  %p8149_p2 = por %p8148_p4, %p8147_p0 }
 0x115   : > { %p8150_p7 = pnand %p8149_p2, %p8143_p12 }
 0x117   : > { %8153 = shalt.err (!%p8150_p7)
}
 0x118   : > { %s9813_s0 = smov 8   ;;  %s9814_s27 = smov 128  }
 0x119   : > { %7640 = dma.hbm_to_vmem [thread:$0]  (!%p8594_p6), %s8634_s11, 65536, %s8628_s28, %s8638_s12, %s9814_s27, %s9814_s27, %s9813_s0  }
 0x11a   : > { %s9815_s21 = sld [smem:[#allocation30_spill]] }
 0x120   : > { %p9816_p10 = scmp.ne.s32.totalorder %s9815_s21, 0 }
 0x121   : > { %s459_s26 = sand.u32 (!%p9816_p10), 1, %s8234_s18  }
 0x122   : > { %457 = sbr.rel (%p9816_p10) target bundleno = 2543 (0x9ef), region = 64  ;;  %s5828_s17 = sshll.u32 (!%p9816_p10), %s459_s26, 9 }
 0x123   : > { %s460_s13 = scalar_lea.sflag (!%p9816_p10), [#allocation4], %s459_s26  ;;  %s8670_s16 = scalar_lea.vmem (!%p9816_p10), [#allocation3], %s5828_s17 }
 0x129   : > { %8197 = dma.done.wait (%p8577_p5), %s460_s13, 8192  }
 0x12a   : > { %8199 = vsyncadd (%p8577_p5), %s460_s13, 4294959104  ;;  %s468_s22 = sand.u32 1, %s8345_s23   ;;  %s5829_s2 = sshll.u32 %s459_s26, 12 }
 0x12b   : > { %s469_s28 = scalar_lea.sflag [#allocation7], %s468_s22  ;;  %s8677_s11 = scalar_lea.vmem [#allocation6], %s5829_s2 }
 0x12c   : > { %8201 = dma.done.wait (%p8577_p5), %s469_s28, 65536  }
 0x12d   : > { %8203 = vsyncadd (%p8577_p5), %s469_s28, 4294901760  ;;  %p9817_p6 = scmp.eq.s32.totalorder %s8345_s23, 0 }
 0x12f   : > { %8205 = dma.done.wait (%p9817_p6), [#allocation7], 16   ;;  %p9818_p1 = pmov %p9817_p6 }
 0x131   : > { %8207 = vsyncadd (%p9818_p1), [#allocation7], 4294967280  ;;  %p9819_p9 = pmov %p9818_p1 }
 0x132   : > { %p9820_p11 = pmov %p9818_p1 }
 0x133   : > { %8209 = dma.done.wait (%p9819_p9), [#allocation10], 32  }
 0x134   : > { %8211 = vsyncadd (%p9820_p11), [#allocation10], 4294967264  ;;  %p9821_p3 = pmov %p9818_p1 }
 0x135   : > { %p9822_p8 = pmov %p9818_p1 }
 0x136   : > { %8213 = dma.done.wait (%p9821_p3), [#allocation13], 2064  }
 0x137   : > { %8215 = vsyncadd (%p9822_p8), [#allocation13], 4294965232  ;;  %p9823_p5 = pmov %p9818_p1 }
 0x138   : > { %p9824_p13 = pmov %p9818_p1 }
 0x139   : > { %8217 = dma.done.wait (%p9823_p5), [#allocation16], 12304  }
 0x13a   : > { %8219 = vsyncadd (%p9824_p13), [#allocation16], 4294954992  ;;  %p9825_p12 = pmov %p9818_p1 }
 0x13b   : > { %p9826_p0 = pmov %p9818_p1 }
 0x13c   : > { %8221 = dma.done.wait (%p9825_p12), [#allocation19], 32  }
 0x13d   : > { %8223 = vsyncadd (%p9826_p0), [#allocation19], 4294967264  ;;  %p9827_p4 = scmp.ne.s32.totalorder %s8345_s23, 0 }
 0x13e   : > { %v8259_v0 = vmov (!%p9827_p4), 0.0  }
 0x13f   : > { %553 = sbr.rel (%p9827_p4) target bundleno = 326 (0x146), region = 112  ;;  %554 = vst [vmem:[#allocation2] sm:$0xff] (!%p9827_p4), %v8259_v0 }
 0x146 PF: > { %v624_v1 = vld [vmem:[%s8677_s11 + $0x20] sm:$0xff]  ;;  %v625_v11 = vld [vmem:[%s8677_s11 + $0x28] sm:$0xff]  ;;  %v626_v26 = vld [vmem:[%s8677_s11 + $0x30] sm:$0xff]  ;;  %p5968_p2 = scmp.ne.s32.totalorder %s8345_s23, 1 }
 0x147   : > { %v632_v2 = vld [vmem:[%s8677_s11 + $0x60] sm:$0xff]  ;;  %v1140_v4 = vunpack.c.l.s8.bf16 %v624_v1  ;;  %v1141_v5 = vunpack.c.h.s8.bf16 %v624_v1  ;;  %v633_v12 = vld [vmem:[%s8677_s11 + $0x68] sm:$0xff]  ;;  %v1142_v15 = vunpack.c.l.s8.bf16 %v625_v11  ;;  %v1143_v23 = vunpack.c.h.s8.bf16 %v625_v11  ;;  %v634_v27 = vld [vmem:[%s8677_s11 + $0x70] sm:$0xff] }
 0x148   : > { %v620_v3 = vld [vmem:[%s8677_s11] sm:$0xff]  ;;  %v1156_v6 = vunpack.c.l.s8.bf16 %v632_v2  ;;  %v1157_v7 = vunpack.c.h.s8.bf16 %v632_v2  ;;  %v1158_v16 = vunpack.c.l.s8.bf16 %v633_v12  ;;  %v621_v17 = vld [vmem:[%s8677_s11 + $0x8] sm:$0xff]  ;;  %v1159_v24 = vunpack.c.h.s8.bf16 %v633_v12  ;;  %v622_v33 = vld [vmem:[%s8677_s11 + $0x10] sm:$0xff] }
 0x149   : > { %v628_v8 = vld [vmem:[%s8677_s11 + $0x40] sm:$0xff]  ;;  %v1132_v9 = vunpack.c.l.s8.bf16 %v620_v3  ;;  %5982 = vmatprep.subr.bf16.mxu0 %v1140_v4  ;;  %v1133_v13 = vunpack.c.h.s8.bf16 %v620_v3  ;;  %v629_v18 = vld [vmem:[%s8677_s11 + $0x48] sm:$0xff]  ;;  %v1134_v21 = vunpack.c.l.s8.bf16 %v621_v17  ;;  %v1135_v29 = vunpack.c.h.s8.bf16 %v621_v17  ;;  %v630_v34 = vld [vmem:[%s8677_s11 + $0x50] sm:$0xff] }
 0x14a   : > { %v1148_v10 = vunpack.c.l.s8.bf16 %v628_v8  ;;  %6004 = vmatprep.subr.bf16.mxu1 %v1156_v6  ;;  %v1149_v14 = vunpack.c.h.s8.bf16 %v628_v8  ;;  %v8714_v19 = vld [vmem:[%s8670_s16] sm:$0xff]  ;;  %v8717_v20 = vld [vmem:[%s8670_s16 + $0x8] sm:$0xff]  ;;  %v1150_v22 = vunpack.c.l.s8.bf16 %v629_v18  ;;  %v1151_v30 = vunpack.c.h.s8.bf16 %v629_v18  ;;  %v627_v39 = vld [vmem:[%s8677_s11 + $0x38] sm:$0xff] }
 0x14b   : > { %5983 = vmatpush3.bf16.msra.mxu0 %v1132_v9  ;;  %v5841_v25 = vcombine.high %v8714_v19, %v8714_v19  ;;  %v5843_v28 = vcombine.high %v8717_v20, %v8717_v20  ;;  %v1144_v31 = vunpack.c.l.s8.bf16 %v626_v26  ;;  %v1160_v32 = vunpack.c.l.s8.bf16 %v634_v27  ;;  %v635_v40 = vld [vmem:[%s8677_s11 + $0x78] sm:$0xff]  ;;  %v640_v51 = vld [vmem:[%s8677_s11 + $0xa0] sm:$0xff]  ;;  %v8740_v61 = vld [vmem:[%s8670_s16 + $0x10] sm:$0xff] }
 0x14c   : > { %6005 = vmatpush3.bf16.msra.mxu1 %v1148_v10  ;;  %5984 = vmatprep.subr.bf16.mxu0 %v1141_v5  ;;  %v1136_v35 = vunpack.c.l.s8.bf16 %v622_v33  ;;  %v1152_v36 = vunpack.c.l.s8.bf16 %v630_v34  ;;  %v1145_v37 = vunpack.c.h.s8.bf16 %v626_v26  ;;  %v1161_v38 = vunpack.c.h.s8.bf16 %v634_v27  ;;  %v623_v45 = vld [vmem:[%s8677_s11 + $0x18] sm:$0xff]  ;;  %v648_v52 = vld [vmem:[%s8677_s11 + $0xe0] sm:$0xff]  ;;  %v641_v3 = vld [vmem:[%s8677_s11 + $0xa8] sm:$0xff] }
 0x14d   : > { %6006 = vmatprep.subr.bf16.mxu1 %v1157_v7  ;;  %2636 = vmatprep.mubr.bf16.mxu0 %v5841_v25  ;;  %v1137_v41 = vunpack.c.h.s8.bf16 %v622_v33  ;;  %v1153_v42 = vunpack.c.h.s8.bf16 %v630_v34  ;;  %v1146_v43 = vunpack.c.l.s8.bf16 %v627_v39  ;;  %v1162_v44 = vunpack.c.l.s8.bf16 %v635_v40  ;;  %v631_v46 = vld [vmem:[%s8677_s11 + $0x58] sm:$0xff]  ;;  %v636_v57 = vld [vmem:[%s8677_s11 + $0x80] sm:$0xff]  ;;  %v649_v4 = vld [vmem:[%s8677_s11 + $0xe8] sm:$0xff] }
 0x14e   : > { %2676 = vmatprep.mubr.bf16.mxu1 %v5843_v28  ;;  %v1138_v47 = vunpack.c.l.s8.bf16 %v623_v45  ;;  %v1154_v48 = vunpack.c.l.s8.bf16 %v631_v46  ;;  %v1147_v49 = vunpack.c.h.s8.bf16 %v627_v39  ;;  %v1163_v50 = vunpack.c.h.s8.bf16 %v635_v40  ;;  %v644_v58 = vld [vmem:[%s8677_s11 + $0xc0] sm:$0xff]  ;;  %v8743_v62 = vld [vmem:[%s8670_s16 + $0x18] sm:$0xff]  ;;  %v637_v11 = vld [vmem:[%s8677_s11 + $0x88] sm:$0xff] }
 0x14f   : > { %5985 = vmatpush3.bf16.msra.mxu0 %v1133_v13  ;;  %v1139_v53 = vunpack.c.h.s8.bf16 %v623_v45  ;;  %v1155_v54 = vunpack.c.h.s8.bf16 %v631_v46  ;;  %v1172_v55 = vunpack.c.l.s8.bf16 %v640_v51  ;;  %v1188_v56 = vunpack.c.l.s8.bf16 %v648_v52  ;;  %v645_v12 = vld [vmem:[%s8677_s11 + $0xc8] sm:$0xff]  ;;  %v642_v17 = vld [vmem:[%s8677_s11 + $0xb0] sm:$0xff] }
 0x150   : > { %6007 = vmatpush3.bf16.msra.mxu1 %v1149_v14  ;;  %5986 = vmatprep.subr.bf16.mxu0 %v1142_v15  ;;  %v5840_v59 = vcombine.low %v8714_v19, %v8714_v19  ;;  %v5842_v60 = vcombine.low %v8717_v20, %v8717_v20  ;;  %v1164_v63 = vunpack.c.l.s8.bf16 %v636_v57  ;;  %v1180_v0 = vunpack.c.l.s8.bf16 %v644_v58  ;;  %v650_v18 = vld [vmem:[%s8677_s11 + $0xf0] sm:$0xff] }
 0x151   : > { %6008 = vmatprep.subr.bf16.mxu1 %v1158_v16  ;;  %v1173_v1 = vunpack.c.h.s8.bf16 %v640_v51  ;;  %v1189_v2 = vunpack.c.h.s8.bf16 %v648_v52  ;;  %v5845_v5 = vcombine.high %v8740_v61, %v8740_v61  ;;  %v5847_v6 = vcombine.high %v8743_v62, %v8743_v62  ;;  %v8770_v51 = vld [vmem:[%s8670_s16 + $0x20] sm:$0xff]  ;;  %v8773_v52 = vld [vmem:[%s8670_s16 + $0x28] sm:$0xff] }
 0x152   : > { %v1165_v7 = vunpack.c.h.s8.bf16 %v636_v57  ;;  %v1181_v8 = vunpack.c.h.s8.bf16 %v644_v58  ;;  %v1174_v9 = vunpack.c.l.s8.bf16 %v641_v3  ;;  %v1190_v10 = vunpack.c.l.s8.bf16 %v649_v4  ;;  %v657_v57 = vld [vmem:[%s8677_s11 + $0x128] sm:$0xff] }
 0x153   : > { %5987 = vmatpush3.bf16.msra.mxu0 %v1134_v21  ;;  %v1166_v13 = vunpack.c.l.s8.bf16 %v637_v11  ;;  %v1182_v14 = vunpack.c.l.s8.bf16 %v645_v12  ;;  %v1175_v15 = vunpack.c.h.s8.bf16 %v641_v3  ;;  %v1191_v16 = vunpack.c.h.s8.bf16 %v649_v4  ;;  %v665_v58 = vld [vmem:[%s8677_s11 + $0x168] sm:$0xff] }
 0x154   : > { %6009 = vmatpush3.bf16.msra.mxu1 %v1150_v22  ;;  %5988 = vmatprep.subr.bf16.mxu0 %v1143_v23  ;;  %v1167_v19 = vunpack.c.h.s8.bf16 %v637_v11  ;;  %v1183_v20 = vunpack.c.h.s8.bf16 %v645_v12  ;;  %v1176_v21 = vunpack.c.l.s8.bf16 %v642_v17  ;;  %v1192_v22 = vunpack.c.l.s8.bf16 %v650_v18  ;;  %v638_v23 = vld [vmem:[%s8677_s11 + $0x90] sm:$0xff] }
 0x155   : > { %6010 = vmatprep.subr.bf16.mxu1 %v1159_v24  ;;  %v646_v24 = vld [vmem:[%s8677_s11 + $0xd0] sm:$0xff]  ;;  %v1168_v25 = vunpack.c.l.s8.bf16 %v638_v23  ;;  %v1177_v27 = vunpack.c.h.s8.bf16 %v642_v17  ;;  %v1193_v28 = vunpack.c.h.s8.bf16 %v650_v18  ;;  %vm8261_vm0 = vmmov (!%p5968_p2), 0  }
 0x156   : > { %v1184_v26 = vunpack.c.l.s8.bf16 %v646_v24  ;;  %vm5642_vm1 = vcmask (!%p5968_p2), 523264  }
 0x157   : > { %5989 = vmatpush3.bf16.msra.mxu0 %v1135_v29  ;;  %v643_v29 = vld [vmem:[%s8677_s11 + $0xb8] sm:$0xff] }
 0x158   : > { %6011 = vmatpush3.bf16.msra.mxu1 %v1151_v30  ;;  %5990 = vmatprep.subr.bf16.mxu0 %v1144_v31  ;;  %v651_v30 = vld [vmem:[%s8677_s11 + $0xf8] sm:$0xff]  ;;  %v1169_v31 = vunpack.c.h.s8.bf16 %v638_v23  ;;  %v1178_v33 = vunpack.c.l.s8.bf16 %v643_v29  ;;  %v1179_v39 = vunpack.c.h.s8.bf16 %v643_v29 }
 0x159   : > { %6012 = vmatprep.subr.bf16.mxu1 %v1160_v32  ;;  %v1185_v32 = vunpack.c.h.s8.bf16 %v646_v24  ;;  %v1194_v34 = vunpack.c.l.s8.bf16 %v651_v30  ;;  %v1195_v40 = vunpack.c.h.s8.bf16 %v651_v30 }
 0x15b   : > { %5991 = vmatpush3.bf16.msra.mxu0 %v1136_v35  ;;  %v639_v35 = vld [vmem:[%s8677_s11 + $0x98] sm:$0xff] }
 0x15c   : > { %6013 = vmatpush3.bf16.msra.mxu1 %v1152_v36  ;;  %5992 = vmatprep.subr.bf16.mxu0 %v1145_v37  ;;  %v647_v36 = vld [vmem:[%s8677_s11 + $0xd8] sm:$0xff]  ;;  %v1170_v37 = vunpack.c.l.s8.bf16 %v639_v35 }
 0x15d   : > { %6014 = vmatprep.subr.bf16.mxu1 %v1161_v38  ;;  %v1186_v38 = vunpack.c.l.s8.bf16 %v647_v36 }
 0x15f   : > { %5993 = vmatpush3.bf16.msra.mxu0 %v1137_v41  ;;  %v656_v41 = vld [vmem:[%s8677_s11 + $0x120] sm:$0xff] }
 0x160   : > { %6015 = vmatpush3.bf16.msra.mxu1 %v1153_v42  ;;  %5994 = vmatprep.subr.bf16.mxu0 %v1146_v43  ;;  %v664_v42 = vld [vmem:[%s8677_s11 + $0x160] sm:$0xff]  ;;  %v1171_v43 = vunpack.c.h.s8.bf16 %v639_v35  ;;  %v1204_v45 = vunpack.c.l.s8.bf16 %v656_v41 }
 0x161   : > { %6016 = vmatprep.subr.bf16.mxu1 %v1162_v44  ;;  %v1187_v44 = vunpack.c.h.s8.bf16 %v647_v36  ;;  %v1220_v46 = vunpack.c.l.s8.bf16 %v664_v42 }
 0x163   : > { %5995 = vmatpush3.bf16.msra.mxu0 %v1138_v47  ;;  %v652_v47 = vld [vmem:[%s8677_s11 + $0x100] sm:$0xff] }
 0x164   : > { %6017 = vmatpush3.bf16.msra.mxu1 %v1154_v48  ;;  %5996 = vmatprep.subr.bf16.mxu0 %v1147_v49  ;;  %v660_v48 = vld [vmem:[%s8677_s11 + $0x140] sm:$0xff]  ;;  %v5844_v49 = vcombine.low %v8740_v61, %v8740_v61  ;;  %v1197_v61 = vunpack.c.h.s8.bf16 %v652_v47 }
 0x165   : > { %6018 = vmatprep.subr.bf16.mxu1 %v1163_v50  ;;  %v5846_v50 = vcombine.low %v8743_v62, %v8743_v62  ;;  %v1213_v62 = vunpack.c.h.s8.bf16 %v660_v48 }
 0x167   : > { %5997 = vmatpush3.bf16.msra.mxu0 %v1139_v53  ;;  %v1196_v53 = vunpack.c.l.s8.bf16 %v652_v47  ;;  %v673_v47 = vld [vmem:[%s8677_s11 + $0x1a8] sm:$0xff] }
 0x168   : > { %6019 = vmatpush3.bf16.msra.mxu1 %v1155_v54  ;;  %6026 = vmatprep.subr.bf16.mxu0 %v1172_v55  ;;  %v1212_v54 = vunpack.c.l.s8.bf16 %v660_v48  ;;  %v1205_v55 = vunpack.c.h.s8.bf16 %v656_v41  ;;  %v8800_v41 = vld [vmem:[%s8670_s16 + $0x30] sm:$0xff]  ;;  %v681_v48 = vld [vmem:[%s8677_s11 + $0x1e8] sm:$0xff] }
 0x169   : > { %6048 = vmatprep.subr.bf16.mxu1 %v1188_v56  ;;  %v1221_v56 = vunpack.c.h.s8.bf16 %v664_v42  ;;  %v8803_v42 = vld [vmem:[%s8670_s16 + $0x38] sm:$0xff] }
 0x16a   : > { %2637 = vmatmul.mubr.bf16.vlgmr.msra.gmra.mrb[0].mxu0 %v5840_v59  ;;  %v5849_v59 = vcombine.high %v8770_v51, %v8770_v51 }
 0x16b   : > { %2677 = vmatmul.mubr.bf16.vlgmr.msra.gmra.mrb[0].mxu1 %v5842_v60  ;;  %6027 = vmatpush3.bf16.msra.mxu0 %v1164_v63  ;;  %v5851_v60 = vcombine.high %v8773_v52, %v8773_v52  ;;  %v1206_v63 = vunpack.c.l.s8.bf16 %v657_v57 }
 0x16c   : > { %6049 = vmatpush3.bf16.msra.mxu1 %v1180_v0  ;;  %6028 = vmatprep.subr.bf16.mxu0 %v1173_v1  ;;  %v1222_v0 = vunpack.c.l.s8.bf16 %v665_v58  ;;  %v653_v1 = vld [vmem:[%s8677_s11 + $0x108] sm:$0xff] }
 0x16d   : > { %6050 = vmatprep.subr.bf16.mxu1 %v1189_v2  ;;  %2716 = vmatprep.mubr.bf16.mxu0 %v5845_v5  ;;  %v661_v2 = vld [vmem:[%s8677_s11 + $0x148] sm:$0xff]  ;;  %v1198_v3 = vunpack.c.l.s8.bf16 %v653_v1  ;;  %v1207_v5 = vunpack.c.h.s8.bf16 %v657_v57 }
 0x16e   : > { %2756 = vmatprep.mubr.bf16.mxu1 %v5847_v6  ;;  %v1214_v4 = vunpack.c.l.s8.bf16 %v661_v2  ;;  %v1223_v6 = vunpack.c.h.s8.bf16 %v665_v58 }
 0x16f   : > { %6029 = vmatpush3.bf16.msra.mxu0 %v1165_v7  ;;  %v658_v7 = vld [vmem:[%s8677_s11 + $0x130] sm:$0xff] }
 0x170   : > { %6051 = vmatpush3.bf16.msra.mxu1 %v1181_v8  ;;  %6030 = vmatprep.subr.bf16.mxu0 %v1174_v9  ;;  %v666_v8 = vld [vmem:[%s8677_s11 + $0x170] sm:$0xff]  ;;  %v1199_v9 = vunpack.c.h.s8.bf16 %v653_v1  ;;  %v1208_v11 = vunpack.c.l.s8.bf16 %v658_v7  ;;  %v1209_v17 = vunpack.c.h.s8.bf16 %v658_v7 }
 0x171   : > { %6052 = vmatprep.subr.bf16.mxu1 %v1190_v10  ;;  %v1215_v10 = vunpack.c.h.s8.bf16 %v661_v2  ;;  %v1224_v12 = vunpack.c.l.s8.bf16 %v666_v8  ;;  %v1225_v18 = vunpack.c.h.s8.bf16 %v666_v8 }
 0x173   : > { %6031 = vmatpush3.bf16.msra.mxu0 %v1166_v13  ;;  %v654_v13 = vld [vmem:[%s8677_s11 + $0x110] sm:$0xff] }
 0x174   : > { %6053 = vmatpush3.bf16.msra.mxu1 %v1182_v14  ;;  %6032 = vmatprep.subr.bf16.mxu0 %v1175_v15  ;;  %v662_v14 = vld [vmem:[%s8677_s11 + $0x150] sm:$0xff]  ;;  %v1200_v15 = vunpack.c.l.s8.bf16 %v654_v13 }
 0x175   : > { %6054 = vmatprep.subr.bf16.mxu1 %v1191_v16  ;;  %v1216_v16 = vunpack.c.l.s8.bf16 %v662_v14 }
 0x177   : > { %6033 = vmatpush3.bf16.msra.mxu0 %v1167_v19  ;;  %v659_v19 = vld [vmem:[%s8677_s11 + $0x138] sm:$0xff] }
 0x178   : > { %6055 = vmatpush3.bf16.msra.mxu1 %v1183_v20  ;;  %6034 = vmatprep.subr.bf16.mxu0 %v1176_v21  ;;  %v667_v20 = vld [vmem:[%s8677_s11 + $0x178] sm:$0xff]  ;;  %v1201_v21 = vunpack.c.h.s8.bf16 %v654_v13  ;;  %v1210_v23 = vunpack.c.l.s8.bf16 %v659_v19  ;;  %v1211_v29 = vunpack.c.h.s8.bf16 %v659_v19 }
 0x179   : > { %6056 = vmatprep.subr.bf16.mxu1 %v1192_v22  ;;  %v1217_v22 = vunpack.c.h.s8.bf16 %v662_v14  ;;  %v1226_v24 = vunpack.c.l.s8.bf16 %v667_v20  ;;  %v1227_v30 = vunpack.c.h.s8.bf16 %v667_v20 }
 0x17b   : > { %6035 = vmatpush3.bf16.msra.mxu0 %v1168_v25  ;;  %v655_v25 = vld [vmem:[%s8677_s11 + $0x118] sm:$0xff] }
 0x17c   : > { %6057 = vmatpush3.bf16.msra.mxu1 %v1184_v26  ;;  %6036 = vmatprep.subr.bf16.mxu0 %v1177_v27  ;;  %v663_v26 = vld [vmem:[%s8677_s11 + $0x158] sm:$0xff]  ;;  %v1202_v27 = vunpack.c.l.s8.bf16 %v655_v25 }
 0x17d   : > { %6058 = vmatprep.subr.bf16.mxu1 %v1193_v28  ;;  %v1218_v28 = vunpack.c.l.s8.bf16 %v663_v26 }
 0x17f   : > { %6037 = vmatpush3.bf16.msra.mxu0 %v1169_v31  ;;  %v672_v31 = vld [vmem:[%s8677_s11 + $0x1a0] sm:$0xff] }
 0x180   : > { %6059 = vmatpush3.bf16.msra.mxu1 %v1185_v32  ;;  %6038 = vmatprep.subr.bf16.mxu0 %v1178_v33  ;;  %v680_v32 = vld [vmem:[%s8677_s11 + $0x1e0] sm:$0xff]  ;;  %v1203_v33 = vunpack.c.h.s8.bf16 %v655_v25  ;;  %v1236_v35 = vunpack.c.l.s8.bf16 %v672_v31 }
 0x181   : > { %6060 = vmatprep.subr.bf16.mxu1 %v1194_v34  ;;  %v1219_v34 = vunpack.c.h.s8.bf16 %v663_v26  ;;  %v1252_v36 = vunpack.c.l.s8.bf16 %v680_v32 }
 0x183   : > { %6039 = vmatpush3.bf16.msra.mxu0 %v1170_v37  ;;  %v668_v37 = vld [vmem:[%s8677_s11 + $0x180] sm:$0xff] }
 0x184   : > { %6061 = vmatpush3.bf16.msra.mxu1 %v1186_v38  ;;  %6040 = vmatprep.subr.bf16.mxu0 %v1179_v39  ;;  %v676_v38 = vld [vmem:[%s8677_s11 + $0x1c0] sm:$0xff]  ;;  %v5848_v39 = vcombine.low %v8770_v51, %v8770_v51  ;;  %v1229_v51 = vunpack.c.h.s8.bf16 %v668_v37 }
 0x185   : > { %6062 = vmatprep.subr.bf16.mxu1 %v1195_v40  ;;  %v5850_v40 = vcombine.low %v8773_v52, %v8773_v52  ;;  %v1245_v52 = vunpack.c.h.s8.bf16 %v676_v38 }
 0x187   : > { %6041 = vmatpush3.bf16.msra.mxu0 %v1171_v43  ;;  %v1228_v43 = vunpack.c.l.s8.bf16 %v668_v37  ;;  %v689_v37 = vld [vmem:[%s8677_s11 + $0x228] sm:$0xff] }
 0x188   : > { %6063 = vmatpush3.bf16.msra.mxu1 %v1187_v44  ;;  %6070 = vmatprep.subr.bf16.mxu0 %v1204_v45  ;;  %v1244_v44 = vunpack.c.l.s8.bf16 %v676_v38  ;;  %v1237_v45 = vunpack.c.h.s8.bf16 %v672_v31  ;;  %v8830_v31 = vld [vmem:[%s8670_s16 + $0x40] sm:$0xff]  ;;  %v697_v38 = vld [vmem:[%s8677_s11 + $0x268] sm:$0xff] }
 0x189   : > { %6092 = vmatprep.subr.bf16.mxu1 %v1220_v46  ;;  %v1253_v46 = vunpack.c.h.s8.bf16 %v680_v32  ;;  %v8833_v32 = vld [vmem:[%s8670_s16 + $0x48] sm:$0xff] }
 0x18a   : > { %2717 = vmatmul.mubr.bf16.vlgmr.msra.gmra.mrb[4].mxu0 %v5844_v49  ;;  %v5853_v49 = vcombine.high %v8800_v41, %v8800_v41 }
 0x18b   : > { %2757 = vmatmul.mubr.bf16.vlgmr.msra.gmra.mrb[4].mxu1 %v5846_v50  ;;  %6071 = vmatpush3.bf16.msra.mxu0 %v1196_v53  ;;  %v5855_v50 = vcombine.high %v8803_v42, %v8803_v42  ;;  %v1238_v53 = vunpack.c.l.s8.bf16 %v673_v47 }
 0x18c   : > { %6093 = vmatpush3.bf16.msra.mxu1 %v1212_v54  ;;  %6072 = vmatprep.subr.bf16.mxu0 %v1205_v55  ;;  %v1254_v54 = vunpack.c.l.s8.bf16 %v681_v48  ;;  %v669_v55 = vld [vmem:[%s8677_s11 + $0x188] sm:$0xff] }
 0x18d   : > { %6094 = vmatprep.subr.bf16.mxu1 %v1221_v56  ;;  %2796 = vmatprep.mubr.bf16.mxu0 %v5849_v59  ;;  %v677_v56 = vld [vmem:[%s8677_s11 + $0x1c8] sm:$0xff]  ;;  %v1230_v57 = vunpack.c.l.s8.bf16 %v669_v55  ;;  %v1239_v59 = vunpack.c.h.s8.bf16 %v673_v47 }
 0x18e   : > { %2836 = vmatprep.mubr.bf16.mxu1 %v5851_v60  ;;  %v1246_v58 = vunpack.c.l.s8.bf16 %v677_v56  ;;  %v1255_v60 = vunpack.c.h.s8.bf16 %v681_v48 }
 0x18f   : > { %6073 = vmatpush3.bf16.msra.mxu0 %v1197_v61  ;;  %v674_v61 = vld [vmem:[%s8677_s11 + $0x1b0] sm:$0xff] }
 0x190   : > { %6095 = vmatpush3.bf16.msra.mxu1 %v1213_v62  ;;  %6074 = vmatprep.subr.bf16.mxu0 %v1206_v63  ;;  %v682_v62 = vld [vmem:[%s8677_s11 + $0x1f0] sm:$0xff]  ;;  %v1231_v63 = vunpack.c.h.s8.bf16 %v669_v55  ;;  %v1240_v1 = vunpack.c.l.s8.bf16 %v674_v61  ;;  %v1241_v7 = vunpack.c.h.s8.bf16 %v674_v61 }
 0x191   : > { %6096 = vmatprep.subr.bf16.mxu1 %v1222_v0  ;;  %v1247_v0 = vunpack.c.h.s8.bf16 %v677_v56  ;;  %v1256_v2 = vunpack.c.l.s8.bf16 %v682_v62  ;;  %v1257_v8 = vunpack.c.h.s8.bf16 %v682_v62 }
 0x193   : > { %6075 = vmatpush3.bf16.msra.mxu0 %v1198_v3  ;;  %v670_v3 = vld [vmem:[%s8677_s11 + $0x190] sm:$0xff] }
 0x194   : > { %6097 = vmatpush3.bf16.msra.mxu1 %v1214_v4  ;;  %6076 = vmatprep.subr.bf16.mxu0 %v1207_v5  ;;  %v678_v4 = vld [vmem:[%s8677_s11 + $0x1d0] sm:$0xff]  ;;  %v1232_v5 = vunpack.c.l.s8.bf16 %v670_v3 }
 0x195   : > { %6098 = vmatprep.subr.bf16.mxu1 %v1223_v6  ;;  %v1248_v6 = vunpack.c.l.s8.bf16 %v678_v4 }
 0x197   : > { %6077 = vmatpush3.bf16.msra.mxu0 %v1199_v9  ;;  %v675_v9 = vld [vmem:[%s8677_s11 + $0x1b8] sm:$0xff] }
 0x198   : > { %6099 = vmatpush3.bf16.msra.mxu1 %v1215_v10  ;;  %6078 = vmatprep.subr.bf16.mxu0 %v1208_v11  ;;  %v683_v10 = vld [vmem:[%s8677_s11 + $0x1f8] sm:$0xff]  ;;  %v1233_v11 = vunpack.c.h.s8.bf16 %v670_v3  ;;  %v1242_v13 = vunpack.c.l.s8.bf16 %v675_v9  ;;  %v1243_v19 = vunpack.c.h.s8.bf16 %v675_v9 }
 0x199   : > { %6100 = vmatprep.subr.bf16.mxu1 %v1224_v12  ;;  %v1249_v12 = vunpack.c.h.s8.bf16 %v678_v4  ;;  %v1258_v14 = vunpack.c.l.s8.bf16 %v683_v10  ;;  %v1259_v20 = vunpack.c.h.s8.bf16 %v683_v10 }
 0x19b   : > { %6079 = vmatpush3.bf16.msra.mxu0 %v1200_v15  ;;  %v671_v15 = vld [vmem:[%s8677_s11 + $0x198] sm:$0xff] }
 0x19c   : > { %6101 = vmatpush3.bf16.msra.mxu1 %v1216_v16  ;;  %6080 = vmatprep.subr.bf16.mxu0 %v1209_v17  ;;  %v679_v16 = vld [vmem:[%s8677_s11 + $0x1d8] sm:$0xff]  ;;  %v1234_v17 = vunpack.c.l.s8.bf16 %v671_v15 }
 0x19d   : > { %6102 = vmatprep.subr.bf16.mxu1 %v1225_v18  ;;  %v1250_v18 = vunpack.c.l.s8.bf16 %v679_v16 }
 0x19f   : > { %6081 = vmatpush3.bf16.msra.mxu0 %v1201_v21  ;;  %v688_v21 = vld [vmem:[%s8677_s11 + $0x220] sm:$0xff] }
 0x1a0   : > { %6103 = vmatpush3.bf16.msra.mxu1 %v1217_v22  ;;  %6082 = vmatprep.subr.bf16.mxu0 %v1210_v23  ;;  %v696_v22 = vld [vmem:[%s8677_s11 + $0x260] sm:$0xff]  ;;  %v1235_v23 = vunpack.c.h.s8.bf16 %v671_v15  ;;  %v1268_v25 = vunpack.c.l.s8.bf16 %v688_v21 }
 0x1a1   : > { %6104 = vmatprep.subr.bf16.mxu1 %v1226_v24  ;;  %v1251_v24 = vunpack.c.h.s8.bf16 %v679_v16  ;;  %v1284_v26 = vunpack.c.l.s8.bf16 %v696_v22 }
 0x1a3   : > { %6083 = vmatpush3.bf16.msra.mxu0 %v1202_v27  ;;  %v684_v27 = vld [vmem:[%s8677_s11 + $0x200] sm:$0xff] }
 0x1a4   : > { %6105 = vmatpush3.bf16.msra.mxu1 %v1218_v28  ;;  %6084 = vmatprep.subr.bf16.mxu0 %v1211_v29  ;;  %v692_v28 = vld [vmem:[%s8677_s11 + $0x240] sm:$0xff]  ;;  %v5852_v29 = vcombine.low %v8800_v41, %v8800_v41  ;;  %v1261_v41 = vunpack.c.h.s8.bf16 %v684_v27 }
 0x1a5   : > { %6106 = vmatprep.subr.bf16.mxu1 %v1227_v30  ;;  %v5854_v30 = vcombine.low %v8803_v42, %v8803_v42  ;;  %v1277_v42 = vunpack.c.h.s8.bf16 %v692_v28 }
 0x1a7   : > { %6085 = vmatpush3.bf16.msra.mxu0 %v1203_v33  ;;  %v1260_v33 = vunpack.c.l.s8.bf16 %v684_v27  ;;  %v705_v27 = vld [vmem:[%s8677_s11 + $0x2a8] sm:$0xff] }
 0x1a8   : > { %6107 = vmatpush3.bf16.msra.mxu1 %v1219_v34  ;;  %6114 = vmatprep.subr.bf16.mxu0 %v1236_v35  ;;  %v1276_v34 = vunpack.c.l.s8.bf16 %v692_v28  ;;  %v1269_v35 = vunpack.c.h.s8.bf16 %v688_v21  ;;  %v8860_v21 = vld [vmem:[%s8670_s16 + $0x50] sm:$0xff]  ;;  %v713_v28 = vld [vmem:[%s8677_s11 + $0x2e8] sm:$0xff] }
 0x1a9   : > { %6136 = vmatprep.subr.bf16.mxu1 %v1252_v36  ;;  %v1285_v36 = vunpack.c.h.s8.bf16 %v696_v22  ;;  %v8863_v22 = vld [vmem:[%s8670_s16 + $0x58] sm:$0xff] }
 0x1aa   : > { %2797 = vmatmul.mubr.bf16.vlgmr.msra.gmra.mrb[8].mxu0 %v5848_v39  ;;  %v5857_v39 = vcombine.high %v8830_v31, %v8830_v31 }
 0x1ab   : > { %2837 = vmatmul.mubr.bf16.vlgmr.msra.gmra.mrb[8].mxu1 %v5850_v40  ;;  %6115 = vmatpush3.bf16.msra.mxu0 %v1228_v43  ;;  %v5859_v40 = vcombine.high %v8833_v32, %v8833_v32  ;;  %v1270_v43 = vunpack.c.l.s8.bf16 %v689_v37 }
 0x1ac   : > { %6137 = vmatpush3.bf16.msra.mxu1 %v1244_v44  ;;  %6116 = vmatprep.subr.bf16.mxu0 %v1237_v45  ;;  %v1286_v44 = vunpack.c.l.s8.bf16 %v697_v38  ;;  %v685_v45 = vld [vmem:[%s8677_s11 + $0x208] sm:$0xff] }
 0x1ad   : > { %6138 = vmatprep.subr.bf16.mxu1 %v1253_v46  ;;  %2876 = vmatprep.mubr.bf16.mxu0 %v5853_v49  ;;  %v693_v46 = vld [vmem:[%s8677_s11 + $0x248] sm:$0xff]  ;;  %v1262_v47 = vunpack.c.l.s8.bf16 %v685_v45  ;;  %v1271_v49 = vunpack.c.h.s8.bf16 %v689_v37 }
 0x1ae   : > { %2916 = vmatprep.mubr.bf16.mxu1 %v5855_v50  ;;  %v1278_v48 = vunpack.c.l.s8.bf16 %v693_v46  ;;  %v1287_v50 = vunpack.c.h.s8.bf16 %v697_v38 }
 0x1af   : > { %6117 = vmatpush3.bf16.msra.mxu0 %v1229_v51  ;;  %v690_v51 = vld [vmem:[%s8677_s11 + $0x230] sm:$0xff] }
 0x1b0   : > { %6139 = vmatpush3.bf16.msra.mxu1 %v1245_v52  ;;  %6118 = vmatprep.subr.bf16.mxu0 %v1238_v53  ;;  %v698_v52 = vld [vmem:[%s8677_s11 + $0x270] sm:$0xff]  ;;  %v1263_v53 = vunpack.c.h.s8.bf16 %v685_v45  ;;  %v1272_v55 = vunpack.c.l.s8.bf16 %v690_v51  ;;  %v1273_v61 = vunpack.c.h.s8.bf16 %v690_v51 }
 0x1b1   : > { %6140 = vmatprep.subr.bf16.mxu1 %v1254_v54  ;;  %v1279_v54 = vunpack.c.h.s8.bf16 %v693_v46  ;;  %v1288_v56 = vunpack.c.l.s8.bf16 %v698_v52  ;;  %v1289_v62 = vunpack.c.h.s8.bf16 %v698_v52 }
 0x1b3   : > { %6119 = vmatpush3.bf16.msra.mxu0 %v1230_v57  ;;  %v686_v57 = vld [vmem:[%s8677_s11 + $0x210] sm:$0xff] }
 0x1b4   : > { %6141 = vmatpush3.bf16.msra.mxu1 %v1246_v58  ;;  %6120 = vmatprep.subr.bf16.mxu0 %v1239_v59  ;;  %v694_v58 = vld [vmem:[%s8677_s11 + $0x250] sm:$0xff]  ;;  %v1264_v59 = vunpack.c.l.s8.bf16 %v686_v57 }
 0x1b5   : > { %6142 = vmatprep.subr.bf16.mxu1 %v1255_v60  ;;  %v1280_v60 = vunpack.c.l.s8.bf16 %v694_v58 }
 0x1b7   : > { %6121 = vmatpush3.bf16.msra.mxu0 %v1231_v63  ;;  %v691_v63 = vld [vmem:[%s8677_s11 + $0x238] sm:$0xff] }
 0x1b8   : > { %6143 = vmatpush3.bf16.msra.mxu1 %v1247_v0  ;;  %6122 = vmatprep.subr.bf16.mxu0 %v1240_v1  ;;  %v699_v0 = vld [vmem:[%s8677_s11 + $0x278] sm:$0xff]  ;;  %v1265_v1 = vunpack.c.h.s8.bf16 %v686_v57  ;;  %v1274_v3 = vunpack.c.l.s8.bf16 %v691_v63  ;;  %v1275_v9 = vunpack.c.h.s8.bf16 %v691_v63 }
 0x1b9   : > { %6144 = vmatprep.subr.bf16.mxu1 %v1256_v2  ;;  %v1281_v2 = vunpack.c.h.s8.bf16 %v694_v58  ;;  %v1290_v4 = vunpack.c.l.s8.bf16 %v699_v0  ;;  %v1291_v10 = vunpack.c.h.s8.bf16 %v699_v0 }
 0x1bb   : > { %6123 = vmatpush3.bf16.msra.mxu0 %v1232_v5  ;;  %v687_v5 = vld [vmem:[%s8677_s11 + $0x218] sm:$0xff] }
 0x1bc   : > { %6145 = vmatpush3.bf16.msra.mxu1 %v1248_v6  ;;  %6124 = vmatprep.subr.bf16.mxu0 %v1241_v7  ;;  %v695_v6 = vld [vmem:[%s8677_s11 + $0x258] sm:$0xff]  ;;  %v1266_v7 = vunpack.c.l.s8.bf16 %v687_v5 }
 0x1bd   : > { %6146 = vmatprep.subr.bf16.mxu1 %v1257_v8  ;;  %v1282_v8 = vunpack.c.l.s8.bf16 %v695_v6 }
 0x1bf   : > { %6125 = vmatpush3.bf16.msra.mxu0 %v1233_v11  ;;  %v704_v11 = vld [vmem:[%s8677_s11 + $0x2a0] sm:$0xff] }
 0x1c0   : > { %6147 = vmatpush3.bf16.msra.mxu1 %v1249_v12  ;;  %6126 = vmatprep.subr.bf16.mxu0 %v1242_v13  ;;  %v712_v12 = vld [vmem:[%s8677_s11 + $0x2e0] sm:$0xff]  ;;  %v1267_v13 = vunpack.c.h.s8.bf16 %v687_v5  ;;  %v1300_v15 = vunpack.c.l.s8.bf16 %v704_v11 }
 0x1c1   : > { %6148 = vmatprep.subr.bf16.mxu1 %v1258_v14  ;;  %v1283_v14 = vunpack.c.h.s8.bf16 %v695_v6  ;;  %v1316_v16 = vunpack.c.l.s8.bf16 %v712_v12 }
 0x1c3   : > { %6127 = vmatpush3.bf16.msra.mxu0 %v1234_v17  ;;  %v700_v17 = vld [vmem:[%s8677_s11 + $0x280] sm:$0xff] }
 0x1c4   : > { %6149 = vmatpush3.bf16.msra.mxu1 %v1250_v18  ;;  %6128 = vmatprep.subr.bf16.mxu0 %v1243_v19  ;;  %v708_v18 = vld [vmem:[%s8677_s11 + $0x2c0] sm:$0xff]  ;;  %v5856_v19 = vcombine.low %v8830_v31, %v8830_v31  ;;  %v1293_v31 = vunpack.c.h.s8.bf16 %v700_v17 }
 0x1c5   : > { %6150 = vmatprep.subr.bf16.mxu1 %v1259_v20  ;;  %v5858_v20 = vcombine.low %v8833_v32, %v8833_v32  ;;  %v1309_v32 = vunpack.c.h.s8.bf16 %v708_v18 }
 0x1c7   : > { %6129 = vmatpush3.bf16.msra.mxu0 %v1235_v23  ;;  %v1292_v23 = vunpack.c.l.s8.bf16 %v700_v17  ;;  %v721_v17 = vld [vmem:[%s8677_s11 + $0x328] sm:$0xff] }
 0x1c8   : > { %6151 = vmatpush3.bf16.msra.mxu1 %v1251_v24  ;;  %6158 = vmatprep.subr.bf16.mxu0 %v1268_v25  ;;  %v1308_v24 = vunpack.c.l.s8.bf16 %v708_v18  ;;  %v1301_v25 = vunpack.c.h.s8.bf16 %v704_v11  ;;  %v8890_v11 = vld [vmem:[%s8670_s16 + $0x60] sm:$0xff]  ;;  %v729_v18 = vld [vmem:[%s8677_s11 + $0x368] sm:$0xff] }
 0x1c9   : > { %6180 = vmatprep.subr.bf16.mxu1 %v1284_v26  ;;  %v1317_v26 = vunpack.c.h.s8.bf16 %v712_v12  ;;  %v8893_v12 = vld [vmem:[%s8670_s16 + $0x68] sm:$0xff] }
 0x1ca   : > { %2877 = vmatmul.mubr.bf16.vlgmr.msra.gmra.mrb[12].mxu0 %v5852_v29  ;;  %v5861_v29 = vcombine.high %v8860_v21, %v8860_v21 }
 0x1cb   : > { %2917 = vmatmul.mubr.bf16.vlgmr.msra.gmra.mrb[12].mxu1 %v5854_v30  ;;  %6159 = vmatpush3.bf16.msra.mxu0 %v1260_v33  ;;  %v5863_v30 = vcombine.high %v8863_v22, %v8863_v22  ;;  %v1302_v33 = vunpack.c.l.s8.bf16 %v705_v27 }
 0x1cc   : > { %6181 = vmatpush3.bf16.msra.mxu1 %v1276_v34  ;;  %6160 = vmatprep.subr.bf16.mxu0 %v1269_v35  ;;  %v1318_v34 = vunpack.c.l.s8.bf16 %v713_v28  ;;  %v701_v35 = vld [vmem:[%s8677_s11 + $0x288] sm:$0xff] }
 0x1cd   : > { %6182 = vmatprep.subr.bf16.mxu1 %v1285_v36  ;;  %2956 = vmatprep.mubr.bf16.mxu0 %v5857_v39  ;;  %v709_v36 = vld [vmem:[%s8677_s11 + $0x2c8] sm:$0xff]  ;;  %v1294_v37 = vunpack.c.l.s8.bf16 %v701_v35  ;;  %v1303_v39 = vunpack.c.h.s8.bf16 %v705_v27 }
 0x1ce   : > { %2996 = vmatprep.mubr.bf16.mxu1 %v5859_v40  ;;  %v1310_v38 = vunpack.c.l.s8.bf16 %v709_v36  ;;  %v1319_v40 = vunpack.c.h.s8.bf16 %v713_v28 }
 0x1cf   : > { %6161 = vmatpush3.bf16.msra.mxu0 %v1261_v41  ;;  %v706_v41 = vld [vmem:[%s8677_s11 + $0x2b0] sm:$0xff] }
 0x1d0   : > { %6183 = vmatpush3.bf16.msra.mxu1 %v1277_v42  ;;  %6162 = vmatprep.subr.bf16.mxu0 %v1270_v43  ;;  %v714_v42 = vld [vmem:[%s8677_s11 + $0x2f0] sm:$0xff]  ;;  %v1295_v43 = vunpack.c.h.s8.bf16 %v701_v35  ;;  %v1304_v45 = vunpack.c.l.s8.bf16 %v706_v41  ;;  %v1305_v51 = vunpack.c.h.s8.bf16 %v706_v41 }
 0x1d1   : > { %6184 = vmatprep.subr.bf16.mxu1 %v1286_v44  ;;  %v1311_v44 = vunpack.c.h.s8.bf16 %v709_v36  ;;  %v1320_v46 = vunpack.c.l.s8.bf16 %v714_v42  ;;  %v1321_v52 = vunpack.c.h.s8.bf16 %v714_v42 }
 0x1d3   : > { %6163 = vmatpush3.bf16.msra.mxu0 %v1262_v47  ;;  %v702_v47 = vld [vmem:[%s8677_s11 + $0x290] sm:$0xff] }
 0x1d4   : > { %6185 = vmatpush3.bf16.msra.mxu1 %v1278_v48  ;;  %6164 = vmatprep.subr.bf16.mxu0 %v1271_v49  ;;  %v710_v48 = vld [vmem:[%s8677_s11 + $0x2d0] sm:$0xff]  ;;  %v1296_v49 = vunpack.c.l.s8.bf16 %v702_v47 }
 0x1d5   : > { %6186 = vmatprep.subr.bf16.mxu1 %v1287_v50  ;;  %v1312_v50 = vunpack.c.l.s8.bf16 %v710_v48 }
 0x1d7   : > { %6165 = vmatpush3.bf16.msra.mxu0 %v1263_v53  ;;  %v707_v53 = vld [vmem:[%s8677_s11 + $0x2b8] sm:$0xff] }
 0x1d8   : > { %6187 = vmatpush3.bf16.msra.mxu1 %v1279_v54  ;;  %6166 = vmatprep.subr.bf16.mxu0 %v1272_v55  ;;  %v715_v54 = vld [vmem:[%s8677_s11 + $0x2f8] sm:$0xff]  ;;  %v1297_v55 = vunpack.c.h.s8.bf16 %v702_v47  ;;  %v1306_v57 = vunpack.c.l.s8.bf16 %v707_v53  ;;  %v1307_v63 = vunpack.c.h.s8.bf16 %v707_v53 }
 0x1d9   : > { %6188 = vmatprep.subr.bf16.mxu1 %v1288_v56  ;;  %v1313_v56 = vunpack.c.h.s8.bf16 %v710_v48  ;;  %v1322_v58 = vunpack.c.l.s8.bf16 %v715_v54  ;;  %v1323_v0 = vunpack.c.h.s8.bf16 %v715_v54 }
 0x1db   : > { %6167 = vmatpush3.bf16.msra.mxu0 %v1264_v59  ;;  %v703_v59 = vld [vmem:[%s8677_s11 + $0x298] sm:$0xff] }
 0x1dc   : > { %6189 = vmatpush3.bf16.msra.mxu1 %v1280_v60  ;;  %6168 = vmatprep.subr.bf16.mxu0 %v1273_v61  ;;  %v711_v60 = vld [vmem:[%s8677_s11 + $0x2d8] sm:$0xff]  ;;  %v1298_v61 = vunpack.c.l.s8.bf16 %v703_v59 }
 0x1dd   : > { %6190 = vmatprep.subr.bf16.mxu1 %v1289_v62  ;;  %v1314_v62 = vunpack.c.l.s8.bf16 %v711_v60 }
 0x1df   : > { %6169 = vmatpush3.bf16.msra.mxu0 %v1265_v1  ;;  %v720_v1 = vld [vmem:[%s8677_s11 + $0x320] sm:$0xff] }
 0x1e0   : > { %6191 = vmatpush3.bf16.msra.mxu1 %v1281_v2  ;;  %6170 = vmatprep.subr.bf16.mxu0 %v1274_v3  ;;  %v728_v2 = vld [vmem:[%s8677_s11 + $0x360] sm:$0xff]  ;;  %v1299_v3 = vunpack.c.h.s8.bf16 %v703_v59  ;;  %v1332_v5 = vunpack.c.l.s8.bf16 %v720_v1 }
 0x1e1   : > { %6192 = vmatprep.subr.bf16.mxu1 %v1290_v4  ;;  %v1315_v4 = vunpack.c.h.s8.bf16 %v711_v60  ;;  %v1348_v6 = vunpack.c.l.s8.bf16 %v728_v2 }
 0x1e3   : > { %6171 = vmatpush3.bf16.msra.mxu0 %v1266_v7  ;;  %v716_v7 = vld [vmem:[%s8677_s11 + $0x300] sm:$0xff] }
 0x1e4   : > { %6193 = vmatpush3.bf16.msra.mxu1 %v1282_v8  ;;  %6172 = vmatprep.subr.bf16.mxu0 %v1275_v9  ;;  %v724_v8 = vld [vmem:[%s8677_s11 + $0x340] sm:$0xff]  ;;  %v5860_v9 = vcombine.low %v8860_v21, %v8860_v21  ;;  %v1325_v21 = vunpack.c.h.s8.bf16 %v716_v7 }
 0x1e5   : > { %6194 = vmatprep.subr.bf16.mxu1 %v1291_v10  ;;  %v5862_v10 = vcombine.low %v8863_v22, %v8863_v22  ;;  %v1341_v22 = vunpack.c.h.s8.bf16 %v724_v8 }
 0x1e7   : > { %6173 = vmatpush3.bf16.msra.mxu0 %v1267_v13  ;;  %v1324_v13 = vunpack.c.l.s8.bf16 %v716_v7  ;;  %v737_v7 = vld [vmem:[%s8677_s11 + $0x3a8] sm:$0xff] }
 0x1e8   : > { %6195 = vmatpush3.bf16.msra.mxu1 %v1283_v14  ;;  %6202 = vmatprep.subr.bf16.mxu0 %v1300_v15  ;;  %v1340_v14 = vunpack.c.l.s8.bf16 %v724_v8  ;;  %v1333_v15 = vunpack.c.h.s8.bf16 %v720_v1  ;;  %v8920_v1 = vld [vmem:[%s8670_s16 + $0x70] sm:$0xff]  ;;  %v745_v8 = vld [vmem:[%s8677_s11 + $0x3e8] sm:$0xff] }
 0x1e9   : > { %6224 = vmatprep.subr.bf16.mxu1 %v1316_v16  ;;  %v1349_v16 = vunpack.c.h.s8.bf16 %v728_v2  ;;  %v8923_v2 = vld [vmem:[%s8670_s16 + $0x78] sm:$0xff] }
 0x1ea   : > { %2957 = vmatmul.mubr.bf16.vlgmr.msra.gmra.mrb[16].mxu0 %v5856_v19  ;;  %v5865_v19 = vcombine.high %v8890_v11, %v8890_v11 }
 0x1eb   : > { %2997 = vmatmul.mubr.bf16.vlgmr.msra.gmra.mrb[16].mxu1 %v5858_v20  ;;  %6203 = vmatpush3.bf16.msra.mxu0 %v1292_v23  ;;  %v5867_v20 = vcombine.high %v8893_v12, %v8893_v12  ;;  %v1334_v23 = vunpack.c.l.s8.bf16 %v721_v17 }
 0x1ec   : > { %6225 = vmatpush3.bf16.msra.mxu1 %v1308_v24  ;;  %6204 = vmatprep.subr.bf16.mxu0 %v1301_v25  ;;  %v1350_v24 = vunpack.c.l.s8.bf16 %v729_v18  ;;  %v717_v25 = vld [vmem:[%s8677_s11 + $0x308] sm:$0xff] }
 0x1ed   : > { %6226 = vmatprep.subr.bf16.mxu1 %v1317_v26  ;;  %3036 = vmatprep.mubr.bf16.mxu0 %v5861_v29  ;;  %v725_v26 = vld [vmem:[%s8677_s11 + $0x348] sm:$0xff]  ;;  %v1326_v27 = vunpack.c.l.s8.bf16 %v717_v25  ;;  %v1335_v29 = vunpack.c.h.s8.bf16 %v721_v17 }
 0x1ee   : > { %3076 = vmatprep.mubr.bf16.mxu1 %v5863_v30  ;;  %v1342_v28 = vunpack.c.l.s8.bf16 %v725_v26  ;;  %v1351_v30 = vunpack.c.h.s8.bf16 %v729_v18 }
 0x1ef   : > { %6205 = vmatpush3.bf16.msra.mxu0 %v1293_v31  ;;  %v722_v31 = vld [vmem:[%s8677_s11 + $0x330] sm:$0xff] }
 0x1f0   : > { %6227 = vmatpush3.bf16.msra.mxu1 %v1309_v32  ;;  %6206 = vmatprep.subr.bf16.mxu0 %v1302_v33  ;;  %v730_v32 = vld [vmem:[%s8677_s11 + $0x370] sm:$0xff]  ;;  %v1327_v33 = vunpack.c.h.s8.bf16 %v717_v25  ;;  %v1336_v35 = vunpack.c.l.s8.bf16 %v722_v31  ;;  %v1337_v41 = vunpack.c.h.s8.bf16 %v722_v31 }
 0x1f1   : > { %6228 = vmatprep.subr.bf16.mxu1 %v1318_v34  ;;  %v1343_v34 = vunpack.c.h.s8.bf16 %v725_v26  ;;  %v1352_v36 = vunpack.c.l.s8.bf16 %v730_v32  ;;  %v1353_v42 = vunpack.c.h.s8.bf16 %v730_v32 }
 0x1f3   : > { %6207 = vmatpush3.bf16.msra.mxu0 %v1294_v37  ;;  %v718_v37 = vld [vmem:[%s8677_s11 + $0x310] sm:$0xff] }
 0x1f4   : > { %6229 = vmatpush3.bf16.msra.mxu1 %v1310_v38  ;;  %6208 = vmatprep.subr.bf16.mxu0 %v1303_v39  ;;  %v726_v38 = vld [vmem:[%s8677_s11 + $0x350] sm:$0xff]  ;;  %v1328_v39 = vunpack.c.l.s8.bf16 %v718_v37 }
 0x1f5   : > { %6230 = vmatprep.subr.bf16.mxu1 %v1319_v40  ;;  %v1344_v40 = vunpack.c.l.s8.bf16 %v726_v38 }
 0x1f7   : > { %6209 = vmatpush3.bf16.msra.mxu0 %v1295_v43  ;;  %v723_v43 = vld [vmem:[%s8677_s11 + $0x338] sm:$0xff] }
 0x1f8   : > { %6231 = vmatpush3.bf16.msra.mxu1 %v1311_v44  ;;  %6210 = vmatprep.subr.bf16.mxu0 %v1304_v45  ;;  %v731_v44 = vld [vmem:[%s8677_s11 + $0x378] sm:$0xff]  ;;  %v1329_v45 = vunpack.c.h.s8.bf16 %v718_v37  ;;  %v1338_v47 = vunpack.c.l.s8.bf16 %v723_v43  ;;  %v1339_v53 = vunpack.c.h.s8.bf16 %v723_v43 }
 0x1f9   : > { %6232 = vmatprep.subr.bf16.mxu1 %v1320_v46  ;;  %v1345_v46 = vunpack.c.h.s8.bf16 %v726_v38  ;;  %v1354_v48 = vunpack.c.l.s8.bf16 %v731_v44  ;;  %v1355_v54 = vunpack.c.h.s8.bf16 %v731_v44 }
 0x1fb   : > { %6211 = vmatpush3.bf16.msra.mxu0 %v1296_v49  ;;  %v719_v49 = vld [vmem:[%s8677_s11 + $0x318] sm:$0xff] }
 0x1fc   : > { %6233 = vmatpush3.bf16.msra.mxu1 %v1312_v50  ;;  %6212 = vmatprep.subr.bf16.mxu0 %v1305_v51  ;;  %v727_v50 = vld [vmem:[%s8677_s11 + $0x358] sm:$0xff]  ;;  %v1330_v51 = vunpack.c.l.s8.bf16 %v719_v49 }
 0x1fd   : > { %6234 = vmatprep.subr.bf16.mxu1 %v1321_v52  ;;  %v1346_v52 = vunpack.c.l.s8.bf16 %v727_v50 }
 0x1ff   : > { %6213 = vmatpush3.bf16.msra.mxu0 %v1297_v55  ;;  %v736_v55 = vld [vmem:[%s8677_s11 + $0x3a0] sm:$0xff] }
 0x200   : > { %6235 = vmatpush3.bf16.msra.mxu1 %v1313_v56  ;;  %6214 = vmatprep.subr.bf16.mxu0 %v1306_v57  ;;  %v744_v56 = vld [vmem:[%s8677_s11 + $0x3e0] sm:$0xff]  ;;  %v1331_v57 = vunpack.c.h.s8.bf16 %v719_v49  ;;  %v1364_v59 = vunpack.c.l.s8.bf16 %v736_v55 }
 0x201   : > { %6236 = vmatprep.subr.bf16.mxu1 %v1322_v58  ;;  %v1347_v58 = vunpack.c.h.s8.bf16 %v727_v50  ;;  %v1380_v60 = vunpack.c.l.s8.bf16 %v744_v56 }
 0x203   : > { %6215 = vmatpush3.bf16.msra.mxu0 %v1298_v61  ;;  %v732_v61 = vld [vmem:[%s8677_s11 + $0x380] sm:$0xff] }
 0x204   : > { %6237 = vmatpush3.bf16.msra.mxu1 %v1314_v62  ;;  %6216 = vmatprep.subr.bf16.mxu0 %v1307_v63  ;;  %v740_v62 = vld [vmem:[%s8677_s11 + $0x3c0] sm:$0xff]  ;;  %v5864_v63 = vcombine.low %v8890_v11, %v8890_v11  ;;  %v1357_v11 = vunpack.c.h.s8.bf16 %v732_v61 }
 0x205   : > { %6238 = vmatprep.subr.bf16.mxu1 %v1323_v0  ;;  %v5866_v0 = vcombine.low %v8893_v12, %v8893_v12  ;;  %v1373_v12 = vunpack.c.h.s8.bf16 %v740_v62 }
 0x207   : > { %6217 = vmatpush3.bf16.msra.mxu0 %v1299_v3  ;;  %v1356_v3 = vunpack.c.l.s8.bf16 %v732_v61 }
 0x208   : > { %6239 = vmatpush3.bf16.msra.mxu1 %v1315_v4  ;;  %6246 = vmatprep.subr.bf16.mxu0 %v1332_v5  ;;  %v1372_v4 = vunpack.c.l.s8.bf16 %v740_v62  ;;  %v1365_v5 = vunpack.c.h.s8.bf16 %v736_v55  ;;  %v748_v62 = vld [vmem:[%s8677_s11 + $0x400] sm:$0xff] }
 0x209   : > { %6268 = vmatprep.subr.bf16.mxu1 %v1348_v6  ;;  %v1381_v6 = vunpack.c.h.s8.bf16 %v744_v56  ;;  %v752_v56 = vld [vmem:[%s8677_s11 + $0x420] sm:$0xff] }
 0x20a   : > { %3037 = vmatmul.mubr.bf16.vlgmr.msra.gmra.mrb[20].mxu0 %v5860_v9  ;;  %v5869_v9 = vcombine.high %v8920_v1, %v8920_v1 }
 0x20b   : > { %3077 = vmatmul.mubr.bf16.vlgmr.msra.gmra.mrb[20].mxu1 %v5862_v10  ;;  %6247 = vmatpush3.bf16.msra.mxu0 %v1324_v13  ;;  %v5871_v10 = vcombine.high %v8923_v2, %v8923_v2  ;;  %v1366_v13 = vunpack.c.l.s8.bf16 %v737_v7 }
 0x20c   : > { %6269 = vmatpush3.bf16.msra.mxu1 %v1340_v14  ;;  %6248 = vmatprep.subr.bf16.mxu0 %v1333_v15  ;;  %v1382_v14 = vunpack.c.l.s8.bf16 %v745_v8  ;;  %v733_v15 = vld [vmem:[%s8677_s11 + $0x388] sm:$0xff] }
 0x20d   : > { %6270 = vmatprep.subr.bf16.mxu1 %v1349_v16  ;;  %3116 = vmatprep.mubr.bf16.mxu0 %v5865_v19  ;;  %v741_v16 = vld [vmem:[%s8677_s11 + $0x3c8] sm:$0xff]  ;;  %v1358_v17 = vunpack.c.l.s8.bf16 %v733_v15  ;;  %v1367_v19 = vunpack.c.h.s8.bf16 %v737_v7 }
 0x20e   : > { %3156 = vmatprep.mubr.bf16.mxu1 %v5867_v20  ;;  %v1374_v18 = vunpack.c.l.s8.bf16 %v741_v16  ;;  %v1383_v20 = vunpack.c.h.s8.bf16 %v745_v8  ;;  %v1397_v8 = vunpack.c.h.s8.bf16 %v752_v56 }
 0x20f   : > { %6249 = vmatpush3.bf16.msra.mxu0 %v1325_v21  ;;  %v738_v21 = vld [vmem:[%s8677_s11 + $0x3b0] sm:$0xff] }
 0x210   : > { %6271 = vmatpush3.bf16.msra.mxu1 %v1341_v22  ;;  %6250 = vmatprep.subr.bf16.mxu0 %v1334_v23  ;;  %v746_v22 = vld [vmem:[%s8677_s11 + $0x3f0] sm:$0xff]  ;;  %v1359_v23 = vunpack.c.h.s8.bf16 %v733_v15  ;;  %v1368_v25 = vunpack.c.l.s8.bf16 %v738_v21  ;;  %v1369_v31 = vunpack.c.h.s8.bf16 %v738_v21 }
 0x211   : > { %6272 = vmatprep.subr.bf16.mxu1 %v1350_v24  ;;  %v1375_v24 = vunpack.c.h.s8.bf16 %v741_v16  ;;  %v1384_v26 = vunpack.c.l.s8.bf16 %v746_v22  ;;  %v1385_v32 = vunpack.c.h.s8.bf16 %v746_v22  ;;  %v749_v16 = vld [vmem:[%s8677_s11 + $0x408] sm:$0xff]  ;;  %v754_v22 = vld [vmem:[%s8677_s11 + $0x430] sm:$0xff] }
 0x213   : > { %6251 = vmatpush3.bf16.msra.mxu0 %v1326_v27  ;;  %v734_v27 = vld [vmem:[%s8677_s11 + $0x390] sm:$0xff] }
 0x214   : > { %6273 = vmatpush3.bf16.msra.mxu1 %v1342_v28  ;;  %6252 = vmatprep.subr.bf16.mxu0 %v1335_v29  ;;  %v742_v28 = vld [vmem:[%s8677_s11 + $0x3d0] sm:$0xff]  ;;  %v1360_v29 = vunpack.c.l.s8.bf16 %v734_v27 }
 0x215   : > { %6274 = vmatprep.subr.bf16.mxu1 %v1351_v30  ;;  %v1376_v30 = vunpack.c.l.s8.bf16 %v742_v28 }
 0x217   : > { %6253 = vmatpush3.bf16.msra.mxu0 %v1327_v33  ;;  %v739_v33 = vld [vmem:[%s8677_s11 + $0x3b8] sm:$0xff] }
 0x218   : > { %6275 = vmatpush3.bf16.msra.mxu1 %v1343_v34  ;;  %6254 = vmatprep.subr.bf16.mxu0 %v1336_v35  ;;  %v747_v34 = vld [vmem:[%s8677_s11 + $0x3f8] sm:$0xff]  ;;  %v1361_v35 = vunpack.c.h.s8.bf16 %v734_v27  ;;  %v1370_v37 = vunpack.c.l.s8.bf16 %v739_v33 }
 0x219   : > { %6276 = vmatprep.subr.bf16.mxu1 %v1352_v36  ;;  %v1377_v36 = vunpack.c.h.s8.bf16 %v742_v28  ;;  %v1386_v38 = vunpack.c.l.s8.bf16 %v747_v34  ;;  %v750_v28 = vld [vmem:[%s8677_s11 + $0x410] sm:$0xff] }
 0x21b   : > { %6255 = vmatpush3.bf16.msra.mxu0 %v1328_v39  ;;  %v735_v39 = vld [vmem:[%s8677_s11 + $0x398] sm:$0xff] }
 0x21c   : > { %6277 = vmatpush3.bf16.msra.mxu1 %v1344_v40  ;;  %6256 = vmatprep.subr.bf16.mxu0 %v1337_v41  ;;  %v743_v40 = vld [vmem:[%s8677_s11 + $0x3d8] sm:$0xff]  ;;  %v1362_v49 = vunpack.c.l.s8.bf16 %v735_v39 }
 0x21d   : > { %6278 = vmatprep.subr.bf16.mxu1 %v1353_v42  ;;  %v1378_v50 = vunpack.c.l.s8.bf16 %v743_v40 }
 0x21f   : > { %6257 = vmatpush3.bf16.msra.mxu0 %v1329_v45 }
 0x220   : > { %6279 = vmatpush3.bf16.msra.mxu1 %v1345_v46  ;;  %6258 = vmatprep.subr.bf16.mxu0 %v1338_v47 }
 0x221   : > { %6280 = vmatprep.subr.bf16.mxu1 %v1354_v48 }
 0x223   : > { %6259 = vmatpush3.bf16.msra.mxu0 %v1330_v51 }
 0x224   : > { %6281 = vmatpush3.bf16.msra.mxu1 %v1346_v52  ;;  %6260 = vmatprep.subr.bf16.mxu0 %v1339_v53  ;;  %v1371_v53 = vunpack.c.h.s8.bf16 %v739_v33 }
 0x225   : > { %6282 = vmatprep.subr.bf16.mxu1 %v1355_v54  ;;  %v1387_v54 = vunpack.c.h.s8.bf16 %v747_v34  ;;  %v755_v34 = vld [vmem:[%s8677_s11 + $0x438] sm:$0xff] }
 0x227   : > { %6261 = vmatpush3.bf16.msra.mxu0 %v1331_v57  ;;  %v760_v57 = vld [vmem:[%s8677_s11 + $0x460] sm:$0xff] }
 0x228   : > { %6283 = vmatpush3.bf16.msra.mxu1 %v1347_v58  ;;  %6290 = vmatprep.subr.bf16.mxu0 %v1364_v59  ;;  %v1363_v58 = vunpack.c.h.s8.bf16 %v735_v39  ;;  %v1379_v59 = vunpack.c.h.s8.bf16 %v743_v40  ;;  %v1412_v61 = vunpack.c.l.s8.bf16 %v760_v57  ;;  %v751_v40 = vld [vmem:[%s8677_s11 + $0x418] sm:$0xff] }
 0x229   : > { %6312 = vmatprep.subr.bf16.mxu1 %v1380_v60  ;;  %v1396_v60 = vunpack.c.l.s8.bf16 %v752_v56 }
 0x22a   : > { %3117 = vmatmul.mubr.bf16.vlgmr.msra.gmra.mrb[24].mxu0 %v5864_v63  ;;  %v756_v63 = vld [vmem:[%s8677_s11 + $0x440] sm:$0xff] }
 0x22b   : > { %3157 = vmatmul.mubr.bf16.vlgmr.msra.gmra.mrb[24].mxu1 %v5866_v0  ;;  %6291 = vmatpush3.bf16.msra.mxu0 %v1356_v3  ;;  %v5868_v0 = vcombine.low %v8920_v1, %v8920_v1  ;;  %v5870_v3 = vcombine.low %v8923_v2, %v8923_v2  ;;  %v1404_v7 = vunpack.c.l.s8.bf16 %v756_v63 }
 0x22c   : > { %6313 = vmatpush3.bf16.msra.mxu1 %v1372_v4  ;;  %6292 = vmatprep.subr.bf16.mxu0 %v1365_v5  ;;  %v8952_v4 = vld [vmem:[%s8670_s16 + $0x80] sm:$0xff]  ;;  %v8955_v5 = vld [vmem:[%s8670_s16 + $0x88] sm:$0xff] }
 0x22d   : > { %6314 = vmatprep.subr.bf16.mxu1 %v1381_v6  ;;  %3196 = vmatprep.mubr.bf16.mxu0 %v5869_v9  ;;  %v1388_v6 = vunpack.c.l.s8.bf16 %v748_v62  ;;  %v1413_v9 = vunpack.c.h.s8.bf16 %v760_v57  ;;  %v5873_v1 = vcombine.high %v8952_v4, %v8952_v4  ;;  %v5875_v2 = vcombine.high %v8955_v5, %v8955_v5 }
 0x22e   : > { %3236 = vmatprep.mubr.bf16.mxu1 %v5871_v10  ;;  %v753_v10 = vld [vmem:[%s8677_s11 + $0x428] sm:$0xff] }
 0x22f   : > { %6293 = vmatpush3.bf16.msra.mxu0 %v1357_v11  ;;  %v761_v11 = vld [vmem:[%s8677_s11 + $0x468] sm:$0xff] }
 0x230   : > { %6315 = vmatpush3.bf16.msra.mxu1 %v1373_v12  ;;  %6294 = vmatprep.subr.bf16.mxu0 %v1366_v13  ;;  %v1389_v12 = vunpack.c.h.s8.bf16 %v748_v62  ;;  %v1405_v13 = vunpack.c.h.s8.bf16 %v756_v63  ;;  %v1414_v15 = vunpack.c.l.s8.bf16 %v761_v11  ;;  %v1415_v21 = vunpack.c.h.s8.bf16 %v761_v11 }
 0x231   : > { %6316 = vmatprep.subr.bf16.mxu1 %v1382_v14  ;;  %v1398_v14 = vunpack.c.l.s8.bf16 %v753_v10 }
 0x233   : > { %6295 = vmatpush3.bf16.msra.mxu0 %v1358_v17  ;;  %v757_v17 = vld [vmem:[%s8677_s11 + $0x448] sm:$0xff] }
 0x234   : > { %6317 = vmatpush3.bf16.msra.mxu1 %v1374_v18  ;;  %6296 = vmatprep.subr.bf16.mxu0 %v1367_v19  ;;  %v1390_v18 = vunpack.c.l.s8.bf16 %v749_v16  ;;  %v1406_v19 = vunpack.c.l.s8.bf16 %v757_v17 }
 0x235   : > { %6318 = vmatprep.subr.bf16.mxu1 %v1383_v20  ;;  %v1399_v20 = vunpack.c.h.s8.bf16 %v753_v10 }
 0x237   : > { %6297 = vmatpush3.bf16.msra.mxu0 %v1359_v23  ;;  %v762_v23 = vld [vmem:[%s8677_s11 + $0x470] sm:$0xff] }
 0x238   : > { %6319 = vmatpush3.bf16.msra.mxu1 %v1375_v24  ;;  %6298 = vmatprep.subr.bf16.mxu0 %v1368_v25  ;;  %v1391_v24 = vunpack.c.h.s8.bf16 %v749_v16  ;;  %v1407_v25 = vunpack.c.h.s8.bf16 %v757_v17  ;;  %v1416_v27 = vunpack.c.l.s8.bf16 %v762_v23  ;;  %v1417_v33 = vunpack.c.h.s8.bf16 %v762_v23 }
 0x239   : > { %6320 = vmatprep.subr.bf16.mxu1 %v1384_v26  ;;  %v1400_v26 = vunpack.c.l.s8.bf16 %v754_v22 }
 0x23b   : > { %6299 = vmatpush3.bf16.msra.mxu0 %v1360_v29  ;;  %v758_v29 = vld [vmem:[%s8677_s11 + $0x450] sm:$0xff] }
 0x23c   : > { %6321 = vmatpush3.bf16.msra.mxu1 %v1376_v30  ;;  %6300 = vmatprep.subr.bf16.mxu0 %v1369_v31  ;;  %v1392_v30 = vunpack.c.l.s8.bf16 %v750_v28  ;;  %v1408_v31 = vunpack.c.l.s8.bf16 %v758_v29 }
 0x23d   : > { %6322 = vmatprep.subr.bf16.mxu1 %v1385_v32  ;;  %v5998_v41 = vpop.f32.mrb[0].mxu0  ;;  %v1401_v32 = vunpack.c.h.s8.bf16 %v754_v22 }
 0x23e   : > { %v6020_v42 = vpop.f32.mrb[0].mxu1  ;;  %v5999_v43 = vpop.f32.mrb[1].mxu0 }
 0x23f   : > { %v6021_v44 = vpop.f32.mrb[1].mxu1  ;;  %v6000_v45 = vadd.f32 %v5999_v43, %v5998_v41  ;;  %v6001_v47 = vpop.f32.mrb[2].mxu0  ;;  %6301 = vmatpush3.bf16.msra.mxu0 %v1361_v35  ;;  %v763_v35 = vld [vmem:[%s8677_s11 + $0x478] sm:$0xff] }
 0x240   : > { %v6022_v46 = vadd.f32 %v6021_v44, %v6020_v42  ;;  %v6023_v48 = vpop.f32.mrb[2].mxu1  ;;  %6323 = vmatpush3.bf16.msra.mxu1 %v1377_v36  ;;  %v6002_v51 = vpop.f32.mrb[3].mxu0  ;;  %6302 = vmatprep.subr.bf16.mxu0 %v1370_v37  ;;  %v1393_v36 = vunpack.c.h.s8.bf16 %v750_v28  ;;  %v1409_v37 = vunpack.c.h.s8.bf16 %v758_v29  ;;  %v1418_v39 = vunpack.c.l.s8.bf16 %v763_v35  ;;  %v759_v41 = vld [vmem:[%s8677_s11 + $0x458] sm:$0xff] }
 0x241   : > { %v6024_v52 = vpop.f32.mrb[3].mxu1  ;;  %6324 = vmatprep.subr.bf16.mxu1 %v1386_v38  ;;  %v1402_v38 = vunpack.c.l.s8.bf16 %v755_v34  ;;  %v1410_v51 = vunpack.c.l.s8.bf16 %v759_v41  ;;  %v1419_v56 = vunpack.c.h.s8.bf16 %v763_v35  ;;  %v1411_v62 = vunpack.c.h.s8.bf16 %v759_v41 }
 0x242   : > { %v8941_v55 = vadd.f32 %v6022_v46, %v6000_v45 }
 0x243   : > { %6303 = vmatpush3.bf16.msra.mxu0 %v1362_v49 }
 0x244   : > { %6325 = vmatpush3.bf16.msra.mxu1 %v1378_v50  ;;  %6304 = vmatprep.subr.bf16.mxu0 %v1371_v53  ;;  %v1394_v50 = vunpack.c.l.s8.bf16 %v751_v40 }
 0x245   : > { %6326 = vmatprep.subr.bf16.mxu1 %v1387_v54  ;;  %v1403_v54 = vunpack.c.h.s8.bf16 %v755_v34 }
 0x247   : > { %6305 = vmatpush3.bf16.msra.mxu0 %v1363_v58  ;;  %v768_v58 = vld [vmem:[%s8677_s11 + $0x4a0] sm:$0xff] }
 0x248   : > { %6327 = vmatpush3.bf16.msra.mxu1 %v1379_v59  ;;  %6334 = vmatprep.subr.bf16.mxu0 %v1396_v60  ;;  %v776_v59 = vld [vmem:[%s8677_s11 + $0x4e0] sm:$0xff]  ;;  %v1428_v63 = vunpack.c.l.s8.bf16 %v768_v58 }
 0x249   : > { %6356 = vmatprep.subr.bf16.mxu1 %v1412_v61  ;;  %v1395_v61 = vunpack.c.h.s8.bf16 %v751_v40 }
 0x24a   : > { %3197 = vmatmul.mubr.bf16.vlgmr.msra.gmra.mrb[28].mxu0 %v5868_v0  ;;  %v1444_v0 = vunpack.c.l.s8.bf16 %v776_v59 }
 0x24b   : > { %3237 = vmatmul.mubr.bf16.vlgmr.msra.gmra.mrb[28].mxu1 %v5870_v3  ;;  %6335 = vmatpush3.bf16.msra.mxu0 %v1388_v6  ;;  %v764_v3 = vld [vmem:[%s8677_s11 + $0x480] sm:$0xff] }
 0x24c   : > { %6357 = vmatpush3.bf16.msra.mxu1 %v1404_v7  ;;  %6336 = vmatprep.subr.bf16.mxu0 %v1397_v8  ;;  %v772_v6 = vld [vmem:[%s8677_s11 + $0x4c0] sm:$0xff]  ;;  %v5874_v7 = vcombine.low %v8955_v5, %v8955_v5  ;;  %v8985_v8 = vld [vmem:[%s8670_s16 + $0x90] sm:$0xff]  ;;  %v1420_v10 = vunpack.c.l.s8.bf16 %v764_v3 }
 0x24d   : > { %6358 = vmatprep.subr.bf16.mxu1 %v1413_v9  ;;  %3276 = vmatprep.mubr.bf16.mxu0 %v5873_v1  ;;  %v8988_v9 = vld [vmem:[%s8670_s16 + $0x98] sm:$0xff]  ;;  %v1436_v11 = vunpack.c.l.s8.bf16 %v772_v6  ;;  %v1429_v1 = vunpack.c.h.s8.bf16 %v768_v58 }
 0x24e   : > { %3316 = vmatprep.mubr.bf16.mxu1 %v5875_v2  ;;  %v1445_v2 = vunpack.c.h.s8.bf16 %v776_v59  ;;  %v5879_v5 = vcombine.high %v8988_v9, %v8988_v9 }
 0x24f   : > { %6337 = vmatpush3.bf16.msra.mxu0 %v1389_v12  ;;  %v769_v12 = vld [vmem:[%s8677_s11 + $0x4a8] sm:$0xff] }
 0x250   : > { %6359 = vmatpush3.bf16.msra.mxu1 %v1405_v13  ;;  %6338 = vmatprep.subr.bf16.mxu0 %v1398_v14  ;;  %v777_v13 = vld [vmem:[%s8677_s11 + $0x4e8] sm:$0xff]  ;;  %v1421_v14 = vunpack.c.h.s8.bf16 %v764_v3  ;;  %v1430_v16 = vunpack.c.l.s8.bf16 %v769_v12  ;;  %v1431_v22 = vunpack.c.h.s8.bf16 %v769_v12 }
 0x251   : > { %6360 = vmatprep.subr.bf16.mxu1 %v1414_v15  ;;  %v1437_v15 = vunpack.c.h.s8.bf16 %v772_v6  ;;  %v1446_v17 = vunpack.c.l.s8.bf16 %v777_v13  ;;  %v1447_v23 = vunpack.c.h.s8.bf16 %v777_v13 }
 0x253   : > { %6339 = vmatpush3.bf16.msra.mxu0 %v1390_v18  ;;  %v765_v18 = vld [vmem:[%s8677_s11 + $0x488] sm:$0xff] }
 0x254   : > { %6361 = vmatpush3.bf16.msra.mxu1 %v1406_v19  ;;  %6340 = vmatprep.subr.bf16.mxu0 %v1399_v20  ;;  %v773_v19 = vld [vmem:[%s8677_s11 + $0x4c8] sm:$0xff]  ;;  %v1422_v20 = vunpack.c.l.s8.bf16 %v765_v18 }
 0x255   : > { %6362 = vmatprep.subr.bf16.mxu1 %v1415_v21  ;;  %v1438_v21 = vunpack.c.l.s8.bf16 %v773_v19 }
 0x257   : > { %6341 = vmatpush3.bf16.msra.mxu0 %v1391_v24  ;;  %v770_v24 = vld [vmem:[%s8677_s11 + $0x4b0] sm:$0xff] }
 0x258   : > { %6363 = vmatpush3.bf16.msra.mxu1 %v1407_v25  ;;  %6342 = vmatprep.subr.bf16.mxu0 %v1400_v26  ;;  %v778_v25 = vld [vmem:[%s8677_s11 + $0x4f0] sm:$0xff]  ;;  %v1423_v26 = vunpack.c.h.s8.bf16 %v765_v18  ;;  %v1432_v28 = vunpack.c.l.s8.bf16 %v770_v24  ;;  %v1433_v34 = vunpack.c.h.s8.bf16 %v770_v24 }
 0x259   : > { %6364 = vmatprep.subr.bf16.mxu1 %v1416_v27  ;;  %v1439_v27 = vunpack.c.h.s8.bf16 %v773_v19  ;;  %v1448_v29 = vunpack.c.l.s8.bf16 %v778_v25  ;;  %v1449_v35 = vunpack.c.h.s8.bf16 %v778_v25 }
 0x25b   : > { %6343 = vmatpush3.bf16.msra.mxu0 %v1392_v30  ;;  %v766_v30 = vld [vmem:[%s8677_s11 + $0x490] sm:$0xff] }
 0x25c   : > { %6365 = vmatpush3.bf16.msra.mxu1 %v1408_v31  ;;  %6344 = vmatprep.subr.bf16.mxu0 %v1401_v32  ;;  %v774_v31 = vld [vmem:[%s8677_s11 + $0x4d0] sm:$0xff]  ;;  %v1424_v32 = vunpack.c.l.s8.bf16 %v766_v30 }
 0x25d   : > { %6366 = vmatprep.subr.bf16.mxu1 %v1417_v33  ;;  %v6042_v42 = vpop.f32.mrb[4].mxu0  ;;  %v1440_v33 = vunpack.c.l.s8.bf16 %v774_v31 }
 0x25e   : > { %v6064_v43 = vpop.f32.mrb[4].mxu1  ;;  %v6043_v44 = vpop.f32.mrb[5].mxu0 }
 0x25f   : > { %v6065_v45 = vpop.f32.mrb[5].mxu1  ;;  %v6044_v46 = vadd.f32 %v6043_v44, %v6042_v42  ;;  %v6045_v48 = vpop.f32.mrb[6].mxu0  ;;  %6345 = vmatpush3.bf16.msra.mxu0 %v1393_v36  ;;  %v771_v36 = vld [vmem:[%s8677_s11 + $0x4b8] sm:$0xff] }
 0x260   : > { %v6066_v47 = vadd.f32 %v6065_v45, %v6064_v43  ;;  %v6067_v49 = vpop.f32.mrb[6].mxu1  ;;  %6367 = vmatpush3.bf16.msra.mxu1 %v1409_v37  ;;  %v6046_v52 = vpop.f32.mrb[7].mxu0  ;;  %6346 = vmatprep.subr.bf16.mxu0 %v1402_v38  ;;  %v779_v37 = vld [vmem:[%s8677_s11 + $0x4f8] sm:$0xff]  ;;  %v1425_v38 = vunpack.c.h.s8.bf16 %v766_v30  ;;  %v1434_v40 = vunpack.c.l.s8.bf16 %v771_v36 }
 0x261   : > { %v6068_v53 = vpop.f32.mrb[7].mxu1  ;;  %6368 = vmatprep.subr.bf16.mxu1 %v1418_v39  ;;  %v2719_v57 = vadd.f32 %v6044_v46, %v8941_v55  ;;  %v5872_v55 = vcombine.low %v8952_v4, %v8952_v4  ;;  %v5877_v4 = vcombine.high %v8985_v8, %v8985_v8  ;;  %v1441_v39 = vunpack.c.h.s8.bf16 %v774_v31  ;;  %v767_v42 = vld [vmem:[%s8677_s11 + $0x498] sm:$0xff] }
 0x262   : > { %v1450_v41 = vunpack.c.l.s8.bf16 %v779_v37  ;;  %v775_v43 = vld [vmem:[%s8677_s11 + $0x4d8] sm:$0xff]  ;;  %v1426_v52 = vunpack.c.l.s8.bf16 %v767_v42  ;;  %v1451_v58 = vunpack.c.h.s8.bf16 %v779_v37 }
 0x263   : > { %v8976_v60 = vadd.f32 %v6066_v47, %v2719_v57  ;;  %6347 = vmatpush3.bf16.msra.mxu0 %v1394_v50  ;;  %v1442_v53 = vunpack.c.l.s8.bf16 %v775_v43  ;;  %v1435_v57 = vunpack.c.h.s8.bf16 %v771_v36  ;;  %v1443_v3 = vunpack.c.h.s8.bf16 %v775_v43 }
 0x264   : > { %6369 = vmatpush3.bf16.msra.mxu1 %v1410_v51  ;;  %6348 = vmatprep.subr.bf16.mxu0 %v1403_v54 }
 0x265   : > { %6370 = vmatprep.subr.bf16.mxu1 %v1419_v56 }
 0x267   : > { %6349 = vmatpush3.bf16.msra.mxu0 %v1395_v61  ;;  %v784_v61 = vld [vmem:[%s8677_s11 + $0x520] sm:$0xff] }
 0x268   : > { %6371 = vmatpush3.bf16.msra.mxu1 %v1411_v62  ;;  %6378 = vmatprep.subr.bf16.mxu0 %v1428_v63  ;;  %v792_v62 = vld [vmem:[%s8677_s11 + $0x560] sm:$0xff]  ;;  %v1460_v6 = vunpack.c.l.s8.bf16 %v784_v61 }
 0x269   : > { %6400 = vmatprep.subr.bf16.mxu1 %v1444_v0  ;;  %v1427_v0 = vunpack.c.h.s8.bf16 %v767_v42 }
 0x26a   : > { %3277 = vmatmul.mubr.bf16.vlgmr.msra.gmra.mrb[32].mxu0 %v5872_v55  ;;  %v1476_v55 = vunpack.c.l.s8.bf16 %v792_v62 }
 0x26b   : > { %3317 = vmatmul.mubr.bf16.vlgmr.msra.gmra.mrb[32].mxu1 %v5874_v7  ;;  %6379 = vmatpush3.bf16.msra.mxu0 %v1420_v10  ;;  %v780_v7 = vld [vmem:[%s8677_s11 + $0x500] sm:$0xff] }
 0x26c   : > { %6401 = vmatpush3.bf16.msra.mxu1 %v1436_v11  ;;  %6380 = vmatprep.subr.bf16.mxu0 %v1429_v1  ;;  %v788_v10 = vld [vmem:[%s8677_s11 + $0x540] sm:$0xff]  ;;  %v5878_v11 = vcombine.low %v8988_v9, %v8988_v9  ;;  %v1452_v12 = vunpack.c.l.s8.bf16 %v780_v7 }
 0x26d   : > { %6402 = vmatprep.subr.bf16.mxu1 %v1445_v2  ;;  %3356 = vmatprep.mubr.bf16.mxu0 %v5877_v4  ;;  %v9018_v1 = vld [vmem:[%s8670_s16 + $0xa0] sm:$0xff]  ;;  %v9021_v2 = vld [vmem:[%s8670_s16 + $0xa8] sm:$0xff]  ;;  %v1468_v13 = vunpack.c.l.s8.bf16 %v788_v10  ;;  %v1461_v4 = vunpack.c.h.s8.bf16 %v784_v61 }
 0x26e   : > { %3396 = vmatprep.mubr.bf16.mxu1 %v5879_v5  ;;  %v1477_v5 = vunpack.c.h.s8.bf16 %v792_v62  ;;  %v5883_v9 = vcombine.high %v9021_v2, %v9021_v2 }
 0x26f   : > { %6381 = vmatpush3.bf16.msra.mxu0 %v1421_v14  ;;  %v785_v14 = vld [vmem:[%s8677_s11 + $0x528] sm:$0xff] }
 0x270   : > { %6403 = vmatpush3.bf16.msra.mxu1 %v1437_v15  ;;  %6382 = vmatprep.subr.bf16.mxu0 %v1430_v16  ;;  %v793_v15 = vld [vmem:[%s8677_s11 + $0x568] sm:$0xff]  ;;  %v1453_v16 = vunpack.c.h.s8.bf16 %v780_v7  ;;  %v1462_v18 = vunpack.c.l.s8.bf16 %v785_v14  ;;  %v1463_v24 = vunpack.c.h.s8.bf16 %v785_v14 }
 0x271   : > { %6404 = vmatprep.subr.bf16.mxu1 %v1446_v17  ;;  %v1469_v17 = vunpack.c.h.s8.bf16 %v788_v10  ;;  %v1478_v19 = vunpack.c.l.s8.bf16 %v793_v15  ;;  %v1479_v25 = vunpack.c.h.s8.bf16 %v793_v15 }
 0x273   : > { %6383 = vmatpush3.bf16.msra.mxu0 %v1422_v20  ;;  %v781_v20 = vld [vmem:[%s8677_s11 + $0x508] sm:$0xff] }
 0x274   : > { %6405 = vmatpush3.bf16.msra.mxu1 %v1438_v21  ;;  %6384 = vmatprep.subr.bf16.mxu0 %v1431_v22  ;;  %v789_v21 = vld [vmem:[%s8677_s11 + $0x548] sm:$0xff]  ;;  %v1454_v22 = vunpack.c.l.s8.bf16 %v781_v20 }
 0x275   : > { %6406 = vmatprep.subr.bf16.mxu1 %v1447_v23  ;;  %v1470_v23 = vunpack.c.l.s8.bf16 %v789_v21 }
 0x277   : > { %6385 = vmatpush3.bf16.msra.mxu0 %v1423_v26  ;;  %v786_v26 = vld [vmem:[%s8677_s11 + $0x530] sm:$0xff] }
 0x278   : > { %6407 = vmatpush3.bf16.msra.mxu1 %v1439_v27  ;;  %6386 = vmatprep.subr.bf16.mxu0 %v1432_v28  ;;  %v794_v27 = vld [vmem:[%s8677_s11 + $0x570] sm:$0xff]  ;;  %v1455_v28 = vunpack.c.h.s8.bf16 %v781_v20  ;;  %v1464_v30 = vunpack.c.l.s8.bf16 %v786_v26  ;;  %v1465_v36 = vunpack.c.h.s8.bf16 %v786_v26 }
 0x279   : > { %6408 = vmatprep.subr.bf16.mxu1 %v1448_v29  ;;  %v1471_v29 = vunpack.c.h.s8.bf16 %v789_v21  ;;  %v1480_v31 = vunpack.c.l.s8.bf16 %v794_v27  ;;  %v1481_v37 = vunpack.c.h.s8.bf16 %v794_v27 }
 0x27b   : > { %6387 = vmatpush3.bf16.msra.mxu0 %v1424_v32  ;;  %v782_v32 = vld [vmem:[%s8677_s11 + $0x510] sm:$0xff] }
 0x27c   : > { %6409 = vmatpush3.bf16.msra.mxu1 %v1440_v33  ;;  %6388 = vmatprep.subr.bf16.mxu0 %v1433_v34  ;;  %v790_v33 = vld [vmem:[%s8677_s11 + $0x550] sm:$0xff]  ;;  %v1456_v34 = vunpack.c.l.s8.bf16 %v782_v32 }
 0x27d   : > { %6410 = vmatprep.subr.bf16.mxu1 %v1449_v35  ;;  %v6086_v44 = vpop.f32.mrb[8].mxu0  ;;  %v1472_v35 = vunpack.c.l.s8.bf16 %v790_v33 }
 0x27e   : > { %v6108_v45 = vpop.f32.mrb[8].mxu1  ;;  %v6087_v46 = vpop.f32.mrb[9].mxu0 }
 0x27f   : > { %v6109_v47 = vpop.f32.mrb[9].mxu1  ;;  %v6088_v48 = vadd.f32 %v6087_v46, %v6086_v44  ;;  %v6089_v50 = vpop.f32.mrb[10].mxu0  ;;  %6389 = vmatpush3.bf16.msra.mxu0 %v1425_v38  ;;  %v787_v38 = vld [vmem:[%s8677_s11 + $0x538] sm:$0xff] }
 0x280   : > { %v6110_v49 = vadd.f32 %v6109_v47, %v6108_v45  ;;  %v6111_v51 = vpop.f32.mrb[10].mxu1  ;;  %6411 = vmatpush3.bf16.msra.mxu1 %v1441_v39  ;;  %v6090_v54 = vpop.f32.mrb[11].mxu0  ;;  %6390 = vmatprep.subr.bf16.mxu0 %v1434_v40  ;;  %v795_v39 = vld [vmem:[%s8677_s11 + $0x578] sm:$0xff]  ;;  %v1457_v40 = vunpack.c.h.s8.bf16 %v782_v32  ;;  %v1466_v42 = vunpack.c.l.s8.bf16 %v787_v38 }
 0x281   : > { %v6112_v56 = vpop.f32.mrb[11].mxu1  ;;  %6412 = vmatprep.subr.bf16.mxu1 %v1450_v41  ;;  %v2799_v59 = vadd.f32 %v6088_v48, %v8976_v60  ;;  %v5876_v60 = vcombine.low %v8985_v8, %v8985_v8  ;;  %v5881_v8 = vcombine.high %v9018_v1, %v9018_v1  ;;  %v1473_v41 = vunpack.c.h.s8.bf16 %v790_v33  ;;  %v783_v44 = vld [vmem:[%s8677_s11 + $0x518] sm:$0xff] }
 0x282   : > { %v1482_v43 = vunpack.c.l.s8.bf16 %v795_v39  ;;  %v791_v45 = vld [vmem:[%s8677_s11 + $0x558] sm:$0xff]  ;;  %v1458_v54 = vunpack.c.l.s8.bf16 %v783_v44  ;;  %v1483_v61 = vunpack.c.h.s8.bf16 %v795_v39 }
 0x283   : > { %v9009_v63 = vadd.f32 %v6110_v49, %v2799_v59  ;;  %6391 = vmatpush3.bf16.msra.mxu0 %v1426_v52  ;;  %v1474_v56 = vunpack.c.l.s8.bf16 %v791_v45  ;;  %v1467_v59 = vunpack.c.h.s8.bf16 %v787_v38  ;;  %v1475_v7 = vunpack.c.h.s8.bf16 %v791_v45 }
 0x284   : > { %6413 = vmatpush3.bf16.msra.mxu1 %v1442_v53  ;;  %6392 = vmatprep.subr.bf16.mxu0 %v1435_v57 }
 0x285   : > { %6414 = vmatprep.subr.bf16.mxu1 %v1451_v58 }
 0x287   : > { %6393 = vmatpush3.bf16.msra.mxu0 %v1427_v0  ;;  %v800_v0 = vld [vmem:[%s8677_s11 + $0x5a0] sm:$0xff] }
 0x288   : > { %6415 = vmatpush3.bf16.msra.mxu1 %v1443_v3  ;;  %6422 = vmatprep.subr.bf16.mxu0 %v1460_v6  ;;  %v808_v3 = vld [vmem:[%s8677_s11 + $0x5e0] sm:$0xff]  ;;  %v1492_v10 = vunpack.c.l.s8.bf16 %v800_v0 }
 0x289   : > { %6444 = vmatprep.subr.bf16.mxu1 %v1476_v55  ;;  %v1459_v55 = vunpack.c.h.s8.bf16 %v783_v44 }
 0x28a   : > { %3357 = vmatmul.mubr.bf16.vlgmr.msra.gmra.mrb[36].mxu0 %v5876_v60  ;;  %v1508_v60 = vunpack.c.l.s8.bf16 %v808_v3 }
 0x28b   : > { %3397 = vmatmul.mubr.bf16.vlgmr.msra.gmra.mrb[36].mxu1 %v5878_v11  ;;  %6423 = vmatpush3.bf16.msra.mxu0 %v1452_v12  ;;  %v796_v11 = vld [vmem:[%s8677_s11 + $0x580] sm:$0xff] }
 0x28c   : > { %6445 = vmatpush3.bf16.msra.mxu1 %v1468_v13  ;;  %6424 = vmatprep.subr.bf16.mxu0 %v1461_v4  ;;  %v804_v12 = vld [vmem:[%s8677_s11 + $0x5c0] sm:$0xff]  ;;  %v5882_v13 = vcombine.low %v9021_v2, %v9021_v2  ;;  %v9051_v4 = vld [vmem:[%s8670_s16 + $0xb0] sm:$0xff]  ;;  %v1484_v14 = vunpack.c.l.s8.bf16 %v796_v11 }
 0x28d   : > { %6446 = vmatprep.subr.bf16.mxu1 %v1477_v5  ;;  %3436 = vmatprep.mubr.bf16.mxu0 %v5881_v8  ;;  %v9054_v5 = vld [vmem:[%s8670_s16 + $0xb8] sm:$0xff]  ;;  %v1500_v15 = vunpack.c.l.s8.bf16 %v804_v12  ;;  %v1493_v8 = vunpack.c.h.s8.bf16 %v800_v0 }
 0x28e   : > { %3476 = vmatprep.mubr.bf16.mxu1 %v5883_v9  ;;  %v1509_v9 = vunpack.c.h.s8.bf16 %v808_v3  ;;  %v5887_v2 = vcombine.high %v9054_v5, %v9054_v5 }
 0x28f   : > { %6425 = vmatpush3.bf16.msra.mxu0 %v1453_v16  ;;  %v801_v16 = vld [vmem:[%s8677_s11 + $0x5a8] sm:$0xff] }
 0x290   : > { %6447 = vmatpush3.bf16.msra.mxu1 %v1469_v17  ;;  %6426 = vmatprep.subr.bf16.mxu0 %v1462_v18  ;;  %v809_v17 = vld [vmem:[%s8677_s11 + $0x5e8] sm:$0xff]  ;;  %v1485_v18 = vunpack.c.h.s8.bf16 %v796_v11  ;;  %v1494_v20 = vunpack.c.l.s8.bf16 %v801_v16  ;;  %v1495_v26 = vunpack.c.h.s8.bf16 %v801_v16 }
 0x291   : > { %6448 = vmatprep.subr.bf16.mxu1 %v1478_v19  ;;  %v1501_v19 = vunpack.c.h.s8.bf16 %v804_v12  ;;  %v1510_v21 = vunpack.c.l.s8.bf16 %v809_v17  ;;  %v1511_v27 = vunpack.c.h.s8.bf16 %v809_v17 }
 0x293   : > { %6427 = vmatpush3.bf16.msra.mxu0 %v1454_v22  ;;  %v797_v22 = vld [vmem:[%s8677_s11 + $0x588] sm:$0xff] }
 0x294   : > { %6449 = vmatpush3.bf16.msra.mxu1 %v1470_v23  ;;  %6428 = vmatprep.subr.bf16.mxu0 %v1463_v24  ;;  %v805_v23 = vld [vmem:[%s8677_s11 + $0x5c8] sm:$0xff]  ;;  %v1486_v24 = vunpack.c.l.s8.bf16 %v797_v22 }
 0x295   : > { %6450 = vmatprep.subr.bf16.mxu1 %v1479_v25  ;;  %v1502_v25 = vunpack.c.l.s8.bf16 %v805_v23 }
 0x297   : > { %6429 = vmatpush3.bf16.msra.mxu0 %v1455_v28  ;;  %v802_v28 = vld [vmem:[%s8677_s11 + $0x5b0] sm:$0xff] }
 0x298   : > { %6451 = vmatpush3.bf16.msra.mxu1 %v1471_v29  ;;  %6430 = vmatprep.subr.bf16.mxu0 %v1464_v30  ;;  %v810_v29 = vld [vmem:[%s8677_s11 + $0x5f0] sm:$0xff]  ;;  %v1487_v30 = vunpack.c.h.s8.bf16 %v797_v22  ;;  %v1496_v32 = vunpack.c.l.s8.bf16 %v802_v28  ;;  %v1497_v38 = vunpack.c.h.s8.bf16 %v802_v28 }
 0x299   : > { %6452 = vmatprep.subr.bf16.mxu1 %v1480_v31  ;;  %v1503_v31 = vunpack.c.h.s8.bf16 %v805_v23  ;;  %v1512_v33 = vunpack.c.l.s8.bf16 %v810_v29  ;;  %v1513_v39 = vunpack.c.h.s8.bf16 %v810_v29 }
 0x29b   : > { %6431 = vmatpush3.bf16.msra.mxu0 %v1456_v34  ;;  %v798_v34 = vld [vmem:[%s8677_s11 + $0x590] sm:$0xff] }
 0x29c   : > { %6453 = vmatpush3.bf16.msra.mxu1 %v1472_v35  ;;  %6432 = vmatprep.subr.bf16.mxu0 %v1465_v36  ;;  %v806_v35 = vld [vmem:[%s8677_s11 + $0x5d0] sm:$0xff]  ;;  %v1488_v36 = vunpack.c.l.s8.bf16 %v798_v34 }
 0x29d   : > { %6454 = vmatprep.subr.bf16.mxu1 %v1481_v37  ;;  %v6130_v46 = vpop.f32.mrb[12].mxu0  ;;  %v1504_v37 = vunpack.c.l.s8.bf16 %v806_v35 }
 0x29e   : > { %v6152_v47 = vpop.f32.mrb[12].mxu1  ;;  %v6131_v48 = vpop.f32.mrb[13].mxu0 }
 0x29f   : > { %v6153_v49 = vpop.f32.mrb[13].mxu1  ;;  %v6132_v50 = vadd.f32 %v6131_v48, %v6130_v46  ;;  %v6133_v52 = vpop.f32.mrb[14].mxu0  ;;  %6433 = vmatpush3.bf16.msra.mxu0 %v1457_v40  ;;  %v803_v40 = vld [vmem:[%s8677_s11 + $0x5b8] sm:$0xff] }
 0x2a0   : > { %v6154_v51 = vadd.f32 %v6153_v49, %v6152_v47  ;;  %v6155_v53 = vpop.f32.mrb[14].mxu1  ;;  %6455 = vmatpush3.bf16.msra.mxu1 %v1473_v41  ;;  %v6134_v57 = vpop.f32.mrb[15].mxu0  ;;  %6434 = vmatprep.subr.bf16.mxu0 %v1466_v42  ;;  %v811_v41 = vld [vmem:[%s8677_s11 + $0x5f8] sm:$0xff]  ;;  %v1489_v42 = vunpack.c.h.s8.bf16 %v798_v34  ;;  %v1498_v44 = vunpack.c.l.s8.bf16 %v803_v40 }
 0x2a1   : > { %v6156_v58 = vpop.f32.mrb[15].mxu1  ;;  %6456 = vmatprep.subr.bf16.mxu1 %v1482_v43  ;;  %v2879_v62 = vadd.f32 %v6132_v50, %v9009_v63  ;;  %v5880_v63 = vcombine.low %v9018_v1, %v9018_v1  ;;  %v5885_v1 = vcombine.high %v9051_v4, %v9051_v4  ;;  %v1505_v43 = vunpack.c.h.s8.bf16 %v806_v35  ;;  %v799_v46 = vld [vmem:[%s8677_s11 + $0x598] sm:$0xff] }
 0x2a2   : > { %v1514_v45 = vunpack.c.l.s8.bf16 %v811_v41  ;;  %v807_v47 = vld [vmem:[%s8677_s11 + $0x5d8] sm:$0xff]  ;;  %v1490_v57 = vunpack.c.l.s8.bf16 %v799_v46  ;;  %v1515_v0 = vunpack.c.h.s8.bf16 %v811_v41 }
 0x2a3   : > { %v9042_v6 = vadd.f32 %v6154_v51, %v2879_v62  ;;  %6435 = vmatpush3.bf16.msra.mxu0 %v1458_v54  ;;  %v1506_v58 = vunpack.c.l.s8.bf16 %v807_v47  ;;  %v1499_v62 = vunpack.c.h.s8.bf16 %v803_v40  ;;  %v1507_v11 = vunpack.c.h.s8.bf16 %v807_v47 }
 0x2a4   : > { %6457 = vmatpush3.bf16.msra.mxu1 %v1474_v56  ;;  %6436 = vmatprep.subr.bf16.mxu0 %v1467_v59 }
 0x2a5   : > { %6458 = vmatprep.subr.bf16.mxu1 %v1483_v61 }
 0x2a7   : > { %6437 = vmatpush3.bf16.msra.mxu0 %v1459_v55  ;;  %v816_v55 = vld [vmem:[%s8677_s11 + $0x620] sm:$0xff] }
 0x2a8   : > { %6459 = vmatpush3.bf16.msra.mxu1 %v1475_v7  ;;  %6466 = vmatprep.subr.bf16.mxu0 %v1492_v10  ;;  %v824_v7 = vld [vmem:[%s8677_s11 + $0x660] sm:$0xff]  ;;  %v1524_v12 = vunpack.c.l.s8.bf16 %v816_v55 }
 0x2a9   : > { %6488 = vmatprep.subr.bf16.mxu1 %v1508_v60  ;;  %v1491_v60 = vunpack.c.h.s8.bf16 %v799_v46 }
 0x2aa   : > { %3437 = vmatmul.mubr.bf16.vlgmr.msra.gmra.mrb[40].mxu0 %v5880_v63  ;;  %v1540_v63 = vunpack.c.l.s8.bf16 %v824_v7 }
 0x2ab   : > { %3477 = vmatmul.mubr.bf16.vlgmr.msra.gmra.mrb[40].mxu1 %v5882_v13  ;;  %6467 = vmatpush3.bf16.msra.mxu0 %v1484_v14  ;;  %v812_v13 = vld [vmem:[%s8677_s11 + $0x600] sm:$0xff] }
 0x2ac   : > { %6489 = vmatpush3.bf16.msra.mxu1 %v1500_v15  ;;  %6468 = vmatprep.subr.bf16.mxu0 %v1493_v8  ;;  %v820_v14 = vld [vmem:[%s8677_s11 + $0x640] sm:$0xff]  ;;  %v5886_v15 = vcombine.low %v9054_v5, %v9054_v5  ;;  %v1516_v16 = vunpack.c.l.s8.bf16 %v812_v13 }
 0x2ad   : > { %6490 = vmatprep.subr.bf16.mxu1 %v1509_v9  ;;  %3516 = vmatprep.mubr.bf16.mxu0 %v5885_v1  ;;  %v9084_v8 = vld [vmem:[%s8670_s16 + $0xc0] sm:$0xff]  ;;  %v9087_v9 = vld [vmem:[%s8670_s16 + $0xc8] sm:$0xff]  ;;  %v1532_v17 = vunpack.c.l.s8.bf16 %v820_v14  ;;  %v1525_v1 = vunpack.c.h.s8.bf16 %v816_v55 }
 0x2ae   : > { %3556 = vmatprep.mubr.bf16.mxu1 %v5887_v2  ;;  %v1541_v2 = vunpack.c.h.s8.bf16 %v824_v7  ;;  %v5891_v5 = vcombine.high %v9087_v9, %v9087_v9 }
 0x2af   : > { %6469 = vmatpush3.bf16.msra.mxu0 %v1485_v18  ;;  %v817_v18 = vld [vmem:[%s8677_s11 + $0x628] sm:$0xff] }
 0x2b0   : > { %6491 = vmatpush3.bf16.msra.mxu1 %v1501_v19  ;;  %6470 = vmatprep.subr.bf16.mxu0 %v1494_v20  ;;  %v825_v19 = vld [vmem:[%s8677_s11 + $0x668] sm:$0xff]  ;;  %v1517_v20 = vunpack.c.h.s8.bf16 %v812_v13  ;;  %v1526_v22 = vunpack.c.l.s8.bf16 %v817_v18  ;;  %v1527_v28 = vunpack.c.h.s8.bf16 %v817_v18 }
 0x2b1   : > { %6492 = vmatprep.subr.bf16.mxu1 %v1510_v21  ;;  %v1533_v21 = vunpack.c.h.s8.bf16 %v820_v14  ;;  %v1542_v23 = vunpack.c.l.s8.bf16 %v825_v19  ;;  %v1543_v29 = vunpack.c.h.s8.bf16 %v825_v19 }
 0x2b3   : > { %6471 = vmatpush3.bf16.msra.mxu0 %v1486_v24  ;;  %v813_v24 = vld [vmem:[%s8677_s11 + $0x608] sm:$0xff] }
 0x2b4   : > { %6493 = vmatpush3.bf16.msra.mxu1 %v1502_v25  ;;  %6472 = vmatprep.subr.bf16.mxu0 %v1495_v26  ;;  %v821_v25 = vld [vmem:[%s8677_s11 + $0x648] sm:$0xff]  ;;  %v1518_v26 = vunpack.c.l.s8.bf16 %v813_v24 }
 0x2b5   : > { %6494 = vmatprep.subr.bf16.mxu1 %v1511_v27  ;;  %v1534_v27 = vunpack.c.l.s8.bf16 %v821_v25 }
 0x2b7   : > { %6473 = vmatpush3.bf16.msra.mxu0 %v1487_v30  ;;  %v818_v30 = vld [vmem:[%s8677_s11 + $0x630] sm:$0xff] }
 0x2b8   : > { %6495 = vmatpush3.bf16.msra.mxu1 %v1503_v31  ;;  %6474 = vmatprep.subr.bf16.mxu0 %v1496_v32  ;;  %v826_v31 = vld [vmem:[%s8677_s11 + $0x670] sm:$0xff]  ;;  %v1519_v32 = vunpack.c.h.s8.bf16 %v813_v24  ;;  %v1528_v34 = vunpack.c.l.s8.bf16 %v818_v30  ;;  %v1529_v40 = vunpack.c.h.s8.bf16 %v818_v30 }
 0x2b9   : > { %6496 = vmatprep.subr.bf16.mxu1 %v1512_v33  ;;  %v1535_v33 = vunpack.c.h.s8.bf16 %v821_v25  ;;  %v1544_v35 = vunpack.c.l.s8.bf16 %v826_v31  ;;  %v1545_v41 = vunpack.c.h.s8.bf16 %v826_v31 }
 0x2bb   : > { %6475 = vmatpush3.bf16.msra.mxu0 %v1488_v36  ;;  %v814_v36 = vld [vmem:[%s8677_s11 + $0x610] sm:$0xff] }
 0x2bc   : > { %6497 = vmatpush3.bf16.msra.mxu1 %v1504_v37  ;;  %6476 = vmatprep.subr.bf16.mxu0 %v1497_v38  ;;  %v822_v37 = vld [vmem:[%s8677_s11 + $0x650] sm:$0xff]  ;;  %v1520_v38 = vunpack.c.l.s8.bf16 %v814_v36 }
 0x2bd   : > { %6498 = vmatprep.subr.bf16.mxu1 %v1513_v39  ;;  %v6174_v48 = vpop.f32.mrb[16].mxu0  ;;  %v1536_v39 = vunpack.c.l.s8.bf16 %v822_v37 }
 0x2be   : > { %v6196_v49 = vpop.f32.mrb[16].mxu1  ;;  %v6175_v50 = vpop.f32.mrb[17].mxu0 }
 0x2bf   : > { %v6197_v51 = vpop.f32.mrb[17].mxu1  ;;  %v6176_v52 = vadd.f32 %v6175_v50, %v6174_v48  ;;  %v6177_v54 = vpop.f32.mrb[18].mxu0  ;;  %6477 = vmatpush3.bf16.msra.mxu0 %v1489_v42  ;;  %v819_v42 = vld [vmem:[%s8677_s11 + $0x638] sm:$0xff] }
 0x2c0   : > { %v6198_v53 = vadd.f32 %v6197_v51, %v6196_v49  ;;  %v6199_v56 = vpop.f32.mrb[18].mxu1  ;;  %6499 = vmatpush3.bf16.msra.mxu1 %v1505_v43  ;;  %v6178_v59 = vpop.f32.mrb[19].mxu0  ;;  %6478 = vmatprep.subr.bf16.mxu0 %v1498_v44  ;;  %v827_v43 = vld [vmem:[%s8677_s11 + $0x678] sm:$0xff]  ;;  %v1521_v44 = vunpack.c.h.s8.bf16 %v814_v36  ;;  %v1530_v46 = vunpack.c.l.s8.bf16 %v819_v42 }
 0x2c1   : > { %v6200_v61 = vpop.f32.mrb[19].mxu1  ;;  %6500 = vmatprep.subr.bf16.mxu1 %v1514_v45  ;;  %v2959_v3 = vadd.f32 %v6176_v52, %v9042_v6  ;;  %v5884_v6 = vcombine.low %v9051_v4, %v9051_v4  ;;  %v5889_v4 = vcombine.high %v9084_v8, %v9084_v8  ;;  %v1537_v45 = vunpack.c.h.s8.bf16 %v822_v37  ;;  %v815_v48 = vld [vmem:[%s8677_s11 + $0x618] sm:$0xff] }
 0x2c2   : > { %v1546_v47 = vunpack.c.l.s8.bf16 %v827_v43  ;;  %v823_v49 = vld [vmem:[%s8677_s11 + $0x658] sm:$0xff]  ;;  %v1522_v59 = vunpack.c.l.s8.bf16 %v815_v48  ;;  %v1547_v55 = vunpack.c.h.s8.bf16 %v827_v43 }
 0x2c3   : > { %v9075_v10 = vadd.f32 %v6198_v53, %v2959_v3  ;;  %6479 = vmatpush3.bf16.msra.mxu0 %v1490_v57  ;;  %v1538_v61 = vunpack.c.l.s8.bf16 %v823_v49  ;;  %v1531_v3 = vunpack.c.h.s8.bf16 %v819_v42  ;;  %v1539_v13 = vunpack.c.h.s8.bf16 %v823_v49 }
 0x2c4   : > { %6501 = vmatpush3.bf16.msra.mxu1 %v1506_v58  ;;  %6480 = vmatprep.subr.bf16.mxu0 %v1499_v62 }
 0x2c5   : > { %6502 = vmatprep.subr.bf16.mxu1 %v1515_v0 }
 0x2c7   : > { %6481 = vmatpush3.bf16.msra.mxu0 %v1491_v60  ;;  %v832_v60 = vld [vmem:[%s8677_s11 + $0x6a0] sm:$0xff] }
 0x2c8   : > { %6503 = vmatpush3.bf16.msra.mxu1 %v1507_v11  ;;  %6510 = vmatprep.subr.bf16.mxu0 %v1524_v12  ;;  %v840_v11 = vld [vmem:[%s8677_s11 + $0x6e0] sm:$0xff]  ;;  %v1556_v14 = vunpack.c.l.s8.bf16 %v832_v60 }
 0x2c9   : > { %6532 = vmatprep.subr.bf16.mxu1 %v1540_v63  ;;  %v1523_v63 = vunpack.c.h.s8.bf16 %v815_v48 }
 0x2ca   : > { %3517 = vmatmul.mubr.bf16.vlgmr.msra.gmra.mrb[44].mxu0 %v5884_v6  ;;  %v1572_v6 = vunpack.c.l.s8.bf16 %v840_v11 }
 0x2cb   : > { %3557 = vmatmul.mubr.bf16.vlgmr.msra.gmra.mrb[44].mxu1 %v5886_v15  ;;  %6511 = vmatpush3.bf16.msra.mxu0 %v1516_v16  ;;  %v828_v15 = vld [vmem:[%s8677_s11 + $0x680] sm:$0xff] }
 0x2cc   : > { %6533 = vmatpush3.bf16.msra.mxu1 %v1532_v17  ;;  %6512 = vmatprep.subr.bf16.mxu0 %v1525_v1  ;;  %v836_v16 = vld [vmem:[%s8677_s11 + $0x6c0] sm:$0xff]  ;;  %v5890_v17 = vcombine.low %v9087_v9, %v9087_v9  ;;  %v9117_v1 = vld [vmem:[%s8670_s16 + $0xd0] sm:$0xff]  ;;  %v1548_v18 = vunpack.c.l.s8.bf16 %v828_v15 }
 0x2cd   : > { %6534 = vmatprep.subr.bf16.mxu1 %v1541_v2  ;;  %3596 = vmatprep.mubr.bf16.mxu0 %v5889_v4  ;;  %v9120_v2 = vld [vmem:[%s8670_s16 + $0xd8] sm:$0xff]  ;;  %v1564_v19 = vunpack.c.l.s8.bf16 %v836_v16  ;;  %v1557_v4 = vunpack.c.h.s8.bf16 %v832_v60 }
 0x2ce   : > { %3636 = vmatprep.mubr.bf16.mxu1 %v5891_v5  ;;  %v1573_v5 = vunpack.c.h.s8.bf16 %v840_v11  ;;  %v5895_v9 = vcombine.high %v9120_v2, %v9120_v2 }
 0x2cf   : > { %6513 = vmatpush3.bf16.msra.mxu0 %v1517_v20  ;;  %v833_v20 = vld [vmem:[%s8677_s11 + $0x6a8] sm:$0xff] }
 0x2d0   : > { %6535 = vmatpush3.bf16.msra.mxu1 %v1533_v21  ;;  %6514 = vmatprep.subr.bf16.mxu0 %v1526_v22  ;;  %v841_v21 = vld [vmem:[%s8677_s11 + $0x6e8] sm:$0xff]  ;;  %v1549_v22 = vunpack.c.h.s8.bf16 %v828_v15  ;;  %v1558_v24 = vunpack.c.l.s8.bf16 %v833_v20  ;;  %v1559_v30 = vunpack.c.h.s8.bf16 %v833_v20 }
 0x2d1   : > { %6536 = vmatprep.subr.bf16.mxu1 %v1542_v23  ;;  %v1565_v23 = vunpack.c.h.s8.bf16 %v836_v16  ;;  %v1574_v25 = vunpack.c.l.s8.bf16 %v841_v21  ;;  %v1575_v31 = vunpack.c.h.s8.bf16 %v841_v21 }
 0x2d3   : > { %6515 = vmatpush3.bf16.msra.mxu0 %v1518_v26  ;;  %v829_v26 = vld [vmem:[%s8677_s11 + $0x688] sm:$0xff] }
 0x2d4   : > { %6537 = vmatpush3.bf16.msra.mxu1 %v1534_v27  ;;  %6516 = vmatprep.subr.bf16.mxu0 %v1527_v28  ;;  %v837_v27 = vld [vmem:[%s8677_s11 + $0x6c8] sm:$0xff]  ;;  %v1550_v28 = vunpack.c.l.s8.bf16 %v829_v26 }
 0x2d5   : > { %6538 = vmatprep.subr.bf16.mxu1 %v1543_v29  ;;  %v1566_v29 = vunpack.c.l.s8.bf16 %v837_v27 }
 0x2d7   : > { %6517 = vmatpush3.bf16.msra.mxu0 %v1519_v32  ;;  %v834_v32 = vld [vmem:[%s8677_s11 + $0x6b0] sm:$0xff] }
 0x2d8   : > { %6539 = vmatpush3.bf16.msra.mxu1 %v1535_v33  ;;  %6518 = vmatprep.subr.bf16.mxu0 %v1528_v34  ;;  %v842_v33 = vld [vmem:[%s8677_s11 + $0x6f0] sm:$0xff]  ;;  %v1551_v34 = vunpack.c.h.s8.bf16 %v829_v26  ;;  %v1560_v36 = vunpack.c.l.s8.bf16 %v834_v32  ;;  %v1561_v42 = vunpack.c.h.s8.bf16 %v834_v32 }
 0x2d9   : > { %6540 = vmatprep.subr.bf16.mxu1 %v1544_v35  ;;  %v1567_v35 = vunpack.c.h.s8.bf16 %v837_v27  ;;  %v1576_v37 = vunpack.c.l.s8.bf16 %v842_v33  ;;  %v1577_v43 = vunpack.c.h.s8.bf16 %v842_v33 }
 0x2db   : > { %6519 = vmatpush3.bf16.msra.mxu0 %v1520_v38  ;;  %v830_v38 = vld [vmem:[%s8677_s11 + $0x690] sm:$0xff] }
 0x2dc   : > { %6541 = vmatpush3.bf16.msra.mxu1 %v1536_v39  ;;  %6520 = vmatprep.subr.bf16.mxu0 %v1529_v40  ;;  %v838_v39 = vld [vmem:[%s8677_s11 + $0x6d0] sm:$0xff]  ;;  %v1552_v40 = vunpack.c.l.s8.bf16 %v830_v38 }
 0x2dd   : > { %6542 = vmatprep.subr.bf16.mxu1 %v1545_v41  ;;  %v6218_v50 = vpop.f32.mrb[20].mxu0  ;;  %v1568_v41 = vunpack.c.l.s8.bf16 %v838_v39 }
 0x2de   : > { %v6240_v51 = vpop.f32.mrb[20].mxu1  ;;  %v6219_v52 = vpop.f32.mrb[21].mxu0 }
 0x2df   : > { %v6241_v53 = vpop.f32.mrb[21].mxu1  ;;  %v6220_v54 = vadd.f32 %v6219_v52, %v6218_v50  ;;  %v6221_v57 = vpop.f32.mrb[22].mxu0  ;;  %6521 = vmatpush3.bf16.msra.mxu0 %v1521_v44  ;;  %v835_v44 = vld [vmem:[%s8677_s11 + $0x6b8] sm:$0xff] }
 0x2e0   : > { %v6242_v56 = vadd.f32 %v6241_v53, %v6240_v51  ;;  %v6243_v58 = vpop.f32.mrb[22].mxu1  ;;  %6543 = vmatpush3.bf16.msra.mxu1 %v1537_v45  ;;  %v6222_v62 = vpop.f32.mrb[23].mxu0  ;;  %6522 = vmatprep.subr.bf16.mxu0 %v1530_v46  ;;  %v843_v45 = vld [vmem:[%s8677_s11 + $0x6f8] sm:$0xff]  ;;  %v1553_v46 = vunpack.c.h.s8.bf16 %v830_v38  ;;  %v1562_v48 = vunpack.c.l.s8.bf16 %v835_v44 }
 0x2e1   : > { %v6244_v0 = vpop.f32.mrb[23].mxu1  ;;  %6544 = vmatprep.subr.bf16.mxu1 %v1546_v47  ;;  %v3039_v7 = vadd.f32 %v6220_v54, %v9075_v10  ;;  %v5888_v10 = vcombine.low %v9084_v8, %v9084_v8  ;;  %v5893_v8 = vcombine.high %v9117_v1, %v9117_v1  ;;  %v1569_v47 = vunpack.c.h.s8.bf16 %v838_v39  ;;  %v831_v50 = vld [vmem:[%s8677_s11 + $0x698] sm:$0xff] }
 0x2e2   : > { %v1578_v49 = vunpack.c.l.s8.bf16 %v843_v45  ;;  %v839_v51 = vld [vmem:[%s8677_s11 + $0x6d8] sm:$0xff]  ;;  %v1554_v62 = vunpack.c.l.s8.bf16 %v831_v50  ;;  %v1579_v60 = vunpack.c.h.s8.bf16 %v843_v45 }
 0x2e3   : > { %v9108_v12 = vadd.f32 %v6242_v56, %v3039_v7  ;;  %6523 = vmatpush3.bf16.msra.mxu0 %v1522_v59  ;;  %v1570_v0 = vunpack.c.l.s8.bf16 %v839_v51  ;;  %v1563_v7 = vunpack.c.h.s8.bf16 %v835_v44  ;;  %v1571_v15 = vunpack.c.h.s8.bf16 %v839_v51 }
 0x2e4   : > { %6545 = vmatpush3.bf16.msra.mxu1 %v1538_v61  ;;  %6524 = vmatprep.subr.bf16.mxu0 %v1531_v3 }
 0x2e5   : > { %6546 = vmatprep.subr.bf16.mxu1 %v1547_v55 }
 0x2e7   : > { %6525 = vmatpush3.bf16.msra.mxu0 %v1523_v63  ;;  %v848_v63 = vld [vmem:[%s8677_s11 + $0x720] sm:$0xff] }
 0x2e8   : > { %6547 = vmatpush3.bf16.msra.mxu1 %v1539_v13  ;;  %6554 = vmatprep.subr.bf16.mxu0 %v1556_v14  ;;  %v856_v13 = vld [vmem:[%s8677_s11 + $0x760] sm:$0xff]  ;;  %v1588_v16 = vunpack.c.l.s8.bf16 %v848_v63 }
 0x2e9   : > { %6576 = vmatprep.subr.bf16.mxu1 %v1572_v6  ;;  %v1555_v6 = vunpack.c.h.s8.bf16 %v831_v50 }
 0x2ea   : > { %3597 = vmatmul.mubr.bf16.vlgmr.msra.gmra.mrb[48].mxu0 %v5888_v10  ;;  %v1604_v10 = vunpack.c.l.s8.bf16 %v856_v13 }
 0x2eb   : > { %3637 = vmatmul.mubr.bf16.vlgmr.msra.gmra.mrb[48].mxu1 %v5890_v17  ;;  %6555 = vmatpush3.bf16.msra.mxu0 %v1548_v18  ;;  %v844_v17 = vld [vmem:[%s8677_s11 + $0x700] sm:$0xff] }
 0x2ec   : > { %6577 = vmatpush3.bf16.msra.mxu1 %v1564_v19  ;;  %6556 = vmatprep.subr.bf16.mxu0 %v1557_v4  ;;  %v852_v18 = vld [vmem:[%s8677_s11 + $0x740] sm:$0xff]  ;;  %v5894_v19 = vcombine.low %v9120_v2, %v9120_v2  ;;  %v1580_v20 = vunpack.c.l.s8.bf16 %v844_v17 }
 0x2ed   : > { %6578 = vmatprep.subr.bf16.mxu1 %v1573_v5  ;;  %3676 = vmatprep.mubr.bf16.mxu0 %v5893_v8  ;;  %v9150_v4 = vld [vmem:[%s8670_s16 + $0xe0] sm:$0xff]  ;;  %v9153_v5 = vld [vmem:[%s8670_s16 + $0xe8] sm:$0xff]  ;;  %v1596_v21 = vunpack.c.l.s8.bf16 %v852_v18  ;;  %v1589_v8 = vunpack.c.h.s8.bf16 %v848_v63 }
 0x2ee   : > { %3716 = vmatprep.mubr.bf16.mxu1 %v5895_v9  ;;  %v1605_v9 = vunpack.c.h.s8.bf16 %v856_v13  ;;  %v5899_v2 = vcombine.high %v9153_v5, %v9153_v5 }
 0x2ef   : > { %6557 = vmatpush3.bf16.msra.mxu0 %v1549_v22  ;;  %v849_v22 = vld [vmem:[%s8677_s11 + $0x728] sm:$0xff] }
 0x2f0   : > { %6579 = vmatpush3.bf16.msra.mxu1 %v1565_v23  ;;  %6558 = vmatprep.subr.bf16.mxu0 %v1558_v24  ;;  %v857_v23 = vld [vmem:[%s8677_s11 + $0x768] sm:$0xff]  ;;  %v1581_v24 = vunpack.c.h.s8.bf16 %v844_v17  ;;  %v1590_v26 = vunpack.c.l.s8.bf16 %v849_v22  ;;  %v1591_v32 = vunpack.c.h.s8.bf16 %v849_v22 }
 0x2f1   : > { %6580 = vmatprep.subr.bf16.mxu1 %v1574_v25  ;;  %v1597_v25 = vunpack.c.h.s8.bf16 %v852_v18  ;;  %v1606_v27 = vunpack.c.l.s8.bf16 %v857_v23  ;;  %v1607_v33 = vunpack.c.h.s8.bf16 %v857_v23 }
 0x2f3   : > { %6559 = vmatpush3.bf16.msra.mxu0 %v1550_v28  ;;  %v845_v28 = vld [vmem:[%s8677_s11 + $0x708] sm:$0xff] }
 0x2f4   : > { %6581 = vmatpush3.bf16.msra.mxu1 %v1566_v29  ;;  %6560 = vmatprep.subr.bf16.mxu0 %v1559_v30  ;;  %v853_v29 = vld [vmem:[%s8677_s11 + $0x748] sm:$0xff]  ;;  %v1582_v30 = vunpack.c.l.s8.bf16 %v845_v28 }
 0x2f5   : > { %6582 = vmatprep.subr.bf16.mxu1 %v1575_v31  ;;  %v1598_v31 = vunpack.c.l.s8.bf16 %v853_v29 }
 0x2f7   : > { %6561 = vmatpush3.bf16.msra.mxu0 %v1551_v34  ;;  %v850_v34 = vld [vmem:[%s8677_s11 + $0x730] sm:$0xff] }
 0x2f8   : > { %6583 = vmatpush3.bf16.msra.mxu1 %v1567_v35  ;;  %6562 = vmatprep.subr.bf16.mxu0 %v1560_v36  ;;  %v858_v35 = vld [vmem:[%s8677_s11 + $0x770] sm:$0xff]  ;;  %v1583_v36 = vunpack.c.h.s8.bf16 %v845_v28  ;;  %v1592_v38 = vunpack.c.l.s8.bf16 %v850_v34  ;;  %v1593_v44 = vunpack.c.h.s8.bf16 %v850_v34 }
 0x2f9   : > { %6584 = vmatprep.subr.bf16.mxu1 %v1576_v37  ;;  %v1599_v37 = vunpack.c.h.s8.bf16 %v853_v29  ;;  %v1608_v39 = vunpack.c.l.s8.bf16 %v858_v35  ;;  %v1609_v45 = vunpack.c.h.s8.bf16 %v858_v35 }
 0x2fb   : > { %6563 = vmatpush3.bf16.msra.mxu0 %v1552_v40  ;;  %v846_v40 = vld [vmem:[%s8677_s11 + $0x710] sm:$0xff] }
 0x2fc   : > { %6585 = vmatpush3.bf16.msra.mxu1 %v1568_v41  ;;  %6564 = vmatprep.subr.bf16.mxu0 %v1561_v42  ;;  %v854_v41 = vld [vmem:[%s8677_s11 + $0x750] sm:$0xff]  ;;  %v1584_v42 = vunpack.c.l.s8.bf16 %v846_v40 }
 0x2fd   : > { %6586 = vmatprep.subr.bf16.mxu1 %v1577_v43  ;;  %v6262_v52 = vpop.f32.mrb[24].mxu0  ;;  %v1600_v43 = vunpack.c.l.s8.bf16 %v854_v41 }
 0x2fe   : > { %v6284_v53 = vpop.f32.mrb[24].mxu1  ;;  %v6263_v54 = vpop.f32.mrb[25].mxu0 }
 0x2ff   : > { %v6285_v56 = vpop.f32.mrb[25].mxu1  ;;  %v6264_v57 = vadd.f32 %v6263_v54, %v6262_v52  ;;  %v6265_v59 = vpop.f32.mrb[26].mxu0  ;;  %6565 = vmatpush3.bf16.msra.mxu0 %v1553_v46  ;;  %v851_v46 = vld [vmem:[%s8677_s11 + $0x738] sm:$0xff] }
 0x300   : > { %v6286_v58 = vadd.f32 %v6285_v56, %v6284_v53  ;;  %v6287_v61 = vpop.f32.mrb[26].mxu1  ;;  %6587 = vmatpush3.bf16.msra.mxu1 %v1569_v47  ;;  %v6266_v3 = vpop.f32.mrb[27].mxu0  ;;  %6566 = vmatprep.subr.bf16.mxu0 %v1562_v48  ;;  %v859_v47 = vld [vmem:[%s8677_s11 + $0x778] sm:$0xff]  ;;  %v1585_v48 = vunpack.c.h.s8.bf16 %v846_v40  ;;  %v1594_v50 = vunpack.c.l.s8.bf16 %v851_v46 }
 0x301   : > { %v6288_v55 = vpop.f32.mrb[27].mxu1  ;;  %6588 = vmatprep.subr.bf16.mxu1 %v1578_v49  ;;  %v3119_v11 = vadd.f32 %v6264_v57, %v9108_v12  ;;  %v5892_v12 = vcombine.low %v9117_v1, %v9117_v1  ;;  %v5897_v1 = vcombine.high %v9150_v4, %v9150_v4  ;;  %v1601_v49 = vunpack.c.h.s8.bf16 %v854_v41  ;;  %v847_v52 = vld [vmem:[%s8677_s11 + $0x718] sm:$0xff] }
 0x302   : > { %v1610_v51 = vunpack.c.l.s8.bf16 %v859_v47  ;;  %v855_v53 = vld [vmem:[%s8677_s11 + $0x758] sm:$0xff]  ;;  %v1586_v3 = vunpack.c.l.s8.bf16 %v847_v52  ;;  %v1611_v63 = vunpack.c.h.s8.bf16 %v859_v47 }
 0x303   : > { %v9141_v14 = vadd.f32 %v6286_v58, %v3119_v11  ;;  %6567 = vmatpush3.bf16.msra.mxu0 %v1554_v62  ;;  %v1602_v55 = vunpack.c.l.s8.bf16 %v855_v53  ;;  %v1595_v11 = vunpack.c.h.s8.bf16 %v851_v46  ;;  %v1603_v17 = vunpack.c.h.s8.bf16 %v855_v53 }
 0x304   : > { %6589 = vmatpush3.bf16.msra.mxu1 %v1570_v0  ;;  %6568 = vmatprep.subr.bf16.mxu0 %v1563_v7 }
 0x305   : > { %6590 = vmatprep.subr.bf16.mxu1 %v1579_v60 }
 0x307   : > { %6569 = vmatpush3.bf16.msra.mxu0 %v1555_v6  ;;  %v864_v6 = vld [vmem:[%s8677_s11 + $0x7a0] sm:$0xff] }
 0x308   : > { %6591 = vmatpush3.bf16.msra.mxu1 %v1571_v15  ;;  %6598 = vmatprep.subr.bf16.mxu0 %v1588_v16  ;;  %v872_v15 = vld [vmem:[%s8677_s11 + $0x7e0] sm:$0xff]  ;;  %v1620_v18 = vunpack.c.l.s8.bf16 %v864_v6 }
 0x309   : > { %6620 = vmatprep.subr.bf16.mxu1 %v1604_v10  ;;  %v1587_v10 = vunpack.c.h.s8.bf16 %v847_v52 }
 0x30a   : > { %3677 = vmatmul.mubr.bf16.vlgmr.msra.gmra.mrb[52].mxu0 %v5892_v12  ;;  %v1636_v12 = vunpack.c.l.s8.bf16 %v872_v15 }
 0x30b   : > { %3717 = vmatmul.mubr.bf16.vlgmr.msra.gmra.mrb[52].mxu1 %v5894_v19  ;;  %6599 = vmatpush3.bf16.msra.mxu0 %v1580_v20  ;;  %v860_v19 = vld [vmem:[%s8677_s11 + $0x780] sm:$0xff] }
 0x30c   : > { %6621 = vmatpush3.bf16.msra.mxu1 %v1596_v21  ;;  %6600 = vmatprep.subr.bf16.mxu0 %v1589_v8  ;;  %v868_v20 = vld [vmem:[%s8677_s11 + $0x7c0] sm:$0xff]  ;;  %v5898_v21 = vcombine.low %v9153_v5, %v9153_v5  ;;  %v9183_v8 = vld [vmem:[%s8670_s16 + $0xf0] sm:$0xff]  ;;  %v1612_v22 = vunpack.c.l.s8.bf16 %v860_v19 }
 0x30d   : > { %6622 = vmatprep.subr.bf16.mxu1 %v1605_v9  ;;  %3756 = vmatprep.mubr.bf16.mxu0 %v5897_v1  ;;  %v9186_v9 = vld [vmem:[%s8670_s16 + $0xf8] sm:$0xff]  ;;  %v1628_v23 = vunpack.c.l.s8.bf16 %v868_v20  ;;  %v1621_v1 = vunpack.c.h.s8.bf16 %v864_v6 }
 0x30e   : > { %3796 = vmatprep.mubr.bf16.mxu1 %v5899_v2  ;;  %v1637_v2 = vunpack.c.h.s8.bf16 %v872_v15  ;;  %v5903_v5 = vcombine.high %v9186_v9, %v9186_v9 }
 0x30f   : > { %6601 = vmatpush3.bf16.msra.mxu0 %v1581_v24  ;;  %v865_v24 = vld [vmem:[%s8677_s11 + $0x7a8] sm:$0xff] }
 0x310   : > { %6623 = vmatpush3.bf16.msra.mxu1 %v1597_v25  ;;  %6602 = vmatprep.subr.bf16.mxu0 %v1590_v26  ;;  %v873_v25 = vld [vmem:[%s8677_s11 + $0x7e8] sm:$0xff]  ;;  %v1613_v26 = vunpack.c.h.s8.bf16 %v860_v19  ;;  %v1622_v28 = vunpack.c.l.s8.bf16 %v865_v24  ;;  %v1623_v34 = vunpack.c.h.s8.bf16 %v865_v24 }
 0x311   : > { %6624 = vmatprep.subr.bf16.mxu1 %v1606_v27  ;;  %v1629_v27 = vunpack.c.h.s8.bf16 %v868_v20  ;;  %v1638_v29 = vunpack.c.l.s8.bf16 %v873_v25  ;;  %v1639_v35 = vunpack.c.h.s8.bf16 %v873_v25 }
 0x313   : > { %6603 = vmatpush3.bf16.msra.mxu0 %v1582_v30  ;;  %v861_v30 = vld [vmem:[%s8677_s11 + $0x788] sm:$0xff] }
 0x314   : > { %6625 = vmatpush3.bf16.msra.mxu1 %v1598_v31  ;;  %6604 = vmatprep.subr.bf16.mxu0 %v1591_v32  ;;  %v869_v31 = vld [vmem:[%s8677_s11 + $0x7c8] sm:$0xff]  ;;  %v1614_v32 = vunpack.c.l.s8.bf16 %v861_v30 }
 0x315   : > { %6626 = vmatprep.subr.bf16.mxu1 %v1607_v33  ;;  %v1630_v33 = vunpack.c.l.s8.bf16 %v869_v31 }
 0x317   : > { %6605 = vmatpush3.bf16.msra.mxu0 %v1583_v36  ;;  %v866_v36 = vld [vmem:[%s8677_s11 + $0x7b0] sm:$0xff] }
 0x318   : > { %6627 = vmatpush3.bf16.msra.mxu1 %v1599_v37  ;;  %6606 = vmatprep.subr.bf16.mxu0 %v1592_v38  ;;  %v874_v37 = vld [vmem:[%s8677_s11 + $0x7f0] sm:$0xff]  ;;  %v1615_v38 = vunpack.c.h.s8.bf16 %v861_v30  ;;  %v1624_v40 = vunpack.c.l.s8.bf16 %v866_v36  ;;  %v1625_v46 = vunpack.c.h.s8.bf16 %v866_v36 }
 0x319   : > { %6628 = vmatprep.subr.bf16.mxu1 %v1608_v39  ;;  %v1631_v39 = vunpack.c.h.s8.bf16 %v869_v31  ;;  %v1640_v41 = vunpack.c.l.s8.bf16 %v874_v37  ;;  %v1641_v47 = vunpack.c.h.s8.bf16 %v874_v37 }
 0x31b   : > { %6607 = vmatpush3.bf16.msra.mxu0 %v1584_v42  ;;  %v862_v42 = vld [vmem:[%s8677_s11 + $0x790] sm:$0xff] }
 0x31c   : > { %6629 = vmatpush3.bf16.msra.mxu1 %v1600_v43  ;;  %6608 = vmatprep.subr.bf16.mxu0 %v1593_v44  ;;  %v870_v43 = vld [vmem:[%s8677_s11 + $0x7d0] sm:$0xff]  ;;  %v1616_v44 = vunpack.c.l.s8.bf16 %v862_v42 }
 0x31d   : > { %6630 = vmatprep.subr.bf16.mxu1 %v1609_v45  ;;  %v6306_v54 = vpop.f32.mrb[28].mxu0  ;;  %v1632_v45 = vunpack.c.l.s8.bf16 %v870_v43 }
 0x31e   : > { %v6328_v56 = vpop.f32.mrb[28].mxu1  ;;  %v6307_v57 = vpop.f32.mrb[29].mxu0 }
 0x31f   : > { %v6329_v58 = vpop.f32.mrb[29].mxu1  ;;  %v6308_v59 = vadd.f32 %v6307_v57, %v6306_v54  ;;  %v6309_v62 = vpop.f32.mrb[30].mxu0  ;;  %6609 = vmatpush3.bf16.msra.mxu0 %v1585_v48  ;;  %v867_v48 = vld [vmem:[%s8677_s11 + $0x7b8] sm:$0xff] }
 0x320   : > { %v6330_v61 = vadd.f32 %v6329_v58, %v6328_v56  ;;  %v6331_v0 = vpop.f32.mrb[30].mxu1  ;;  %6631 = vmatpush3.bf16.msra.mxu1 %v1601_v49  ;;  %v6310_v7 = vpop.f32.mrb[31].mxu0  ;;  %6610 = vmatprep.subr.bf16.mxu0 %v1594_v50  ;;  %v875_v49 = vld [vmem:[%s8677_s11 + $0x7f8] sm:$0xff]  ;;  %v1617_v50 = vunpack.c.h.s8.bf16 %v862_v42  ;;  %v1626_v52 = vunpack.c.l.s8.bf16 %v867_v48 }
 0x321   : > { %v6332_v60 = vpop.f32.mrb[31].mxu1  ;;  %6632 = vmatprep.subr.bf16.mxu1 %v1610_v51  ;;  %v3199_v13 = vadd.f32 %v6308_v59, %v9141_v14  ;;  %v5896_v14 = vcombine.low %v9150_v4, %v9150_v4  ;;  %v5901_v4 = vcombine.high %v9183_v8, %v9183_v8  ;;  %v1633_v51 = vunpack.c.h.s8.bf16 %v870_v43  ;;  %v863_v54 = vld [vmem:[%s8677_s11 + $0x798] sm:$0xff] }
 0x322   : > { %v1642_v53 = vunpack.c.l.s8.bf16 %v875_v49  ;;  %v871_v56 = vld [vmem:[%s8677_s11 + $0x7d8] sm:$0xff]  ;;  %v1618_v7 = vunpack.c.l.s8.bf16 %v863_v54  ;;  %v1643_v6 = vunpack.c.h.s8.bf16 %v875_v49 }
 0x323   : > { %v9174_v16 = vadd.f32 %v6330_v61, %v3199_v13  ;;  %6611 = vmatpush3.bf16.msra.mxu0 %v1586_v3  ;;  %v1634_v60 = vunpack.c.l.s8.bf16 %v871_v56  ;;  %v1627_v13 = vunpack.c.h.s8.bf16 %v867_v48  ;;  %v1635_v19 = vunpack.c.h.s8.bf16 %v871_v56 }
 0x324   : > { %6633 = vmatpush3.bf16.msra.mxu1 %v1602_v55  ;;  %6612 = vmatprep.subr.bf16.mxu0 %v1595_v11 }
 0x325   : > { %6634 = vmatprep.subr.bf16.mxu1 %v1611_v63 }
 0x327   : > { %6613 = vmatpush3.bf16.msra.mxu0 %v1587_v10  ;;  %v880_v10 = vld [vmem:[%s8677_s11 + $0x820] sm:$0xff] }
 0x328   : > { %6635 = vmatpush3.bf16.msra.mxu1 %v1603_v17  ;;  %6642 = vmatprep.subr.bf16.mxu0 %v1620_v18  ;;  %v888_v17 = vld [vmem:[%s8677_s11 + $0x860] sm:$0xff]  ;;  %v1652_v20 = vunpack.c.l.s8.bf16 %v880_v10 }
 0x329   : > { %6664 = vmatprep.subr.bf16.mxu1 %v1636_v12  ;;  %v1619_v12 = vunpack.c.h.s8.bf16 %v863_v54 }
 0x32a   : > { %3757 = vmatmul.mubr.bf16.vlgmr.msra.gmra.mrb[56].mxu0 %v5896_v14  ;;  %v1668_v14 = vunpack.c.l.s8.bf16 %v888_v17 }
 0x32b   : > { %3797 = vmatmul.mubr.bf16.vlgmr.msra.gmra.mrb[56].mxu1 %v5898_v21  ;;  %6643 = vmatpush3.bf16.msra.mxu0 %v1612_v22  ;;  %v876_v21 = vld [vmem:[%s8677_s11 + $0x800] sm:$0xff] }
 0x32c   : > { %6665 = vmatpush3.bf16.msra.mxu1 %v1628_v23  ;;  %6644 = vmatprep.subr.bf16.mxu0 %v1621_v1  ;;  %v884_v22 = vld [vmem:[%s8677_s11 + $0x840] sm:$0xff]  ;;  %v5902_v23 = vcombine.low %v9186_v9, %v9186_v9  ;;  %v1644_v24 = vunpack.c.l.s8.bf16 %v876_v21 }
 0x32d   : > { %6666 = vmatprep.subr.bf16.mxu1 %v1637_v2  ;;  %3836 = vmatprep.mubr.bf16.mxu0 %v5901_v4  ;;  %v9216_v1 = vld [vmem:[%s8670_s16 + $0x100] sm:$0xff]  ;;  %v9219_v2 = vld [vmem:[%s8670_s16 + $0x108] sm:$0xff]  ;;  %v1660_v25 = vunpack.c.l.s8.bf16 %v884_v22  ;;  %v1653_v4 = vunpack.c.h.s8.bf16 %v880_v10 }
 0x32e   : > { %3876 = vmatprep.mubr.bf16.mxu1 %v5903_v5  ;;  %v1669_v5 = vunpack.c.h.s8.bf16 %v888_v17  ;;  %v5907_v9 = vcombine.high %v9219_v2, %v9219_v2 }
 0x32f   : > { %6645 = vmatpush3.bf16.msra.mxu0 %v1613_v26  ;;  %v881_v26 = vld [vmem:[%s8677_s11 + $0x828] sm:$0xff] }
 0x330   : > { %6667 = vmatpush3.bf16.msra.mxu1 %v1629_v27  ;;  %6646 = vmatprep.subr.bf16.mxu0 %v1622_v28  ;;  %v889_v27 = vld [vmem:[%s8677_s11 + $0x868] sm:$0xff]  ;;  %v1645_v28 = vunpack.c.h.s8.bf16 %v876_v21  ;;  %v1654_v30 = vunpack.c.l.s8.bf16 %v881_v26  ;;  %v1655_v36 = vunpack.c.h.s8.bf16 %v881_v26 }
 0x331   : > { %6668 = vmatprep.subr.bf16.mxu1 %v1638_v29  ;;  %v1661_v29 = vunpack.c.h.s8.bf16 %v884_v22  ;;  %v1670_v31 = vunpack.c.l.s8.bf16 %v889_v27  ;;  %v1671_v37 = vunpack.c.h.s8.bf16 %v889_v27 }
 0x333   : > { %6647 = vmatpush3.bf16.msra.mxu0 %v1614_v32  ;;  %v877_v32 = vld [vmem:[%s8677_s11 + $0x808] sm:$0xff] }
 0x334   : > { %6669 = vmatpush3.bf16.msra.mxu1 %v1630_v33  ;;  %6648 = vmatprep.subr.bf16.mxu0 %v1623_v34  ;;  %v885_v33 = vld [vmem:[%s8677_s11 + $0x848] sm:$0xff]  ;;  %v1646_v34 = vunpack.c.l.s8.bf16 %v877_v32 }
 0x335   : > { %6670 = vmatprep.subr.bf16.mxu1 %v1639_v35  ;;  %v1662_v35 = vunpack.c.l.s8.bf16 %v885_v33 }
 0x337   : > { %6649 = vmatpush3.bf16.msra.mxu0 %v1615_v38  ;;  %v882_v38 = vld [vmem:[%s8677_s11 + $0x830] sm:$0xff] }
 0x338   : > { %6671 = vmatpush3.bf16.msra.mxu1 %v1631_v39  ;;  %6650 = vmatprep.subr.bf16.mxu0 %v1624_v40  ;;  %v890_v39 = vld [vmem:[%s8677_s11 + $0x870] sm:$0xff]  ;;  %v1647_v40 = vunpack.c.h.s8.bf16 %v877_v32  ;;  %v1656_v42 = vunpack.c.l.s8.bf16 %v882_v38  ;;  %v1657_v48 = vunpack.c.h.s8.bf16 %v882_v38 }
 0x339   : > { %6672 = vmatprep.subr.bf16.mxu1 %v1640_v41  ;;  %v1663_v41 = vunpack.c.h.s8.bf16 %v885_v33  ;;  %v1672_v43 = vunpack.c.l.s8.bf16 %v890_v39  ;;  %v1673_v49 = vunpack.c.h.s8.bf16 %v890_v39 }
 0x33b   : > { %6651 = vmatpush3.bf16.msra.mxu0 %v1616_v44  ;;  %v878_v44 = vld [vmem:[%s8677_s11 + $0x810] sm:$0xff] }
 0x33c   : > { %6673 = vmatpush3.bf16.msra.mxu1 %v1632_v45  ;;  %6652 = vmatprep.subr.bf16.mxu0 %v1625_v46  ;;  %v886_v45 = vld [vmem:[%s8677_s11 + $0x850] sm:$0xff]  ;;  %v1648_v46 = vunpack.c.l.s8.bf16 %v878_v44 }
 0x33d   : > { %6674 = vmatprep.subr.bf16.mxu1 %v1641_v47  ;;  %v6350_v57 = vpop.f32.mrb[32].mxu0  ;;  %v1664_v47 = vunpack.c.l.s8.bf16 %v886_v45 }
 0x33e   : > { %v6372_v58 = vpop.f32.mrb[32].mxu1  ;;  %v6351_v59 = vpop.f32.mrb[33].mxu0 }
 0x33f   : > { %v6373_v61 = vpop.f32.mrb[33].mxu1  ;;  %v6352_v62 = vadd.f32 %v6351_v59, %v6350_v57  ;;  %v6353_v3 = vpop.f32.mrb[34].mxu0  ;;  %6653 = vmatpush3.bf16.msra.mxu0 %v1617_v50  ;;  %v883_v50 = vld [vmem:[%s8677_s11 + $0x838] sm:$0xff] }
 0x340   : > { %v6374_v0 = vadd.f32 %v6373_v61, %v6372_v58  ;;  %v6375_v55 = vpop.f32.mrb[34].mxu1  ;;  %6675 = vmatpush3.bf16.msra.mxu1 %v1633_v51  ;;  %v6354_v11 = vpop.f32.mrb[35].mxu0  ;;  %6654 = vmatprep.subr.bf16.mxu0 %v1626_v52  ;;  %v891_v51 = vld [vmem:[%s8677_s11 + $0x878] sm:$0xff]  ;;  %v1649_v52 = vunpack.c.h.s8.bf16 %v878_v44  ;;  %v1658_v54 = vunpack.c.l.s8.bf16 %v883_v50 }
 0x341   : > { %v6376_v63 = vpop.f32.mrb[35].mxu1  ;;  %6676 = vmatprep.subr.bf16.mxu1 %v1642_v53  ;;  %v3279_v15 = vadd.f32 %v6352_v62, %v9174_v16  ;;  %v5900_v16 = vcombine.low %v9183_v8, %v9183_v8  ;;  %v5905_v8 = vcombine.high %v9216_v1, %v9216_v1  ;;  %v1665_v53 = vunpack.c.h.s8.bf16 %v886_v45  ;;  %v879_v57 = vld [vmem:[%s8677_s11 + $0x818] sm:$0xff] }
 0x342   : > { %v1674_v56 = vunpack.c.l.s8.bf16 %v891_v51  ;;  %v887_v58 = vld [vmem:[%s8677_s11 + $0x858] sm:$0xff]  ;;  %v1650_v11 = vunpack.c.l.s8.bf16 %v879_v57  ;;  %v1675_v10 = vunpack.c.h.s8.bf16 %v891_v51 }
 0x343   : > { %v9207_v18 = vadd.f32 %v6374_v0, %v3279_v15  ;;  %6655 = vmatpush3.bf16.msra.mxu0 %v1618_v7  ;;  %v1666_v63 = vunpack.c.l.s8.bf16 %v887_v58  ;;  %v1659_v15 = vunpack.c.h.s8.bf16 %v883_v50  ;;  %v1667_v21 = vunpack.c.h.s8.bf16 %v887_v58 }
 0x344   : > { %6677 = vmatpush3.bf16.msra.mxu1 %v1634_v60  ;;  %6656 = vmatprep.subr.bf16.mxu0 %v1627_v13 }
 0x345   : > { %6678 = vmatprep.subr.bf16.mxu1 %v1643_v6 }
 0x347   : > { %6657 = vmatpush3.bf16.msra.mxu0 %v1619_v12  ;;  %v896_v12 = vld [vmem:[%s8677_s11 + $0x8a0] sm:$0xff] }
 0x348   : > { %6679 = vmatpush3.bf16.msra.mxu1 %v1635_v19  ;;  %6686 = vmatprep.subr.bf16.mxu0 %v1652_v20  ;;  %v904_v19 = vld [vmem:[%s8677_s11 + $0x8e0] sm:$0xff]  ;;  %v1684_v22 = vunpack.c.l.s8.bf16 %v896_v12 }
 0x349   : > { %6708 = vmatprep.subr.bf16.mxu1 %v1668_v14  ;;  %v1651_v14 = vunpack.c.h.s8.bf16 %v879_v57 }
 0x34a   : > { %3837 = vmatmul.mubr.bf16.vlgmr.msra.gmra.mrb[60].mxu0 %v5900_v16  ;;  %v1700_v16 = vunpack.c.l.s8.bf16 %v904_v19 }
 0x34b   : > { %3877 = vmatmul.mubr.bf16.vlgmr.msra.gmra.mrb[60].mxu1 %v5902_v23  ;;  %6687 = vmatpush3.bf16.msra.mxu0 %v1644_v24  ;;  %v892_v23 = vld [vmem:[%s8677_s11 + $0x880] sm:$0xff] }
 0x34c   : > { %6709 = vmatpush3.bf16.msra.mxu1 %v1660_v25  ;;  %6688 = vmatprep.subr.bf16.mxu0 %v1653_v4  ;;  %v900_v24 = vld [vmem:[%s8677_s11 + $0x8c0] sm:$0xff]  ;;  %v5906_v25 = vcombine.low %v9219_v2, %v9219_v2  ;;  %v9249_v4 = vld [vmem:[%s8670_s16 + $0x110] sm:$0xff]  ;;  %v1676_v26 = vunpack.c.l.s8.bf16 %v892_v23 }
 0x34d   : > { %6710 = vmatprep.subr.bf16.mxu1 %v1669_v5  ;;  %3916 = vmatprep.mubr.bf16.mxu0 %v5905_v8  ;;  %v9252_v5 = vld [vmem:[%s8670_s16 + $0x118] sm:$0xff]  ;;  %v1692_v27 = vunpack.c.l.s8.bf16 %v900_v24  ;;  %v1685_v8 = vunpack.c.h.s8.bf16 %v896_v12 }
 0x34e   : > { %3956 = vmatprep.mubr.bf16.mxu1 %v5907_v9  ;;  %v1701_v9 = vunpack.c.h.s8.bf16 %v904_v19  ;;  %v5911_v2 = vcombine.high %v9252_v5, %v9252_v5 }
 0x34f   : > { %6689 = vmatpush3.bf16.msra.mxu0 %v1645_v28  ;;  %v897_v28 = vld [vmem:[%s8677_s11 + $0x8a8] sm:$0xff] }
 0x350   : > { %6711 = vmatpush3.bf16.msra.mxu1 %v1661_v29  ;;  %6690 = vmatprep.subr.bf16.mxu0 %v1654_v30  ;;  %v905_v29 = vld [vmem:[%s8677_s11 + $0x8e8] sm:$0xff]  ;;  %v1677_v30 = vunpack.c.h.s8.bf16 %v892_v23  ;;  %v1686_v32 = vunpack.c.l.s8.bf16 %v897_v28  ;;  %v1687_v38 = vunpack.c.h.s8.bf16 %v897_v28 }
 0x351   : > { %6712 = vmatprep.subr.bf16.mxu1 %v1670_v31  ;;  %v1693_v31 = vunpack.c.h.s8.bf16 %v900_v24  ;;  %v1702_v33 = vunpack.c.l.s8.bf16 %v905_v29  ;;  %v1703_v39 = vunpack.c.h.s8.bf16 %v905_v29 }
 0x353   : > { %6691 = vmatpush3.bf16.msra.mxu0 %v1646_v34  ;;  %v893_v34 = vld [vmem:[%s8677_s11 + $0x888] sm:$0xff] }
 0x354   : > { %6713 = vmatpush3.bf16.msra.mxu1 %v1662_v35  ;;  %6692 = vmatprep.subr.bf16.mxu0 %v1655_v36  ;;  %v901_v35 = vld [vmem:[%s8677_s11 + $0x8c8] sm:$0xff]  ;;  %v1678_v36 = vunpack.c.l.s8.bf16 %v893_v34 }
 0x355   : > { %6714 = vmatprep.subr.bf16.mxu1 %v1671_v37  ;;  %v1694_v37 = vunpack.c.l.s8.bf16 %v901_v35 }
 0x357   : > { %6693 = vmatpush3.bf16.msra.mxu0 %v1647_v40  ;;  %v898_v40 = vld [vmem:[%s8677_s11 + $0x8b0] sm:$0xff] }
 0x358   : > { %6715 = vmatpush3.bf16.msra.mxu1 %v1663_v41  ;;  %6694 = vmatprep.subr.bf16.mxu0 %v1656_v42  ;;  %v906_v41 = vld [vmem:[%s8677_s11 + $0x8f0] sm:$0xff]  ;;  %v1679_v42 = vunpack.c.h.s8.bf16 %v893_v34  ;;  %v1688_v44 = vunpack.c.l.s8.bf16 %v898_v40  ;;  %v1689_v50 = vunpack.c.h.s8.bf16 %v898_v40 }
 0x359   : > { %6716 = vmatprep.subr.bf16.mxu1 %v1672_v43  ;;  %v1695_v43 = vunpack.c.h.s8.bf16 %v901_v35  ;;  %v1704_v45 = vunpack.c.l.s8.bf16 %v906_v41  ;;  %v1705_v51 = vunpack.c.h.s8.bf16 %v906_v41 }
 0x35b   : > { %6695 = vmatpush3.bf16.msra.mxu0 %v1648_v46  ;;  %v894_v46 = vld [vmem:[%s8677_s11 + $0x890] sm:$0xff] }
 0x35c   : > { %6717 = vmatpush3.bf16.msra.mxu1 %v1664_v47  ;;  %6696 = vmatprep.subr.bf16.mxu0 %v1657_v48  ;;  %v902_v47 = vld [vmem:[%s8677_s11 + $0x8d0] sm:$0xff]  ;;  %v1680_v48 = vunpack.c.l.s8.bf16 %v894_v46 }
 0x35d   : > { %6718 = vmatprep.subr.bf16.mxu1 %v1673_v49  ;;  %v6394_v59 = vpop.f32.mrb[36].mxu0  ;;  %v1696_v49 = vunpack.c.l.s8.bf16 %v902_v47 }
 0x35e   : > { %v6416_v61 = vpop.f32.mrb[36].mxu1  ;;  %v6395_v62 = vpop.f32.mrb[37].mxu0 }
 0x35f   : > { %v6417_v0 = vpop.f32.mrb[37].mxu1  ;;  %v6396_v3 = vadd.f32 %v6395_v62, %v6394_v59  ;;  %v6397_v7 = vpop.f32.mrb[38].mxu0  ;;  %6697 = vmatpush3.bf16.msra.mxu0 %v1649_v52  ;;  %v899_v52 = vld [vmem:[%s8677_s11 + $0x8b8] sm:$0xff] }
 0x360   : > { %v6418_v55 = vadd.f32 %v6417_v0, %v6416_v61  ;;  %v6419_v60 = vpop.f32.mrb[38].mxu1  ;;  %6719 = vmatpush3.bf16.msra.mxu1 %v1665_v53  ;;  %v6398_v13 = vpop.f32.mrb[39].mxu0  ;;  %6698 = vmatprep.subr.bf16.mxu0 %v1658_v54  ;;  %v907_v53 = vld [vmem:[%s8677_s11 + $0x8f8] sm:$0xff]  ;;  %v1681_v54 = vunpack.c.h.s8.bf16 %v894_v46  ;;  %v1690_v57 = vunpack.c.l.s8.bf16 %v899_v52 }
 0x361   : > { %v6420_v6 = vpop.f32.mrb[39].mxu1  ;;  %6720 = vmatprep.subr.bf16.mxu1 %v1674_v56  ;;  %v3359_v17 = vadd.f32 %v6396_v3, %v9207_v18  ;;  %v5904_v18 = vcombine.low %v9216_v1, %v9216_v1  ;;  %v5909_v1 = vcombine.high %v9249_v4, %v9249_v4  ;;  %v1697_v56 = vunpack.c.h.s8.bf16 %v902_v47  ;;  %v895_v59 = vld [vmem:[%s8677_s11 + $0x898] sm:$0xff] }
 0x362   : > { %v1706_v58 = vunpack.c.l.s8.bf16 %v907_v53  ;;  %v903_v61 = vld [vmem:[%s8677_s11 + $0x8d8] sm:$0xff]  ;;  %v1682_v13 = vunpack.c.l.s8.bf16 %v895_v59  ;;  %v1707_v12 = vunpack.c.h.s8.bf16 %v907_v53 }
 0x363   : > { %v9240_v20 = vadd.f32 %v6418_v55, %v3359_v17  ;;  %6699 = vmatpush3.bf16.msra.mxu0 %v1650_v11  ;;  %v1698_v6 = vunpack.c.l.s8.bf16 %v903_v61  ;;  %v1691_v17 = vunpack.c.h.s8.bf16 %v899_v52  ;;  %v1699_v23 = vunpack.c.h.s8.bf16 %v903_v61 }
 0x364   : > { %6721 = vmatpush3.bf16.msra.mxu1 %v1666_v63  ;;  %6700 = vmatprep.subr.bf16.mxu0 %v1659_v15 }
 0x365   : > { %6722 = vmatprep.subr.bf16.mxu1 %v1675_v10 }
 0x367   : > { %6701 = vmatpush3.bf16.msra.mxu0 %v1651_v14  ;;  %v912_v14 = vld [vmem:[%s8677_s11 + $0x920] sm:$0xff] }
 0x368   : > { %6723 = vmatpush3.bf16.msra.mxu1 %v1667_v21  ;;  %6730 = vmatprep.subr.bf16.mxu0 %v1684_v22  ;;  %v920_v21 = vld [vmem:[%s8677_s11 + $0x960] sm:$0xff]  ;;  %v1716_v24 = vunpack.c.l.s8.bf16 %v912_v14 }
 0x369   : > { %6752 = vmatprep.subr.bf16.mxu1 %v1700_v16  ;;  %v1683_v16 = vunpack.c.h.s8.bf16 %v895_v59 }
 0x36a   : > { %3917 = vmatmul.mubr.bf16.vlgmr.msra.gmra.mrb[64].mxu0 %v5904_v18  ;;  %v1732_v18 = vunpack.c.l.s8.bf16 %v920_v21 }
 0x36b   : > { %3957 = vmatmul.mubr.bf16.vlgmr.msra.gmra.mrb[64].mxu1 %v5906_v25  ;;  %6731 = vmatpush3.bf16.msra.mxu0 %v1676_v26  ;;  %v908_v25 = vld [vmem:[%s8677_s11 + $0x900] sm:$0xff] }
 0x36c   : > { %6753 = vmatpush3.bf16.msra.mxu1 %v1692_v27  ;;  %6732 = vmatprep.subr.bf16.mxu0 %v1685_v8  ;;  %v916_v26 = vld [vmem:[%s8677_s11 + $0x940] sm:$0xff]  ;;  %v5910_v27 = vcombine.low %v9252_v5, %v9252_v5  ;;  %v1708_v28 = vunpack.c.l.s8.bf16 %v908_v25 }
 0x36d   : > { %6754 = vmatprep.subr.bf16.mxu1 %v1701_v9  ;;  %3996 = vmatprep.mubr.bf16.mxu0 %v5909_v1  ;;  %v9282_v8 = vld [vmem:[%s8670_s16 + $0x120] sm:$0xff]  ;;  %v9285_v9 = vld [vmem:[%s8670_s16 + $0x128] sm:$0xff]  ;;  %v1724_v29 = vunpack.c.l.s8.bf16 %v916_v26  ;;  %v1717_v1 = vunpack.c.h.s8.bf16 %v912_v14 }
 0x36e   : > { %4036 = vmatprep.mubr.bf16.mxu1 %v5911_v2  ;;  %v1733_v2 = vunpack.c.h.s8.bf16 %v920_v21  ;;  %v5915_v5 = vcombine.high %v9285_v9, %v9285_v9 }
 0x36f   : > { %6733 = vmatpush3.bf16.msra.mxu0 %v1677_v30  ;;  %v913_v30 = vld [vmem:[%s8677_s11 + $0x928] sm:$0xff] }
 0x370   : > { %6755 = vmatpush3.bf16.msra.mxu1 %v1693_v31  ;;  %6734 = vmatprep.subr.bf16.mxu0 %v1686_v32  ;;  %v921_v31 = vld [vmem:[%s8677_s11 + $0x968] sm:$0xff]  ;;  %v1709_v32 = vunpack.c.h.s8.bf16 %v908_v25  ;;  %v1718_v34 = vunpack.c.l.s8.bf16 %v913_v30  ;;  %v1719_v40 = vunpack.c.h.s8.bf16 %v913_v30 }
 0x371   : > { %6756 = vmatprep.subr.bf16.mxu1 %v1702_v33  ;;  %v1725_v33 = vunpack.c.h.s8.bf16 %v916_v26  ;;  %v1734_v35 = vunpack.c.l.s8.bf16 %v921_v31  ;;  %v1735_v41 = vunpack.c.h.s8.bf16 %v921_v31 }
 0x373   : > { %6735 = vmatpush3.bf16.msra.mxu0 %v1678_v36  ;;  %v909_v36 = vld [vmem:[%s8677_s11 + $0x908] sm:$0xff] }
 0x374   : > { %6757 = vmatpush3.bf16.msra.mxu1 %v1694_v37  ;;  %6736 = vmatprep.subr.bf16.mxu0 %v1687_v38  ;;  %v917_v37 = vld [vmem:[%s8677_s11 + $0x948] sm:$0xff]  ;;  %v1710_v38 = vunpack.c.l.s8.bf16 %v909_v36 }
 0x375   : > { %6758 = vmatprep.subr.bf16.mxu1 %v1703_v39  ;;  %v1726_v39 = vunpack.c.l.s8.bf16 %v917_v37 }
 0x377   : > { %6737 = vmatpush3.bf16.msra.mxu0 %v1679_v42  ;;  %v914_v42 = vld [vmem:[%s8677_s11 + $0x930] sm:$0xff] }
 0x378   : > { %6759 = vmatpush3.bf16.msra.mxu1 %v1695_v43  ;;  %6738 = vmatprep.subr.bf16.mxu0 %v1688_v44  ;;  %v922_v43 = vld [vmem:[%s8677_s11 + $0x970] sm:$0xff]  ;;  %v1711_v44 = vunpack.c.h.s8.bf16 %v909_v36  ;;  %v1720_v46 = vunpack.c.l.s8.bf16 %v914_v42  ;;  %v1721_v52 = vunpack.c.h.s8.bf16 %v914_v42 }
 0x379   : > { %6760 = vmatprep.subr.bf16.mxu1 %v1704_v45  ;;  %v1727_v45 = vunpack.c.h.s8.bf16 %v917_v37  ;;  %v1736_v47 = vunpack.c.l.s8.bf16 %v922_v43  ;;  %v1737_v53 = vunpack.c.h.s8.bf16 %v922_v43 }
 0x37b   : > { %6739 = vmatpush3.bf16.msra.mxu0 %v1680_v48  ;;  %v910_v48 = vld [vmem:[%s8677_s11 + $0x910] sm:$0xff] }
 0x37c   : > { %6761 = vmatpush3.bf16.msra.mxu1 %v1696_v49  ;;  %6740 = vmatprep.subr.bf16.mxu0 %v1689_v50  ;;  %v918_v49 = vld [vmem:[%s8677_s11 + $0x950] sm:$0xff]  ;;  %v1712_v50 = vunpack.c.l.s8.bf16 %v910_v48 }
 0x37d   : > { %6762 = vmatprep.subr.bf16.mxu1 %v1705_v51  ;;  %v6438_v62 = vpop.f32.mrb[40].mxu0  ;;  %v1728_v51 = vunpack.c.l.s8.bf16 %v918_v49 }
 0x37e   : > { %v6460_v0 = vpop.f32.mrb[40].mxu1  ;;  %v6439_v3 = vpop.f32.mrb[41].mxu0 }
 0x37f   : > { %v6461_v55 = vpop.f32.mrb[41].mxu1  ;;  %v6440_v7 = vadd.f32 %v6439_v3, %v6438_v62  ;;  %v6441_v11 = vpop.f32.mrb[42].mxu0  ;;  %6741 = vmatpush3.bf16.msra.mxu0 %v1681_v54  ;;  %v915_v54 = vld [vmem:[%s8677_s11 + $0x938] sm:$0xff] }
 0x380   : > { %v6462_v60 = vadd.f32 %v6461_v55, %v6460_v0  ;;  %v6463_v63 = vpop.f32.mrb[42].mxu1  ;;  %6763 = vmatpush3.bf16.msra.mxu1 %v1697_v56  ;;  %v6442_v15 = vpop.f32.mrb[43].mxu0  ;;  %6742 = vmatprep.subr.bf16.mxu0 %v1690_v57  ;;  %v923_v56 = vld [vmem:[%s8677_s11 + $0x978] sm:$0xff]  ;;  %v1713_v57 = vunpack.c.h.s8.bf16 %v910_v48  ;;  %v1722_v59 = vunpack.c.l.s8.bf16 %v915_v54 }
 0x381   : > { %v6464_v10 = vpop.f32.mrb[43].mxu1  ;;  %6764 = vmatprep.subr.bf16.mxu1 %v1706_v58  ;;  %v3439_v19 = vadd.f32 %v6440_v7, %v9240_v20  ;;  %v5908_v20 = vcombine.low %v9249_v4, %v9249_v4  ;;  %v5913_v4 = vcombine.high %v9282_v8, %v9282_v8  ;;  %v1729_v58 = vunpack.c.h.s8.bf16 %v918_v49  ;;  %v911_v62 = vld [vmem:[%s8677_s11 + $0x918] sm:$0xff] }
 0x382   : > { %v1738_v61 = vunpack.c.l.s8.bf16 %v923_v56  ;;  %v919_v0 = vld [vmem:[%s8677_s11 + $0x958] sm:$0xff]  ;;  %v1714_v15 = vunpack.c.l.s8.bf16 %v911_v62  ;;  %v1739_v14 = vunpack.c.h.s8.bf16 %v923_v56 }
 0x383   : > { %v9273_v22 = vadd.f32 %v6462_v60, %v3439_v19  ;;  %6743 = vmatpush3.bf16.msra.mxu0 %v1682_v13  ;;  %v1730_v10 = vunpack.c.l.s8.bf16 %v919_v0  ;;  %v1723_v19 = vunpack.c.h.s8.bf16 %v915_v54  ;;  %v1731_v25 = vunpack.c.h.s8.bf16 %v919_v0 }
 0x384   : > { %6765 = vmatpush3.bf16.msra.mxu1 %v1698_v6  ;;  %6744 = vmatprep.subr.bf16.mxu0 %v1691_v17 }
 0x385   : > { %6766 = vmatprep.subr.bf16.mxu1 %v1707_v12 }
 0x387   : > { %6745 = vmatpush3.bf16.msra.mxu0 %v1683_v16  ;;  %v928_v16 = vld [vmem:[%s8677_s11 + $0x9a0] sm:$0xff] }
 0x388   : > { %6767 = vmatpush3.bf16.msra.mxu1 %v1699_v23  ;;  %6774 = vmatprep.subr.bf16.mxu0 %v1716_v24  ;;  %v936_v23 = vld [vmem:[%s8677_s11 + $0x9e0] sm:$0xff]  ;;  %v1748_v26 = vunpack.c.l.s8.bf16 %v928_v16 }
 0x389   : > { %6796 = vmatprep.subr.bf16.mxu1 %v1732_v18  ;;  %v1715_v18 = vunpack.c.h.s8.bf16 %v911_v62 }
 0x38a   : > { %3997 = vmatmul.mubr.bf16.vlgmr.msra.gmra.mrb[68].mxu0 %v5908_v20  ;;  %v1764_v20 = vunpack.c.l.s8.bf16 %v936_v23 }
 0x38b   : > { %4037 = vmatmul.mubr.bf16.vlgmr.msra.gmra.mrb[68].mxu1 %v5910_v27  ;;  %6775 = vmatpush3.bf16.msra.mxu0 %v1708_v28  ;;  %v924_v27 = vld [vmem:[%s8677_s11 + $0x980] sm:$0xff] }
 0x38c   : > { %6797 = vmatpush3.bf16.msra.mxu1 %v1724_v29  ;;  %6776 = vmatprep.subr.bf16.mxu0 %v1717_v1  ;;  %v932_v28 = vld [vmem:[%s8677_s11 + $0x9c0] sm:$0xff]  ;;  %v5914_v29 = vcombine.low %v9285_v9, %v9285_v9  ;;  %v9315_v1 = vld [vmem:[%s8670_s16 + $0x130] sm:$0xff]  ;;  %v1740_v30 = vunpack.c.l.s8.bf16 %v924_v27 }
 0x38d   : > { %6798 = vmatprep.subr.bf16.mxu1 %v1733_v2  ;;  %4076 = vmatprep.mubr.bf16.mxu0 %v5913_v4  ;;  %v9318_v2 = vld [vmem:[%s8670_s16 + $0x138] sm:$0xff]  ;;  %v1756_v31 = vunpack.c.l.s8.bf16 %v932_v28  ;;  %v1749_v4 = vunpack.c.h.s8.bf16 %v928_v16 }
 0x38e   : > { %4116 = vmatprep.mubr.bf16.mxu1 %v5915_v5  ;;  %v1765_v5 = vunpack.c.h.s8.bf16 %v936_v23  ;;  %v5919_v9 = vcombine.high %v9318_v2, %v9318_v2 }
 0x38f   : > { %6777 = vmatpush3.bf16.msra.mxu0 %v1709_v32  ;;  %v929_v32 = vld [vmem:[%s8677_s11 + $0x9a8] sm:$0xff] }
 0x390   : > { %6799 = vmatpush3.bf16.msra.mxu1 %v1725_v33  ;;  %6778 = vmatprep.subr.bf16.mxu0 %v1718_v34  ;;  %v937_v33 = vld [vmem:[%s8677_s11 + $0x9e8] sm:$0xff]  ;;  %v1741_v34 = vunpack.c.h.s8.bf16 %v924_v27  ;;  %v1750_v36 = vunpack.c.l.s8.bf16 %v929_v32  ;;  %v1751_v42 = vunpack.c.h.s8.bf16 %v929_v32 }
 0x391   : > { %6800 = vmatprep.subr.bf16.mxu1 %v1734_v35  ;;  %v1757_v35 = vunpack.c.h.s8.bf16 %v932_v28  ;;  %v1766_v37 = vunpack.c.l.s8.bf16 %v937_v33  ;;  %v1767_v43 = vunpack.c.h.s8.bf16 %v937_v33 }
 0x393   : > { %6779 = vmatpush3.bf16.msra.mxu0 %v1710_v38  ;;  %v925_v38 = vld [vmem:[%s8677_s11 + $0x988] sm:$0xff] }
 0x394   : > { %6801 = vmatpush3.bf16.msra.mxu1 %v1726_v39  ;;  %6780 = vmatprep.subr.bf16.mxu0 %v1719_v40  ;;  %v933_v39 = vld [vmem:[%s8677_s11 + $0x9c8] sm:$0xff]  ;;  %v1742_v40 = vunpack.c.l.s8.bf16 %v925_v38 }
 0x395   : > { %6802 = vmatprep.subr.bf16.mxu1 %v1735_v41  ;;  %v1758_v41 = vunpack.c.l.s8.bf16 %v933_v39 }
 0x397   : > { %6781 = vmatpush3.bf16.msra.mxu0 %v1711_v44  ;;  %v930_v44 = vld [vmem:[%s8677_s11 + $0x9b0] sm:$0xff] }
 0x398   : > { %6803 = vmatpush3.bf16.msra.mxu1 %v1727_v45  ;;  %6782 = vmatprep.subr.bf16.mxu0 %v1720_v46  ;;  %v938_v45 = vld [vmem:[%s8677_s11 + $0x9f0] sm:$0xff]  ;;  %v1743_v46 = vunpack.c.h.s8.bf16 %v925_v38  ;;  %v1752_v48 = vunpack.c.l.s8.bf16 %v930_v44  ;;  %v1753_v54 = vunpack.c.h.s8.bf16 %v930_v44 }
 0x399   : > { %6804 = vmatprep.subr.bf16.mxu1 %v1736_v47  ;;  %v1759_v47 = vunpack.c.h.s8.bf16 %v933_v39  ;;  %v1768_v49 = vunpack.c.l.s8.bf16 %v938_v45  ;;  %v1769_v56 = vunpack.c.h.s8.bf16 %v938_v45 }
 0x39b   : > { %6783 = vmatpush3.bf16.msra.mxu0 %v1712_v50  ;;  %v926_v50 = vld [vmem:[%s8677_s11 + $0x990] sm:$0xff] }
 0x39c   : > { %6805 = vmatpush3.bf16.msra.mxu1 %v1728_v51  ;;  %6784 = vmatprep.subr.bf16.mxu0 %v1721_v52  ;;  %v934_v51 = vld [vmem:[%s8677_s11 + $0x9d0] sm:$0xff]  ;;  %v1744_v52 = vunpack.c.l.s8.bf16 %v926_v50 }
 0x39d   : > { %6806 = vmatprep.subr.bf16.mxu1 %v1737_v53  ;;  %v6482_v3 = vpop.f32.mrb[44].mxu0  ;;  %v1760_v53 = vunpack.c.l.s8.bf16 %v934_v51 }
 0x39e   : > { %v6504_v55 = vpop.f32.mrb[44].mxu1  ;;  %v6483_v7 = vpop.f32.mrb[45].mxu0 }
 0x39f   : > { %v6505_v60 = vpop.f32.mrb[45].mxu1  ;;  %v6484_v11 = vadd.f32 %v6483_v7, %v6482_v3  ;;  %v6485_v13 = vpop.f32.mrb[46].mxu0  ;;  %6785 = vmatpush3.bf16.msra.mxu0 %v1713_v57  ;;  %v931_v57 = vld [vmem:[%s8677_s11 + $0x9b8] sm:$0xff] }
 0x3a0   : > { %v6506_v63 = vadd.f32 %v6505_v60, %v6504_v55  ;;  %v6507_v6 = vpop.f32.mrb[46].mxu1  ;;  %6807 = vmatpush3.bf16.msra.mxu1 %v1729_v58  ;;  %v6486_v17 = vpop.f32.mrb[47].mxu0  ;;  %6786 = vmatprep.subr.bf16.mxu0 %v1722_v59  ;;  %v939_v58 = vld [vmem:[%s8677_s11 + $0x9f8] sm:$0xff]  ;;  %v1745_v59 = vunpack.c.h.s8.bf16 %v926_v50  ;;  %v1754_v62 = vunpack.c.l.s8.bf16 %v931_v57 }
 0x3a1   : > { %v6508_v12 = vpop.f32.mrb[47].mxu1  ;;  %6808 = vmatprep.subr.bf16.mxu1 %v1738_v61  ;;  %v3519_v21 = vadd.f32 %v6484_v11, %v9273_v22  ;;  %v5912_v22 = vcombine.low %v9282_v8, %v9282_v8  ;;  %v5917_v8 = vcombine.high %v9315_v1, %v9315_v1  ;;  %v1761_v61 = vunpack.c.h.s8.bf16 %v934_v51  ;;  %v927_v3 = vld [vmem:[%s8677_s11 + $0x998] sm:$0xff] }
 0x3a2   : > { %v1770_v0 = vunpack.c.l.s8.bf16 %v939_v58  ;;  %v935_v55 = vld [vmem:[%s8677_s11 + $0x9d8] sm:$0xff]  ;;  %v1746_v17 = vunpack.c.l.s8.bf16 %v927_v3  ;;  %v1771_v16 = vunpack.c.h.s8.bf16 %v939_v58 }
 0x3a3   : > { %v9306_v24 = vadd.f32 %v6506_v63, %v3519_v21  ;;  %6787 = vmatpush3.bf16.msra.mxu0 %v1714_v15  ;;  %v1762_v12 = vunpack.c.l.s8.bf16 %v935_v55  ;;  %v1755_v21 = vunpack.c.h.s8.bf16 %v931_v57  ;;  %v1763_v27 = vunpack.c.h.s8.bf16 %v935_v55 }
 0x3a4   : > { %6809 = vmatpush3.bf16.msra.mxu1 %v1730_v10  ;;  %6788 = vmatprep.subr.bf16.mxu0 %v1723_v19 }
 0x3a5   : > { %6810 = vmatprep.subr.bf16.mxu1 %v1739_v14 }
 0x3a7   : > { %6789 = vmatpush3.bf16.msra.mxu0 %v1715_v18  ;;  %v944_v18 = vld [vmem:[%s8677_s11 + $0xa20] sm:$0xff] }
 0x3a8   : > { %6811 = vmatpush3.bf16.msra.mxu1 %v1731_v25  ;;  %6818 = vmatprep.subr.bf16.mxu0 %v1748_v26  ;;  %v952_v25 = vld [vmem:[%s8677_s11 + $0xa60] sm:$0xff]  ;;  %v1780_v28 = vunpack.c.l.s8.bf16 %v944_v18 }
 0x3a9   : > { %6840 = vmatprep.subr.bf16.mxu1 %v1764_v20  ;;  %v1747_v20 = vunpack.c.h.s8.bf16 %v927_v3 }
 0x3aa   : > { %4077 = vmatmul.mubr.bf16.vlgmr.msra.gmra.mrb[72].mxu0 %v5912_v22  ;;  %v1796_v22 = vunpack.c.l.s8.bf16 %v952_v25 }
 0x3ab   : > { %4117 = vmatmul.mubr.bf16.vlgmr.msra.gmra.mrb[72].mxu1 %v5914_v29  ;;  %6819 = vmatpush3.bf16.msra.mxu0 %v1740_v30  ;;  %v940_v29 = vld [vmem:[%s8677_s11 + $0xa00] sm:$0xff] }
 0x3ac   : > { %6841 = vmatpush3.bf16.msra.mxu1 %v1756_v31  ;;  %6820 = vmatprep.subr.bf16.mxu0 %v1749_v4  ;;  %v948_v30 = vld [vmem:[%s8677_s11 + $0xa40] sm:$0xff]  ;;  %v5918_v31 = vcombine.low %v9318_v2, %v9318_v2  ;;  %v1772_v32 = vunpack.c.l.s8.bf16 %v940_v29 }
 0x3ad   : > { %6842 = vmatprep.subr.bf16.mxu1 %v1765_v5  ;;  %4156 = vmatprep.mubr.bf16.mxu0 %v5917_v8  ;;  %v9348_v4 = vld [vmem:[%s8670_s16 + $0x140] sm:$0xff]  ;;  %v9351_v5 = vld [vmem:[%s8670_s16 + $0x148] sm:$0xff]  ;;  %v1788_v33 = vunpack.c.l.s8.bf16 %v948_v30  ;;  %v1781_v8 = vunpack.c.h.s8.bf16 %v944_v18 }
 0x3ae   : > { %4196 = vmatprep.mubr.bf16.mxu1 %v5919_v9  ;;  %v1797_v9 = vunpack.c.h.s8.bf16 %v952_v25  ;;  %v5923_v2 = vcombine.high %v9351_v5, %v9351_v5 }
 0x3af   : > { %6821 = vmatpush3.bf16.msra.mxu0 %v1741_v34  ;;  %v945_v34 = vld [vmem:[%s8677_s11 + $0xa28] sm:$0xff] }
 0x3b0   : > { %6843 = vmatpush3.bf16.msra.mxu1 %v1757_v35  ;;  %6822 = vmatprep.subr.bf16.mxu0 %v1750_v36  ;;  %v953_v35 = vld [vmem:[%s8677_s11 + $0xa68] sm:$0xff]  ;;  %v1773_v36 = vunpack.c.h.s8.bf16 %v940_v29  ;;  %v1782_v38 = vunpack.c.l.s8.bf16 %v945_v34  ;;  %v1783_v44 = vunpack.c.h.s8.bf16 %v945_v34 }
 0x3b1   : > { %6844 = vmatprep.subr.bf16.mxu1 %v1766_v37  ;;  %v1789_v37 = vunpack.c.h.s8.bf16 %v948_v30  ;;  %v1798_v39 = vunpack.c.l.s8.bf16 %v953_v35  ;;  %v1799_v45 = vunpack.c.h.s8.bf16 %v953_v35 }
 0x3b3   : > { %6823 = vmatpush3.bf16.msra.mxu0 %v1742_v40  ;;  %v941_v40 = vld [vmem:[%s8677_s11 + $0xa08] sm:$0xff] }
 0x3b4   : > { %6845 = vmatpush3.bf16.msra.mxu1 %v1758_v41  ;;  %6824 = vmatprep.subr.bf16.mxu0 %v1751_v42  ;;  %v949_v41 = vld [vmem:[%s8677_s11 + $0xa48] sm:$0xff]  ;;  %v1774_v42 = vunpack.c.l.s8.bf16 %v941_v40 }
 0x3b5   : > { %6846 = vmatprep.subr.bf16.mxu1 %v1767_v43  ;;  %v1790_v43 = vunpack.c.l.s8.bf16 %v949_v41 }
 0x3b7   : > { %6825 = vmatpush3.bf16.msra.mxu0 %v1743_v46  ;;  %v946_v46 = vld [vmem:[%s8677_s11 + $0xa30] sm:$0xff] }
 0x3b8   : > { %6847 = vmatpush3.bf16.msra.mxu1 %v1759_v47  ;;  %6826 = vmatprep.subr.bf16.mxu0 %v1752_v48  ;;  %v954_v47 = vld [vmem:[%s8677_s11 + $0xa70] sm:$0xff]  ;;  %v1775_v48 = vunpack.c.h.s8.bf16 %v941_v40  ;;  %v1784_v50 = vunpack.c.l.s8.bf16 %v946_v46  ;;  %v1785_v57 = vunpack.c.h.s8.bf16 %v946_v46 }
 0x3b9   : > { %6848 = vmatprep.subr.bf16.mxu1 %v1768_v49  ;;  %v1791_v49 = vunpack.c.h.s8.bf16 %v949_v41  ;;  %v1800_v51 = vunpack.c.l.s8.bf16 %v954_v47  ;;  %v1801_v58 = vunpack.c.h.s8.bf16 %v954_v47 }
 0x3bb   : > { %6827 = vmatpush3.bf16.msra.mxu0 %v1744_v52  ;;  %v942_v52 = vld [vmem:[%s8677_s11 + $0xa10] sm:$0xff] }
 0x3bc   : > { %6849 = vmatpush3.bf16.msra.mxu1 %v1760_v53  ;;  %6828 = vmatprep.subr.bf16.mxu0 %v1753_v54  ;;  %v950_v53 = vld [vmem:[%s8677_s11 + $0xa50] sm:$0xff]  ;;  %v1776_v54 = vunpack.c.l.s8.bf16 %v942_v52 }
 0x3bd   : > { %6850 = vmatprep.subr.bf16.mxu1 %v1769_v56  ;;  %v6526_v7 = vpop.f32.mrb[48].mxu0  ;;  %v1792_v56 = vunpack.c.l.s8.bf16 %v950_v53 }
 0x3be   : > { %v6548_v60 = vpop.f32.mrb[48].mxu1  ;;  %v6527_v11 = vpop.f32.mrb[49].mxu0 }
 0x3bf   : > { %v6549_v63 = vpop.f32.mrb[49].mxu1  ;;  %v6528_v13 = vadd.f32 %v6527_v11, %v6526_v7  ;;  %v6529_v15 = vpop.f32.mrb[50].mxu0  ;;  %6829 = vmatpush3.bf16.msra.mxu0 %v1745_v59  ;;  %v947_v59 = vld [vmem:[%s8677_s11 + $0xa38] sm:$0xff] }
 0x3c0   : > { %v6550_v6 = vadd.f32 %v6549_v63, %v6548_v60  ;;  %v6551_v10 = vpop.f32.mrb[50].mxu1  ;;  %6851 = vmatpush3.bf16.msra.mxu1 %v1761_v61  ;;  %v6530_v19 = vpop.f32.mrb[51].mxu0  ;;  %6830 = vmatprep.subr.bf16.mxu0 %v1754_v62  ;;  %v955_v61 = vld [vmem:[%s8677_s11 + $0xa78] sm:$0xff]  ;;  %v1777_v62 = vunpack.c.h.s8.bf16 %v942_v52  ;;  %v1786_v3 = vunpack.c.l.s8.bf16 %v947_v59 }
 0x3c1   : > { %v6552_v14 = vpop.f32.mrb[51].mxu1  ;;  %6852 = vmatprep.subr.bf16.mxu1 %v1770_v0  ;;  %v3599_v23 = vadd.f32 %v6528_v13, %v9306_v24  ;;  %v5916_v24 = vcombine.low %v9315_v1, %v9315_v1  ;;  %v5921_v1 = vcombine.high %v9348_v4, %v9348_v4  ;;  %v1793_v0 = vunpack.c.h.s8.bf16 %v950_v53  ;;  %v943_v7 = vld [vmem:[%s8677_s11 + $0xa18] sm:$0xff] }
 0x3c2   : > { %v1802_v55 = vunpack.c.l.s8.bf16 %v955_v61  ;;  %v951_v60 = vld [vmem:[%s8677_s11 + $0xa58] sm:$0xff]  ;;  %v1778_v19 = vunpack.c.l.s8.bf16 %v943_v7  ;;  %v1803_v18 = vunpack.c.h.s8.bf16 %v955_v61 }
 0x3c3   : > { %v9339_v26 = vadd.f32 %v6550_v6, %v3599_v23  ;;  %6831 = vmatpush3.bf16.msra.mxu0 %v1746_v17  ;;  %v1794_v14 = vunpack.c.l.s8.bf16 %v951_v60  ;;  %v1787_v23 = vunpack.c.h.s8.bf16 %v947_v59  ;;  %v1795_v29 = vunpack.c.h.s8.bf16 %v951_v60 }
 0x3c4   : > { %6853 = vmatpush3.bf16.msra.mxu1 %v1762_v12  ;;  %6832 = vmatprep.subr.bf16.mxu0 %v1755_v21 }
 0x3c5   : > { %6854 = vmatprep.subr.bf16.mxu1 %v1771_v16 }
 0x3c7   : > { %6833 = vmatpush3.bf16.msra.mxu0 %v1747_v20  ;;  %v960_v20 = vld [vmem:[%s8677_s11 + $0xaa0] sm:$0xff] }
 0x3c8   : > { %6855 = vmatpush3.bf16.msra.mxu1 %v1763_v27  ;;  %6862 = vmatprep.subr.bf16.mxu0 %v1780_v28  ;;  %v968_v27 = vld [vmem:[%s8677_s11 + $0xae0] sm:$0xff]  ;;  %v1812_v30 = vunpack.c.l.s8.bf16 %v960_v20 }
 0x3c9   : > { %6884 = vmatprep.subr.bf16.mxu1 %v1796_v22  ;;  %v1779_v22 = vunpack.c.h.s8.bf16 %v943_v7 }
 0x3ca   : > { %4157 = vmatmul.mubr.bf16.vlgmr.msra.gmra.mrb[76].mxu0 %v5916_v24  ;;  %v1828_v24 = vunpack.c.l.s8.bf16 %v968_v27 }
 0x3cb   : > { %4197 = vmatmul.mubr.bf16.vlgmr.msra.gmra.mrb[76].mxu1 %v5918_v31  ;;  %6863 = vmatpush3.bf16.msra.mxu0 %v1772_v32  ;;  %v956_v31 = vld [vmem:[%s8677_s11 + $0xa80] sm:$0xff] }
 0x3cc   : > { %6885 = vmatpush3.bf16.msra.mxu1 %v1788_v33  ;;  %6864 = vmatprep.subr.bf16.mxu0 %v1781_v8  ;;  %v964_v32 = vld [vmem:[%s8677_s11 + $0xac0] sm:$0xff]  ;;  %v5922_v33 = vcombine.low %v9351_v5, %v9351_v5  ;;  %v9381_v8 = vld [vmem:[%s8670_s16 + $0x150] sm:$0xff]  ;;  %v1804_v34 = vunpack.c.l.s8.bf16 %v956_v31 }
 0x3cd   : > { %6886 = vmatprep.subr.bf16.mxu1 %v1797_v9  ;;  %4236 = vmatprep.mubr.bf16.mxu0 %v5921_v1  ;;  %v9384_v9 = vld [vmem:[%s8670_s16 + $0x158] sm:$0xff]  ;;  %v1820_v35 = vunpack.c.l.s8.bf16 %v964_v32  ;;  %v1813_v1 = vunpack.c.h.s8.bf16 %v960_v20 }
 0x3ce   : > { %4276 = vmatprep.mubr.bf16.mxu1 %v5923_v2  ;;  %v1829_v2 = vunpack.c.h.s8.bf16 %v968_v27  ;;  %v5927_v5 = vcombine.high %v9384_v9, %v9384_v9 }
 0x3cf   : > { %6865 = vmatpush3.bf16.msra.mxu0 %v1773_v36  ;;  %v961_v36 = vld [vmem:[%s8677_s11 + $0xaa8] sm:$0xff] }
 0x3d0   : > { %6887 = vmatpush3.bf16.msra.mxu1 %v1789_v37  ;;  %6866 = vmatprep.subr.bf16.mxu0 %v1782_v38  ;;  %v969_v37 = vld [vmem:[%s8677_s11 + $0xae8] sm:$0xff]  ;;  %v1805_v38 = vunpack.c.h.s8.bf16 %v956_v31  ;;  %v1814_v40 = vunpack.c.l.s8.bf16 %v961_v36  ;;  %v1815_v46 = vunpack.c.h.s8.bf16 %v961_v36 }
 0x3d1   : > { %6888 = vmatprep.subr.bf16.mxu1 %v1798_v39  ;;  %v1821_v39 = vunpack.c.h.s8.bf16 %v964_v32  ;;  %v1830_v41 = vunpack.c.l.s8.bf16 %v969_v37  ;;  %v1831_v47 = vunpack.c.h.s8.bf16 %v969_v37 }
 0x3d3   : > { %6867 = vmatpush3.bf16.msra.mxu0 %v1774_v42  ;;  %v957_v42 = vld [vmem:[%s8677_s11 + $0xa88] sm:$0xff] }
 0x3d4   : > { %6889 = vmatpush3.bf16.msra.mxu1 %v1790_v43  ;;  %6868 = vmatprep.subr.bf16.mxu0 %v1783_v44  ;;  %v965_v43 = vld [vmem:[%s8677_s11 + $0xac8] sm:$0xff]  ;;  %v1806_v44 = vunpack.c.l.s8.bf16 %v957_v42 }
 0x3d5   : > { %6890 = vmatprep.subr.bf16.mxu1 %v1799_v45  ;;  %v1822_v45 = vunpack.c.l.s8.bf16 %v965_v43 }
 0x3d7   : > { %6869 = vmatpush3.bf16.msra.mxu0 %v1775_v48  ;;  %v962_v48 = vld [vmem:[%s8677_s11 + $0xab0] sm:$0xff] }
 0x3d8   : > { %6891 = vmatpush3.bf16.msra.mxu1 %v1791_v49  ;;  %6870 = vmatprep.subr.bf16.mxu0 %v1784_v50  ;;  %v970_v49 = vld [vmem:[%s8677_s11 + $0xaf0] sm:$0xff]  ;;  %v1807_v50 = vunpack.c.h.s8.bf16 %v957_v42  ;;  %v1816_v52 = vunpack.c.l.s8.bf16 %v962_v48  ;;  %v1817_v59 = vunpack.c.h.s8.bf16 %v962_v48 }
 0x3d9   : > { %6892 = vmatprep.subr.bf16.mxu1 %v1800_v51  ;;  %v1823_v51 = vunpack.c.h.s8.bf16 %v965_v43  ;;  %v1832_v53 = vunpack.c.l.s8.bf16 %v970_v49  ;;  %v1833_v61 = vunpack.c.h.s8.bf16 %v970_v49 }
 0x3db   : > { %6871 = vmatpush3.bf16.msra.mxu0 %v1776_v54  ;;  %v958_v54 = vld [vmem:[%s8677_s11 + $0xa90] sm:$0xff] }
 0x3dc   : > { %6893 = vmatpush3.bf16.msra.mxu1 %v1792_v56  ;;  %6872 = vmatprep.subr.bf16.mxu0 %v1785_v57  ;;  %v966_v56 = vld [vmem:[%s8677_s11 + $0xad0] sm:$0xff]  ;;  %v1808_v57 = vunpack.c.l.s8.bf16 %v958_v54 }
 0x3dd   : > { %6894 = vmatprep.subr.bf16.mxu1 %v1801_v58  ;;  %v6570_v11 = vpop.f32.mrb[52].mxu0  ;;  %v1824_v58 = vunpack.c.l.s8.bf16 %v966_v56 }
 0x3de   : > { %v6592_v63 = vpop.f32.mrb[52].mxu1  ;;  %v6571_v13 = vpop.f32.mrb[53].mxu0 }
 0x3df   : > { %v6593_v6 = vpop.f32.mrb[53].mxu1  ;;  %v6572_v15 = vadd.f32 %v6571_v13, %v6570_v11  ;;  %v6573_v17 = vpop.f32.mrb[54].mxu0  ;;  %6873 = vmatpush3.bf16.msra.mxu0 %v1777_v62  ;;  %v963_v62 = vld [vmem:[%s8677_s11 + $0xab8] sm:$0xff] }
 0x3e0   : > { %v6594_v10 = vadd.f32 %v6593_v6, %v6592_v63  ;;  %v6595_v12 = vpop.f32.mrb[54].mxu1  ;;  %6895 = vmatpush3.bf16.msra.mxu1 %v1793_v0  ;;  %v6574_v21 = vpop.f32.mrb[55].mxu0  ;;  %6874 = vmatprep.subr.bf16.mxu0 %v1786_v3  ;;  %v971_v0 = vld [vmem:[%s8677_s11 + $0xaf8] sm:$0xff]  ;;  %v1809_v3 = vunpack.c.h.s8.bf16 %v958_v54  ;;  %v1818_v7 = vunpack.c.l.s8.bf16 %v963_v62 }
 0x3e1   : > { %v6596_v16 = vpop.f32.mrb[55].mxu1  ;;  %6896 = vmatprep.subr.bf16.mxu1 %v1802_v55  ;;  %v3679_v25 = vadd.f32 %v6572_v15, %v9339_v26  ;;  %v5920_v26 = vcombine.low %v9348_v4, %v9348_v4  ;;  %v5925_v4 = vcombine.high %v9381_v8, %v9381_v8  ;;  %v1825_v55 = vunpack.c.h.s8.bf16 %v966_v56  ;;  %v959_v11 = vld [vmem:[%s8677_s11 + $0xa98] sm:$0xff] }
 0x3e2   : > { %v1834_v60 = vunpack.c.l.s8.bf16 %v971_v0  ;;  %v967_v63 = vld [vmem:[%s8677_s11 + $0xad8] sm:$0xff]  ;;  %v1810_v21 = vunpack.c.l.s8.bf16 %v959_v11  ;;  %v1835_v20 = vunpack.c.h.s8.bf16 %v971_v0 }
 0x3e3   : > { %v9372_v28 = vadd.f32 %v6594_v10, %v3679_v25  ;;  %6875 = vmatpush3.bf16.msra.mxu0 %v1778_v19  ;;  %v1826_v16 = vunpack.c.l.s8.bf16 %v967_v63  ;;  %v1819_v25 = vunpack.c.h.s8.bf16 %v963_v62  ;;  %v1827_v31 = vunpack.c.h.s8.bf16 %v967_v63 }
 0x3e4   : > { %6897 = vmatpush3.bf16.msra.mxu1 %v1794_v14  ;;  %6876 = vmatprep.subr.bf16.mxu0 %v1787_v23 }
 0x3e5   : > { %6898 = vmatprep.subr.bf16.mxu1 %v1803_v18 }
 0x3e7   : > { %6877 = vmatpush3.bf16.msra.mxu0 %v1779_v22  ;;  %v976_v22 = vld [vmem:[%s8677_s11 + $0xb20] sm:$0xff] }
 0x3e8   : > { %6899 = vmatpush3.bf16.msra.mxu1 %v1795_v29  ;;  %6906 = vmatprep.subr.bf16.mxu0 %v1812_v30  ;;  %v984_v29 = vld [vmem:[%s8677_s11 + $0xb60] sm:$0xff]  ;;  %v1844_v32 = vunpack.c.l.s8.bf16 %v976_v22 }
 0x3e9   : > { %6928 = vmatprep.subr.bf16.mxu1 %v1828_v24  ;;  %v1811_v24 = vunpack.c.h.s8.bf16 %v959_v11 }
 0x3ea   : > { %4237 = vmatmul.mubr.bf16.vlgmr.msra.gmra.mrb[80].mxu0 %v5920_v26  ;;  %v1860_v26 = vunpack.c.l.s8.bf16 %v984_v29 }
 0x3eb   : > { %4277 = vmatmul.mubr.bf16.vlgmr.msra.gmra.mrb[80].mxu1 %v5922_v33  ;;  %6907 = vmatpush3.bf16.msra.mxu0 %v1804_v34  ;;  %v972_v33 = vld [vmem:[%s8677_s11 + $0xb00] sm:$0xff] }
 0x3ec   : > { %6929 = vmatpush3.bf16.msra.mxu1 %v1820_v35  ;;  %6908 = vmatprep.subr.bf16.mxu0 %v1813_v1  ;;  %v980_v34 = vld [vmem:[%s8677_s11 + $0xb40] sm:$0xff]  ;;  %v5926_v35 = vcombine.low %v9384_v9, %v9384_v9  ;;  %v1836_v36 = vunpack.c.l.s8.bf16 %v972_v33 }
 0x3ed   : > { %6930 = vmatprep.subr.bf16.mxu1 %v1829_v2  ;;  %4316 = vmatprep.mubr.bf16.mxu0 %v5925_v4  ;;  %v9414_v1 = vld [vmem:[%s8670_s16 + $0x160] sm:$0xff]  ;;  %v9417_v2 = vld [vmem:[%s8670_s16 + $0x168] sm:$0xff]  ;;  %v1852_v37 = vunpack.c.l.s8.bf16 %v980_v34  ;;  %v1845_v4 = vunpack.c.h.s8.bf16 %v976_v22 }
 0x3ee   : > { %4356 = vmatprep.mubr.bf16.mxu1 %v5927_v5  ;;  %v1861_v5 = vunpack.c.h.s8.bf16 %v984_v29  ;;  %v5931_v9 = vcombine.high %v9417_v2, %v9417_v2 }
 0x3ef   : > { %6909 = vmatpush3.bf16.msra.mxu0 %v1805_v38  ;;  %v977_v38 = vld [vmem:[%s8677_s11 + $0xb28] sm:$0xff] }
 0x3f0   : > { %6931 = vmatpush3.bf16.msra.mxu1 %v1821_v39  ;;  %6910 = vmatprep.subr.bf16.mxu0 %v1814_v40  ;;  %v985_v39 = vld [vmem:[%s8677_s11 + $0xb68] sm:$0xff]  ;;  %v1837_v40 = vunpack.c.h.s8.bf16 %v972_v33  ;;  %v1846_v42 = vunpack.c.l.s8.bf16 %v977_v38  ;;  %v1847_v48 = vunpack.c.h.s8.bf16 %v977_v38 }
 0x3f1   : > { %6932 = vmatprep.subr.bf16.mxu1 %v1830_v41  ;;  %v1853_v41 = vunpack.c.h.s8.bf16 %v980_v34  ;;  %v1862_v43 = vunpack.c.l.s8.bf16 %v985_v39  ;;  %v1863_v49 = vunpack.c.h.s8.bf16 %v985_v39 }
 0x3f3   : > { %6911 = vmatpush3.bf16.msra.mxu0 %v1806_v44  ;;  %v973_v44 = vld [vmem:[%s8677_s11 + $0xb08] sm:$0xff] }
 0x3f4   : > { %6933 = vmatpush3.bf16.msra.mxu1 %v1822_v45  ;;  %6912 = vmatprep.subr.bf16.mxu0 %v1815_v46  ;;  %v981_v45 = vld [vmem:[%s8677_s11 + $0xb48] sm:$0xff]  ;;  %v1838_v46 = vunpack.c.l.s8.bf16 %v973_v44 }
 0x3f5   : > { %6934 = vmatprep.subr.bf16.mxu1 %v1831_v47  ;;  %v1854_v47 = vunpack.c.l.s8.bf16 %v981_v45 }
 0x3f7   : > { %6913 = vmatpush3.bf16.msra.mxu0 %v1807_v50  ;;  %v978_v50 = vld [vmem:[%s8677_s11 + $0xb30] sm:$0xff] }
 0x3f8   : > { %6935 = vmatpush3.bf16.msra.mxu1 %v1823_v51  ;;  %6914 = vmatprep.subr.bf16.mxu0 %v1816_v52  ;;  %v986_v51 = vld [vmem:[%s8677_s11 + $0xb70] sm:$0xff]  ;;  %v1839_v52 = vunpack.c.h.s8.bf16 %v973_v44  ;;  %v1848_v54 = vunpack.c.l.s8.bf16 %v978_v50  ;;  %v1849_v62 = vunpack.c.h.s8.bf16 %v978_v50 }
 0x3f9   : > { %6936 = vmatprep.subr.bf16.mxu1 %v1832_v53  ;;  %v1855_v53 = vunpack.c.h.s8.bf16 %v981_v45  ;;  %v1864_v56 = vunpack.c.l.s8.bf16 %v986_v51  ;;  %v1865_v0 = vunpack.c.h.s8.bf16 %v986_v51 }
 0x3fb   : > { %6915 = vmatpush3.bf16.msra.mxu0 %v1808_v57  ;;  %v974_v57 = vld [vmem:[%s8677_s11 + $0xb10] sm:$0xff] }
 0x3fc   : > { %6937 = vmatpush3.bf16.msra.mxu1 %v1824_v58  ;;  %6916 = vmatprep.subr.bf16.mxu0 %v1817_v59  ;;  %v982_v58 = vld [vmem:[%s8677_s11 + $0xb50] sm:$0xff]  ;;  %v1840_v59 = vunpack.c.l.s8.bf16 %v974_v57 }
 0x3fd   : > { %6938 = vmatprep.subr.bf16.mxu1 %v1833_v61  ;;  %v6614_v13 = vpop.f32.mrb[56].mxu0  ;;  %v1856_v61 = vunpack.c.l.s8.bf16 %v982_v58 }
 0x3fe   : > { %v6636_v6 = vpop.f32.mrb[56].mxu1  ;;  %v6615_v15 = vpop.f32.mrb[57].mxu0 }
 0x3ff   : > { %v6637_v10 = vpop.f32.mrb[57].mxu1  ;;  %v6616_v17 = vadd.f32 %v6615_v15, %v6614_v13  ;;  %v6617_v19 = vpop.f32.mrb[58].mxu0  ;;  %6917 = vmatpush3.bf16.msra.mxu0 %v1809_v3  ;;  %v979_v3 = vld [vmem:[%s8677_s11 + $0xb38] sm:$0xff] }
 0x400   : > { %v6638_v12 = vadd.f32 %v6637_v10, %v6636_v6  ;;  %v6639_v14 = vpop.f32.mrb[58].mxu1  ;;  %6939 = vmatpush3.bf16.msra.mxu1 %v1825_v55  ;;  %v6618_v23 = vpop.f32.mrb[59].mxu0  ;;  %6918 = vmatprep.subr.bf16.mxu0 %v1818_v7  ;;  %v987_v55 = vld [vmem:[%s8677_s11 + $0xb78] sm:$0xff]  ;;  %v1841_v7 = vunpack.c.h.s8.bf16 %v974_v57  ;;  %v1850_v11 = vunpack.c.l.s8.bf16 %v979_v3 }
 0x401   : > { %v6640_v18 = vpop.f32.mrb[59].mxu1  ;;  %6940 = vmatprep.subr.bf16.mxu1 %v1834_v60  ;;  %v3759_v27 = vadd.f32 %v6616_v17, %v9372_v28  ;;  %v5924_v28 = vcombine.low %v9381_v8, %v9381_v8  ;;  %v5929_v8 = vcombine.high %v9414_v1, %v9414_v1  ;;  %v1857_v60 = vunpack.c.h.s8.bf16 %v982_v58  ;;  %v975_v13 = vld [vmem:[%s8677_s11 + $0xb18] sm:$0xff] }
 0x402   : > { %v1866_v63 = vunpack.c.l.s8.bf16 %v987_v55  ;;  %v983_v6 = vld [vmem:[%s8677_s11 + $0xb58] sm:$0xff]  ;;  %v1842_v23 = vunpack.c.l.s8.bf16 %v975_v13  ;;  %v1867_v22 = vunpack.c.h.s8.bf16 %v987_v55 }
 0x403   : > { %v9405_v30 = vadd.f32 %v6638_v12, %v3759_v27  ;;  %6919 = vmatpush3.bf16.msra.mxu0 %v1810_v21  ;;  %v1858_v18 = vunpack.c.l.s8.bf16 %v983_v6  ;;  %v1851_v27 = vunpack.c.h.s8.bf16 %v979_v3  ;;  %v1859_v33 = vunpack.c.h.s8.bf16 %v983_v6 }
 0x404   : > { %6941 = vmatpush3.bf16.msra.mxu1 %v1826_v16  ;;  %6920 = vmatprep.subr.bf16.mxu0 %v1819_v25 }
 0x405   : > { %6942 = vmatprep.subr.bf16.mxu1 %v1835_v20 }
 0x407   : > { %6921 = vmatpush3.bf16.msra.mxu0 %v1811_v24  ;;  %v992_v24 = vld [vmem:[%s8677_s11 + $0xba0] sm:$0xff] }
 0x408   : > { %6943 = vmatpush3.bf16.msra.mxu1 %v1827_v31  ;;  %6950 = vmatprep.subr.bf16.mxu0 %v1844_v32  ;;  %v1000_v31 = vld [vmem:[%s8677_s11 + $0xbe0] sm:$0xff]  ;;  %v1876_v34 = vunpack.c.l.s8.bf16 %v992_v24 }
 0x409   : > { %6972 = vmatprep.subr.bf16.mxu1 %v1860_v26  ;;  %v1843_v26 = vunpack.c.h.s8.bf16 %v975_v13 }
 0x40a   : > { %4317 = vmatmul.mubr.bf16.vlgmr.msra.gmra.mrb[84].mxu0 %v5924_v28  ;;  %v1892_v28 = vunpack.c.l.s8.bf16 %v1000_v31 }
 0x40b   : > { %4357 = vmatmul.mubr.bf16.vlgmr.msra.gmra.mrb[84].mxu1 %v5926_v35  ;;  %6951 = vmatpush3.bf16.msra.mxu0 %v1836_v36  ;;  %v988_v35 = vld [vmem:[%s8677_s11 + $0xb80] sm:$0xff] }
 0x40c   : > { %6973 = vmatpush3.bf16.msra.mxu1 %v1852_v37  ;;  %6952 = vmatprep.subr.bf16.mxu0 %v1845_v4  ;;  %v996_v36 = vld [vmem:[%s8677_s11 + $0xbc0] sm:$0xff]  ;;  %v5930_v37 = vcombine.low %v9417_v2, %v9417_v2  ;;  %v9447_v4 = vld [vmem:[%s8670_s16 + $0x170] sm:$0xff]  ;;  %v1868_v38 = vunpack.c.l.s8.bf16 %v988_v35 }
 0x40d   : > { %6974 = vmatprep.subr.bf16.mxu1 %v1861_v5  ;;  %4396 = vmatprep.mubr.bf16.mxu0 %v5929_v8  ;;  %v9450_v5 = vld [vmem:[%s8670_s16 + $0x178] sm:$0xff]  ;;  %v1884_v39 = vunpack.c.l.s8.bf16 %v996_v36  ;;  %v1877_v8 = vunpack.c.h.s8.bf16 %v992_v24 }
 0x40e   : > { %4436 = vmatprep.mubr.bf16.mxu1 %v5931_v9  ;;  %v1893_v9 = vunpack.c.h.s8.bf16 %v1000_v31  ;;  %v5935_v2 = vcombine.high %v9450_v5, %v9450_v5 }
 0x40f   : > { %6953 = vmatpush3.bf16.msra.mxu0 %v1837_v40  ;;  %v993_v40 = vld [vmem:[%s8677_s11 + $0xba8] sm:$0xff] }
 0x410   : > { %6975 = vmatpush3.bf16.msra.mxu1 %v1853_v41  ;;  %6954 = vmatprep.subr.bf16.mxu0 %v1846_v42  ;;  %v1001_v41 = vld [vmem:[%s8677_s11 + $0xbe8] sm:$0xff]  ;;  %v1869_v42 = vunpack.c.h.s8.bf16 %v988_v35  ;;  %v1878_v44 = vunpack.c.l.s8.bf16 %v993_v40  ;;  %v1879_v50 = vunpack.c.h.s8.bf16 %v993_v40 }
 0x411   : > { %6976 = vmatprep.subr.bf16.mxu1 %v1862_v43  ;;  %v1885_v43 = vunpack.c.h.s8.bf16 %v996_v36  ;;  %v1894_v45 = vunpack.c.l.s8.bf16 %v1001_v41  ;;  %v1895_v51 = vunpack.c.h.s8.bf16 %v1001_v41 }
 0x413   : > { %6955 = vmatpush3.bf16.msra.mxu0 %v1838_v46  ;;  %v989_v46 = vld [vmem:[%s8677_s11 + $0xb88] sm:$0xff] }
 0x414   : > { %6977 = vmatpush3.bf16.msra.mxu1 %v1854_v47  ;;  %6956 = vmatprep.subr.bf16.mxu0 %v1847_v48  ;;  %v997_v47 = vld [vmem:[%s8677_s11 + $0xbc8] sm:$0xff]  ;;  %v1870_v48 = vunpack.c.l.s8.bf16 %v989_v46 }
 0x415   : > { %6978 = vmatprep.subr.bf16.mxu1 %v1863_v49  ;;  %v1886_v49 = vunpack.c.l.s8.bf16 %v997_v47 }
 0x417   : > { %6957 = vmatpush3.bf16.msra.mxu0 %v1839_v52  ;;  %v994_v52 = vld [vmem:[%s8677_s11 + $0xbb0] sm:$0xff] }
 0x418   : > { %6979 = vmatpush3.bf16.msra.mxu1 %v1855_v53  ;;  %6958 = vmatprep.subr.bf16.mxu0 %v1848_v54  ;;  %v1002_v53 = vld [vmem:[%s8677_s11 + $0xbf0] sm:$0xff]  ;;  %v1871_v54 = vunpack.c.h.s8.bf16 %v989_v46  ;;  %v1880_v57 = vunpack.c.l.s8.bf16 %v994_v52  ;;  %v1881_v3 = vunpack.c.h.s8.bf16 %v994_v52 }
 0x419   : > { %6980 = vmatprep.subr.bf16.mxu1 %v1864_v56  ;;  %v1887_v56 = vunpack.c.h.s8.bf16 %v997_v47  ;;  %v1896_v58 = vunpack.c.l.s8.bf16 %v1002_v53  ;;  %v1897_v55 = vunpack.c.h.s8.bf16 %v1002_v53 }
 0x41b   : > { %6959 = vmatpush3.bf16.msra.mxu0 %v1840_v59  ;;  %v990_v59 = vld [vmem:[%s8677_s11 + $0xb90] sm:$0xff] }
 0x41c   : > { %6981 = vmatpush3.bf16.msra.mxu1 %v1856_v61  ;;  %6960 = vmatprep.subr.bf16.mxu0 %v1849_v62  ;;  %v998_v61 = vld [vmem:[%s8677_s11 + $0xbd0] sm:$0xff]  ;;  %v1872_v62 = vunpack.c.l.s8.bf16 %v990_v59 }
 0x41d   : > { %6982 = vmatprep.subr.bf16.mxu1 %v1865_v0  ;;  %v6658_v15 = vpop.f32.mrb[60].mxu0  ;;  %v1888_v0 = vunpack.c.l.s8.bf16 %v998_v61 }
 0x41e   : > { %v6680_v10 = vpop.f32.mrb[60].mxu1  ;;  %v6659_v17 = vpop.f32.mrb[61].mxu0 }
 0x41f   : > { %v6681_v12 = vpop.f32.mrb[61].mxu1  ;;  %v6660_v19 = vadd.f32 %v6659_v17, %v6658_v15  ;;  %v6661_v21 = vpop.f32.mrb[62].mxu0  ;;  %6961 = vmatpush3.bf16.msra.mxu0 %v1841_v7  ;;  %v995_v7 = vld [vmem:[%s8677_s11 + $0xbb8] sm:$0xff] }
 0x420   : > { %v6682_v14 = vadd.f32 %v6681_v12, %v6680_v10  ;;  %v6683_v16 = vpop.f32.mrb[62].mxu1  ;;  %6983 = vmatpush3.bf16.msra.mxu1 %v1857_v60  ;;  %v6662_v25 = vpop.f32.mrb[63].mxu0  ;;  %6962 = vmatprep.subr.bf16.mxu0 %v1850_v11  ;;  %v1003_v60 = vld [vmem:[%s8677_s11 + $0xbf8] sm:$0xff]  ;;  %v1873_v11 = vunpack.c.h.s8.bf16 %v990_v59  ;;  %v1882_v13 = vunpack.c.l.s8.bf16 %v995_v7 }
 0x421   : > { %v6684_v20 = vpop.f32.mrb[63].mxu1  ;;  %6984 = vmatprep.subr.bf16.mxu1 %v1866_v63  ;;  %v3839_v29 = vadd.f32 %v6660_v19, %v9405_v30  ;;  %v5928_v30 = vcombine.low %v9414_v1, %v9414_v1  ;;  %v5933_v1 = vcombine.high %v9447_v4, %v9447_v4  ;;  %v1889_v63 = vunpack.c.h.s8.bf16 %v998_v61  ;;  %v991_v15 = vld [vmem:[%s8677_s11 + $0xb98] sm:$0xff] }
 0x422   : > { %v1898_v6 = vunpack.c.l.s8.bf16 %v1003_v60  ;;  %v999_v10 = vld [vmem:[%s8677_s11 + $0xbd8] sm:$0xff]  ;;  %v1874_v25 = vunpack.c.l.s8.bf16 %v991_v15  ;;  %v1899_v24 = vunpack.c.h.s8.bf16 %v1003_v60 }
 0x423   : > { %v9438_v32 = vadd.f32 %v6682_v14, %v3839_v29  ;;  %6963 = vmatpush3.bf16.msra.mxu0 %v1842_v23  ;;  %v1890_v20 = vunpack.c.l.s8.bf16 %v999_v10  ;;  %v1883_v29 = vunpack.c.h.s8.bf16 %v995_v7  ;;  %v1891_v35 = vunpack.c.h.s8.bf16 %v999_v10 }
 0x424   : > { %6985 = vmatpush3.bf16.msra.mxu1 %v1858_v18  ;;  %6964 = vmatprep.subr.bf16.mxu0 %v1851_v27 }
 0x425   : > { %6986 = vmatprep.subr.bf16.mxu1 %v1867_v22 }
 0x427   : > { %6965 = vmatpush3.bf16.msra.mxu0 %v1843_v26  ;;  %v1008_v26 = vld [vmem:[%s8677_s11 + $0xc20] sm:$0xff] }
 0x428   : > { %6987 = vmatpush3.bf16.msra.mxu1 %v1859_v33  ;;  %6994 = vmatprep.subr.bf16.mxu0 %v1876_v34  ;;  %v1016_v33 = vld [vmem:[%s8677_s11 + $0xc60] sm:$0xff]  ;;  %v1908_v36 = vunpack.c.l.s8.bf16 %v1008_v26 }
 0x429   : > { %7016 = vmatprep.subr.bf16.mxu1 %v1892_v28  ;;  %v1875_v28 = vunpack.c.h.s8.bf16 %v991_v15 }
 0x42a   : > { %4397 = vmatmul.mubr.bf16.vlgmr.msra.gmra.mrb[88].mxu0 %v5928_v30  ;;  %v1924_v30 = vunpack.c.l.s8.bf16 %v1016_v33 }
 0x42b   : > { %4437 = vmatmul.mubr.bf16.vlgmr.msra.gmra.mrb[88].mxu1 %v5930_v37  ;;  %6995 = vmatpush3.bf16.msra.mxu0 %v1868_v38  ;;  %v1004_v37 = vld [vmem:[%s8677_s11 + $0xc00] sm:$0xff] }
 0x42c   : > { %7017 = vmatpush3.bf16.msra.mxu1 %v1884_v39  ;;  %6996 = vmatprep.subr.bf16.mxu0 %v1877_v8  ;;  %v1012_v38 = vld [vmem:[%s8677_s11 + $0xc40] sm:$0xff]  ;;  %v5934_v39 = vcombine.low %v9450_v5, %v9450_v5  ;;  %v1900_v40 = vunpack.c.l.s8.bf16 %v1004_v37 }
 0x42d   : > { %7018 = vmatprep.subr.bf16.mxu1 %v1893_v9  ;;  %4476 = vmatprep.mubr.bf16.mxu0 %v5933_v1  ;;  %v9480_v8 = vld [vmem:[%s8670_s16 + $0x180] sm:$0xff]  ;;  %v9483_v9 = vld [vmem:[%s8670_s16 + $0x188] sm:$0xff]  ;;  %v1916_v41 = vunpack.c.l.s8.bf16 %v1012_v38  ;;  %v1909_v1 = vunpack.c.h.s8.bf16 %v1008_v26 }
 0x42e   : > { %4516 = vmatprep.mubr.bf16.mxu1 %v5935_v2  ;;  %v1925_v2 = vunpack.c.h.s8.bf16 %v1016_v33  ;;  %v5939_v5 = vcombine.high %v9483_v9, %v9483_v9 }
 0x42f   : > { %6997 = vmatpush3.bf16.msra.mxu0 %v1869_v42  ;;  %v1009_v42 = vld [vmem:[%s8677_s11 + $0xc28] sm:$0xff] }
 0x430   : > { %7019 = vmatpush3.bf16.msra.mxu1 %v1885_v43  ;;  %6998 = vmatprep.subr.bf16.mxu0 %v1878_v44  ;;  %v1017_v43 = vld [vmem:[%s8677_s11 + $0xc68] sm:$0xff]  ;;  %v1901_v44 = vunpack.c.h.s8.bf16 %v1004_v37  ;;  %v1910_v46 = vunpack.c.l.s8.bf16 %v1009_v42  ;;  %v1911_v52 = vunpack.c.h.s8.bf16 %v1009_v42 }
 0x431   : > { %7020 = vmatprep.subr.bf16.mxu1 %v1894_v45  ;;  %v1917_v45 = vunpack.c.h.s8.bf16 %v1012_v38  ;;  %v1926_v47 = vunpack.c.l.s8.bf16 %v1017_v43  ;;  %v1927_v53 = vunpack.c.h.s8.bf16 %v1017_v43 }
 0x433   : > { %6999 = vmatpush3.bf16.msra.mxu0 %v1870_v48  ;;  %v1005_v48 = vld [vmem:[%s8677_s11 + $0xc08] sm:$0xff] }
 0x434   : > { %7021 = vmatpush3.bf16.msra.mxu1 %v1886_v49  ;;  %7000 = vmatprep.subr.bf16.mxu0 %v1879_v50  ;;  %v1013_v49 = vld [vmem:[%s8677_s11 + $0xc48] sm:$0xff]  ;;  %v1902_v50 = vunpack.c.l.s8.bf16 %v1005_v48 }
 0x435   : > { %7022 = vmatprep.subr.bf16.mxu1 %v1895_v51  ;;  %v1918_v51 = vunpack.c.l.s8.bf16 %v1013_v49 }
 0x437   : > { %7001 = vmatpush3.bf16.msra.mxu0 %v1871_v54  ;;  %v1010_v54 = vld [vmem:[%s8677_s11 + $0xc30] sm:$0xff] }
 0x438   : > { %7023 = vmatpush3.bf16.msra.mxu1 %v1887_v56  ;;  %7002 = vmatprep.subr.bf16.mxu0 %v1880_v57  ;;  %v1018_v56 = vld [vmem:[%s8677_s11 + $0xc70] sm:$0xff]  ;;  %v1903_v57 = vunpack.c.h.s8.bf16 %v1005_v48  ;;  %v1912_v59 = vunpack.c.l.s8.bf16 %v1010_v54  ;;  %v1913_v7 = vunpack.c.h.s8.bf16 %v1010_v54 }
 0x439   : > { %7024 = vmatprep.subr.bf16.mxu1 %v1896_v58  ;;  %v1919_v58 = vunpack.c.h.s8.bf16 %v1013_v49  ;;  %v1928_v61 = vunpack.c.l.s8.bf16 %v1018_v56  ;;  %v1929_v60 = vunpack.c.h.s8.bf16 %v1018_v56 }
 0x43b   : > { %7003 = vmatpush3.bf16.msra.mxu0 %v1872_v62  ;;  %v1006_v62 = vld [vmem:[%s8677_s11 + $0xc10] sm:$0xff] }
 0x43c   : > { %7025 = vmatpush3.bf16.msra.mxu1 %v1888_v0  ;;  %7004 = vmatprep.subr.bf16.mxu0 %v1881_v3  ;;  %v1014_v0 = vld [vmem:[%s8677_s11 + $0xc50] sm:$0xff]  ;;  %v1904_v3 = vunpack.c.l.s8.bf16 %v1006_v62 }
 0x43d   : > { %7026 = vmatprep.subr.bf16.mxu1 %v1897_v55  ;;  %v6702_v17 = vpop.f32.mrb[64].mxu0  ;;  %v1920_v55 = vunpack.c.l.s8.bf16 %v1014_v0 }
 0x43e   : > { %v6724_v12 = vpop.f32.mrb[64].mxu1  ;;  %v6703_v19 = vpop.f32.mrb[65].mxu0 }
 0x43f   : > { %v6725_v14 = vpop.f32.mrb[65].mxu1  ;;  %v6704_v21 = vadd.f32 %v6703_v19, %v6702_v17  ;;  %v6705_v23 = vpop.f32.mrb[66].mxu0  ;;  %7005 = vmatpush3.bf16.msra.mxu0 %v1873_v11  ;;  %v1011_v11 = vld [vmem:[%s8677_s11 + $0xc38] sm:$0xff] }
 0x440   : > { %v6726_v16 = vadd.f32 %v6725_v14, %v6724_v12  ;;  %v6727_v18 = vpop.f32.mrb[66].mxu1  ;;  %7027 = vmatpush3.bf16.msra.mxu1 %v1889_v63  ;;  %v6706_v27 = vpop.f32.mrb[67].mxu0  ;;  %7006 = vmatprep.subr.bf16.mxu0 %v1882_v13  ;;  %v1019_v63 = vld [vmem:[%s8677_s11 + $0xc78] sm:$0xff]  ;;  %v1905_v13 = vunpack.c.h.s8.bf16 %v1006_v62  ;;  %v1914_v15 = vunpack.c.l.s8.bf16 %v1011_v11 }
 0x441   : > { %v6728_v22 = vpop.f32.mrb[67].mxu1  ;;  %7028 = vmatprep.subr.bf16.mxu1 %v1898_v6  ;;  %v3919_v31 = vadd.f32 %v6704_v21, %v9438_v32  ;;  %v5932_v32 = vcombine.low %v9447_v4, %v9447_v4  ;;  %v5937_v4 = vcombine.high %v9480_v8, %v9480_v8  ;;  %v1921_v6 = vunpack.c.h.s8.bf16 %v1014_v0  ;;  %v1007_v17 = vld [vmem:[%s8677_s11 + $0xc18] sm:$0xff] }
 0x442   : > { %v1930_v10 = vunpack.c.l.s8.bf16 %v1019_v63  ;;  %v1015_v12 = vld [vmem:[%s8677_s11 + $0xc58] sm:$0xff]  ;;  %v1906_v27 = vunpack.c.l.s8.bf16 %v1007_v17  ;;  %v1931_v26 = vunpack.c.h.s8.bf16 %v1019_v63 }
 0x443   : > { %v9471_v34 = vadd.f32 %v6726_v16, %v3919_v31  ;;  %7007 = vmatpush3.bf16.msra.mxu0 %v1874_v25  ;;  %v1922_v22 = vunpack.c.l.s8.bf16 %v1015_v12  ;;  %v1915_v31 = vunpack.c.h.s8.bf16 %v1011_v11  ;;  %v1923_v37 = vunpack.c.h.s8.bf16 %v1015_v12 }
 0x444   : > { %7029 = vmatpush3.bf16.msra.mxu1 %v1890_v20  ;;  %7008 = vmatprep.subr.bf16.mxu0 %v1883_v29 }
 0x445   : > { %7030 = vmatprep.subr.bf16.mxu1 %v1899_v24 }
 0x447   : > { %7009 = vmatpush3.bf16.msra.mxu0 %v1875_v28  ;;  %v1024_v28 = vld [vmem:[%s8677_s11 + $0xca0] sm:$0xff] }
 0x448   : > { %7031 = vmatpush3.bf16.msra.mxu1 %v1891_v35  ;;  %7038 = vmatprep.subr.bf16.mxu0 %v1908_v36  ;;  %v1032_v35 = vld [vmem:[%s8677_s11 + $0xce0] sm:$0xff]  ;;  %v1940_v38 = vunpack.c.l.s8.bf16 %v1024_v28 }
 0x449   : > { %7060 = vmatprep.subr.bf16.mxu1 %v1924_v30  ;;  %v1907_v30 = vunpack.c.h.s8.bf16 %v1007_v17 }
 0x44a   : > { %4477 = vmatmul.mubr.bf16.vlgmr.msra.gmra.mrb[92].mxu0 %v5932_v32  ;;  %v1956_v32 = vunpack.c.l.s8.bf16 %v1032_v35 }
 0x44b   : > { %4517 = vmatmul.mubr.bf16.vlgmr.msra.gmra.mrb[92].mxu1 %v5934_v39  ;;  %7039 = vmatpush3.bf16.msra.mxu0 %v1900_v40  ;;  %v1020_v39 = vld [vmem:[%s8677_s11 + $0xc80] sm:$0xff] }
 0x44c   : > { %7061 = vmatpush3.bf16.msra.mxu1 %v1916_v41  ;;  %7040 = vmatprep.subr.bf16.mxu0 %v1909_v1  ;;  %v1028_v40 = vld [vmem:[%s8677_s11 + $0xcc0] sm:$0xff]  ;;  %v5938_v41 = vcombine.low %v9483_v9, %v9483_v9  ;;  %v9513_v1 = vld [vmem:[%s8670_s16 + $0x190] sm:$0xff]  ;;  %v1932_v42 = vunpack.c.l.s8.bf16 %v1020_v39 }
 0x44d   : > { %7062 = vmatprep.subr.bf16.mxu1 %v1925_v2  ;;  %4556 = vmatprep.mubr.bf16.mxu0 %v5937_v4  ;;  %v9516_v2 = vld [vmem:[%s8670_s16 + $0x198] sm:$0xff]  ;;  %v1948_v43 = vunpack.c.l.s8.bf16 %v1028_v40  ;;  %v1941_v4 = vunpack.c.h.s8.bf16 %v1024_v28 }
 0x44e   : > { %4596 = vmatprep.mubr.bf16.mxu1 %v5939_v5  ;;  %v1957_v5 = vunpack.c.h.s8.bf16 %v1032_v35  ;;  %v5943_v9 = vcombine.high %v9516_v2, %v9516_v2 }
 0x44f   : > { %7041 = vmatpush3.bf16.msra.mxu0 %v1901_v44  ;;  %v1025_v44 = vld [vmem:[%s8677_s11 + $0xca8] sm:$0xff] }
 0x450   : > { %7063 = vmatpush3.bf16.msra.mxu1 %v1917_v45  ;;  %7042 = vmatprep.subr.bf16.mxu0 %v1910_v46  ;;  %v1033_v45 = vld [vmem:[%s8677_s11 + $0xce8] sm:$0xff]  ;;  %v1933_v46 = vunpack.c.h.s8.bf16 %v1020_v39  ;;  %v1942_v48 = vunpack.c.l.s8.bf16 %v1025_v44  ;;  %v1943_v54 = vunpack.c.h.s8.bf16 %v1025_v44 }
 0x451   : > { %7064 = vmatprep.subr.bf16.mxu1 %v1926_v47  ;;  %v1949_v47 = vunpack.c.h.s8.bf16 %v1028_v40  ;;  %v1958_v49 = vunpack.c.l.s8.bf16 %v1033_v45  ;;  %v1959_v56 = vunpack.c.h.s8.bf16 %v1033_v45 }
 0x453   : > { %7043 = vmatpush3.bf16.msra.mxu0 %v1902_v50  ;;  %v1021_v50 = vld [vmem:[%s8677_s11 + $0xc88] sm:$0xff] }
 0x454   : > { %7065 = vmatpush3.bf16.msra.mxu1 %v1918_v51  ;;  %7044 = vmatprep.subr.bf16.mxu0 %v1911_v52  ;;  %v1029_v51 = vld [vmem:[%s8677_s11 + $0xcc8] sm:$0xff]  ;;  %v1934_v52 = vunpack.c.l.s8.bf16 %v1021_v50 }
 0x455   : > { %7066 = vmatprep.subr.bf16.mxu1 %v1927_v53  ;;  %v1950_v53 = vunpack.c.l.s8.bf16 %v1029_v51 }
 0x457   : > { %7045 = vmatpush3.bf16.msra.mxu0 %v1903_v57  ;;  %v1026_v57 = vld [vmem:[%s8677_s11 + $0xcb0] sm:$0xff] }
 0x458   : > { %7067 = vmatpush3.bf16.msra.mxu1 %v1919_v58  ;;  %7046 = vmatprep.subr.bf16.mxu0 %v1912_v59  ;;  %v1034_v58 = vld [vmem:[%s8677_s11 + $0xcf0] sm:$0xff]  ;;  %v1935_v59 = vunpack.c.h.s8.bf16 %v1021_v50  ;;  %v1944_v62 = vunpack.c.l.s8.bf16 %v1026_v57  ;;  %v1945_v11 = vunpack.c.h.s8.bf16 %v1026_v57 }
 0x459   : > { %7068 = vmatprep.subr.bf16.mxu1 %v1928_v61  ;;  %v1951_v61 = vunpack.c.h.s8.bf16 %v1029_v51  ;;  %v1960_v0 = vunpack.c.l.s8.bf16 %v1034_v58  ;;  %v1961_v63 = vunpack.c.h.s8.bf16 %v1034_v58 }
 0x45b   : > { %7047 = vmatpush3.bf16.msra.mxu0 %v1904_v3  ;;  %v1022_v3 = vld [vmem:[%s8677_s11 + $0xc90] sm:$0xff] }
 0x45c   : > { %7069 = vmatpush3.bf16.msra.mxu1 %v1920_v55  ;;  %7048 = vmatprep.subr.bf16.mxu0 %v1913_v7  ;;  %v1030_v55 = vld [vmem:[%s8677_s11 + $0xcd0] sm:$0xff]  ;;  %v1936_v7 = vunpack.c.l.s8.bf16 %v1022_v3 }
 0x45d   : > { %7070 = vmatprep.subr.bf16.mxu1 %v1929_v60  ;;  %v6746_v19 = vpop.f32.mrb[68].mxu0  ;;  %v1952_v60 = vunpack.c.l.s8.bf16 %v1030_v55 }
 0x45e   : > { %v6768_v14 = vpop.f32.mrb[68].mxu1  ;;  %v6747_v21 = vpop.f32.mrb[69].mxu0 }
 0x45f   : > { %v6769_v16 = vpop.f32.mrb[69].mxu1  ;;  %v6748_v23 = vadd.f32 %v6747_v21, %v6746_v19  ;;  %v6749_v25 = vpop.f32.mrb[70].mxu0  ;;  %7049 = vmatpush3.bf16.msra.mxu0 %v1905_v13  ;;  %v1027_v13 = vld [vmem:[%s8677_s11 + $0xcb8] sm:$0xff] }
 0x460   : > { %v6770_v18 = vadd.f32 %v6769_v16, %v6768_v14  ;;  %v6771_v20 = vpop.f32.mrb[70].mxu1  ;;  %7071 = vmatpush3.bf16.msra.mxu1 %v1921_v6  ;;  %v6750_v29 = vpop.f32.mrb[71].mxu0  ;;  %7050 = vmatprep.subr.bf16.mxu0 %v1914_v15  ;;  %v1035_v6 = vld [vmem:[%s8677_s11 + $0xcf8] sm:$0xff]  ;;  %v1937_v15 = vunpack.c.h.s8.bf16 %v1022_v3  ;;  %v1946_v17 = vunpack.c.l.s8.bf16 %v1027_v13 }
 0x461   : > { %v6772_v24 = vpop.f32.mrb[71].mxu1  ;;  %7072 = vmatprep.subr.bf16.mxu1 %v1930_v10  ;;  %v3999_v33 = vadd.f32 %v6748_v23, %v9471_v34  ;;  %v5936_v34 = vcombine.low %v9480_v8, %v9480_v8  ;;  %v5941_v8 = vcombine.high %v9513_v1, %v9513_v1  ;;  %v1953_v10 = vunpack.c.h.s8.bf16 %v1030_v55  ;;  %v1023_v19 = vld [vmem:[%s8677_s11 + $0xc98] sm:$0xff] }
 0x462   : > { %v1962_v12 = vunpack.c.l.s8.bf16 %v1035_v6  ;;  %v1031_v14 = vld [vmem:[%s8677_s11 + $0xcd8] sm:$0xff]  ;;  %v1938_v29 = vunpack.c.l.s8.bf16 %v1023_v19  ;;  %v1963_v28 = vunpack.c.h.s8.bf16 %v1035_v6 }
 0x463   : > { %v9504_v36 = vadd.f32 %v6770_v18, %v3999_v33  ;;  %7051 = vmatpush3.bf16.msra.mxu0 %v1906_v27  ;;  %v1954_v24 = vunpack.c.l.s8.bf16 %v1031_v14  ;;  %v1947_v33 = vunpack.c.h.s8.bf16 %v1027_v13  ;;  %v1955_v39 = vunpack.c.h.s8.bf16 %v1031_v14 }
 0x464   : > { %7073 = vmatpush3.bf16.msra.mxu1 %v1922_v22  ;;  %7052 = vmatprep.subr.bf16.mxu0 %v1915_v31 }
 0x465   : > { %7074 = vmatprep.subr.bf16.mxu1 %v1931_v26 }
 0x467   : > { %7053 = vmatpush3.bf16.msra.mxu0 %v1907_v30  ;;  %v1040_v30 = vld [vmem:[%s8677_s11 + $0xd20] sm:$0xff] }
 0x468   : > { %7075 = vmatpush3.bf16.msra.mxu1 %v1923_v37  ;;  %7082 = vmatprep.subr.bf16.mxu0 %v1940_v38  ;;  %v1048_v37 = vld [vmem:[%s8677_s11 + $0xd60] sm:$0xff]  ;;  %v1972_v40 = vunpack.c.l.s8.bf16 %v1040_v30 }
 0x469   : > { %7104 = vmatprep.subr.bf16.mxu1 %v1956_v32  ;;  %v1939_v32 = vunpack.c.h.s8.bf16 %v1023_v19 }
 0x46a   : > { %4557 = vmatmul.mubr.bf16.vlgmr.msra.gmra.mrb[96].mxu0 %v5936_v34  ;;  %v1988_v34 = vunpack.c.l.s8.bf16 %v1048_v37 }
 0x46b   : > { %4597 = vmatmul.mubr.bf16.vlgmr.msra.gmra.mrb[96].mxu1 %v5938_v41  ;;  %7083 = vmatpush3.bf16.msra.mxu0 %v1932_v42  ;;  %v1036_v41 = vld [vmem:[%s8677_s11 + $0xd00] sm:$0xff] }
 0x46c   : > { %7105 = vmatpush3.bf16.msra.mxu1 %v1948_v43  ;;  %7084 = vmatprep.subr.bf16.mxu0 %v1941_v4  ;;  %v1044_v42 = vld [vmem:[%s8677_s11 + $0xd40] sm:$0xff]  ;;  %v5942_v43 = vcombine.low %v9516_v2, %v9516_v2  ;;  %v1964_v44 = vunpack.c.l.s8.bf16 %v1036_v41 }
 0x46d   : > { %7106 = vmatprep.subr.bf16.mxu1 %v1957_v5  ;;  %4636 = vmatprep.mubr.bf16.mxu0 %v5941_v8  ;;  %v9546_v4 = vld [vmem:[%s8670_s16 + $0x1a0] sm:$0xff]  ;;  %v9549_v5 = vld [vmem:[%s8670_s16 + $0x1a8] sm:$0xff]  ;;  %v1980_v45 = vunpack.c.l.s8.bf16 %v1044_v42  ;;  %v1973_v8 = vunpack.c.h.s8.bf16 %v1040_v30 }
 0x46e   : > { %4676 = vmatprep.mubr.bf16.mxu1 %v5943_v9  ;;  %v1989_v9 = vunpack.c.h.s8.bf16 %v1048_v37  ;;  %v5947_v2 = vcombine.high %v9549_v5, %v9549_v5 }
 0x46f   : > { %7085 = vmatpush3.bf16.msra.mxu0 %v1933_v46  ;;  %v1041_v46 = vld [vmem:[%s8677_s11 + $0xd28] sm:$0xff] }
 0x470   : > { %7107 = vmatpush3.bf16.msra.mxu1 %v1949_v47  ;;  %7086 = vmatprep.subr.bf16.mxu0 %v1942_v48  ;;  %v1049_v47 = vld [vmem:[%s8677_s11 + $0xd68] sm:$0xff]  ;;  %v1965_v48 = vunpack.c.h.s8.bf16 %v1036_v41  ;;  %v1974_v50 = vunpack.c.l.s8.bf16 %v1041_v46  ;;  %v1975_v57 = vunpack.c.h.s8.bf16 %v1041_v46 }
 0x471   : > { %7108 = vmatprep.subr.bf16.mxu1 %v1958_v49  ;;  %v1981_v49 = vunpack.c.h.s8.bf16 %v1044_v42  ;;  %v1990_v51 = vunpack.c.l.s8.bf16 %v1049_v47  ;;  %v1991_v58 = vunpack.c.h.s8.bf16 %v1049_v47 }
 0x473   : > { %7087 = vmatpush3.bf16.msra.mxu0 %v1934_v52  ;;  %v1037_v52 = vld [vmem:[%s8677_s11 + $0xd08] sm:$0xff] }
 0x474   : > { %7109 = vmatpush3.bf16.msra.mxu1 %v1950_v53  ;;  %7088 = vmatprep.subr.bf16.mxu0 %v1943_v54  ;;  %v1045_v53 = vld [vmem:[%s8677_s11 + $0xd48] sm:$0xff]  ;;  %v1966_v54 = vunpack.c.l.s8.bf16 %v1037_v52 }
 0x475   : > { %7110 = vmatprep.subr.bf16.mxu1 %v1959_v56  ;;  %v1982_v56 = vunpack.c.l.s8.bf16 %v1045_v53 }
 0x477   : > { %7089 = vmatpush3.bf16.msra.mxu0 %v1935_v59  ;;  %v1042_v59 = vld [vmem:[%s8677_s11 + $0xd30] sm:$0xff] }
 0x478   : > { %7111 = vmatpush3.bf16.msra.mxu1 %v1951_v61  ;;  %7090 = vmatprep.subr.bf16.mxu0 %v1944_v62  ;;  %v1050_v61 = vld [vmem:[%s8677_s11 + $0xd70] sm:$0xff]  ;;  %v1967_v62 = vunpack.c.h.s8.bf16 %v1037_v52  ;;  %v1976_v3 = vunpack.c.l.s8.bf16 %v1042_v59  ;;  %v1977_v13 = vunpack.c.h.s8.bf16 %v1042_v59 }
 0x479   : > { %7112 = vmatprep.subr.bf16.mxu1 %v1960_v0  ;;  %v1983_v0 = vunpack.c.h.s8.bf16 %v1045_v53  ;;  %v1992_v55 = vunpack.c.l.s8.bf16 %v1050_v61  ;;  %v1993_v6 = vunpack.c.h.s8.bf16 %v1050_v61 }
 0x47b   : > { %7091 = vmatpush3.bf16.msra.mxu0 %v1936_v7  ;;  %v1038_v7 = vld [vmem:[%s8677_s11 + $0xd10] sm:$0xff] }
 0x47c   : > { %7113 = vmatpush3.bf16.msra.mxu1 %v1952_v60  ;;  %7092 = vmatprep.subr.bf16.mxu0 %v1945_v11  ;;  %v1046_v60 = vld [vmem:[%s8677_s11 + $0xd50] sm:$0xff]  ;;  %v1968_v11 = vunpack.c.l.s8.bf16 %v1038_v7 }
 0x47d   : > { %7114 = vmatprep.subr.bf16.mxu1 %v1961_v63  ;;  %v6790_v21 = vpop.f32.mrb[72].mxu0  ;;  %v1984_v63 = vunpack.c.l.s8.bf16 %v1046_v60 }
 0x47e   : > { %v6812_v16 = vpop.f32.mrb[72].mxu1  ;;  %v6791_v23 = vpop.f32.mrb[73].mxu0 }
 0x47f   : > { %v6813_v18 = vpop.f32.mrb[73].mxu1  ;;  %v6792_v25 = vadd.f32 %v6791_v23, %v6790_v21  ;;  %v6793_v27 = vpop.f32.mrb[74].mxu0  ;;  %7093 = vmatpush3.bf16.msra.mxu0 %v1937_v15  ;;  %v1043_v15 = vld [vmem:[%s8677_s11 + $0xd38] sm:$0xff] }
 0x480   : > { %v6814_v20 = vadd.f32 %v6813_v18, %v6812_v16  ;;  %v6815_v22 = vpop.f32.mrb[74].mxu1  ;;  %7115 = vmatpush3.bf16.msra.mxu1 %v1953_v10  ;;  %v6794_v31 = vpop.f32.mrb[75].mxu0  ;;  %7094 = vmatprep.subr.bf16.mxu0 %v1946_v17  ;;  %v1051_v10 = vld [vmem:[%s8677_s11 + $0xd78] sm:$0xff]  ;;  %v1969_v17 = vunpack.c.h.s8.bf16 %v1038_v7  ;;  %v1978_v19 = vunpack.c.l.s8.bf16 %v1043_v15 }
 0x481   : > { %v6816_v26 = vpop.f32.mrb[75].mxu1  ;;  %7116 = vmatprep.subr.bf16.mxu1 %v1962_v12  ;;  %v4079_v35 = vadd.f32 %v6792_v25, %v9504_v36  ;;  %v5940_v36 = vcombine.low %v9513_v1, %v9513_v1  ;;  %v5945_v1 = vcombine.high %v9546_v4, %v9546_v4  ;;  %v1985_v12 = vunpack.c.h.s8.bf16 %v1046_v60  ;;  %v1039_v21 = vld [vmem:[%s8677_s11 + $0xd18] sm:$0xff] }
 0x482   : > { %v1994_v14 = vunpack.c.l.s8.bf16 %v1051_v10  ;;  %v1047_v16 = vld [vmem:[%s8677_s11 + $0xd58] sm:$0xff]  ;;  %v1970_v31 = vunpack.c.l.s8.bf16 %v1039_v21  ;;  %v1995_v30 = vunpack.c.h.s8.bf16 %v1051_v10 }
 0x483   : > { %v9537_v38 = vadd.f32 %v6814_v20, %v4079_v35  ;;  %7095 = vmatpush3.bf16.msra.mxu0 %v1938_v29  ;;  %v1986_v26 = vunpack.c.l.s8.bf16 %v1047_v16  ;;  %v1979_v35 = vunpack.c.h.s8.bf16 %v1043_v15  ;;  %v1987_v41 = vunpack.c.h.s8.bf16 %v1047_v16 }
 0x484   : > { %7117 = vmatpush3.bf16.msra.mxu1 %v1954_v24  ;;  %7096 = vmatprep.subr.bf16.mxu0 %v1947_v33 }
 0x485   : > { %7118 = vmatprep.subr.bf16.mxu1 %v1963_v28 }
 0x487   : > { %7097 = vmatpush3.bf16.msra.mxu0 %v1939_v32  ;;  %v1056_v32 = vld [vmem:[%s8677_s11 + $0xda0] sm:$0xff] }
 0x488   : > { %7119 = vmatpush3.bf16.msra.mxu1 %v1955_v39  ;;  %7126 = vmatprep.subr.bf16.mxu0 %v1972_v40  ;;  %v1064_v39 = vld [vmem:[%s8677_s11 + $0xde0] sm:$0xff]  ;;  %v2004_v42 = vunpack.c.l.s8.bf16 %v1056_v32 }
 0x489   : > { %7148 = vmatprep.subr.bf16.mxu1 %v1988_v34  ;;  %v1971_v34 = vunpack.c.h.s8.bf16 %v1039_v21 }
 0x48a   : > { %4637 = vmatmul.mubr.bf16.vlgmr.msra.gmra.mrb[100].mxu0 %v5940_v36  ;;  %v2020_v36 = vunpack.c.l.s8.bf16 %v1064_v39 }
 0x48b   : > { %4677 = vmatmul.mubr.bf16.vlgmr.msra.gmra.mrb[100].mxu1 %v5942_v43  ;;  %7127 = vmatpush3.bf16.msra.mxu0 %v1964_v44  ;;  %v1052_v43 = vld [vmem:[%s8677_s11 + $0xd80] sm:$0xff] }
 0x48c   : > { %7149 = vmatpush3.bf16.msra.mxu1 %v1980_v45  ;;  %7128 = vmatprep.subr.bf16.mxu0 %v1973_v8  ;;  %v1060_v44 = vld [vmem:[%s8677_s11 + $0xdc0] sm:$0xff]  ;;  %v5946_v45 = vcombine.low %v9549_v5, %v9549_v5  ;;  %v9579_v8 = vld [vmem:[%s8670_s16 + $0x1b0] sm:$0xff]  ;;  %v1996_v46 = vunpack.c.l.s8.bf16 %v1052_v43 }
 0x48d   : > { %7150 = vmatprep.subr.bf16.mxu1 %v1989_v9  ;;  %4716 = vmatprep.mubr.bf16.mxu0 %v5945_v1  ;;  %v9582_v9 = vld [vmem:[%s8670_s16 + $0x1b8] sm:$0xff]  ;;  %v2012_v47 = vunpack.c.l.s8.bf16 %v1060_v44  ;;  %v2005_v1 = vunpack.c.h.s8.bf16 %v1056_v32 }
 0x48e   : > { %4756 = vmatprep.mubr.bf16.mxu1 %v5947_v2  ;;  %v2021_v2 = vunpack.c.h.s8.bf16 %v1064_v39  ;;  %v5951_v5 = vcombine.high %v9582_v9, %v9582_v9 }
 0x48f   : > { %7129 = vmatpush3.bf16.msra.mxu0 %v1965_v48  ;;  %v1057_v48 = vld [vmem:[%s8677_s11 + $0xda8] sm:$0xff] }
 0x490   : > { %7151 = vmatpush3.bf16.msra.mxu1 %v1981_v49  ;;  %7130 = vmatprep.subr.bf16.mxu0 %v1974_v50  ;;  %v1065_v49 = vld [vmem:[%s8677_s11 + $0xde8] sm:$0xff]  ;;  %v1997_v50 = vunpack.c.h.s8.bf16 %v1052_v43  ;;  %v2006_v52 = vunpack.c.l.s8.bf16 %v1057_v48  ;;  %v2007_v59 = vunpack.c.h.s8.bf16 %v1057_v48 }
 0x491   : > { %7152 = vmatprep.subr.bf16.mxu1 %v1990_v51  ;;  %v2013_v51 = vunpack.c.h.s8.bf16 %v1060_v44  ;;  %v2022_v53 = vunpack.c.l.s8.bf16 %v1065_v49  ;;  %v2023_v61 = vunpack.c.h.s8.bf16 %v1065_v49 }
 0x493   : > { %7131 = vmatpush3.bf16.msra.mxu0 %v1966_v54  ;;  %v1053_v54 = vld [vmem:[%s8677_s11 + $0xd88] sm:$0xff] }
 0x494   : > { %7153 = vmatpush3.bf16.msra.mxu1 %v1982_v56  ;;  %7132 = vmatprep.subr.bf16.mxu0 %v1975_v57  ;;  %v1061_v56 = vld [vmem:[%s8677_s11 + $0xdc8] sm:$0xff]  ;;  %v1998_v57 = vunpack.c.l.s8.bf16 %v1053_v54 }
 0x495   : > { %7154 = vmatprep.subr.bf16.mxu1 %v1991_v58  ;;  %v2014_v58 = vunpack.c.l.s8.bf16 %v1061_v56 }
 0x497   : > { %7133 = vmatpush3.bf16.msra.mxu0 %v1967_v62  ;;  %v1058_v62 = vld [vmem:[%s8677_s11 + $0xdb0] sm:$0xff] }
 0x498   : > { %7155 = vmatpush3.bf16.msra.mxu1 %v1983_v0  ;;  %7134 = vmatprep.subr.bf16.mxu0 %v1976_v3  ;;  %v1066_v0 = vld [vmem:[%s8677_s11 + $0xdf0] sm:$0xff]  ;;  %v1999_v3 = vunpack.c.h.s8.bf16 %v1053_v54  ;;  %v2008_v7 = vunpack.c.l.s8.bf16 %v1058_v62  ;;  %v2009_v15 = vunpack.c.h.s8.bf16 %v1058_v62 }
 0x499   : > { %7156 = vmatprep.subr.bf16.mxu1 %v1992_v55  ;;  %v2015_v55 = vunpack.c.h.s8.bf16 %v1061_v56  ;;  %v2024_v60 = vunpack.c.l.s8.bf16 %v1066_v0  ;;  %v2025_v10 = vunpack.c.h.s8.bf16 %v1066_v0 }
 0x49b   : > { %7135 = vmatpush3.bf16.msra.mxu0 %v1968_v11  ;;  %v1054_v11 = vld [vmem:[%s8677_s11 + $0xd90] sm:$0xff] }
 0x49c   : > { %7157 = vmatpush3.bf16.msra.mxu1 %v1984_v63  ;;  %7136 = vmatprep.subr.bf16.mxu0 %v1977_v13  ;;  %v1062_v63 = vld [vmem:[%s8677_s11 + $0xdd0] sm:$0xff]  ;;  %v2000_v13 = vunpack.c.l.s8.bf16 %v1054_v11 }
 0x49d   : > { %7158 = vmatprep.subr.bf16.mxu1 %v1993_v6  ;;  %v6834_v23 = vpop.f32.mrb[76].mxu0  ;;  %v2016_v6 = vunpack.c.l.s8.bf16 %v1062_v63 }
 0x49e   : > { %v6856_v18 = vpop.f32.mrb[76].mxu1  ;;  %v6835_v25 = vpop.f32.mrb[77].mxu0 }
 0x49f   : > { %v6857_v20 = vpop.f32.mrb[77].mxu1  ;;  %v6836_v27 = vadd.f32 %v6835_v25, %v6834_v23  ;;  %v6837_v29 = vpop.f32.mrb[78].mxu0  ;;  %7137 = vmatpush3.bf16.msra.mxu0 %v1969_v17  ;;  %v1059_v17 = vld [vmem:[%s8677_s11 + $0xdb8] sm:$0xff] }
 0x4a0   : > { %v6858_v22 = vadd.f32 %v6857_v20, %v6856_v18  ;;  %v6859_v24 = vpop.f32.mrb[78].mxu1  ;;  %7159 = vmatpush3.bf16.msra.mxu1 %v1985_v12  ;;  %v6838_v33 = vpop.f32.mrb[79].mxu0  ;;  %7138 = vmatprep.subr.bf16.mxu0 %v1978_v19  ;;  %v1067_v12 = vld [vmem:[%s8677_s11 + $0xdf8] sm:$0xff]  ;;  %v2001_v19 = vunpack.c.h.s8.bf16 %v1054_v11  ;;  %v2010_v21 = vunpack.c.l.s8.bf16 %v1059_v17 }
 0x4a1   : > { %v6860_v28 = vpop.f32.mrb[79].mxu1  ;;  %7160 = vmatprep.subr.bf16.mxu1 %v1994_v14  ;;  %v4159_v37 = vadd.f32 %v6836_v27, %v9537_v38  ;;  %v5944_v38 = vcombine.low %v9546_v4, %v9546_v4  ;;  %v5949_v4 = vcombine.high %v9579_v8, %v9579_v8  ;;  %v2017_v14 = vunpack.c.h.s8.bf16 %v1062_v63  ;;  %v1055_v23 = vld [vmem:[%s8677_s11 + $0xd98] sm:$0xff] }
 0x4a2   : > { %v2026_v16 = vunpack.c.l.s8.bf16 %v1067_v12  ;;  %v1063_v18 = vld [vmem:[%s8677_s11 + $0xdd8] sm:$0xff]  ;;  %v2002_v33 = vunpack.c.l.s8.bf16 %v1055_v23  ;;  %v2027_v32 = vunpack.c.h.s8.bf16 %v1067_v12 }
 0x4a3   : > { %v9570_v40 = vadd.f32 %v6858_v22, %v4159_v37  ;;  %7139 = vmatpush3.bf16.msra.mxu0 %v1970_v31  ;;  %v2018_v28 = vunpack.c.l.s8.bf16 %v1063_v18  ;;  %v2011_v37 = vunpack.c.h.s8.bf16 %v1059_v17  ;;  %v2019_v43 = vunpack.c.h.s8.bf16 %v1063_v18 }
 0x4a4   : > { %7161 = vmatpush3.bf16.msra.mxu1 %v1986_v26  ;;  %7140 = vmatprep.subr.bf16.mxu0 %v1979_v35 }
 0x4a5   : > { %7162 = vmatprep.subr.bf16.mxu1 %v1995_v30 }
 0x4a7   : > { %7141 = vmatpush3.bf16.msra.mxu0 %v1971_v34  ;;  %v1072_v34 = vld [vmem:[%s8677_s11 + $0xe20] sm:$0xff] }
 0x4a8   : > { %7163 = vmatpush3.bf16.msra.mxu1 %v1987_v41  ;;  %7170 = vmatprep.subr.bf16.mxu0 %v2004_v42  ;;  %v1080_v41 = vld [vmem:[%s8677_s11 + $0xe60] sm:$0xff]  ;;  %v2036_v44 = vunpack.c.l.s8.bf16 %v1072_v34 }
 0x4a9   : > { %7192 = vmatprep.subr.bf16.mxu1 %v2020_v36  ;;  %v2003_v36 = vunpack.c.h.s8.bf16 %v1055_v23 }
 0x4aa   : > { %4717 = vmatmul.mubr.bf16.vlgmr.msra.gmra.mrb[104].mxu0 %v5944_v38  ;;  %v2052_v38 = vunpack.c.l.s8.bf16 %v1080_v41 }
 0x4ab   : > { %4757 = vmatmul.mubr.bf16.vlgmr.msra.gmra.mrb[104].mxu1 %v5946_v45  ;;  %7171 = vmatpush3.bf16.msra.mxu0 %v1996_v46  ;;  %v1068_v45 = vld [vmem:[%s8677_s11 + $0xe00] sm:$0xff] }
 0x4ac   : > { %7193 = vmatpush3.bf16.msra.mxu1 %v2012_v47  ;;  %7172 = vmatprep.subr.bf16.mxu0 %v2005_v1  ;;  %v1076_v46 = vld [vmem:[%s8677_s11 + $0xe40] sm:$0xff]  ;;  %v5950_v47 = vcombine.low %v9582_v9, %v9582_v9  ;;  %v2028_v48 = vunpack.c.l.s8.bf16 %v1068_v45 }
 0x4ad   : > { %7194 = vmatprep.subr.bf16.mxu1 %v2021_v2  ;;  %4796 = vmatprep.mubr.bf16.mxu0 %v5949_v4  ;;  %v9612_v1 = vld [vmem:[%s8670_s16 + $0x1c0] sm:$0xff]  ;;  %v9615_v2 = vld [vmem:[%s8670_s16 + $0x1c8] sm:$0xff]  ;;  %v2044_v49 = vunpack.c.l.s8.bf16 %v1076_v46  ;;  %v2037_v4 = vunpack.c.h.s8.bf16 %v1072_v34 }
 0x4ae   : > { %4836 = vmatprep.mubr.bf16.mxu1 %v5951_v5  ;;  %v2053_v5 = vunpack.c.h.s8.bf16 %v1080_v41  ;;  %v5955_v9 = vcombine.high %v9615_v2, %v9615_v2 }
 0x4af   : > { %7173 = vmatpush3.bf16.msra.mxu0 %v1997_v50  ;;  %v1073_v50 = vld [vmem:[%s8677_s11 + $0xe28] sm:$0xff] }
 0x4b0   : > { %7195 = vmatpush3.bf16.msra.mxu1 %v2013_v51  ;;  %7174 = vmatprep.subr.bf16.mxu0 %v2006_v52  ;;  %v1081_v51 = vld [vmem:[%s8677_s11 + $0xe68] sm:$0xff]  ;;  %v2029_v52 = vunpack.c.h.s8.bf16 %v1068_v45  ;;  %v2038_v54 = vunpack.c.l.s8.bf16 %v1073_v50  ;;  %v2039_v62 = vunpack.c.h.s8.bf16 %v1073_v50 }
 0x4b1   : > { %7196 = vmatprep.subr.bf16.mxu1 %v2022_v53  ;;  %v2045_v53 = vunpack.c.h.s8.bf16 %v1076_v46  ;;  %v2054_v56 = vunpack.c.l.s8.bf16 %v1081_v51  ;;  %v2055_v0 = vunpack.c.h.s8.bf16 %v1081_v51 }
 0x4b3   : > { %7175 = vmatpush3.bf16.msra.mxu0 %v1998_v57  ;;  %v1069_v57 = vld [vmem:[%s8677_s11 + $0xe08] sm:$0xff] }
 0x4b4   : > { %7197 = vmatpush3.bf16.msra.mxu1 %v2014_v58  ;;  %7176 = vmatprep.subr.bf16.mxu0 %v2007_v59  ;;  %v1077_v58 = vld [vmem:[%s8677_s11 + $0xe48] sm:$0xff]  ;;  %v2030_v59 = vunpack.c.l.s8.bf16 %v1069_v57 }
 0x4b5   : > { %7198 = vmatprep.subr.bf16.mxu1 %v2023_v61  ;;  %v2046_v61 = vunpack.c.l.s8.bf16 %v1077_v58 }
 0x4b7   : > { %7177 = vmatpush3.bf16.msra.mxu0 %v1999_v3  ;;  %v1074_v3 = vld [vmem:[%s8677_s11 + $0xe30] sm:$0xff] }
 0x4b8   : > { %7199 = vmatpush3.bf16.msra.mxu1 %v2015_v55  ;;  %7178 = vmatprep.subr.bf16.mxu0 %v2008_v7  ;;  %v1082_v55 = vld [vmem:[%s8677_s11 + $0xe70] sm:$0xff]  ;;  %v2031_v7 = vunpack.c.h.s8.bf16 %v1069_v57  ;;  %v2040_v11 = vunpack.c.l.s8.bf16 %v1074_v3  ;;  %v2041_v17 = vunpack.c.h.s8.bf16 %v1074_v3 }
 0x4b9   : > { %7200 = vmatprep.subr.bf16.mxu1 %v2024_v60  ;;  %v2047_v60 = vunpack.c.h.s8.bf16 %v1077_v58  ;;  %v2056_v63 = vunpack.c.l.s8.bf16 %v1082_v55  ;;  %v2057_v12 = vunpack.c.h.s8.bf16 %v1082_v55 }
 0x4bb   : > { %7179 = vmatpush3.bf16.msra.mxu0 %v2000_v13  ;;  %v1070_v13 = vld [vmem:[%s8677_s11 + $0xe10] sm:$0xff] }
 0x4bc   : > { %7201 = vmatpush3.bf16.msra.mxu1 %v2016_v6  ;;  %7180 = vmatprep.subr.bf16.mxu0 %v2009_v15  ;;  %v1078_v6 = vld [vmem:[%s8677_s11 + $0xe50] sm:$0xff]  ;;  %v2032_v15 = vunpack.c.l.s8.bf16 %v1070_v13 }
 0x4bd   : > { %7202 = vmatprep.subr.bf16.mxu1 %v2025_v10  ;;  %v6878_v25 = vpop.f32.mrb[80].mxu0  ;;  %v2048_v10 = vunpack.c.l.s8.bf16 %v1078_v6 }
 0x4be   : > { %v6900_v20 = vpop.f32.mrb[80].mxu1  ;;  %v6879_v27 = vpop.f32.mrb[81].mxu0 }
 0x4bf   : > { %v6901_v22 = vpop.f32.mrb[81].mxu1  ;;  %v6880_v29 = vadd.f32 %v6879_v27, %v6878_v25  ;;  %v6881_v31 = vpop.f32.mrb[82].mxu0  ;;  %7181 = vmatpush3.bf16.msra.mxu0 %v2001_v19  ;;  %v1075_v19 = vld [vmem:[%s8677_s11 + $0xe38] sm:$0xff] }
 0x4c0   : > { %v6902_v24 = vadd.f32 %v6901_v22, %v6900_v20  ;;  %v6903_v26 = vpop.f32.mrb[82].mxu1  ;;  %7203 = vmatpush3.bf16.msra.mxu1 %v2017_v14  ;;  %v6882_v35 = vpop.f32.mrb[83].mxu0  ;;  %7182 = vmatprep.subr.bf16.mxu0 %v2010_v21  ;;  %v1083_v14 = vld [vmem:[%s8677_s11 + $0xe78] sm:$0xff]  ;;  %v2033_v21 = vunpack.c.h.s8.bf16 %v1070_v13  ;;  %v2042_v23 = vunpack.c.l.s8.bf16 %v1075_v19 }
 0x4c1   : > { %v6904_v30 = vpop.f32.mrb[83].mxu1  ;;  %7204 = vmatprep.subr.bf16.mxu1 %v2026_v16  ;;  %v4239_v39 = vadd.f32 %v6880_v29, %v9570_v40  ;;  %v5948_v40 = vcombine.low %v9579_v8, %v9579_v8  ;;  %v5953_v8 = vcombine.high %v9612_v1, %v9612_v1  ;;  %v2049_v16 = vunpack.c.h.s8.bf16 %v1078_v6  ;;  %v1071_v25 = vld [vmem:[%s8677_s11 + $0xe18] sm:$0xff] }
 0x4c2   : > { %v2058_v18 = vunpack.c.l.s8.bf16 %v1083_v14  ;;  %v1079_v20 = vld [vmem:[%s8677_s11 + $0xe58] sm:$0xff]  ;;  %v2034_v35 = vunpack.c.l.s8.bf16 %v1071_v25  ;;  %v2059_v34 = vunpack.c.h.s8.bf16 %v1083_v14 }
 0x4c3   : > { %v9603_v42 = vadd.f32 %v6902_v24, %v4239_v39  ;;  %7183 = vmatpush3.bf16.msra.mxu0 %v2002_v33  ;;  %v2050_v30 = vunpack.c.l.s8.bf16 %v1079_v20  ;;  %v2043_v39 = vunpack.c.h.s8.bf16 %v1075_v19  ;;  %v2051_v45 = vunpack.c.h.s8.bf16 %v1079_v20 }
 0x4c4   : > { %7205 = vmatpush3.bf16.msra.mxu1 %v2018_v28  ;;  %7184 = vmatprep.subr.bf16.mxu0 %v2011_v37 }
 0x4c5   : > { %7206 = vmatprep.subr.bf16.mxu1 %v2027_v32 }
 0x4c7   : > { %7185 = vmatpush3.bf16.msra.mxu0 %v2003_v36  ;;  %v1088_v36 = vld [vmem:[%s8677_s11 + $0xea0] sm:$0xff] }
 0x4c8   : > { %7207 = vmatpush3.bf16.msra.mxu1 %v2019_v43  ;;  %7214 = vmatprep.subr.bf16.mxu0 %v2036_v44  ;;  %v1096_v43 = vld [vmem:[%s8677_s11 + $0xee0] sm:$0xff]  ;;  %v2068_v46 = vunpack.c.l.s8.bf16 %v1088_v36 }
 0x4c9   : > { %7236 = vmatprep.subr.bf16.mxu1 %v2052_v38  ;;  %v2035_v38 = vunpack.c.h.s8.bf16 %v1071_v25 }
 0x4ca   : > { %4797 = vmatmul.mubr.bf16.vlgmr.msra.gmra.mrb[108].mxu0 %v5948_v40  ;;  %v2084_v40 = vunpack.c.l.s8.bf16 %v1096_v43 }
 0x4cb   : > { %4837 = vmatmul.mubr.bf16.vlgmr.msra.gmra.mrb[108].mxu1 %v5950_v47  ;;  %7215 = vmatpush3.bf16.msra.mxu0 %v2028_v48  ;;  %v1084_v47 = vld [vmem:[%s8677_s11 + $0xe80] sm:$0xff] }
 0x4cc   : > { %7237 = vmatpush3.bf16.msra.mxu1 %v2044_v49  ;;  %7216 = vmatprep.subr.bf16.mxu0 %v2037_v4  ;;  %v1092_v48 = vld [vmem:[%s8677_s11 + $0xec0] sm:$0xff]  ;;  %v5954_v49 = vcombine.low %v9615_v2, %v9615_v2  ;;  %v9645_v4 = vld [vmem:[%s8670_s16 + $0x1d0] sm:$0xff]  ;;  %v2060_v50 = vunpack.c.l.s8.bf16 %v1084_v47 }
 0x4cd   : > { %7238 = vmatprep.subr.bf16.mxu1 %v2053_v5  ;;  %4876 = vmatprep.mubr.bf16.mxu0 %v5953_v8  ;;  %v9648_v5 = vld [vmem:[%s8670_s16 + $0x1d8] sm:$0xff]  ;;  %v2076_v51 = vunpack.c.l.s8.bf16 %v1092_v48  ;;  %v2069_v8 = vunpack.c.h.s8.bf16 %v1088_v36 }
 0x4ce   : > { %4916 = vmatprep.mubr.bf16.mxu1 %v5955_v9  ;;  %v2085_v9 = vunpack.c.h.s8.bf16 %v1096_v43  ;;  %v5959_v2 = vcombine.high %v9648_v5, %v9648_v5 }
 0x4cf   : > { %7217 = vmatpush3.bf16.msra.mxu0 %v2029_v52  ;;  %v1089_v52 = vld [vmem:[%s8677_s11 + $0xea8] sm:$0xff] }
 0x4d0   : > { %7239 = vmatpush3.bf16.msra.mxu1 %v2045_v53  ;;  %7218 = vmatprep.subr.bf16.mxu0 %v2038_v54  ;;  %v1097_v53 = vld [vmem:[%s8677_s11 + $0xee8] sm:$0xff]  ;;  %v2061_v54 = vunpack.c.h.s8.bf16 %v1084_v47  ;;  %v2070_v57 = vunpack.c.l.s8.bf16 %v1089_v52  ;;  %v2071_v3 = vunpack.c.h.s8.bf16 %v1089_v52 }
 0x4d1   : > { %7240 = vmatprep.subr.bf16.mxu1 %v2054_v56  ;;  %v2077_v56 = vunpack.c.h.s8.bf16 %v1092_v48  ;;  %v2086_v58 = vunpack.c.l.s8.bf16 %v1097_v53  ;;  %v2087_v55 = vunpack.c.h.s8.bf16 %v1097_v53 }
 0x4d3   : > { %7219 = vmatpush3.bf16.msra.mxu0 %v2030_v59  ;;  %v1085_v59 = vld [vmem:[%s8677_s11 + $0xe88] sm:$0xff] }
 0x4d4   : > { %7241 = vmatpush3.bf16.msra.mxu1 %v2046_v61  ;;  %7220 = vmatprep.subr.bf16.mxu0 %v2039_v62  ;;  %v1093_v61 = vld [vmem:[%s8677_s11 + $0xec8] sm:$0xff]  ;;  %v2062_v62 = vunpack.c.l.s8.bf16 %v1085_v59 }
 0x4d5   : > { %7242 = vmatprep.subr.bf16.mxu1 %v2055_v0  ;;  %v2078_v0 = vunpack.c.l.s8.bf16 %v1093_v61 }
 0x4d7   : > { %7221 = vmatpush3.bf16.msra.mxu0 %v2031_v7  ;;  %v1090_v7 = vld [vmem:[%s8677_s11 + $0xeb0] sm:$0xff] }
 0x4d8   : > { %7243 = vmatpush3.bf16.msra.mxu1 %v2047_v60  ;;  %7222 = vmatprep.subr.bf16.mxu0 %v2040_v11  ;;  %v1098_v60 = vld [vmem:[%s8677_s11 + $0xef0] sm:$0xff]  ;;  %v2063_v11 = vunpack.c.h.s8.bf16 %v1085_v59  ;;  %v2072_v13 = vunpack.c.l.s8.bf16 %v1090_v7  ;;  %v2073_v19 = vunpack.c.h.s8.bf16 %v1090_v7 }
 0x4d9   : > { %7244 = vmatprep.subr.bf16.mxu1 %v2056_v63  ;;  %v2079_v63 = vunpack.c.h.s8.bf16 %v1093_v61  ;;  %v2088_v6 = vunpack.c.l.s8.bf16 %v1098_v60  ;;  %v2089_v14 = vunpack.c.h.s8.bf16 %v1098_v60 }
 0x4db   : > { %7223 = vmatpush3.bf16.msra.mxu0 %v2032_v15  ;;  %v1086_v15 = vld [vmem:[%s8677_s11 + $0xe90] sm:$0xff] }
 0x4dc   : > { %7245 = vmatpush3.bf16.msra.mxu1 %v2048_v10  ;;  %7224 = vmatprep.subr.bf16.mxu0 %v2041_v17  ;;  %v1094_v10 = vld [vmem:[%s8677_s11 + $0xed0] sm:$0xff]  ;;  %v2064_v17 = vunpack.c.l.s8.bf16 %v1086_v15 }
 0x4dd   : > { %7246 = vmatprep.subr.bf16.mxu1 %v2057_v12  ;;  %v6922_v27 = vpop.f32.mrb[84].mxu0  ;;  %v2080_v12 = vunpack.c.l.s8.bf16 %v1094_v10 }
 0x4de   : > { %v6944_v22 = vpop.f32.mrb[84].mxu1  ;;  %v6923_v29 = vpop.f32.mrb[85].mxu0 }
 0x4df   : > { %v6945_v24 = vpop.f32.mrb[85].mxu1  ;;  %v6924_v31 = vadd.f32 %v6923_v29, %v6922_v27  ;;  %v6925_v33 = vpop.f32.mrb[86].mxu0  ;;  %7225 = vmatpush3.bf16.msra.mxu0 %v2033_v21  ;;  %v1091_v21 = vld [vmem:[%s8677_s11 + $0xeb8] sm:$0xff] }
 0x4e0   : > { %v6946_v26 = vadd.f32 %v6945_v24, %v6944_v22  ;;  %v6947_v28 = vpop.f32.mrb[86].mxu1  ;;  %7247 = vmatpush3.bf16.msra.mxu1 %v2049_v16  ;;  %v6926_v37 = vpop.f32.mrb[87].mxu0  ;;  %7226 = vmatprep.subr.bf16.mxu0 %v2042_v23  ;;  %v1099_v16 = vld [vmem:[%s8677_s11 + $0xef8] sm:$0xff]  ;;  %v2065_v23 = vunpack.c.h.s8.bf16 %v1086_v15  ;;  %v2074_v25 = vunpack.c.l.s8.bf16 %v1091_v21 }
 0x4e1   : > { %v6948_v32 = vpop.f32.mrb[87].mxu1  ;;  %7248 = vmatprep.subr.bf16.mxu1 %v2058_v18  ;;  %v4319_v41 = vadd.f32 %v6924_v31, %v9603_v42  ;;  %v5952_v42 = vcombine.low %v9612_v1, %v9612_v1  ;;  %v5957_v1 = vcombine.high %v9645_v4, %v9645_v4  ;;  %v2081_v18 = vunpack.c.h.s8.bf16 %v1094_v10  ;;  %v1087_v27 = vld [vmem:[%s8677_s11 + $0xe98] sm:$0xff] }
 0x4e2   : > { %v2090_v20 = vunpack.c.l.s8.bf16 %v1099_v16  ;;  %v1095_v22 = vld [vmem:[%s8677_s11 + $0xed8] sm:$0xff]  ;;  %v2066_v37 = vunpack.c.l.s8.bf16 %v1087_v27  ;;  %v2091_v36 = vunpack.c.h.s8.bf16 %v1099_v16 }
 0x4e3   : > { %v9636_v44 = vadd.f32 %v6946_v26, %v4319_v41  ;;  %7227 = vmatpush3.bf16.msra.mxu0 %v2034_v35  ;;  %v2082_v32 = vunpack.c.l.s8.bf16 %v1095_v22  ;;  %v2075_v41 = vunpack.c.h.s8.bf16 %v1091_v21  ;;  %v2083_v47 = vunpack.c.h.s8.bf16 %v1095_v22 }
 0x4e4   : > { %7249 = vmatpush3.bf16.msra.mxu1 %v2050_v30  ;;  %7228 = vmatprep.subr.bf16.mxu0 %v2043_v39 }
 0x4e5   : > { %7250 = vmatprep.subr.bf16.mxu1 %v2059_v34 }
 0x4e7   : > { %7229 = vmatpush3.bf16.msra.mxu0 %v2035_v38  ;;  %v1104_v38 = vld [vmem:[%s8677_s11 + $0xf20] sm:$0xff] }
 0x4e8   : > { %7251 = vmatpush3.bf16.msra.mxu1 %v2051_v45  ;;  %7258 = vmatprep.subr.bf16.mxu0 %v2068_v46  ;;  %v1112_v45 = vld [vmem:[%s8677_s11 + $0xf60] sm:$0xff]  ;;  %v2100_v48 = vunpack.c.l.s8.bf16 %v1104_v38 }
 0x4e9   : > { %7280 = vmatprep.subr.bf16.mxu1 %v2084_v40  ;;  %v2067_v40 = vunpack.c.h.s8.bf16 %v1087_v27 }
 0x4ea   : > { %4877 = vmatmul.mubr.bf16.vlgmr.msra.gmra.mrb[112].mxu0 %v5952_v42  ;;  %v2116_v42 = vunpack.c.l.s8.bf16 %v1112_v45 }
 0x4eb   : > { %4917 = vmatmul.mubr.bf16.vlgmr.msra.gmra.mrb[112].mxu1 %v5954_v49  ;;  %7259 = vmatpush3.bf16.msra.mxu0 %v2060_v50  ;;  %v1100_v49 = vld [vmem:[%s8677_s11 + $0xf00] sm:$0xff] }
 0x4ec   : > { %7281 = vmatpush3.bf16.msra.mxu1 %v2076_v51  ;;  %7260 = vmatprep.subr.bf16.mxu0 %v2069_v8  ;;  %v1108_v50 = vld [vmem:[%s8677_s11 + $0xf40] sm:$0xff]  ;;  %v5958_v51 = vcombine.low %v9648_v5, %v9648_v5  ;;  %v2092_v52 = vunpack.c.l.s8.bf16 %v1100_v49 }
 0x4ed   : > { %7282 = vmatprep.subr.bf16.mxu1 %v2085_v9  ;;  %4956 = vmatprep.mubr.bf16.mxu0 %v5957_v1  ;;  %v9678_v8 = vld [vmem:[%s8670_s16 + $0x1e0] sm:$0xff]  ;;  %v9681_v9 = vld [vmem:[%s8670_s16 + $0x1e8] sm:$0xff]  ;;  %v2108_v53 = vunpack.c.l.s8.bf16 %v1108_v50  ;;  %v2101_v1 = vunpack.c.h.s8.bf16 %v1104_v38 }
 0x4ee   : > { %4996 = vmatprep.mubr.bf16.mxu1 %v5959_v2  ;;  %v2117_v2 = vunpack.c.h.s8.bf16 %v1112_v45  ;;  %v5963_v5 = vcombine.high %v9681_v9, %v9681_v9 }
 0x4ef   : > { %7261 = vmatpush3.bf16.msra.mxu0 %v2061_v54  ;;  %v1105_v54 = vld [vmem:[%s8677_s11 + $0xf28] sm:$0xff] }
 0x4f0   : > { %7283 = vmatpush3.bf16.msra.mxu1 %v2077_v56  ;;  %7262 = vmatprep.subr.bf16.mxu0 %v2070_v57  ;;  %v1113_v56 = vld [vmem:[%s8677_s11 + $0xf68] sm:$0xff]  ;;  %v2093_v57 = vunpack.c.h.s8.bf16 %v1100_v49  ;;  %v2102_v59 = vunpack.c.l.s8.bf16 %v1105_v54  ;;  %v2103_v7 = vunpack.c.h.s8.bf16 %v1105_v54 }
 0x4f1   : > { %7284 = vmatprep.subr.bf16.mxu1 %v2086_v58  ;;  %v2109_v58 = vunpack.c.h.s8.bf16 %v1108_v50  ;;  %v2118_v61 = vunpack.c.l.s8.bf16 %v1113_v56  ;;  %v2119_v60 = vunpack.c.h.s8.bf16 %v1113_v56 }
 0x4f3   : > { %7263 = vmatpush3.bf16.msra.mxu0 %v2062_v62  ;;  %v1101_v62 = vld [vmem:[%s8677_s11 + $0xf08] sm:$0xff] }
 0x4f4   : > { %7285 = vmatpush3.bf16.msra.mxu1 %v2078_v0  ;;  %7264 = vmatprep.subr.bf16.mxu0 %v2071_v3  ;;  %v1109_v0 = vld [vmem:[%s8677_s11 + $0xf48] sm:$0xff]  ;;  %v2094_v3 = vunpack.c.l.s8.bf16 %v1101_v62 }
 0x4f5   : > { %7286 = vmatprep.subr.bf16.mxu1 %v2087_v55  ;;  %v2110_v55 = vunpack.c.l.s8.bf16 %v1109_v0 }
 0x4f7   : > { %7265 = vmatpush3.bf16.msra.mxu0 %v2063_v11  ;;  %v1106_v11 = vld [vmem:[%s8677_s11 + $0xf30] sm:$0xff] }
 0x4f8   : > { %7287 = vmatpush3.bf16.msra.mxu1 %v2079_v63  ;;  %7266 = vmatprep.subr.bf16.mxu0 %v2072_v13  ;;  %v1114_v63 = vld [vmem:[%s8677_s11 + $0xf70] sm:$0xff]  ;;  %v2095_v13 = vunpack.c.h.s8.bf16 %v1101_v62  ;;  %v2104_v15 = vunpack.c.l.s8.bf16 %v1106_v11  ;;  %v2105_v21 = vunpack.c.h.s8.bf16 %v1106_v11 }
 0x4f9   : > { %7288 = vmatprep.subr.bf16.mxu1 %v2088_v6  ;;  %v2111_v6 = vunpack.c.h.s8.bf16 %v1109_v0  ;;  %v2120_v10 = vunpack.c.l.s8.bf16 %v1114_v63  ;;  %v2121_v16 = vunpack.c.h.s8.bf16 %v1114_v63 }
 0x4fb   : > { %7267 = vmatpush3.bf16.msra.mxu0 %v2064_v17  ;;  %v1102_v17 = vld [vmem:[%s8677_s11 + $0xf10] sm:$0xff] }
 0x4fc   : > { %7289 = vmatpush3.bf16.msra.mxu1 %v2080_v12  ;;  %7268 = vmatprep.subr.bf16.mxu0 %v2073_v19  ;;  %v1110_v12 = vld [vmem:[%s8677_s11 + $0xf50] sm:$0xff]  ;;  %v2096_v19 = vunpack.c.l.s8.bf16 %v1102_v17 }
 0x4fd   : > { %7290 = vmatprep.subr.bf16.mxu1 %v2089_v14  ;;  %v6966_v29 = vpop.f32.mrb[88].mxu0  ;;  %v2112_v14 = vunpack.c.l.s8.bf16 %v1110_v12 }
 0x4fe   : > { %v6988_v24 = vpop.f32.mrb[88].mxu1  ;;  %v6967_v31 = vpop.f32.mrb[89].mxu0 }
 0x4ff   : > { %v6989_v26 = vpop.f32.mrb[89].mxu1  ;;  %v6968_v33 = vadd.f32 %v6967_v31, %v6966_v29  ;;  %v6969_v35 = vpop.f32.mrb[90].mxu0  ;;  %7269 = vmatpush3.bf16.msra.mxu0 %v2065_v23  ;;  %v1107_v23 = vld [vmem:[%s8677_s11 + $0xf38] sm:$0xff] }
 0x500   : > { %v6990_v28 = vadd.f32 %v6989_v26, %v6988_v24  ;;  %v6991_v30 = vpop.f32.mrb[90].mxu1  ;;  %7291 = vmatpush3.bf16.msra.mxu1 %v2081_v18  ;;  %v6970_v39 = vpop.f32.mrb[91].mxu0  ;;  %7270 = vmatprep.subr.bf16.mxu0 %v2074_v25  ;;  %v1115_v18 = vld [vmem:[%s8677_s11 + $0xf78] sm:$0xff]  ;;  %v2097_v25 = vunpack.c.h.s8.bf16 %v1102_v17  ;;  %v2106_v27 = vunpack.c.l.s8.bf16 %v1107_v23 }
 0x501   : > { %v6992_v34 = vpop.f32.mrb[91].mxu1  ;;  %7292 = vmatprep.subr.bf16.mxu1 %v2090_v20  ;;  %v4399_v43 = vadd.f32 %v6968_v33, %v9636_v44  ;;  %v5956_v44 = vcombine.low %v9645_v4, %v9645_v4  ;;  %v5961_v4 = vcombine.high %v9678_v8, %v9678_v8  ;;  %v2113_v20 = vunpack.c.h.s8.bf16 %v1110_v12  ;;  %v1103_v29 = vld [vmem:[%s8677_s11 + $0xf18] sm:$0xff] }
 0x502   : > { %v2122_v22 = vunpack.c.l.s8.bf16 %v1115_v18  ;;  %v1111_v24 = vld [vmem:[%s8677_s11 + $0xf58] sm:$0xff]  ;;  %v2098_v39 = vunpack.c.l.s8.bf16 %v1103_v29  ;;  %v2123_v38 = vunpack.c.h.s8.bf16 %v1115_v18 }
 0x503   : > { %v9669_v46 = vadd.f32 %v6990_v28, %v4399_v43  ;;  %7271 = vmatpush3.bf16.msra.mxu0 %v2066_v37  ;;  %v2114_v34 = vunpack.c.l.s8.bf16 %v1111_v24  ;;  %v2107_v43 = vunpack.c.h.s8.bf16 %v1107_v23  ;;  %v2115_v49 = vunpack.c.h.s8.bf16 %v1111_v24 }
 0x504   : > { %7293 = vmatpush3.bf16.msra.mxu1 %v2082_v32  ;;  %7272 = vmatprep.subr.bf16.mxu0 %v2075_v41 }
 0x505   : > { %7294 = vmatprep.subr.bf16.mxu1 %v2091_v36 }
 0x507   : > { %7273 = vmatpush3.bf16.msra.mxu0 %v2067_v40  ;;  %v1120_v40 = vld [vmem:[%s8677_s11 + $0xfa0] sm:$0xff] }
 0x508   : > { %7295 = vmatpush3.bf16.msra.mxu1 %v2083_v47  ;;  %7302 = vmatprep.subr.bf16.mxu0 %v2100_v48  ;;  %v1128_v47 = vld [vmem:[%s8677_s11 + $0xfe0] sm:$0xff]  ;;  %v2132_v50 = vunpack.c.l.s8.bf16 %v1120_v40 }
 0x509   : > { %7324 = vmatprep.subr.bf16.mxu1 %v2116_v42  ;;  %v2099_v42 = vunpack.c.h.s8.bf16 %v1103_v29 }
 0x50a   : > { %4957 = vmatmul.mubr.bf16.vlgmr.msra.gmra.mrb[116].mxu0 %v5956_v44  ;;  %v2148_v44 = vunpack.c.l.s8.bf16 %v1128_v47 }
 0x50b   : > { %4997 = vmatmul.mubr.bf16.vlgmr.msra.gmra.mrb[116].mxu1 %v5958_v51  ;;  %7303 = vmatpush3.bf16.msra.mxu0 %v2092_v52  ;;  %v1116_v51 = vld [vmem:[%s8677_s11 + $0xf80] sm:$0xff] }
 0x50c   : > { %7325 = vmatpush3.bf16.msra.mxu1 %v2108_v53  ;;  %7304 = vmatprep.subr.bf16.mxu0 %v2101_v1  ;;  %v1124_v52 = vld [vmem:[%s8677_s11 + $0xfc0] sm:$0xff]  ;;  %v5962_v53 = vcombine.low %v9681_v9, %v9681_v9  ;;  %v9711_v1 = vld [vmem:[%s8670_s16 + $0x1f0] sm:$0xff]  ;;  %v2124_v54 = vunpack.c.l.s8.bf16 %v1116_v51 }
 0x50d   : > { %7326 = vmatprep.subr.bf16.mxu1 %v2117_v2  ;;  %5036 = vmatprep.mubr.bf16.mxu0 %v5961_v4  ;;  %v9714_v2 = vld [vmem:[%s8670_s16 + $0x1f8] sm:$0xff]  ;;  %v2140_v56 = vunpack.c.l.s8.bf16 %v1124_v52  ;;  %v2133_v4 = vunpack.c.h.s8.bf16 %v1120_v40 }
 0x50e   : > { %5076 = vmatprep.mubr.bf16.mxu1 %v5963_v5  ;;  %v2149_v5 = vunpack.c.h.s8.bf16 %v1128_v47  ;;  %v5967_v9 = vcombine.high %v9714_v2, %v9714_v2 }
 0x50f   : > { %7305 = vmatpush3.bf16.msra.mxu0 %v2093_v57  ;;  %v1121_v57 = vld [vmem:[%s8677_s11 + $0xfa8] sm:$0xff] }
 0x510   : > { %7327 = vmatpush3.bf16.msra.mxu1 %v2109_v58  ;;  %7306 = vmatprep.subr.bf16.mxu0 %v2102_v59  ;;  %v1129_v58 = vld [vmem:[%s8677_s11 + $0xfe8] sm:$0xff]  ;;  %v2125_v59 = vunpack.c.h.s8.bf16 %v1116_v51  ;;  %v2134_v62 = vunpack.c.l.s8.bf16 %v1121_v57  ;;  %v2135_v11 = vunpack.c.h.s8.bf16 %v1121_v57  ;;  %v5966_v51 = vcombine.low %v9714_v2, %v9714_v2 }
 0x511   : > { %7328 = vmatprep.subr.bf16.mxu1 %v2118_v61  ;;  %v2141_v61 = vunpack.c.h.s8.bf16 %v1124_v52  ;;  %v2150_v0 = vunpack.c.l.s8.bf16 %v1129_v58  ;;  %v2151_v63 = vunpack.c.h.s8.bf16 %v1129_v58 }
 0x513   : > { %7307 = vmatpush3.bf16.msra.mxu0 %v2094_v3  ;;  %v1117_v3 = vld [vmem:[%s8677_s11 + $0xf88] sm:$0xff] }
 0x514   : > { %7329 = vmatpush3.bf16.msra.mxu1 %v2110_v55  ;;  %7308 = vmatprep.subr.bf16.mxu0 %v2103_v7  ;;  %v1125_v55 = vld [vmem:[%s8677_s11 + $0xfc8] sm:$0xff]  ;;  %v2126_v7 = vunpack.c.l.s8.bf16 %v1117_v3 }
 0x515   : > { %7330 = vmatprep.subr.bf16.mxu1 %v2119_v60  ;;  %v2142_v60 = vunpack.c.l.s8.bf16 %v1125_v55 }
 0x517   : > { %7309 = vmatpush3.bf16.msra.mxu0 %v2095_v13  ;;  %v1122_v13 = vld [vmem:[%s8677_s11 + $0xfb0] sm:$0xff] }
 0x518   : > { %7331 = vmatpush3.bf16.msra.mxu1 %v2111_v6  ;;  %7310 = vmatprep.subr.bf16.mxu0 %v2104_v15  ;;  %v1130_v6 = vld [vmem:[%s8677_s11 + $0xff0] sm:$0xff]  ;;  %v2127_v15 = vunpack.c.h.s8.bf16 %v1117_v3  ;;  %v2136_v17 = vunpack.c.l.s8.bf16 %v1122_v13  ;;  %v2137_v23 = vunpack.c.h.s8.bf16 %v1122_v13 }
 0x519   : > { %7332 = vmatprep.subr.bf16.mxu1 %v2120_v10  ;;  %v2143_v10 = vunpack.c.h.s8.bf16 %v1125_v55  ;;  %v2152_v12 = vunpack.c.l.s8.bf16 %v1130_v6  ;;  %v2153_v18 = vunpack.c.h.s8.bf16 %v1130_v6 }
 0x51b   : > { %7311 = vmatpush3.bf16.msra.mxu0 %v2096_v19  ;;  %v1118_v19 = vld [vmem:[%s8677_s11 + $0xf90] sm:$0xff] }
 0x51c   : > { %7333 = vmatpush3.bf16.msra.mxu1 %v2112_v14  ;;  %7312 = vmatprep.subr.bf16.mxu0 %v2105_v21  ;;  %v1126_v14 = vld [vmem:[%s8677_s11 + $0xfd0] sm:$0xff]  ;;  %v2128_v21 = vunpack.c.l.s8.bf16 %v1118_v19 }
 0x51d   : > { %7334 = vmatprep.subr.bf16.mxu1 %v2121_v16  ;;  %v7010_v31 = vpop.f32.mrb[92].mxu0  ;;  %v2144_v16 = vunpack.c.l.s8.bf16 %v1126_v14 }
 0x51e   : > { %v7032_v26 = vpop.f32.mrb[92].mxu1  ;;  %v7011_v33 = vpop.f32.mrb[93].mxu0 }
 0x51f   : > { %v7033_v28 = vpop.f32.mrb[93].mxu1  ;;  %v7012_v35 = vadd.f32 %v7011_v33, %v7010_v31  ;;  %v7013_v37 = vpop.f32.mrb[94].mxu0  ;;  %7313 = vmatpush3.bf16.msra.mxu0 %v2097_v25  ;;  %v1123_v25 = vld [vmem:[%s8677_s11 + $0xfb8] sm:$0xff] }
 0x520   : > { %v7034_v30 = vadd.f32 %v7033_v28, %v7032_v26  ;;  %v7035_v32 = vpop.f32.mrb[94].mxu1  ;;  %7335 = vmatpush3.bf16.msra.mxu1 %v2113_v20  ;;  %v7014_v41 = vpop.f32.mrb[95].mxu0  ;;  %7314 = vmatprep.subr.bf16.mxu0 %v2106_v27  ;;  %v1131_v20 = vld [vmem:[%s8677_s11 + $0xff8] sm:$0xff]  ;;  %v2129_v27 = vunpack.c.h.s8.bf16 %v1118_v19  ;;  %v2138_v29 = vunpack.c.l.s8.bf16 %v1123_v25 }
 0x521   : > { %v7036_v36 = vpop.f32.mrb[95].mxu1  ;;  %7336 = vmatprep.subr.bf16.mxu1 %v2122_v22  ;;  %v4479_v45 = vadd.f32 %v7012_v35, %v9669_v46  ;;  %v5960_v46 = vcombine.low %v9678_v8, %v9678_v8  ;;  %v5965_v8 = vcombine.high %v9711_v1, %v9711_v1  ;;  %v2145_v22 = vunpack.c.h.s8.bf16 %v1126_v14  ;;  %v1119_v31 = vld [vmem:[%s8677_s11 + $0xf98] sm:$0xff] }
 0x522   : > { %v2154_v24 = vunpack.c.l.s8.bf16 %v1131_v20  ;;  %v1127_v26 = vld [vmem:[%s8677_s11 + $0xfd8] sm:$0xff]  ;;  %v2130_v41 = vunpack.c.l.s8.bf16 %v1119_v31  ;;  %v2155_v40 = vunpack.c.h.s8.bf16 %v1131_v20 }
 0x523   : > { %v9702_v48 = vadd.f32 %v7034_v30, %v4479_v45  ;;  %7315 = vmatpush3.bf16.msra.mxu0 %v2098_v39  ;;  %v2146_v36 = vunpack.c.l.s8.bf16 %v1127_v26  ;;  %v2139_v45 = vunpack.c.h.s8.bf16 %v1123_v25 }
 0x524   : > { %7337 = vmatpush3.bf16.msra.mxu1 %v2114_v34  ;;  %7316 = vmatprep.subr.bf16.mxu0 %v2107_v43 }
 0x525   : > { %7338 = vmatprep.subr.bf16.mxu1 %v2123_v38 }
 0x527   : > { %7317 = vmatpush3.bf16.msra.mxu0 %v2099_v42 }
 0x528   : > { %7339 = vmatpush3.bf16.msra.mxu1 %v2115_v49  ;;  %7346 = vmatprep.subr.bf16.mxu0 %v2132_v50  ;;  %v2131_v49 = vunpack.c.h.s8.bf16 %v1119_v31  ;;  %v2147_v50 = vunpack.c.h.s8.bf16 %v1127_v26 }
 0x529   : > { %7368 = vmatprep.subr.bf16.mxu1 %v2148_v44  ;;  %v5964_v44 = vcombine.low %v9711_v1, %v9711_v1 }
 0x52a   : > { %5037 = vmatmul.mubr.bf16.vlgmr.msra.gmra.mrb[120].mxu0 %v5960_v46 }
 0x52b   : > { %5077 = vmatmul.mubr.bf16.vlgmr.msra.gmra.mrb[120].mxu1 %v5962_v53  ;;  %7347 = vmatpush3.bf16.msra.mxu0 %v2124_v54 }
 0x52c   : > { %7369 = vmatpush3.bf16.msra.mxu1 %v2140_v56  ;;  %7348 = vmatprep.subr.bf16.mxu0 %v2133_v4 }
 0x52d   : > { %7370 = vmatprep.subr.bf16.mxu1 %v2149_v5  ;;  %5116 = vmatprep.mubr.bf16.mxu0 %v5965_v8 }
 0x52e   : > { %5156 = vmatprep.mubr.bf16.mxu1 %v5967_v9 }
 0x52f   : > { %7349 = vmatpush3.bf16.msra.mxu0 %v2125_v59 }
 0x530   : > { %7371 = vmatpush3.bf16.msra.mxu1 %v2141_v61  ;;  %7350 = vmatprep.subr.bf16.mxu0 %v2134_v62 }
 0x531   : > { %7372 = vmatprep.subr.bf16.mxu1 %v2150_v0 }
 0x533   : > { %7351 = vmatpush3.bf16.msra.mxu0 %v2126_v7 }
 0x534   : > { %7373 = vmatpush3.bf16.msra.mxu1 %v2142_v60  ;;  %7352 = vmatprep.subr.bf16.mxu0 %v2135_v11 }
 0x535   : > { %7374 = vmatprep.subr.bf16.mxu1 %v2151_v63 }
 0x537   : > { %7353 = vmatpush3.bf16.msra.mxu0 %v2127_v15 }
 0x538   : > { %7375 = vmatpush3.bf16.msra.mxu1 %v2143_v10  ;;  %7354 = vmatprep.subr.bf16.mxu0 %v2136_v17 }
 0x539   : > { %7376 = vmatprep.subr.bf16.mxu1 %v2152_v12 }
 0x53b   : > { %7355 = vmatpush3.bf16.msra.mxu0 %v2128_v21 }
 0x53c   : > { %7377 = vmatpush3.bf16.msra.mxu1 %v2144_v16  ;;  %7356 = vmatprep.subr.bf16.mxu0 %v2137_v23 }
 0x53d   : > { %7378 = vmatprep.subr.bf16.mxu1 %v2153_v18  ;;  %v7054_v33 = vpop.f32.mrb[96].mxu0 }
 0x53e   : > { %v7076_v28 = vpop.f32.mrb[96].mxu1  ;;  %v7055_v35 = vpop.f32.mrb[97].mxu0 }
 0x53f   : > { %v7077_v30 = vpop.f32.mrb[97].mxu1  ;;  %v7056_v37 = vadd.f32 %v7055_v35, %v7054_v33  ;;  %v7057_v39 = vpop.f32.mrb[98].mxu0  ;;  %7357 = vmatpush3.bf16.msra.mxu0 %v2129_v27 }
 0x540   : > { %v7078_v32 = vadd.f32 %v7077_v30, %v7076_v28  ;;  %v7079_v34 = vpop.f32.mrb[98].mxu1  ;;  %7379 = vmatpush3.bf16.msra.mxu1 %v2145_v22  ;;  %v7058_v43 = vpop.f32.mrb[99].mxu0  ;;  %7358 = vmatprep.subr.bf16.mxu0 %v2138_v29 }
 0x541   : > { %v7080_v38 = vpop.f32.mrb[99].mxu1  ;;  %7380 = vmatprep.subr.bf16.mxu1 %v2154_v24  ;;  %v4559_v47 = vadd.f32 %v7056_v37, %v9702_v48 }
 0x543   : > { %v4599_v42 = vadd.f32 %v7078_v32, %v4559_v47  ;;  %7359 = vmatpush3.bf16.msra.mxu0 %v2130_v41 }
 0x544   : > { %7381 = vmatpush3.bf16.msra.mxu1 %v2146_v36  ;;  %7360 = vmatprep.subr.bf16.mxu0 %v2139_v45 }
 0x545   : > { %7382 = vmatprep.subr.bf16.mxu1 %v2155_v40 }
 0x547   : > { %7361 = vmatpush3.bf16.msra.mxu0 %v2131_v49 }
 0x548   : > { %7383 = vmatpush3.bf16.msra.mxu1 %v2147_v50 }
 0x54a   : > { %5117 = vmatmul.mubr.bf16.vlgmr.msra.gmra.mrb[124].mxu0 %v5964_v44 }
 0x54b   : > { %5157 = vmatmul.mubr.bf16.vlgmr.msra.gmra.mrb[124].mxu1 %v5966_v51 }
 0x55d   : > { %v7098_v52 = vpop.f32.mrb[100].mxu0 }
 0x55e   : > { %v7120_v46 = vpop.f32.mrb[100].mxu1  ;;  %v7099_v48 = vpop.f32.mrb[101].mxu0 }
 0x55f   : > { %v7121_v53 = vpop.f32.mrb[101].mxu1  ;;  %v7100_v54 = vadd.f32 %v7099_v48, %v7098_v52  ;;  %v7101_v4 = vpop.f32.mrb[102].mxu0 }
 0x560   : > { %v7122_v56 = vadd.f32 %v7121_v53, %v7120_v46  ;;  %v7123_v5 = vpop.f32.mrb[102].mxu1  ;;  %v7102_v57 = vpop.f32.mrb[103].mxu0 }
 0x561   : > { %v7124_v58 = vpop.f32.mrb[103].mxu1  ;;  %v4639_v8 = vadd.f32 %v7100_v54, %v4599_v42 }
 0x563   : > { %v4679_v9 = vadd.f32 %v7122_v56, %v4639_v8 }
 0x57d   : > { %v7142_v1 = vpop.f32.mrb[104].mxu0 }
 0x57e   : > { %v7164_v59 = vpop.f32.mrb[104].mxu1  ;;  %v7143_v61 = vpop.f32.mrb[105].mxu0 }
 0x57f   : > { %v7165_v2 = vpop.f32.mrb[105].mxu1  ;;  %v7144_v62 = vadd.f32 %v7143_v61, %v7142_v1  ;;  %v7145_v3 = vpop.f32.mrb[106].mxu0 }
 0x580   : > { %v7166_v0 = vadd.f32 %v7165_v2, %v7164_v59  ;;  %v7167_v55 = vpop.f32.mrb[106].mxu1  ;;  %v7146_v7 = vpop.f32.mrb[107].mxu0 }
 0x581   : > { %v7168_v60 = vpop.f32.mrb[107].mxu1  ;;  %v4719_v11 = vadd.f32 %v7144_v62, %v4679_v9  ;;  %v555_v55 = vld [vmem:[#allocation2] sm:$0xff] }
 0x583   : > { %v4759_v63 = vadd.f32 %v7166_v0, %v4719_v11 }
 0x59d   : > { %v7186_v13 = vpop.f32.mrb[108].mxu0 }
 0x59e   : > { %v7208_v6 = vpop.f32.mrb[108].mxu1  ;;  %v7187_v15 = vpop.f32.mrb[109].mxu0 }
 0x59f   : > { %v7209_v10 = vpop.f32.mrb[109].mxu1  ;;  %v7188_v17 = vadd.f32 %v7187_v15, %v7186_v13  ;;  %v7189_v19 = vpop.f32.mrb[110].mxu0  ;;  %v5970_v13 = vld [vmem:[#allocation9] ss:$0 sm:$0xff] (!%p5968_p2) }
 0x5a0   : > { %v7210_v12 = vadd.f32 %v7209_v10, %v7208_v6  ;;  %v7211_v14 = vpop.f32.mrb[110].mxu1  ;;  %v7190_v21 = vpop.f32.mrb[111].mxu0  ;;  %v5218_v19 = vld [vmem:[#allocation14 + $0x10] sm:$0xff] (!%p5968_p2) }
 0x5a1   : > { %v7212_v16 = vpop.f32.mrb[111].mxu1  ;;  %v4799_v23 = vadd.f32 %v7188_v17, %v4759_v63  ;;  %v5969_v63 = vld [vmem:[#allocation8] ss:$0 sm:$0xff] (!%p5968_p2)  ;;  %v5216_v17 = vld [vmem:[#allocation14] sm:$0xff] (!%p5968_p2)  ;;  %v8260_v14 = vmov (!%p5968_p2), 0.0|0.0  }
 0x5a2   : > { %7442 = vmatprep.subr.bf16.mxu0 (!%p5968_p2), %v8260_v14  ;;  %v5219_v16 = vld [vmem:[#allocation14 + $0x18] sm:$0xff] (!%p5968_p2) }
 0x5a3   : > { %v4839_v18 = vadd.f32 %v7210_v12, %v4799_v23  ;;  %v5217_v12 = vld [vmem:[#allocation14 + $0x8] sm:$0xff] (!%p5968_p2)  ;;  %v7446_v23 = vpack.c.bf16 (!%p5968_p2), %v5219_v16, %v5218_v19 }
 0x5a4   : > { %v7443_v21 = vpack.c.bf16 (!%p5968_p2), %v5217_v12, %v5216_v17  ;;  %v5377_v17 = vld [vmem:[#allocation17 + $0x218] sm:$0xff] (!%p5968_p2)  ;;  %v5370_v12 = vld [vmem:[#allocation17 + $0x1e0] sm:$0xff] (!%p5968_p2)  ;;  %v5383_v16 = vld [vmem:[#allocation17 + $0x248] sm:$0xff] (!%p5968_p2) }
 0x5a6   : > { %7444 = vmatpush3.bf16.msra.mxu0 (!%p5968_p2), %v7443_v21 }
 0x5a7   : > { %7445 = vmatprep.subr.bf16.mxu0 (!%p5968_p2), %v8260_v14 }
 0x5aa   : > { %7447 = vmatpush3.bf16.msra.mxu0 (!%p5968_p2), %v7446_v23  ;;  %v5389_v23 = vld [vmem:[#allocation17 + $0x278] sm:$0xff] (!%p5968_p2) }
 0x5ab   : > { %7448 = vmatprep.subr.bf16.mxu0 (!%p5968_p2), %v8260_v14 }
 0x5bd   : > { %v7230_v25 = vpop.f32.mrb[112].mxu0 }
 0x5be   : > { %v7252_v20 = vpop.f32.mrb[112].mxu1  ;;  %v7231_v27 = vpop.f32.mrb[113].mxu0 }
 0x5bf   : > { %v7253_v22 = vpop.f32.mrb[113].mxu1  ;;  %v7232_v29 = vadd.f32 %v7231_v27, %v7230_v25  ;;  %v7233_v31 = vpop.f32.mrb[114].mxu0  ;;  %v5221_v25 = vld [vmem:[#allocation14 + $0x28] sm:$0xff] (!%p5968_p2) }
 0x5c0   : > { %v7254_v24 = vadd.f32 %v7253_v22, %v7252_v20  ;;  %v7255_v26 = vpop.f32.mrb[114].mxu1  ;;  %v7234_v33 = vpop.f32.mrb[115].mxu0  ;;  %v5222_v31 = vld [vmem:[#allocation14 + $0x30] sm:$0xff] (!%p5968_p2) }
 0x5c1   : > { %v7256_v28 = vpop.f32.mrb[115].mxu1  ;;  %v4879_v35 = vadd.f32 %v7232_v29, %v4839_v18  ;;  %v5220_v18 = vld [vmem:[#allocation14 + $0x20] sm:$0xff] (!%p5968_p2)  ;;  %v5223_v26 = vld [vmem:[#allocation14 + $0x38] sm:$0xff] (!%p5968_p2) }
 0x5c2   : > { %v7449_v20 = vpack.c.bf16 (!%p5968_p2), %v5221_v25, %v5220_v18  ;;  %v7452_v33 = vpack.c.bf16 (!%p5968_p2), %v5223_v26, %v5222_v31  ;;  %v5224_v28 = vld [vmem:[#allocation14 + $0x40] sm:$0xff] (!%p5968_p2)  ;;  %v7490_v25 = vpack.c.bf16 (!%p5968_p2), %v5389_v23, %v5383_v16 }
 0x5c3   : > { %v4919_v30 = vadd.f32 %v7254_v24, %v4879_v35  ;;  %v5225_v35 = vld [vmem:[#allocation14 + $0x48] sm:$0xff] (!%p5968_p2) }
 0x5c4   : > { %7450 = vmatpush3.bf16.msra.mxu0 (!%p5968_p2), %v7449_v20  ;;  %v5382_v18 = vld [vmem:[#allocation17 + $0x240] sm:$0xff] (!%p5968_p2)  ;;  %v5388_v20 = vld [vmem:[#allocation17 + $0x270] sm:$0xff] (!%p5968_p2) }
 0x5c5   : > { %7451 = vmatprep.subr.bf16.mxu0 (!%p5968_p2), %v8260_v14  ;;  %v5402_v16 = vld [vmem:[#allocation17 + $0x2e0] sm:$0xff] (!%p5968_p2) }
 0x5c8   : > { %7453 = vmatpush3.bf16.msra.mxu0 (!%p5968_p2), %v7452_v33  ;;  %v5971_v33 = vld [vmem:[#allocation11] ss:$0 sm:$0xff] (!%p5968_p2) }
 0x5c9   : > { %7454 = vmatprep.subr.bf16.mxu0 (!%p5968_p2), %v8260_v14 }
 0x5dd   : > { %v7274_v37 = vpop.f32.mrb[116].mxu0 }
 0x5de   : > { %v7296_v32 = vpop.f32.mrb[116].mxu1  ;;  %v7275_v39 = vpop.f32.mrb[117].mxu0 }
 0x5df   : > { %v7297_v34 = vpop.f32.mrb[117].mxu1  ;;  %v7276_v41 = vadd.f32 %v7275_v39, %v7274_v37  ;;  %v7277_v43 = vpop.f32.mrb[118].mxu0  ;;  %v5226_v37 = vld [vmem:[#allocation14 + $0x50] sm:$0xff] (!%p5968_p2)  ;;  %v8262_v39 = vmov (!%p5968_p2), 0.0  }
 0x5e0   : > { %v7298_v36 = vadd.f32 %v7297_v34, %v7296_v32  ;;  %v7299_v38 = vpop.f32.mrb[118].mxu1  ;;  %v7278_v45 = vpop.f32.mrb[119].mxu0  ;;  %v5227_v32 = vld [vmem:[#allocation14 + $0x58] sm:$0xff] (!%p5968_p2)  ;;  %7439 = vmatprep.mubr.msk.f32.mxu0 (!%p5968_p2), %vm8261_vm0, %v8262_v39  ;;  %5470 = vmatprep.mubr.f32.mxu1 (!%p5968_p2), %v8262_v39 }
 0x5e1   : > { %v7300_v40 = vpop.f32.mrb[119].mxu1  ;;  %v4959_v47 = vadd.f32 %v7276_v41, %v4919_v30  ;;  %v7455_v30 = vpack.c.bf16 (!%p5968_p2), %v5225_v35, %v5224_v28  ;;  %v7458_v34 = vpack.c.bf16 (!%p5968_p2), %v5227_v32, %v5226_v37  ;;  %v5228_v41 = vld [vmem:[#allocation14 + $0x60] sm:$0xff] (!%p5968_p2)  ;;  %v5230_v38 = vld [vmem:[#allocation14 + $0x70] sm:$0xff] (!%p5968_p2)  ;;  %v5231_v45 = vld [vmem:[#allocation14 + $0x78] sm:$0xff] (!%p5968_p2) }
 0x5e2   : > { %v7464_v40 = vpack.c.bf16 (!%p5968_p2), %v5231_v45, %v5230_v38  ;;  %v5312_v35 = vld [vmem:[#allocation17 + $0x10] sm:$0xff] (!%p5968_p2)  ;;  %v5972_v37 = vld [vmem:[#allocation12] ss:$0 sm:$0xff] (!%p5968_p2) }
 0x5e3   : > { %v4999_v42 = vadd.f32 %v7298_v36, %v4959_v47  ;;  %7456 = vmatpush3.bf16.msra.mxu0 (!%p5968_p2), %v7455_v30  ;;  %v5229_v36 = vld [vmem:[#allocation14 + $0x68] sm:$0xff] (!%p5968_p2)  ;;  %v5325_v32 = vld [vmem:[#allocation17 + $0x78] sm:$0xff] (!%p5968_p2)  ;;  %v5324_v45 = vld [vmem:[#allocation17 + $0x70] sm:$0xff] (!%p5968_p2) }
 0x5e4   : > { %7457 = vmatprep.subr.bf16.mxu0 (!%p5968_p2), %v8260_v14  ;;  %v7461_v43 = vpack.c.bf16 (!%p5968_p2), %v5229_v36, %v5228_v41  ;;  %v5311_v47 = vld [vmem:[#allocation17 + $0x8] sm:$0xff] (!%p5968_p2)  ;;  %v5318_v30 = vld [vmem:[#allocation17 + $0x40] sm:$0xff] (!%p5968_p2) }
 0x5e5   : > { %v7500_v36 = vpack.c.bf16 (!%p5968_p2), %v5318_v30, %v5312_v35 }
 0x5e7   : > { %7459 = vmatpush3.bf16.msra.mxu0 (!%p5968_p2), %v7458_v34  ;;  %v5331_v34 = vld [vmem:[#allocation17 + $0xa8] sm:$0xff] (!%p5968_p2) }
 0x5e8   : > { %7460 = vmatprep.subr.bf16.mxu0 (!%p5968_p2), %v8260_v14  ;;  %v7502_v38 = vpack.c.bf16 (!%p5968_p2), %v5331_v34, %v5325_v32 }
 0x5eb   : > { %7462 = vmatpush3.bf16.msra.mxu0 (!%p5968_p2), %v7461_v43 }
 0x5ec   : > { %7463 = vmatprep.subr.bf16.mxu0 (!%p5968_p2), %v8260_v14  ;;  %v5376_v14 = vld [vmem:[#allocation17 + $0x210] sm:$0xff] (!%p5968_p2) }
 0x5ed   : > { %v7488_v21 = vpack.c.bf16 (!%p5968_p2), %v5376_v14, %v5370_v12  ;;  %v5397_v12 = vld [vmem:[#allocation17 + $0x2b8] sm:$0xff] (!%p5968_p2)  ;;  %v5403_v14 = vld [vmem:[#allocation17 + $0x2e8] sm:$0xff] (!%p5968_p2) }
 0x5ee   : > { %v7526_v23 = vpack.c.bf16 (!%p5968_p2), %v5403_v14, %v5397_v12 }
 0x5ef   : > { %7465 = vmatpush3.bf16.msra.mxu0 (!%p5968_p2), %v7464_v40  ;;  %v5330_v40 = vld [vmem:[#allocation17 + $0xa0] sm:$0xff] (!%p5968_p2) }
 0x5fd   : > { %v7318_v49 = vpop.f32.mrb[120].mxu0 }
 0x5fe   : > { %v7340_v50 = vpop.f32.mrb[120].mxu1  ;;  %v7319_v44 = vpop.f32.mrb[121].mxu0 }
 0x5ff   : > { %v7341_v51 = vpop.f32.mrb[121].mxu1  ;;  %v7320_v52 = vadd.f32 %v7319_v44, %v7318_v49  ;;  %v7321_v48 = vpop.f32.mrb[122].mxu0  ;;  %v5310_v49 = vld [vmem:[#allocation17] sm:$0xff] (!%p5968_p2)  ;;  %v5316_v44 = vld [vmem:[#allocation17 + $0x30] sm:$0xff] (!%p5968_p2) }
 0x600   : > { %v7342_v46 = vadd.f32 %v7341_v51, %v7340_v50  ;;  %v7343_v53 = vpop.f32.mrb[122].mxu1  ;;  %v7322_v54 = vpop.f32.mrb[123].mxu0  ;;  %v5313_v51 = vld [vmem:[#allocation17 + $0x18] sm:$0xff] (!%p5968_p2) }
 0x601   : > { %v7344_v56 = vpop.f32.mrb[123].mxu1  ;;  %v5039_v4 = vadd.f32 %v7320_v52, %v4999_v42  ;;  %v5317_v42 = vld [vmem:[#allocation17 + $0x38] sm:$0xff] (!%p5968_p2)  ;;  %v5319_v52 = vld [vmem:[#allocation17 + $0x48] sm:$0xff] (!%p5968_p2) }
 0x602   : > { %v7466_v50 = vpack.c.bf16 (!%p5968_p2), %v5317_v42, %v5311_v47  ;;  %v7498_v48 = vpack.c.bf16 (!%p5968_p2), %v5319_v52, %v5313_v51  ;;  %v5323_v53 = vld [vmem:[#allocation17 + $0x68] sm:$0xff] (!%p5968_p2)  ;;  %v5329_v54 = vld [vmem:[#allocation17 + $0x98] sm:$0xff] (!%p5968_p2)  ;;  %v5322_v56 = vld [vmem:[#allocation17 + $0x60] sm:$0xff] (!%p5968_p2) }
 0x603   : > { %v5079_v5 = vadd.f32 %v7342_v46, %v5039_v4  ;;  %v7468_v46 = vpack.c.bf16 (!%p5968_p2), %v5316_v44, %v5310_v49  ;;  %v5328_v4 = vld [vmem:[#allocation17 + $0x90] sm:$0xff] (!%p5968_p2)  ;;  %v5337_v47 = vld [vmem:[#allocation17 + $0xd8] sm:$0xff] (!%p5968_p2)  ;;  %v5343_v42 = vld [vmem:[#allocation17 + $0x108] sm:$0xff] (!%p5968_p2)  ;;  %v7504_v49 = vpack.c.bf16 (!%p5968_p2), %v5330_v40, %v5324_v45 }
 0x604   : > { %7467 = vmatprep.subr.bf16.mxu1 (!%p5968_p2), %v7466_v50  ;;  %7499 = vmatprep.subr.bf16.mxu0 (!%p5968_p2), %v7498_v48  ;;  %v5336_v50 = vld [vmem:[#allocation17 + $0xd0] sm:$0xff] (!%p5968_p2)  ;;  %v5342_v44 = vld [vmem:[#allocation17 + $0x100] sm:$0xff] (!%p5968_p2)  ;;  %v5349_v51 = vld [vmem:[#allocation17 + $0x138] sm:$0xff] (!%p5968_p2) }
 0x605   : > { %7469 = vmatpush1.bf16.msra.mxu1 (!%p5968_p2), %v7468_v46  ;;  %v5355_v52 = vld [vmem:[#allocation17 + $0x168] sm:$0xff] (!%p5968_p2)  ;;  %v7508_v46 = vpack.c.bf16 (!%p5968_p2), %v5342_v44, %v5336_v50 }
 0x606   : > { %v7510_v48 = vpack.c.bf16 (!%p5968_p2), %v5355_v52, %v5349_v51  ;;  %v5350_v51 = vld [vmem:[#allocation17 + $0x140] sm:$0xff] (!%p5968_p2)  ;;  %v5356_v52 = vld [vmem:[#allocation17 + $0x170] sm:$0xff] (!%p5968_p2) }
 0x61d   : > { %v7362_v57 = vpop.f32.mrb[124].mxu0 }
 0x61e   : > { %v7384_v58 = vpop.f32.mrb[124].mxu1  ;;  %v7363_v8 = vpop.f32.mrb[125].mxu0 }
 0x61f   : > { %v7385_v9 = vpop.f32.mrb[125].mxu1  ;;  %v7364_v1 = vadd.f32 %v7363_v8, %v7362_v57  ;;  %v7365_v61 = vpop.f32.mrb[126].mxu0  ;;  %v7472_v57 = vpack.c.bf16 (!%p5968_p2), %v5328_v4, %v5322_v56  ;;  %v5341_v8 = vld [vmem:[#allocation17 + $0xf8] sm:$0xff] (!%p5968_p2)  ;;  %v5367_v4 = vld [vmem:[#allocation17 + $0x1c8] sm:$0xff] (!%p5968_p2) }
 0x620   : > { %v7386_v59 = vadd.f32 %v7385_v9, %v7384_v58  ;;  %v7387_v2 = vpop.f32.mrb[126].mxu1  ;;  %v7366_v62 = vpop.f32.mrb[127].mxu0  ;;  %v5335_v58 = vld [vmem:[#allocation17 + $0xc8] sm:$0xff] (!%p5968_p2)  ;;  %v5361_v56 = vld [vmem:[#allocation17 + $0x198] sm:$0xff] (!%p5968_p2) }
 0x621   : > { %v7388_v0 = vpop.f32.mrb[127].mxu1  ;;  %v5119_v3 = vadd.f32 %v7364_v1, %v5079_v5  ;;  %5169 = sbr.rel (%p5968_p2) target bundleno = 2512 (0x9d0), region = 116  ;;  %v7470_v5 = vpack.c.bf16 (!%p5968_p2), %v5329_v54, %v5323_v53  ;;  %v7474_v9 = vpack.c.bf16 (!%p5968_p2), %v5341_v8, %v5335_v58  ;;  %v5334_v1 = vld [vmem:[#allocation17 + $0xc0] sm:$0xff] (!%p5968_p2)  ;;  %v5347_v2 = vld [vmem:[#allocation17 + $0x128] sm:$0xff] (!%p5968_p2)  ;;  %v5353_v62 = vld [vmem:[#allocation17 + $0x158] sm:$0xff] (!%p5968_p2) }
 0x622   : > { %v5346_v0 = vld [vmem:[#allocation17 + $0x120] sm:$0xff] (!%p5968_p2)  ;;  %v5348_v53 = vld [vmem:[#allocation17 + $0x130] sm:$0xff] (!%p5968_p2) }
 0x623   : > { %v5159_v7 = vadd.f32 %v7386_v59, %v5119_v3  ;;  %7471 = vmatprep.subr.bf16.mxu1 (!%p5968_p2), %v7470_v5  ;;  %v5340_v59 = vld [vmem:[#allocation17 + $0xf0] sm:$0xff] (!%p5968_p2)  ;;  %v7478_v3 = vpack.c.bf16 (!%p5968_p2), %v5353_v62, %v5347_v2  ;;  %v5354_v54 = vld [vmem:[#allocation17 + $0x160] sm:$0xff] (!%p5968_p2) }
 0x624   : > { %7473 = vmatpush1.bf16.msra.mxu1 (!%p5968_p2), %v7472_v57  ;;  %v7476_v61 = vpack.c.bf16 (!%p5968_p2), %v5340_v59, %v5334_v1  ;;  %v7512_v5 = vpack.c.bf16 (!%p5968_p2), %v5354_v54, %v5348_v53  ;;  %v7514_v57 = vpack.c.bf16 (!%p5968_p2), %v5367_v4, %v5361_v56  ;;  %v5360_v58 = vld [vmem:[#allocation17 + $0x190] sm:$0xff] (!%p5968_p2)  ;;  %v5366_v8 = vld [vmem:[#allocation17 + $0x1c0] sm:$0xff] (!%p5968_p2)  ;;  %v5379_v1 = vld [vmem:[#allocation17 + $0x228] sm:$0xff] (!%p5968_p2)  ;;  %v7544_v53 = vpack.c.bf16 (!%p5968_p2), %v5356_v52, %v5350_v51 }
 0x625   : > { %v5164_v60 = vadd.f32 %v5159_v7, %v555_v55  ;;  %7475 = vmatprep.subr.bf16.mxu1 (!%p5968_p2), %v7474_v9  ;;  %v5352_v55 = vld [vmem:[#allocation17 + $0x150] sm:$0xff] (!%p5968_p2)  ;;  %v5373_v9 = vld [vmem:[#allocation17 + $0x1f8] sm:$0xff] (!%p5968_p2)  ;;  %v7516_v59 = vpack.c.bf16 (!%p5968_p2), %v5366_v8, %v5360_v58  ;;  %v5378_v62 = vld [vmem:[#allocation17 + $0x220] sm:$0xff] (!%p5968_p2) }
 0x626   : > { %v7480_v7 = vpack.c.bf16 (!%p5968_p2), %v5352_v55, %v5346_v0  ;;  %v5372_v2 = vld [vmem:[#allocation17 + $0x1f0] sm:$0xff] (!%p5968_p2)  ;;  %v5385_v0 = vld [vmem:[#allocation17 + $0x258] sm:$0xff] (!%p5968_p2)  ;;  %v5362_v56 = vld [vmem:[#allocation17 + $0x1a0] sm:$0xff] (!%p5968_p2) }
 0x627   : > { %5165 = vst [vmem:[#allocation2] sm:$0xff] %v5164_v60  ;;  %v5359_v60 = vld [vmem:[#allocation17 + $0x188] sm:$0xff] (!%p5968_p2)  ;;  %v7520_v55 = vpack.c.bf16 (!%p5968_p2), %v5378_v62, %v5372_v2  ;;  %v5374_v8 = vld [vmem:[#allocation17 + $0x200] sm:$0xff] (!%p5968_p2) }
 0x628   : > { %7477 = vmatpush1.bf16.msra.mxu1 %v7476_v61  ;;  %v7518_v61 = vpack.c.bf16 %v5379_v1, %v5373_v9  ;;  %v5375_v4 = vld [vmem:[#allocation17 + $0x208] sm:$0xff]  ;;  %v5380_v9 = vld [vmem:[#allocation17 + $0x230] sm:$0xff]  ;;  %v5386_v62 = vld [vmem:[#allocation17 + $0x260] sm:$0xff] }
 0x629   : > { %7479 = vmatprep.subr.bf16.mxu1 %v7478_v3  ;;  %v5391_v3 = vld [vmem:[#allocation17 + $0x288] sm:$0xff] }
 0x62a   : > { %v5387_v1 = vld [vmem:[#allocation17 + $0x268] sm:$0xff] }
 0x62c   : > { %7481 = vmatpush1.bf16.msra.mxu1 %v7480_v7  ;;  %v7522_v7 = vpack.c.bf16 %v5391_v3, %v5385_v0  ;;  %v5392_v0 = vld [vmem:[#allocation17 + $0x290] sm:$0xff]  ;;  %v5399_v3 = vld [vmem:[#allocation17 + $0x2c8] sm:$0xff] }
 0x62e   : > { %v5170_v11 = vld [vmem:[#allocation2] sm:$0xff] }
 0x62f   : > { %v5178_v6 = vmul.f32 %v5969_v63, %v5170_v11  ;;  %v5365_v11 = vld [vmem:[#allocation17 + $0x1b8] sm:$0xff]  ;;  %v5358_v63 = vld [vmem:[#allocation17 + $0x180] sm:$0xff] }
 0x631   : > { %v5186_v15 = vadd.f32 %v5970_v13, %v5178_v6  ;;  %v7482_v13 = vpack.c.bf16 %v5365_v11, %v5359_v60  ;;  %v5364_v6 = vld [vmem:[#allocation17 + $0x1b0] sm:$0xff]  ;;  %v5390_v11 = vld [vmem:[#allocation17 + $0x280] sm:$0xff] }
 0x632   : > { %v5384_v60 = vld [vmem:[#allocation17 + $0x250] sm:$0xff] }
 0x633   : > { %v5187_v10 = vmax.f32 %v5186_v15, 0.0  ;;  %v7484_v15 = vpack.c.bf16 %v5364_v6, %v5358_v63  ;;  %7483 = vmatprep.subr.bf16.mxu1 %v7482_v13  ;;  %v7524_v63 = vpack.c.bf16 %v5390_v11, %v5384_v60  ;;  %v5395_v13 = vld [vmem:[#allocation17 + $0x2a8] sm:$0xff]  ;;  %v5401_v6 = vld [vmem:[#allocation17 + $0x2d8] sm:$0xff]  ;;  %v5398_v11 = vld [vmem:[#allocation17 + $0x2c0] sm:$0xff] }
 0x635   : > { %5188 = vadd.xlane.f32.xlu0 %v5187_v10  ;;  %7485 = vmatpush1.bf16.msra.mxu1 %v7484_v15  ;;  %v7494_v15 = vpack.c.bf16 %v5401_v6, %v5395_v13 }
 0x6c2   : > { %v5189_v27 = vpop.xlane.xlu0 %5188 }
 0x6c3   : > { %v5191_v22 = vmul.f32 0.0078125, %v5189_v27  ;;  %v7492_v27 = vpack.c.bf16 %v5388_v20, %v5382_v18  ;;  %v5321_v20 = vld [vmem:[#allocation17 + $0x58] sm:$0xff] }
 0x6c5   : > { %v9738_v29 = vsub.f32 %v5187_v10, %v5191_v22  ;;  %v5371_v10 = vld [vmem:[#allocation17 + $0x1e8] sm:$0xff] }
 0x6c6   : > { %v7486_v19 = vpack.c.bf16 %v5377_v17, %v5371_v10  ;;  %v5394_v10 = vld [vmem:[#allocation17 + $0x2a0] sm:$0xff]  ;;  %v5400_v17 = vld [vmem:[#allocation17 + $0x2d0] sm:$0xff] }
 0x6c7   : > { %v5193_v24 = vmul.f32 %v9738_v29, %v9738_v29 }
 0x6c8   : > { %7487 = vmatprep.subr.bf16.mxu1 %v7486_v19  ;;  %v7496_v19 = vpack.c.bf16 %v5400_v17, %v5394_v10 }
 0x6c9   : > { %5194 = vadd.xlane.f32.xlu0 %v5193_v24  ;;  %7489 = vmatpush1.bf16.msra.mxu1 %v7488_v21  ;;  %v5396_v21 = vld [vmem:[#allocation17 + $0x2b0] sm:$0xff] }
 0x6ca   : > { %7491 = vmatprep.subr.bf16.mxu1 %v7490_v25  ;;  %v7528_v18 = vpack.c.bf16 %v5402_v16, %v5396_v21  ;;  %v5315_v25 = vld [vmem:[#allocation17 + $0x28] sm:$0xff] }
 0x6cd   : > { %7493 = vmatpush1.bf16.msra.mxu1 %v7492_v27  ;;  %v7530_v27 = vpack.c.bf16 %v5321_v20, %v5315_v25  ;;  %v5974_v25 = vld [vmem:[#allocation18] ss:$0 sm:$0xff]  ;;  %v5975_v20 = vld [vmem:[#allocation20] ss:$0 sm:$0xff] }
 0x6ce   : > { %7495 = vmatprep.subr.bf16.mxu1 %v7494_v15 }
 0x6d1   : > { %7497 = vmatpush1.bf16.msra.mxu1 %v7496_v19 }
 0x6d2   : > { %7531 = vmatprep.subr.bf16.mxu1 %v7530_v27 }
 0x756   : > { %v5195_v22 = vpop.xlane.xlu0 %5194 }
 0x757   : > { %v5196_v24 = vmul.f32 0.0078125, %v5195_v22  ;;  %v5973_v22 = vld [vmem:[#allocation15] ss:$0 sm:$0xff] }
 0x759   : > { %v5197_v31 = vadd.f32 1e-05, %v5196_v24  ;;  %v5314_v24 = vld [vmem:[#allocation17 + $0x20] sm:$0xff] }
 0x75b   : > { %7840 = vrsqrt.f32 %v5197_v31  ;;  %v5320_v31 = vld [vmem:[#allocation17 + $0x50] sm:$0xff] }
 0x765   : > { %v7841_v26 = vpop.eup %7840 }
 0x766   : > { %v5199_v28 = vmul.f32 %v7841_v26, %v9738_v29  ;;  %v7506_v29 = vpack.c.bf16 %v5343_v42, %v5337_v47  ;;  %v5338_v47 = vld [vmem:[#allocation17 + $0xe0] sm:$0xff]  ;;  %v5344_v42 = vld [vmem:[#allocation17 + $0x110] sm:$0xff] }
 0x767   : > { %v7540_v50 = vpack.c.bf16 %v5344_v42, %v5338_v47 }
 0x768   : > { %v5207_v41 = vmul.f32 %v5971_v33, %v5199_v28  ;;  %v5327_v33 = vld [vmem:[#allocation17 + $0x88] sm:$0xff]  ;;  %v5333_v28 = vld [vmem:[#allocation17 + $0xb8] sm:$0xff] }
 0x769   : > { %v7534_v34 = vpack.c.bf16 %v5333_v28, %v5327_v33 }
 0x76a   : > { %v5215_v43 = vadd.f32 %v5972_v37, %v5207_v41  ;;  %v7532_v37 = vpack.c.bf16 %v5320_v31, %v5314_v24  ;;  %v5326_v41 = vld [vmem:[#allocation17 + $0x80] sm:$0xff] }
 0x76c   : > { %7440 = vmatmul.mubr.f32.vlgmr.msra.gmra.mrb[0].mxu0 %v5215_v43  ;;  %v5339_v43 = vld [vmem:[#allocation17 + $0xe8] sm:$0xff] }
 0x76d   : > { %7501 = vmatpush1.bf16.msra.mxu0 %v7500_v36  ;;  %5541 = vmatprep.mubr.f32.mxu0 %v8262_v39  ;;  %v5332_v36 = vld [vmem:[#allocation17 + $0xb0] sm:$0xff] }
 0x76e   : > { %7503 = vmatprep.subr.bf16.mxu0 %v7502_v38  ;;  %v5345_v38 = vld [vmem:[#allocation17 + $0x118] sm:$0xff]  ;;  %v7536_v45 = vpack.c.bf16 %v5332_v36, %v5326_v41 }
 0x76f   : > { %v7538_v40 = vpack.c.bf16 %v5345_v38, %v5339_v43 }
 0x771   : > { %7505 = vmatpush1.bf16.msra.mxu0 %v7504_v49  ;;  %v5351_v49 = vld [vmem:[#allocation17 + $0x148] sm:$0xff] }
 0x772   : > { %7507 = vmatprep.subr.bf16.mxu0 %v7506_v29  ;;  %v5357_v29 = vld [vmem:[#allocation17 + $0x178] sm:$0xff] }
 0x773   : > { %v7542_v44 = vpack.c.bf16 %v5357_v29, %v5351_v49 }
 0x775   : > { %7509 = vmatpush1.bf16.msra.mxu0 %v7508_v46  ;;  %v5363_v46 = vld [vmem:[#allocation17 + $0x1a8] sm:$0xff] }
 0x776   : > { %7511 = vmatprep.subr.bf16.mxu0 %v7510_v48  ;;  %v5369_v48 = vld [vmem:[#allocation17 + $0x1d8] sm:$0xff] }
 0x777   : > { %v7546_v54 = vpack.c.bf16 %v5369_v48, %v5363_v46 }
 0x779   : > { %7513 = vmatpush1.bf16.msra.mxu0 %v7512_v5  ;;  %v5381_v5 = vld [vmem:[#allocation17 + $0x238] sm:$0xff] }
 0x77a   : > { %7515 = vmatprep.subr.bf16.mxu0 %v7514_v57  ;;  %v7550_v58 = vpack.c.bf16 %v5381_v5, %v5375_v4 }
 0x77d   : > { %7517 = vmatpush1.bf16.msra.mxu0 %v7516_v59  ;;  %v5393_v59 = vld [vmem:[#allocation17 + $0x298] sm:$0xff] }
 0x77e   : > { %7519 = vmatprep.subr.bf16.mxu0 %v7518_v61  ;;  %v7552_v61 = vpack.c.bf16 %v5380_v9, %v5374_v8  ;;  %v7554_v2 = vpack.c.bf16 %v5393_v59, %v5387_v1 }
 0x781   : > { %7521 = vmatpush1.bf16.msra.mxu0 %v7520_v55  ;;  %v5405_v55 = vld [vmem:[#allocation17 + $0x2f8] sm:$0xff] }
 0x782   : > { %7523 = vmatprep.subr.bf16.mxu0 %v7522_v7  ;;  %v7556_v7 = vpack.c.bf16 %v5392_v0, %v5386_v62  ;;  %v7558_v60 = vpack.c.bf16 %v5405_v55, %v5399_v3 }
 0x785   : > { %7525 = vmatpush1.bf16.msra.mxu0 %v7524_v63  ;;  %v5404_v63 = vld [vmem:[#allocation17 + $0x2f0] sm:$0xff] }
 0x786   : > { %7527 = vmatprep.subr.bf16.mxu0 %v7526_v23  ;;  %v7560_v13 = vpack.c.bf16 %v5404_v63, %v5398_v11 }
 0x789   : > { %7529 = vmatpush1.bf16.msra.mxu0 %v7528_v18 }
 0x83f   : > { %v5305_v26 = vpop.f32.mrb[0].mxu0 }
 0x840   : > { %v5306_v35 = vadd.f32 %v5973_v22, %v5305_v26  ;;  %v7441_v30 = vpop.f32.mrb[1].mxu0 }
 0x842   : > { %v5309_v32 = vmax.f32 %v5306_v35, 0.0 }
 0x844   : > { %5471 = vmatmul.mubr.f32.vlgmr.msra.gmra.mrb[0].mxu1 %v5309_v32  ;;  %5542 = vmatmul.mubr.f32.vlgmr.msra.gmra.mrb[2].mxu0 %v5309_v32 }
 0x845   : > { %7533 = vmatpush1.bf16.msra.mxu1 %v7532_v37  ;;  %5612 = vmatprep.mubr.f32.mxu1 %v8262_v39  ;;  %v5368_v39 = vld [vmem:[#allocation17 + $0x1d0] sm:$0xff] }
 0x846   : > { %7535 = vmatprep.subr.bf16.mxu1 %v7534_v34  ;;  %v7548_v57 = vpack.c.bf16 %v5368_v39, %v5362_v56 }
 0x849   : > { %7537 = vmatpush1.bf16.msra.mxu1 %v7536_v45 }
 0x84a   : > { %7539 = vmatprep.subr.bf16.mxu1 %v7538_v40 }
 0x84d   : > { %7541 = vmatpush1.bf16.msra.mxu1 %v7540_v50 }
 0x84e   : > { %7543 = vmatprep.subr.bf16.mxu1 %v7542_v44 }
 0x851   : > { %7545 = vmatpush1.bf16.msra.mxu1 %v7544_v53 }
 0x852   : > { %7547 = vmatprep.subr.bf16.mxu1 %v7546_v54 }
 0x855   : > { %7549 = vmatpush1.bf16.msra.mxu1 %v7548_v57 }
 0x856   : > { %7551 = vmatprep.subr.bf16.mxu1 %v7550_v58 }
 0x859   : > { %7553 = vmatpush1.bf16.msra.mxu1 %v7552_v61 }
 0x85a   : > { %7555 = vmatprep.subr.bf16.mxu1 %v7554_v2 }
 0x85d   : > { %7557 = vmatpush1.bf16.msra.mxu1 %v7556_v7 }
 0x85e   : > { %7559 = vmatprep.subr.bf16.mxu1 %v7558_v60 }
 0x861   : > { %7561 = vmatpush1.bf16.msra.mxu1 %v7560_v13 }
 0x864   : > { %5613 = vmatmul.mubr.f32.vlgmr.msra.gmra.mrb[2].mxu1 %v5309_v32 }
 0x917   : > { %v5472_v6 = vpop.f32.mrb[0].mxu1  ;;  %v5543_v15 = vpop.f32.mrb[2].mxu0 }
 0x918   : > { %v5619_v10 = vmul.f32 %v5543_v15, %v5472_v6  ;;  %v5474_v17 = vpop.f32.mrb[1].mxu1  ;;  %v5545_v12 = vpop.f32.mrb[3].mxu0 }
 0x919   : > { %v5620_v19 = vmul.f32 %v5545_v12, %v5474_v17 }
 0x937   : > { %v5614_v14 = vpop.f32.mrb[2].mxu1 }
 0x938   : > { %v5621_v21 = vmul.f32 %v5619_v10, %v5614_v14  ;;  %v5616_v16 = vpop.f32.mrb[3].mxu1 }
 0x939   : > { %v5622_v23 = vmul.f32 %v5620_v19, %v5616_v16 }
 0x93b   : > { %v5623_v18 = vadd.f32 %v5622_v23, %v5621_v21 }
 0x93d   : > { %5624 = vadd.xlane.f32.xlu1 %v5623_v18 }
 0x9ca   : > { %v5625_v27 = vpop.xlane.xlu1 %5624 }
 0x9cb   : > { %v5633_v22 = vmul.f32 %v5974_v25, %v5625_v27 }
 0x9cd   : > { %v5641_v24 = vadd.f32 %v5975_v20, %v5633_v22 }
 0x9cf   : > { %5643 = vst.msk [vmem:[#allocation21] sm:$0xff] %vm5642_vm1, %v5641_v24 }
 0x9d0 PF: > { %p7660_p7 = scmp.eq.s32.totalorder %s8345_s23, 1  ;;  %s8263_s14 = smov [#allocation21]  }
 0x9d1   : > { %s5651_s12 = sshll.u32 %s8263_s14, 4  ;;  %s5652_s12 = int_to_ptr.vmem [resolvable:$true] %s5651_s12 }
 0x9d2   : > { %s8154_s20 = scalar_lea.vmem %s5652_s12, 128  ;;  %p8161_p9 = scmp.lt.s32.totalorder %s5652_s12, %s5652_s12 }
 0x9d3   : > { %p8155_p10 = scmp.ne.s32.totalorder %s5652_s12, %s8154_s20  ;;  %p8162_p11 = scmp.lt.s32.totalorder %s8154_s20, %s8154_s20 }
 0x9d5   : > { %p8156_p6 = pnand %p8155_p10, %p7660_p7  ;;  %p8163_p3 = por %p8162_p11, %p8161_p9 }
 0x9d7   : > { %p8157_p1 = pneg %p8156_p6 }
 0x9d9   : > { %p8164_p8 = pnand %p8163_p3, %p8157_p1 }
 0x9db   : > { %8167 = shalt.err (!%p8164_p8)
}
 0x9dc   : > { %s9828_s24 = sld [smem:[#allocation33_spill]] }
 0x9e2   : > { %s8168_s0 = scalar_lea.hbm %s9828_s24, 128 }
 0x9e3   : > { %p8169_p5 = scmp.ne.s32.totalorder %s9828_s24, %s8168_s0  ;;  %p8174_p0 = scmp.lt.u32.totalorder %s8168_s0, %s9828_s24 }
 0x9e5   : > { %p8170_p13 = pnand %p8169_p5, %p7660_p7 }
 0x9e7   : > { %p8171_p12 = pneg %p8170_p13 }
 0x9e9   : > { %p8176_p4 = pnand %p8174_p0, %p8171_p12 }
 0x9eb   : > { %8179 = shalt.err (!%p8176_p4)
}
 0x9ec   : > { %7603 = dma.vmem_to_hbm [thread:$0]  (%p7660_p7), %s5652_s12, 128, %s9828_s24, [#allocation5]  }
 0x9ed   : > { %8225 = dma.done.wait (%p7660_p7), [#allocation5], 128  }
 0x9ee   : > { %8227 = vsyncadd (%p7660_p7), [#allocation5], 4294967168 }
 0x9ef PF: > { %p29_p2 = scmp.ge.s32.totalorder %s8562_s25, 4   ;;  %s9829_s17 = smov %s8234_s18 }
 0x9f0   : > { %s9830_s18 = smov %s8238_s19  ;;  %s9831_s19 = smov %s8573_s15 }
 0x9f1   : > { %s9832_s20 = smov %s8562_s25  ;;  %31 = sbr.rel (!%p29_p2) target bundleno = 14 (0xe), region = 158 }
 0x9f8   :  { %5664 = vsyncpa [#allocation4], 1 }
 0x9f9   :  { %5666 = vsyncpa [#allocation4 + $0x1], 1 }
 0x9fa   :  { %5667 = vsyncpa [#allocation7], 1 }
 0x9fb   :  { %5669 = vsyncpa [#allocation7 + $0x1], 1 }
 0x9fc   :  { %5670 = vsyncpa [#allocation10], 1 }
 0x9fd   :  { %5671 = vsyncpa [#allocation13], 1 }
 0x9fe   :  { %5672 = vsyncpa [#allocation16], 1 }
 0x9ff   :  { %5673 = vsyncpa [#allocation19], 1 }
 0xa00   :  { %5674 = vsyncpa [#allocation5], 1 }
 0xa01   :  { %5676 = vsyncpa [#allocation5 + $0x1], 1 }

</bundles_post_ra>
